<compile_context>
chip_gen: v7x
topology: tpu7x:2x2x1
jax: 0.10.0
libtpu: 0.0.40
codegen_flags: <defaults>
</compile_context>

<pallas_src>
import jax
import jax.numpy as jnp
import numpy as np
from jax import lax
from jax.experimental import pallas as pl
from jax.experimental.pallas import tpu as pltpu


def _round_up(x, m):
    return ((x + m - 1) // m) * m


def _vmem_limit_bytes():
    cap = 64 * 1024 * 1024
    try:
        info = pltpu.get_tpu_info()
        cap = int(getattr(info, "vmem_capacity_bytes", cap))
    except Exception:
        pass
    # leave headroom: 128 MiB parts (v5e/v6e) -> ~100 MiB, 64 MiB parts (v7x) -> ~48 MiB
    return int(min(max(cap - 16 * 1024 * 1024, 32 * 1024 * 1024), 100 * 1024 * 1024))


# ----------------------------------------------------------------------------
# Kernel A: fused fwd/bwd GRU recurrence + per-step hidden projection
# ----------------------------------------------------------------------------
def _make_gru_kernel(T, Hp, nb, unroll):
    def kernel(pf_ref, pb_ref, wf_ref, wb_ref, bf_ref, bb_ref, bp_ref,
               est_ref, ef_ref, eb_ref):

        def sigm(x):
            # one EUP pass (tanh) + cheap VALU ops instead of exp + reciprocal
            return 0.5 * jnp.tanh(0.5 * x) + 0.5

        def gru_step(h, x, w, b):
            # h: (Hp, nb), x: (3, nb), w: (4Hp+1, Hp+3), b: (4Hp+1, 1)
            hx = jnp.concatenate([h, x], axis=0)                     # (Hp+3, nb)
            z = jnp.dot(w, hx, preferred_element_type=jnp.float32) + b
            r = sigm(z[0:Hp])
            u = sigm(z[Hp:2 * Hp])
            n = jnp.tanh(z[3 * Hp:4 * Hp] + r * z[2 * Hp:3 * Hp])    # gi_n + r*gh_n
            h_new = n + u * (h - n)                                  # (1-u)*n + u*h
            proj_prev = z[4 * Hp:4 * Hp + 1]                         # (1,nb) = wp @ h_{t-1}
            return h_new, proj_prev

        def step(t, carry):
            h_f, h_b = carry
            h_f, pf_prev = gru_step(h_f, pf_ref[t], wf_ref[...], bf_ref[...])
            h_b, pb_prev = gru_step(h_b, pb_ref[t], wb_ref[...], bb_ref[...])
            # The fused projection row is of h_{t-1}:
            #   forward  -> est row t-1 (t=0 writes a harmless 0, overwritten at t=1)
            #   backward -> flipped row T-1-(t-1) = T-t (clamped; same overwrite trick)
            ef_ref[pl.ds(jnp.maximum(t - 1, 0), 1), :] = pf_prev
            eb_ref[pl.ds(jnp.minimum(T - t, T - 1), 1), :] = pb_prev
            return (h_f, h_b)

        h0 = jnp.zeros((Hp, nb), jnp.float32)
        h_f, h_b = lax.fori_loop(0, T, step, (h0, h0), unroll=unroll)

        # last-step projections (in-loop trick only covers h_0 .. h_{T-2})
        wpf = wf_ref[...][4 * Hp:4 * Hp + 1, 0:Hp]
        wpb = wb_ref[...][4 * Hp:4 * Hp + 1, 0:Hp]
        ef_ref[pl.ds(T - 1, 1), :] = jnp.dot(wpf, h_f, preferred_element_type=jnp.float32)
        eb_ref[pl.ds(0, 1), :] = jnp.dot(wpb, h_b, preferred_element_type=jnp.float32)

        # single lane-dense output store
        est_ref[...] = ef_ref[...] + eb_ref[...] + bp_ref[...]
    return kernel


# ----------------------------------------------------------------------------
# Kernel B: FCN_Regression + imputation + per-step loss partial sums
# ----------------------------------------------------------------------------
def _make_fcn_kernel(F8, cb, BT):
    def kernel(x_ref, m_ref, r_ref, wh_ref, beta_ref, wfin_ref, bfin_ref,
               imp_ref, part_ref):
        i = pl.program_id(0)
        X = x_ref[...]                       # (F8, cb): features on sublanes, (b,t) on lanes
        M = m_ref[...]
        R = r_ref[...]
        rnn_imp = M * X + (1.0 - M) * R
        # fused FCN matmul: [U_m | V1_m | V2] @ [X ; rnn_imp ; M]
        xcat = jnp.concatenate([X, rnn_imp, M], axis=0)              # (3*F8, cb)
        h = jnp.tanh(jnp.dot(wh_ref[...], xcat, preferred_element_type=jnp.float32)
                     + beta_ref[...])
        fcn = (jnp.dot(wfin_ref[...], h, preferred_element_type=jnp.float32)
               + bfin_ref[...])
        imp_ref[...] = M * X + (1.0 - M) * fcn

        # loss partials: padded feature rows contribute exactly 0 (zero-padded
        # weights / biases); padded (b,t) lanes are masked out of the FCN term.
        col = i * cb + lax.broadcasted_iota(jnp.int32, (F8, cb), 1)
        valid = (col < BT).astype(jnp.float32)
        d_r = R - X
        d_f = (fcn - rnn_imp) * valid
        rnn_sq = jnp.sum(d_r * d_r * M)
        m_sum = jnp.sum(M)
        fcn_sq = jnp.sum(d_f * d_f)

        lane = lax.broadcasted_iota(jnp.int32, (8, 128), 1)
        sub = lax.broadcasted_iota(jnp.int32, (8, 128), 0)
        row0 = sub == 0
        part_ref[...] = (jnp.where(row0 & (lane == 0), rnn_sq, 0.0)
                         + jnp.where(row0 & (lane == 1), m_sum, 0.0)
                         + jnp.where(row0 & (lane == 2), fcn_sq, 0.0))
    return kernel


# ----------------------------------------------------------------------------
# Parameter init (deterministic, PyTorch shapes)
# ----------------------------------------------------------------------------
def init_params(key, feature_num, rnn_hidden_size):
    H, F = rnn_hidden_size, feature_num
    keys = jax.random.split(key, 16)
    sH = 1.0 / np.sqrt(H)
    sP = 1.0 / np.sqrt(2 * H)
    sF = 1.0 / np.sqrt(F)

    def u(k, shape, scale):
        return jax.random.uniform(k, shape, jnp.float32, -scale, scale)

    return dict(
        # nn.GRU(3, H): weight_ih (3H,3), weight_hh (3H,H), biases (3H,) — gate order [r,z,n]
        wih_f=u(keys[0], (3 * H, 3), sH), whh_f=u(keys[1], (3 * H, H), sH),
        bih_f=u(keys[2], (3 * H,), sH), bhh_f=u(keys[3], (3 * H,), sH),
        wih_b=u(keys[4], (3 * H, 3), sH), whh_b=u(keys[5], (3 * H, H), sH),
        bih_b=u(keys[6], (3 * H,), sH), bhh_b=u(keys[7], (3 * H,), sH),
        # concated_hidden_project: Linear(2H, 1)
        w_proj=u(keys[8], (1, 2 * H), sP), b_proj=u(keys[9], (1,), sP),
        # FCN_Regression(feature_num)
        U=u(keys[10], (F, F), sF), V1=u(keys[11], (F, F), sF),
        V2=u(keys[12], (F, F), sF), beta=u(keys[13], (F,), sF),
        w_final=u(keys[14], (F, F), sF), b_final=u(keys[15], (F,), sF),
    )


# ----------------------------------------------------------------------------
# Pallas-backed forward
# ----------------------------------------------------------------------------
def mrnn_forward_pallas(inputs, params, training=True):
    Xf = jnp.asarray(inputs['forward']['X'], jnp.float32)
    Mf = jnp.asarray(inputs['forward']['missing_mask'], jnp.float32)
    Df = jnp.asarray(inputs['forward']['deltas'], jnp.float32)
    Xb = jnp.asarray(inputs['backward']['X'], jnp.float32)
    Mb = jnp.asarray(inputs['backward']['missing_mask'], jnp.float32)
    Db = jnp.asarray(inputs['backward']['deltas'], jnp.float32)

    B, T, F = Xf.shape
    H = params['whh_f'].shape[1]
    Hp = _round_up(H, 8)
    N = F * B
    vmem_limit = _vmem_limit_bytes()

    # ---- lane (N) block size: lane-dense, >=2 blocks when N is large enough
    #      (v7x megacore), capped so the streamed buffers + scratch fit VMEM ----
    nb = min(512, _round_up(N, 128))
    if N > 256:
        nb = min(nb, _round_up((N + 1) // 2, 128))
    bytes_per_lane = 4 * T * (2 * 2 * 8 + 2 + 2 + 2)   # dbuf'd streams + out + scratch
    cap = max(128, ((vmem_limit // 2) // max(bytes_per_lane, 1)) // 128 * 128)
    nb = max(128, min(nb, cap))
    N_pad = _round_up(N, nb)
    unroll = min(T, 8) if nb <= 256 else 2

    # ---- pack raw per-feature GRU inputs: (B,T,F)x3 -> (T, 3, N_pad), n = f*B + b ----
    def pack(X, M, D):
        s = jnp.stack([X, M, D], axis=0)              # (3, B, T, F)
        s = jnp.transpose(s, (2, 0, 3, 1)).reshape(T, 3, N)
        return jnp.pad(s, ((0, 0), (0, 0), (0, N_pad - N)))

    pf = pack(Xf, Mf, Df)
    pb = pack(Xb, Mb, Db)

    # ---- fused per-direction weight [r | z | gh_n | gi_n | proj] over [h ; x] ----
    def fuse(wih, whh, bih, bhh, wp):
        def whg(g):
            return jnp.pad(whh[g * H:(g + 1) * H, :], ((0, Hp - H), (0, Hp - H)))

        def wig(g):
            return jnp.pad(wih[g * H:(g + 1) * H, :], ((0, Hp - H), (0, 0)))

        def bg(b, g):
            return jnp.pad(b[g * H:(g + 1) * H], ((0, Hp - H),))

        zH = jnp.zeros((Hp, Hp), jnp.float32)
        z3 = jnp.zeros((Hp, 3), jnp.float32)
        wp_p = jnp.pad(wp, ((0, 0), (0, Hp - H)))
        w = jnp.concatenate([
            jnp.concatenate([whg(0), wig(0)], axis=1),                       # r
            jnp.concatenate([whg(1), wig(1)], axis=1),                       # z
            jnp.concatenate([whg(2), z3], axis=1),                           # gh_n
            jnp.concatenate([zH, wig(2)], axis=1),                           # gi_n
            jnp.concatenate([wp_p, jnp.zeros((1, 3), jnp.float32)], axis=1)  # proj(h)
        ], axis=0)                                                           # (4Hp+1, Hp+3)
        b = jnp.concatenate([
            bg(bih, 0) + bg(bhh, 0),
            bg(bih, 1) + bg(bhh, 1),
            bg(bhh, 2),
            bg(bih, 2),
            jnp.zeros((1,), jnp.float32),
        ]).reshape(4 * Hp + 1, 1)
        return w, b

    w_f, b_f = fuse(params['wih_f'], params['whh_f'], params['bih_f'],
                    params['bhh_f'], params['w_proj'][:, :H])
    w_b, b_b = fuse(params['wih_b'], params['whh_b'], params['bih_b'],
                    params['bhh_b'], params['w_proj'][:, H:])
    bp = params['b_proj'].reshape(1, 1)

    p_spec = pl.BlockSpec((T, 3, nb), lambda i: (0, 0, i))
    w_spec = pl.BlockSpec((4 * Hp + 1, Hp + 3), lambda i: (0, 0))
    b_spec = pl.BlockSpec((4 * Hp + 1, 1), lambda i: (0, 0))
    bp_spec = pl.BlockSpec((1, 1), lambda i: (0, 0))

    est = pl.pallas_call(
        _make_gru_kernel(T, Hp, nb, unroll),
        out_shape=jax.ShapeDtypeStruct((T, N_pad), jnp.float32),
        grid=(N_pad // nb,),
        in_specs=[p_spec, p_spec, w_spec, w_spec, b_spec, b_spec, bp_spec],
        out_specs=pl.BlockSpec((T, nb), lambda i: (0, i)),
        scratch_shapes=[pltpu.VMEM((T, nb), jnp.float32),
                        pltpu.VMEM((T, nb), jnp.float32)],
        compiler_params=pltpu.CompilerParams(
            dimension_semantics=("parallel",),
            vmem_limit_bytes=vmem_limit),
    )(pf, pb, w_f, w_b, b_f, b_b, bp)

    # ----------------------------- Kernel B ---------------------------------
    BT = B * T
    F8 = _round_up(F, 8)
    cb = min(4096, _round_up(BT, 128))
    cb_cap = max(128, ((vmem_limit // 3) // (4 * 2 * F8 * 4)) // 128 * 128)
    cb = max(128, min(cb, cb_cap))
    BTL = _round_up(BT, cb)
    ncb = BTL // cb

    def to_fbt(a):                      # (B,T,F) -> (F8, BTL): features on sublanes
        a = jnp.transpose(a, (2, 0, 1)).reshape(F, BT)
        return jnp.pad(a, ((0, F8 - F), (0, BTL - BT)))

    # est (T, N) with n = f*B + b  ->  (F, B*T) with col = b*T + t
    Rt = jnp.pad(
        jnp.transpose(est[:, :N].reshape(T, F, B), (1, 2, 0)).reshape(F, BT),
        ((0, F8 - F), (0, BTL - BT)))

    m_mask = 1.0 - jnp.eye(F, dtype=jnp.float32)

    def pad_sq(a):
        return jnp.pad(a, ((0, F8 - F), (0, F8 - F)))

    def pad_col(a):
        return jnp.pad(a.reshape(F, 1), ((0, F8 - F), (0, 0)))

    Wh = jnp.concatenate([pad_sq(params['U'] * m_mask),
                          pad_sq(params['V1'] * m_mask),
                          pad_sq(params['V2'])], axis=1)             # (F8, 3*F8)

    imp, part = pl.pallas_call(
        _make_fcn_kernel(F8, cb, BT),
        out_shape=(jax.ShapeDtypeStruct((F8, BTL), jnp.float32),
                   jax.ShapeDtypeStruct((ncb * 8, 128), jnp.float32)),
        grid=(ncb,),
        in_specs=[pl.BlockSpec((F8, cb), lambda i: (0, i))] * 3
                 + [pl.BlockSpec((F8, 3 * F8), lambda i: (0, 0)),
                    pl.BlockSpec((F8, 1), lambda i: (0, 0)),
                    pl.BlockSpec((F8, F8), lambda i: (0, 0)),
                    pl.BlockSpec((F8, 1), lambda i: (0, 0))],
        out_specs=(pl.BlockSpec((F8, cb), lambda i: (0, i)),
                   pl.BlockSpec((8, 128), lambda i: (i, 0))),
        compiler_params=pltpu.CompilerParams(
            dimension_semantics=("parallel",),
            vmem_limit_bytes=vmem_limit),
    )(to_fbt(Xf), to_fbt(Mf), Rt, Wh, pad_col(params['beta']),
      pad_sq(params['w_final']), pad_col(params['b_final']))

    imputed = jnp.transpose(imp[:F, :BT].reshape(F, B, T), (1, 2, 0))
    results = {'imputed_data': imputed}
    if training:
        psum = jnp.sum(part, axis=0)            # finalize with UNPADDED denominators
        rnn_loss = jnp.sqrt(psum[0] / (psum[1] + 1e-12))
        fcn_loss = jnp.sqrt(psum[2] / (B * T * F))
        results['loss'] = rnn_loss + fcn_loss
    return results


# ----------------------------------------------------------------------------
# Pure-JAX reference (mirrors the PyTorch module exactly)
# ----------------------------------------------------------------------------
def _gru_ref(inp, wih, whh, bih, bhh):
    H = whh.shape[1]

    def step(h, x_t):
        gi = x_t @ wih.T + bih
        gh = h @ whh.T + bhh
        r = jax.nn.sigmoid(gi[:, :H] + gh[:, :H])
        z = jax.nn.sigmoid(gi[:, H:2 * H] + gh[:, H:2 * H])
        n = jnp.tanh(gi[:, 2 * H:] + r * gh[:, 2 * H:])
        h_new = (1.0 - z) * n + z * h
        return h_new, h_new

    h0 = jnp.zeros((inp.shape[0], H), jnp.float32)
    _, hs = lax.scan(step, h0, jnp.swapaxes(inp, 0, 1))
    return jnp.swapaxes(hs, 0, 1)                 # (B, T, H)


def mrnn_forward_ref(inputs, params, training=True):
    Xf, Mf, Df = (inputs['forward'][k] for k in ('X', 'missing_mask', 'deltas'))
    Xb, Mb, Db = (inputs['backward'][k] for k in ('X', 'missing_mask', 'deltas'))
    B, T, F = Xf.shape
    feats = []
    for f in range(F):
        f_in = jnp.stack([Xf[:, :, f], Mf[:, :, f], Df[:, :, f]], axis=2)
        b_in = jnp.stack([Xb[:, :, f], Mb[:, :, f], Db[:, :, f]], axis=2)
        hs_f = _gru_ref(f_in, params['wih_f'], params['whh_f'], params['bih_f'], params['bhh_f'])
        hs_b = _gru_ref(b_in, params['wih_b'], params['whh_b'], params['bih_b'], params['bhh_b'])
        hs_b = jnp.flip(hs_b, axis=1)
        cat = jnp.concatenate([hs_f, hs_b], axis=2)
        feats.append(cat @ params['w_proj'].T + params['b_proj'])
    rnn_est = jnp.concatenate(feats, axis=2)
    rnn_imp = Mf * Xf + (1 - Mf) * rnn_est
    m_mask = 1.0 - jnp.eye(F, dtype=jnp.float32)
    h = jnp.tanh(Xf @ (params['U'] * m_mask).T + rnn_imp @ (params['V1'] * m_mask).T
                 + Mf @ params['V2'].T + params['beta'])
    fcn_est = h @ params['w_final'].T + params['b_final']
    imputed = Mf * Xf + (1 - Mf) * fcn_est
    res = {'imputed_data': imputed}
    if training:
        rnn_loss = jnp.sqrt(jnp.sum(jnp.square(rnn_est - Xf) * Mf) / (jnp.sum(Mf) + 1e-12))
        fcn_loss = jnp.sqrt(jnp.mean(jnp.square(fcn_est - rnn_imp)))
        res['loss'] = rnn_loss + fcn_loss
    return res


if __name__ == "__main__":
    B, T, F, H = 2, 8, 4, 32
    key = jax.random.PRNGKey(0)
    kp, kx, km, kd = jax.random.split(key, 4)
    params = init_params(kp, F, H)

    M = (jax.random.uniform(km, (B, T, F)) > 0.3).astype(jnp.float32)
    X = jax.random.normal(kx, (B, T, F), jnp.float32) * M
    D = jax.random.uniform(kd, (B, T, F), jnp.float32, 0.0, 2.0)
    # TODO(synk): backward deltas in pypots are recomputed on the reversed series;
    # here they are simply the flipped forward deltas (the module just consumes them).
    inputs = {
        'forward': {'X': X, 'missing_mask': M, 'deltas': D},
        'backward': {'X': jnp.flip(X, 1), 'missing_mask': jnp.flip(M, 1), 'deltas': jnp.flip(D, 1)},
    }

    out = mrnn_forward_pallas(inputs, params, training=True)
    jax.block_until_ready(out)

    ref = mrnn_forward_ref(inputs, params, training=True)
    np.testing.assert_allclose(np.asarray(out['imputed_data']),
                               np.asarray(ref['imputed_data']), rtol=2e-3, atol=2e-3)
    np.testing.assert_allclose(np.asarray(out['loss']),
                               np.asarray(ref['loss']), rtol=2e-3, atol=2e-3)
    print("KERNEL_OK")
</pallas_src>

<mosaic_0001>
module attributes {stable_mosaic.version = 11 : i64} {
  func.func @kernel(%arg0: i32, %arg1: memref<8x3x128xf32, #tpu.memory_space<vmem>>, %arg2: memref<8x3x128xf32, #tpu.memory_space<vmem>>, %arg3: memref<129x35xf32, #tpu.memory_space<vmem>>, %arg4: memref<129x35xf32, #tpu.memory_space<vmem>>, %arg5: memref<129x1xf32, #tpu.memory_space<vmem>>, %arg6: memref<129x1xf32, #tpu.memory_space<vmem>>, %arg7: memref<1x1xf32, #tpu.memory_space<vmem>>, %arg8: memref<8x128xf32, #tpu.memory_space<vmem>>, %arg9: memref<8x128xf32, #tpu.memory_space<vmem>>, %arg10: memref<8x128xf32, #tpu.memory_space<vmem>>) attributes {dimension_semantics = [#tpu.dimension_semantics<parallel>], iteration_bounds = array<i64: 1>, scalar_prefetch = 0 : i64, scratch_operands = 2 : i64, tpu.core_type = #tpu.core_type<tc>, window_params = [{transform_indices = @transform_0, window_bounds = array<i64: 8, 3, 128>}, {transform_indices = @transform_1, window_bounds = array<i64: 8, 3, 128>}, {pipeline_mode = #tpu.pipeline_mode<synchronous>, transform_indices = @transform_2, window_bounds = array<i64: 129, 35>}, {pipeline_mode = #tpu.pipeline_mode<synchronous>, transform_indices = @transform_3, window_bounds = array<i64: 129, 35>}, {pipeline_mode = #tpu.pipeline_mode<synchronous>, transform_indices = @transform_4, window_bounds = array<i64: 129, 1>}, {pipeline_mode = #tpu.pipeline_mode<synchronous>, transform_indices = @transform_5, window_bounds = array<i64: 129, 1>}, {pipeline_mode = #tpu.pipeline_mode<synchronous>, transform_indices = @transform_6, window_bounds = array<i64: 1, 1>}, {transform_indices = @transform_7, window_bounds = array<i64: 8, 128>}]} {
    %cst = arith.constant 0.000000e+00 : f32
    %0 = vector.broadcast %cst : f32 to vector<32x128xf32>
    %c0_i32 = arith.constant 0 : i32
    %1 = arith.index_cast %c0_i32 : i32 to index
    %c0 = arith.constant 0 : index
    %c0_0 = arith.constant 0 : index
    %2 = vector.load %arg1[%1, %c0, %c0_0] : memref<8x3x128xf32, #tpu.memory_space<vmem>>, vector<1x3x128xf32>
    %3 = vector.shape_cast %2 : vector<1x3x128xf32> to vector<3x128xf32>
    %c0_1 = arith.constant 0 : index
    %c0_2 = arith.constant 0 : index
    %4 = vector.load %arg3[%c0_1, %c0_2] : memref<129x35xf32, #tpu.memory_space<vmem>>, vector<129x35xf32>
    %c0_3 = arith.constant 0 : index
    %c0_4 = arith.constant 0 : index
    %5 = vector.load %arg5[%c0_3, %c0_4] : memref<129x1xf32, #tpu.memory_space<vmem>>, vector<129x1xf32>
    %6 = tpu.concatenate %0, %3 in 0 : vector<32x128xf32>, vector<3x128xf32> -> vector<35x128xf32>
    %cst_5 = arith.constant dense<0.000000e+00> : vector<129x128xf32>
    %7 = tpu.matmul %4, %6, %cst_5 {dimension_numbers = #tpu.dot_dimension_numbers<[1], [0], [0], [1], [0, 0, 1, 1], [], []>} : vector<129x35xf32>, vector<35x128xf32>, vector<129x128xf32> -> vector<129x128xf32>
    %8 = vector.broadcast %5 : vector<129x1xf32> to vector<129x128xf32>
    %9 = arith.addf %7, %8 : vector<129x128xf32>
    %10 = vector.extract_strided_slice %9 {offsets = [0, 0], sizes = [32, 128], strides = [1, 1]} : vector<129x128xf32> to vector<32x128xf32>
    %cst_6 = arith.constant 5.000000e-01 : f32
    %11 = vector.broadcast %cst_6 : f32 to vector<32x128xf32>
    %12 = arith.mulf %11, %10 : vector<32x128xf32>
    %13 = math.tanh %12 : vector<32x128xf32>
    %cst_7 = arith.constant 5.000000e-01 : f32
    %14 = vector.broadcast %cst_7 : f32 to vector<32x128xf32>
    %15 = arith.mulf %14, %13 : vector<32x128xf32>
    %cst_8 = arith.constant 5.000000e-01 : f32
    %16 = vector.broadcast %cst_8 : f32 to vector<32x128xf32>
    %17 = arith.addf %15, %16 : vector<32x128xf32>
    %18 = vector.extract_strided_slice %9 {offsets = [32, 0], sizes = [32, 128], strides = [1, 1]} : vector<129x128xf32> to vector<32x128xf32>
    %cst_9 = arith.constant 5.000000e-01 : f32
    %19 = vector.broadcast %cst_9 : f32 to vector<32x128xf32>
    %20 = arith.mulf %19, %18 : vector<32x128xf32>
    %21 = math.tanh %20 : vector<32x128xf32>
    %cst_10 = arith.constant 5.000000e-01 : f32
    %22 = vector.broadcast %cst_10 : f32 to vector<32x128xf32>
    %23 = arith.mulf %22, %21 : vector<32x128xf32>
    %cst_11 = arith.constant 5.000000e-01 : f32
    %24 = vector.broadcast %cst_11 : f32 to vector<32x128xf32>
    %25 = arith.addf %23, %24 : vector<32x128xf32>
    %26 = vector.extract_strided_slice %9 {offsets = [96, 0], sizes = [32, 128], strides = [1, 1]} : vector<129x128xf32> to vector<32x128xf32>
    %27 = vector.extract_strided_slice %9 {offsets = [64, 0], sizes = [32, 128], strides = [1, 1]} : vector<129x128xf32> to vector<32x128xf32>
    %28 = arith.mulf %17, %27 : vector<32x128xf32>
    %29 = arith.addf %26, %28 : vector<32x128xf32>
    %30 = math.tanh %29 : vector<32x128xf32>
    %31 = arith.subf %0, %30 : vector<32x128xf32>
    %32 = arith.mulf %25, %31 : vector<32x128xf32>
    %33 = arith.addf %30, %32 : vector<32x128xf32>
    %34 = vector.extract_strided_slice %9 {offsets = [128, 0], sizes = [1, 128], strides = [1, 1]} : vector<129x128xf32> to vector<1x128xf32>
    %35 = arith.index_cast %c0_i32 : i32 to index
    %c0_12 = arith.constant 0 : index
    %c0_13 = arith.constant 0 : index
    %36 = vector.load %arg2[%35, %c0_12, %c0_13] : memref<8x3x128xf32, #tpu.memory_space<vmem>>, vector<1x3x128xf32>
    %37 = vector.shape_cast %36 : vector<1x3x128xf32> to vector<3x128xf32>
    %c0_14 = arith.constant 0 : index
    %c0_15 = arith.constant 0 : index
    %38 = vector.load %arg4[%c0_14, %c0_15] : memref<129x35xf32, #tpu.memory_space<vmem>>, vector<129x35xf32>
    %c0_16 = arith.constant 0 : index
    %c0_17 = arith.constant 0 : index
    %39 = vector.load %arg6[%c0_16, %c0_17] : memref<129x1xf32, #tpu.memory_space<vmem>>, vector<129x1xf32>
    %40 = tpu.concatenate %0, %37 in 0 : vector<32x128xf32>, vector<3x128xf32> -> vector<35x128xf32>
    %cst_18 = arith.constant dense<0.000000e+00> : vector<129x128xf32>
    %41 = tpu.matmul %38, %40, %cst_18 {dimension_numbers = #tpu.dot_dimension_numbers<[1], [0], [0], [1], [0, 0, 1, 1], [], []>} : vector<129x35xf32>, vector<35x128xf32>, vector<129x128xf32> -> vector<129x128xf32>
    %42 = vector.broadcast %39 : vector<129x1xf32> to vector<129x128xf32>
    %43 = arith.addf %41, %42 : vector<129x128xf32>
    %44 = vector.extract_strided_slice %43 {offsets = [0, 0], sizes = [32, 128], strides = [1, 1]} : vector<129x128xf32> to vector<32x128xf32>
    %cst_19 = arith.constant 5.000000e-01 : f32
    %45 = vector.broadcast %cst_19 : f32 to vector<32x128xf32>
    %46 = arith.mulf %45, %44 : vector<32x128xf32>
    %47 = math.tanh %46 : vector<32x128xf32>
    %cst_20 = arith.constant 5.000000e-01 : f32
    %48 = vector.broadcast %cst_20 : f32 to vector<32x128xf32>
    %49 = arith.mulf %48, %47 : vector<32x128xf32>
    %cst_21 = arith.constant 5.000000e-01 : f32
    %50 = vector.broadcast %cst_21 : f32 to vector<32x128xf32>
    %51 = arith.addf %49, %50 : vector<32x128xf32>
    %52 = vector.extract_strided_slice %43 {offsets = [32, 0], sizes = [32, 128], strides = [1, 1]} : vector<129x128xf32> to vector<32x128xf32>
    %cst_22 = arith.constant 5.000000e-01 : f32
    %53 = vector.broadcast %cst_22 : f32 to vector<32x128xf32>
    %54 = arith.mulf %53, %52 : vector<32x128xf32>
    %55 = math.tanh %54 : vector<32x128xf32>
    %cst_23 = arith.constant 5.000000e-01 : f32
    %56 = vector.broadcast %cst_23 : f32 to vector<32x128xf32>
    %57 = arith.mulf %56, %55 : vector<32x128xf32>
    %cst_24 = arith.constant 5.000000e-01 : f32
    %58 = vector.broadcast %cst_24 : f32 to vector<32x128xf32>
    %59 = arith.addf %57, %58 : vector<32x128xf32>
    %60 = vector.extract_strided_slice %43 {offsets = [96, 0], sizes = [32, 128], strides = [1, 1]} : vector<129x128xf32> to vector<32x128xf32>
    %61 = vector.extract_strided_slice %43 {offsets = [64, 0], sizes = [32, 128], strides = [1, 1]} : vector<129x128xf32> to vector<32x128xf32>
    %62 = arith.mulf %51, %61 : vector<32x128xf32>
    %63 = arith.addf %60, %62 : vector<32x128xf32>
    %64 = math.tanh %63 : vector<32x128xf32>
    %65 = arith.subf %0, %64 : vector<32x128xf32>
    %66 = arith.mulf %59, %65 : vector<32x128xf32>
    %67 = arith.addf %64, %66 : vector<32x128xf32>
    %68 = vector.extract_strided_slice %43 {offsets = [128, 0], sizes = [1, 128], strides = [1, 1]} : vector<129x128xf32> to vector<1x128xf32>
    %c1_i32 = arith.constant 1 : i32
    %69 = arith.subi %c0_i32, %c1_i32 : i32
    %c0_i32_25 = arith.constant 0 : i32
    %70 = arith.maxsi %69, %c0_i32_25 : i32
    %71 = arith.index_cast %70 : i32 to index
    %c0_26 = arith.constant 0 : index
    %72 = vector.load %arg9[%71, %c0_26] : memref<8x128xf32, #tpu.memory_space<vmem>>, vector<1x128xf32>
    tpu.vector_store %arg9[%71, %c0_26], %34 {strides = array<i32>} : memref<8x128xf32, #tpu.memory_space<vmem>>, vector<1x128xf32>,
    %c8_i32 = arith.constant 8 : i32
    %73 = arith.subi %c8_i32, %c0_i32 : i32
    %c7_i32 = arith.constant 7 : i32
    %74 = arith.minsi %73, %c7_i32 : i32
    %75 = arith.index_cast %74 : i32 to index
    %c0_27 = arith.constant 0 : index
    %76 = vector.load %arg10[%75, %c0_27] : memref<8x128xf32, #tpu.memory_space<vmem>>, vector<1x128xf32>
    tpu.vector_store %arg10[%75, %c0_27], %68 {strides = array<i32>} : memref<8x128xf32, #tpu.memory_space<vmem>>, vector<1x128xf32>,
    %c1_i32_28 = arith.constant 1 : i32
    %77 = arith.index_cast %c1_i32_28 : i32 to index
    %c0_29 = arith.constant 0 : index
    %c0_30 = arith.constant 0 : index
    %78 = vector.load %arg1[%77, %c0_29, %c0_30] : memref<8x3x128xf32, #tpu.memory_space<vmem>>, vector<1x3x128xf32>
    %79 = vector.shape_cast %78 : vector<1x3x128xf32> to vector<3x128xf32>
    %c0_31 = arith.constant 0 : index
    %c0_32 = arith.constant 0 : index
    %80 = vector.load %arg3[%c0_31, %c0_32] : memref<129x35xf32, #tpu.memory_space<vmem>>, vector<129x35xf32>
    %c0_33 = arith.constant 0 : index
    %c0_34 = arith.constant 0 : index
    %81 = vector.load %arg5[%c0_33, %c0_34] : memref<129x1xf32, #tpu.memory_space<vmem>>, vector<129x1xf32>
    %82 = tpu.concatenate %33, %79 in 0 : vector<32x128xf32>, vector<3x128xf32> -> vector<35x128xf32>
    %cst_35 = arith.constant dense<0.000000e+00> : vector<129x128xf32>
    %83 = tpu.matmul %80, %82, %cst_35 {dimension_numbers = #tpu.dot_dimension_numbers<[1], [0], [0], [1], [0, 0, 1, 1], [], []>} : vector<129x35xf32>, vector<35x128xf32>, vector<129x128xf32> -> vector<129x128xf32>
    %84 = vector.broadcast %81 : vector<129x1xf32> to vector<129x128xf32>
    %85 = arith.addf %83, %84 : vector<129x128xf32>
    %86 = vector.extract_strided_slice %85 {offsets = [0, 0], sizes = [32, 128], strides = [1, 1]} : vector<129x128xf32> to vector<32x128xf32>
    %cst_36 = arith.constant 5.000000e-01 : f32
    %87 = vector.broadcast %cst_36 : f32 to vector<32x128xf32>
    %88 = arith.mulf %87, %86 : vector<32x128xf32>
    %89 = math.tanh %88 : vector<32x128xf32>
    %cst_37 = arith.constant 5.000000e-01 : f32
    %90 = vector.broadcast %cst_37 : f32 to vector<32x128xf32>
    %91 = arith.mulf %90, %89 : vector<32x128xf32>
    %cst_38 = arith.constant 5.000000e-01 : f32
    %92 = vector.broadcast %cst_38 : f32 to vector<32x128xf32>
    %93 = arith.addf %91, %92 : vector<32x128xf32>
    %94 = vector.extract_strided_slice %85 {offsets = [32, 0], sizes = [32, 128], strides = [1, 1]} : vector<129x128xf32> to vector<32x128xf32>
    %cst_39 = arith.constant 5.000000e-01 : f32
    %95 = vector.broadcast %cst_39 : f32 to vector<32x128xf32>
    %96 = arith.mulf %95, %94 : vector<32x128xf32>
    %97 = math.tanh %96 : vector<32x128xf32>
    %cst_40 = arith.constant 5.000000e-01 : f32
    %98 = vector.broadcast %cst_40 : f32 to vector<32x128xf32>
    %99 = arith.mulf %98, %97 : vector<32x128xf32>
    %cst_41 = arith.constant 5.000000e-01 : f32
    %100 = vector.broadcast %cst_41 : f32 to vector<32x128xf32>
    %101 = arith.addf %99, %100 : vector<32x128xf32>
    %102 = vector.extract_strided_slice %85 {offsets = [96, 0], sizes = [32, 128], strides = [1, 1]} : vector<129x128xf32> to vector<32x128xf32>
    %103 = vector.extract_strided_slice %85 {offsets = [64, 0], sizes = [32, 128], strides = [1, 1]} : vector<129x128xf32> to vector<32x128xf32>
    %104 = arith.mulf %93, %103 : vector<32x128xf32>
    %105 = arith.addf %102, %104 : vector<32x128xf32>
    %106 = math.tanh %105 : vector<32x128xf32>
    %107 = arith.subf %33, %106 : vector<32x128xf32>
    %108 = arith.mulf %101, %107 : vector<32x128xf32>
    %109 = arith.addf %106, %108 : vector<32x128xf32>
    %110 = vector.extract_strided_slice %85 {offsets = [128, 0], sizes = [1, 128], strides = [1, 1]} : vector<129x128xf32> to vector<1x128xf32>
    %111 = arith.index_cast %c1_i32_28 : i32 to index
    %c0_42 = arith.constant 0 : index
    %c0_43 = arith.constant 0 : index
    %112 = vector.load %arg2[%111, %c0_42, %c0_43] : memref<8x3x128xf32, #tpu.memory_space<vmem>>, vector<1x3x128xf32>
    %113 = vector.shape_cast %112 : vector<1x3x128xf32> to vector<3x128xf32>
    %c0_44 = arith.constant 0 : index
    %c0_45 = arith.constant 0 : index
    %114 = vector.load %arg4[%c0_44, %c0_45] : memref<129x35xf32, #tpu.memory_space<vmem>>, vector<129x35xf32>
    %c0_46 = arith.constant 0 : index
    %c0_47 = arith.constant 0 : index
    %115 = vector.load %arg6[%c0_46, %c0_47] : memref<129x1xf32, #tpu.memory_space<vmem>>, vector<129x1xf32>
    %116 = tpu.concatenate %67, %113 in 0 : vector<32x128xf32>, vector<3x128xf32> -> vector<35x128xf32>
    %cst_48 = arith.constant dense<0.000000e+00> : vector<129x128xf32>
    %117 = tpu.matmul %114, %116, %cst_48 {dimension_numbers = #tpu.dot_dimension_numbers<[1], [0], [0], [1], [0, 0, 1, 1], [], []>} : vector<129x35xf32>, vector<35x128xf32>, vector<129x128xf32> -> vector<129x128xf32>
    %118 = vector.broadcast %115 : vector<129x1xf32> to vector<129x128xf32>
    %119 = arith.addf %117, %118 : vector<129x128xf32>
    %120 = vector.extract_strided_slice %119 {offsets = [0, 0], sizes = [32, 128], strides = [1, 1]} : vector<129x128xf32> to vector<32x128xf32>
    %cst_49 = arith.constant 5.000000e-01 : f32
    %121 = vector.broadcast %cst_49 : f32 to vector<32x128xf32>
    %122 = arith.mulf %121, %120 : vector<32x128xf32>
    %123 = math.tanh %122 : vector<32x128xf32>
    %cst_50 = arith.constant 5.000000e-01 : f32
    %124 = vector.broadcast %cst_50 : f32 to vector<32x128xf32>
    %125 = arith.mulf %124, %123 : vector<32x128xf32>
    %cst_51 = arith.constant 5.000000e-01 : f32
    %126 = vector.broadcast %cst_51 : f32 to vector<32x128xf32>
    %127 = arith.addf %125, %126 : vector<32x128xf32>
    %128 = vector.extract_strided_slice %119 {offsets = [32, 0], sizes = [32, 128], strides = [1, 1]} : vector<129x128xf32> to vector<32x128xf32>
    %cst_52 = arith.constant 5.000000e-01 : f32
    %129 = vector.broadcast %cst_52 : f32 to vector<32x128xf32>
    %130 = arith.mulf %129, %128 : vector<32x128xf32>
    %131 = math.tanh %130 : vector<32x128xf32>
    %cst_53 = arith.constant 5.000000e-01 : f32
    %132 = vector.broadcast %cst_53 : f32 to vector<32x128xf32>
    %133 = arith.mulf %132, %131 : vector<32x128xf32>
    %cst_54 = arith.constant 5.000000e-01 : f32
    %134 = vector.broadcast %cst_54 : f32 to vector<32x128xf32>
    %135 = arith.addf %133, %134 : vector<32x128xf32>
    %136 = vector.extract_strided_slice %119 {offsets = [96, 0], sizes = [32, 128], strides = [1, 1]} : vector<129x128xf32> to vector<32x128xf32>
    %137 = vector.extract_strided_slice %119 {offsets = [64, 0], sizes = [32, 128], strides = [1, 1]} : vector<129x128xf32> to vector<32x128xf32>
    %138 = arith.mulf %127, %137 : vector<32x128xf32>
    %139 = arith.addf %136, %138 : vector<32x128xf32>
    %140 = math.tanh %139 : vector<32x128xf32>
    %141 = arith.subf %67, %140 : vector<32x128xf32>
    %142 = arith.mulf %135, %141 : vector<32x128xf32>
    %143 = arith.addf %140, %142 : vector<32x128xf32>
    %144 = vector.extract_strided_slice %119 {offsets = [128, 0], sizes = [1, 128], strides = [1, 1]} : vector<129x128xf32> to vector<1x128xf32>
    %c1_i32_55 = arith.constant 1 : i32
    %145 = arith.subi %c1_i32_28, %c1_i32_55 : i32
    %c0_i32_56 = arith.constant 0 : i32
    %146 = arith.maxsi %145, %c0_i32_56 : i32
    %147 = arith.index_cast %146 : i32 to index
    %c0_57 = arith.constant 0 : index
    %148 = vector.load %arg9[%147, %c0_57] : memref<8x128xf32, #tpu.memory_space<vmem>>, vector<1x128xf32>
    tpu.vector_store %arg9[%147, %c0_57], %110 {strides = array<i32>} : memref<8x128xf32, #tpu.memory_space<vmem>>, vector<1x128xf32>,
    %c8_i32_58 = arith.constant 8 : i32
    %149 = arith.subi %c8_i32_58, %c1_i32_28 : i32
    %c7_i32_59 = arith.constant 7 : i32
    %150 = arith.minsi %149, %c7_i32_59 : i32
    %151 = arith.index_cast %150 : i32 to index
    %c0_60 = arith.constant 0 : index
    %152 = vector.load %arg10[%151, %c0_60] : memref<8x128xf32, #tpu.memory_space<vmem>>, vector<1x128xf32>
    tpu.vector_store %arg10[%151, %c0_60], %144 {strides = array<i32>} : memref<8x128xf32, #tpu.memory_space<vmem>>, vector<1x128xf32>,
    %c2_i32 = arith.constant 2 : i32
    %153 = arith.index_cast %c2_i32 : i32 to index
    %c0_61 = arith.constant 0 : index
    %c0_62 = arith.constant 0 : index
    %154 = vector.load %arg1[%153, %c0_61, %c0_62] : memref<8x3x128xf32, #tpu.memory_space<vmem>>, vector<1x3x128xf32>
    %155 = vector.shape_cast %154 : vector<1x3x128xf32> to vector<3x128xf32>
    %c0_63 = arith.constant 0 : index
    %c0_64 = arith.constant 0 : index
    %156 = vector.load %arg3[%c0_63, %c0_64] : memref<129x35xf32, #tpu.memory_space<vmem>>, vector<129x35xf32>
    %c0_65 = arith.constant 0 : index
    %c0_66 = arith.constant 0 : index
    %157 = vector.load %arg5[%c0_65, %c0_66] : memref<129x1xf32, #tpu.memory_space<vmem>>, vector<129x1xf32>
    %158 = tpu.concatenate %109, %155 in 0 : vector<32x128xf32>, vector<3x128xf32> -> vector<35x128xf32>
    %cst_67 = arith.constant dense<0.000000e+00> : vector<129x128xf32>
    %159 = tpu.matmul %156, %158, %cst_67 {dimension_numbers = #tpu.dot_dimension_numbers<[1], [0], [0], [1], [0, 0, 1, 1], [], []>} : vector<129x35xf32>, vector<35x128xf32>, vector<129x128xf32> -> vector<129x128xf32>
    %160 = vector.broadcast %157 : vector<129x1xf32> to vector<129x128xf32>
    %161 = arith.addf %159, %160 : vector<129x128xf32>
    %162 = vector.extract_strided_slice %161 {offsets = [0, 0], sizes = [32, 128], strides = [1, 1]} : vector<129x128xf32> to vector<32x128xf32>
    %cst_68 = arith.constant 5.000000e-01 : f32
    %163 = vector.broadcast %cst_68 : f32 to vector<32x128xf32>
    %164 = arith.mulf %163, %162 : vector<32x128xf32>
    %165 = math.tanh %164 : vector<32x128xf32>
    %cst_69 = arith.constant 5.000000e-01 : f32
    %166 = vector.broadcast %cst_69 : f32 to vector<32x128xf32>
    %167 = arith.mulf %166, %165 : vector<32x128xf32>
    %cst_70 = arith.constant 5.000000e-01 : f32
    %168 = vector.broadcast %cst_70 : f32 to vector<32x128xf32>
    %169 = arith.addf %167, %168 : vector<32x128xf32>
    %170 = vector.extract_strided_slice %161 {offsets = [32, 0], sizes = [32, 128], strides = [1, 1]} : vector<129x128xf32> to vector<32x128xf32>
    %cst_71 = arith.constant 5.000000e-01 : f32
    %171 = vector.broadcast %cst_71 : f32 to vector<32x128xf32>
    %172 = arith.mulf %171, %170 : vector<32x128xf32>
    %173 = math.tanh %172 : vector<32x128xf32>
    %cst_72 = arith.constant 5.000000e-01 : f32
    %174 = vector.broadcast %cst_72 : f32 to vector<32x128xf32>
    %175 = arith.mulf %174, %173 : vector<32x128xf32>
    %cst_73 = arith.constant 5.000000e-01 : f32
    %176 = vector.broadcast %cst_73 : f32 to vector<32x128xf32>
    %177 = arith.addf %175, %176 : vector<32x128xf32>
    %178 = vector.extract_strided_slice %161 {offsets = [96, 0], sizes = [32, 128], strides = [1, 1]} : vector<129x128xf32> to vector<32x128xf32>
    %179 = vector.extract_strided_slice %161 {offsets = [64, 0], sizes = [32, 128], strides = [1, 1]} : vector<129x128xf32> to vector<32x128xf32>
    %180 = arith.mulf %169, %179 : vector<32x128xf32>
    %181 = arith.addf %178, %180 : vector<32x128xf32>
    %182 = math.tanh %181 : vector<32x128xf32>
    %183 = arith.subf %109, %182 : vector<32x128xf32>
    %184 = arith.mulf %177, %183 : vector<32x128xf32>
    %185 = arith.addf %182, %184 : vector<32x128xf32>
    %186 = vector.extract_strided_slice %161 {offsets = [128, 0], sizes = [1, 128], strides = [1, 1]} : vector<129x128xf32> to vector<1x128xf32>
    %187 = arith.index_cast %c2_i32 : i32 to index
    %c0_74 = arith.constant 0 : index
    %c0_75 = arith.constant 0 : index
    %188 = vector.load %arg2[%187, %c0_74, %c0_75] : memref<8x3x128xf32, #tpu.memory_space<vmem>>, vector<1x3x128xf32>
    %189 = vector.shape_cast %188 : vector<1x3x128xf32> to vector<3x128xf32>
    %c0_76 = arith.constant 0 : index
    %c0_77 = arith.constant 0 : index
    %190 = vector.load %arg4[%c0_76, %c0_77] : memref<129x35xf32, #tpu.memory_space<vmem>>, vector<129x35xf32>
    %c0_78 = arith.constant 0 : index
    %c0_79 = arith.constant 0 : index
    %191 = vector.load %arg6[%c0_78, %c0_79] : memref<129x1xf32, #tpu.memory_space<vmem>>, vector<129x1xf32>
    %192 = tpu.concatenate %143, %189 in 0 : vector<32x128xf32>, vector<3x128xf32> -> vector<35x128xf32>
    %cst_80 = arith.constant dense<0.000000e+00> : vector<129x128xf32>
    %193 = tpu.matmul %190, %192, %cst_80 {dimension_numbers = #tpu.dot_dimension_numbers<[1], [0], [0], [1], [0, 0, 1, 1], [], []>} : vector<129x35xf32>, vector<35x128xf32>, vector<129x128xf32> -> vector<129x128xf32>
    %194 = vector.broadcast %191 : vector<129x1xf32> to vector<129x128xf32>
    %195 = arith.addf %193, %194 : vector<129x128xf32>
    %196 = vector.extract_strided_slice %195 {offsets = [0, 0], sizes = [32, 128], strides = [1, 1]} : vector<129x128xf32> to vector<32x128xf32>
    %cst_81 = arith.constant 5.000000e-01 : f32
    %197 = vector.broadcast %cst_81 : f32 to vector<32x128xf32>
    %198 = arith.mulf %197, %196 : vector<32x128xf32>
    %199 = math.tanh %198 : vector<32x128xf32>
    %cst_82 = arith.constant 5.000000e-01 : f32
    %200 = vector.broadcast %cst_82 : f32 to vector<32x128xf32>
    %201 = arith.mulf %200, %199 : vector<32x128xf32>
    %cst_83 = arith.constant 5.000000e-01 : f32
    %202 = vector.broadcast %cst_83 : f32 to vector<32x128xf32>
    %203 = arith.addf %201, %202 : vector<32x128xf32>
    %204 = vector.extract_strided_slice %195 {offsets = [32, 0], sizes = [32, 128], strides = [1, 1]} : vector<129x128xf32> to vector<32x128xf32>
    %cst_84 = arith.constant 5.000000e-01 : f32
    %205 = vector.broadcast %cst_84 : f32 to vector<32x128xf32>
    %206 = arith.mulf %205, %204 : vector<32x128xf32>
    %207 = math.tanh %206 : vector<32x128xf32>
    %cst_85 = arith.constant 5.000000e-01 : f32
    %208 = vector.broadcast %cst_85 : f32 to vector<32x128xf32>
    %209 = arith.mulf %208, %207 : vector<32x128xf32>
    %cst_86 = arith.constant 5.000000e-01 : f32
    %210 = vector.broadcast %cst_86 : f32 to vector<32x128xf32>
    %211 = arith.addf %209, %210 : vector<32x128xf32>
    %212 = vector.extract_strided_slice %195 {offsets = [96, 0], sizes = [32, 128], strides = [1, 1]} : vector<129x128xf32> to vector<32x128xf32>
    %213 = vector.extract_strided_slice %195 {offsets = [64, 0], sizes = [32, 128], strides = [1, 1]} : vector<129x128xf32> to vector<32x128xf32>
    %214 = arith.mulf %203, %213 : vector<32x128xf32>
    %215 = arith.addf %212, %214 : vector<32x128xf32>
    %216 = math.tanh %215 : vector<32x128xf32>
    %217 = arith.subf %143, %216 : vector<32x128xf32>
    %218 = arith.mulf %211, %217 : vector<32x128xf32>
    %219 = arith.addf %216, %218 : vector<32x128xf32>
    %220 = vector.extract_strided_slice %195 {offsets = [128, 0], sizes = [1, 128], strides = [1, 1]} : vector<129x128xf32> to vector<1x128xf32>
    %c1_i32_87 = arith.constant 1 : i32
    %221 = arith.subi %c2_i32, %c1_i32_87 : i32
    %c0_i32_88 = arith.constant 0 : i32
    %222 = arith.maxsi %221, %c0_i32_88 : i32
    %223 = arith.index_cast %222 : i32 to index
    %c0_89 = arith.constant 0 : index
    %224 = vector.load %arg9[%223, %c0_89] : memref<8x128xf32, #tpu.memory_space<vmem>>, vector<1x128xf32>
    tpu.vector_store %arg9[%223, %c0_89], %186 {strides = array<i32>} : memref<8x128xf32, #tpu.memory_space<vmem>>, vector<1x128xf32>,
    %c8_i32_90 = arith.constant 8 : i32
    %225 = arith.subi %c8_i32_90, %c2_i32 : i32
    %c7_i32_91 = arith.constant 7 : i32
    %226 = arith.minsi %225, %c7_i32_91 : i32
    %227 = arith.index_cast %226 : i32 to index
    %c0_92 = arith.constant 0 : index
    %228 = vector.load %arg10[%227, %c0_92] : memref<8x128xf32, #tpu.memory_space<vmem>>, vector<1x128xf32>
    tpu.vector_store %arg10[%227, %c0_92], %220 {strides = array<i32>} : memref<8x128xf32, #tpu.memory_space<vmem>>, vector<1x128xf32>,
    %c3_i32 = arith.constant 3 : i32
    %229 = arith.index_cast %c3_i32 : i32 to index
    %c0_93 = arith.constant 0 : index
    %c0_94 = arith.constant 0 : index
    %230 = vector.load %arg1[%229, %c0_93, %c0_94] : memref<8x3x128xf32, #tpu.memory_space<vmem>>, vector<1x3x128xf32>
    %231 = vector.shape_cast %230 : vector<1x3x128xf32> to vector<3x128xf32>
    %c0_95 = arith.constant 0 : index
    %c0_96 = arith.constant 0 : index
    %232 = vector.load %arg3[%c0_95, %c0_96] : memref<129x35xf32, #tpu.memory_space<vmem>>, vector<129x35xf32>
    %c0_97 = arith.constant 0 : index
    %c0_98 = arith.constant 0 : index
    %233 = vector.load %arg5[%c0_97, %c0_98] : memref<129x1xf32, #tpu.memory_space<vmem>>, vector<129x1xf32>
    %234 = tpu.concatenate %185, %231 in 0 : vector<32x128xf32>, vector<3x128xf32> -> vector<35x128xf32>
    %cst_99 = arith.constant dense<0.000000e+00> : vector<129x128xf32>
    %235 = tpu.matmul %232, %234, %cst_99 {dimension_numbers = #tpu.dot_dimension_numbers<[1], [0], [0], [1], [0, 0, 1, 1], [], []>} : vector<129x35xf32>, vector<35x128xf32>, vector<129x128xf32> -> vector<129x128xf32>
    %236 = vector.broadcast %233 : vector<129x1xf32> to vector<129x128xf32>
    %237 = arith.addf %235, %236 : vector<129x128xf32>
    %238 = vector.extract_strided_slice %237 {offsets = [0, 0], sizes = [32, 128], strides = [1, 1]} : vector<129x128xf32> to vector<32x128xf32>
    %cst_100 = arith.constant 5.000000e-01 : f32
    %239 = vector.broadcast %cst_100 : f32 to vector<32x128xf32>
    %240 = arith.mulf %239, %238 : vector<32x128xf32>
    %241 = math.tanh %240 : vector<32x128xf32>
    %cst_101 = arith.constant 5.000000e-01 : f32
    %242 = vector.broadcast %cst_101 : f32 to vector<32x128xf32>
    %243 = arith.mulf %242, %241 : vector<32x128xf32>
    %cst_102 = arith.constant 5.000000e-01 : f32
    %244 = vector.broadcast %cst_102 : f32 to vector<32x128xf32>
    %245 = arith.addf %243, %244 : vector<32x128xf32>
    %246 = vector.extract_strided_slice %237 {offsets = [32, 0], sizes = [32, 128], strides = [1, 1]} : vector<129x128xf32> to vector<32x128xf32>
    %cst_103 = arith.constant 5.000000e-01 : f32
    %247 = vector.broadcast %cst_103 : f32 to vector<32x128xf32>
    %248 = arith.mulf %247, %246 : vector<32x128xf32>
    %249 = math.tanh %248 : vector<32x128xf32>
    %cst_104 = arith.constant 5.000000e-01 : f32
    %250 = vector.broadcast %cst_104 : f32 to vector<32x128xf32>
    %251 = arith.mulf %250, %249 : vector<32x128xf32>
    %cst_105 = arith.constant 5.000000e-01 : f32
    %252 = vector.broadcast %cst_105 : f32 to vector<32x128xf32>
    %253 = arith.addf %251, %252 : vector<32x128xf32>
    %254 = vector.extract_strided_slice %237 {offsets = [96, 0], sizes = [32, 128], strides = [1, 1]} : vector<129x128xf32> to vector<32x128xf32>
    %255 = vector.extract_strided_slice %237 {offsets = [64, 0], sizes = [32, 128], strides = [1, 1]} : vector<129x128xf32> to vector<32x128xf32>
    %256 = arith.mulf %245, %255 : vector<32x128xf32>
    %257 = arith.addf %254, %256 : vector<32x128xf32>
    %258 = math.tanh %257 : vector<32x128xf32>
    %259 = arith.subf %185, %258 : vector<32x128xf32>
    %260 = arith.mulf %253, %259 : vector<32x128xf32>
    %261 = arith.addf %258, %260 : vector<32x128xf32>
    %262 = vector.extract_strided_slice %237 {offsets = [128, 0], sizes = [1, 128], strides = [1, 1]} : vector<129x128xf32> to vector<1x128xf32>
    %263 = arith.index_cast %c3_i32 : i32 to index
    %c0_106 = arith.constant 0 : index
    %c0_107 = arith.constant 0 : index
    %264 = vector.load %arg2[%263, %c0_106, %c0_107] : memref<8x3x128xf32, #tpu.memory_space<vmem>>, vector<1x3x128xf32>
    %265 = vector.shape_cast %264 : vector<1x3x128xf32> to vector<3x128xf32>
    %c0_108 = arith.constant 0 : index
    %c0_109 = arith.constant 0 : index
    %266 = vector.load %arg4[%c0_108, %c0_109] : memref<129x35xf32, #tpu.memory_space<vmem>>, vector<129x35xf32>
    %c0_110 = arith.constant 0 : index
    %c0_111 = arith.constant 0 : index
    %267 = vector.load %arg6[%c0_110, %c0_111] : memref<129x1xf32, #tpu.memory_space<vmem>>, vector<129x1xf32>
    %268 = tpu.concatenate %219, %265 in 0 : vector<32x128xf32>, vector<3x128xf32> -> vector<35x128xf32>
    %cst_112 = arith.constant dense<0.000000e+00> : vector<129x128xf32>
    %269 = tpu.matmul %266, %268, %cst_112 {dimension_numbers = #tpu.dot_dimension_numbers<[1], [0], [0], [1], [0, 0, 1, 1], [], []>} : vector<129x35xf32>, vector<35x128xf32>, vector<129x128xf32> -> vector<129x128xf32>
    %270 = vector.broadcast %267 : vector<129x1xf32> to vector<129x128xf32>
    %271 = arith.addf %269, %270 : vector<129x128xf32>
    %272 = vector.extract_strided_slice %271 {offsets = [0, 0], sizes = [32, 128], strides = [1, 1]} : vector<129x128xf32> to vector<32x128xf32>
    %cst_113 = arith.constant 5.000000e-01 : f32
    %273 = vector.broadcast %cst_113 : f32 to vector<32x128xf32>
    %274 = arith.mulf %273, %272 : vector<32x128xf32>
    %275 = math.tanh %274 : vector<32x128xf32>
    %cst_114 = arith.constant 5.000000e-01 : f32
    %276 = vector.broadcast %cst_114 : f32 to vector<32x128xf32>
    %277 = arith.mulf %276, %275 : vector<32x128xf32>
    %cst_115 = arith.constant 5.000000e-01 : f32
    %278 = vector.broadcast %cst_115 : f32 to vector<32x128xf32>
    %279 = arith.addf %277, %278 : vector<32x128xf32>
    %280 = vector.extract_strided_slice %271 {offsets = [32, 0], sizes = [32, 128], strides = [1, 1]} : vector<129x128xf32> to vector<32x128xf32>
    %cst_116 = arith.constant 5.000000e-01 : f32
    %281 = vector.broadcast %cst_116 : f32 to vector<32x128xf32>
    %282 = arith.mulf %281, %280 : vector<32x128xf32>
    %283 = math.tanh %282 : vector<32x128xf32>
    %cst_117 = arith.constant 5.000000e-01 : f32
    %284 = vector.broadcast %cst_117 : f32 to vector<32x128xf32>
    %285 = arith.mulf %284, %283 : vector<32x128xf32>
    %cst_118 = arith.constant 5.000000e-01 : f32
    %286 = vector.broadcast %cst_118 : f32 to vector<32x128xf32>
    %287 = arith.addf %285, %286 : vector<32x128xf32>
    %288 = vector.extract_strided_slice %271 {offsets = [96, 0], sizes = [32, 128], strides = [1, 1]} : vector<129x128xf32> to vector<32x128xf32>
    %289 = vector.extract_strided_slice %271 {offsets = [64, 0], sizes = [32, 128], strides = [1, 1]} : vector<129x128xf32> to vector<32x128xf32>
    %290 = arith.mulf %279, %289 : vector<32x128xf32>
    %291 = arith.addf %288, %290 : vector<32x128xf32>
    %292 = math.tanh %291 : vector<32x128xf32>
    %293 = arith.subf %219, %292 : vector<32x128xf32>
    %294 = arith.mulf %287, %293 : vector<32x128xf32>
    %295 = arith.addf %292, %294 : vector<32x128xf32>
    %296 = vector.extract_strided_slice %271 {offsets = [128, 0], sizes = [1, 128], strides = [1, 1]} : vector<129x128xf32> to vector<1x128xf32>
    %c1_i32_119 = arith.constant 1 : i32
    %297 = arith.subi %c3_i32, %c1_i32_119 : i32
    %c0_i32_120 = arith.constant 0 : i32
    %298 = arith.maxsi %297, %c0_i32_120 : i32
    %299 = arith.index_cast %298 : i32 to index
    %c0_121 = arith.constant 0 : index
    %300 = vector.load %arg9[%299, %c0_121] : memref<8x128xf32, #tpu.memory_space<vmem>>, vector<1x128xf32>
    tpu.vector_store %arg9[%299, %c0_121], %262 {strides = array<i32>} : memref<8x128xf32, #tpu.memory_space<vmem>>, vector<1x128xf32>,
    %c8_i32_122 = arith.constant 8 : i32
    %301 = arith.subi %c8_i32_122, %c3_i32 : i32
    %c7_i32_123 = arith.constant 7 : i32
    %302 = arith.minsi %301, %c7_i32_123 : i32
    %303 = arith.index_cast %302 : i32 to index
    %c0_124 = arith.constant 0 : index
    %304 = vector.load %arg10[%303, %c0_124] : memref<8x128xf32, #tpu.memory_space<vmem>>, vector<1x128xf32>
    tpu.vector_store %arg10[%303, %c0_124], %296 {strides = array<i32>} : memref<8x128xf32, #tpu.memory_space<vmem>>, vector<1x128xf32>,
    %c4_i32 = arith.constant 4 : i32
    %305 = arith.index_cast %c4_i32 : i32 to index
    %c0_125 = arith.constant 0 : index
    %c0_126 = arith.constant 0 : index
    %306 = vector.load %arg1[%305, %c0_125, %c0_126] : memref<8x3x128xf32, #tpu.memory_space<vmem>>, vector<1x3x128xf32>
    %307 = vector.shape_cast %306 : vector<1x3x128xf32> to vector<3x128xf32>
    %c0_127 = arith.constant 0 : index
    %c0_128 = arith.constant 0 : index
    %308 = vector.load %arg3[%c0_127, %c0_128] : memref<129x35xf32, #tpu.memory_space<vmem>>, vector<129x35xf32>
    %c0_129 = arith.constant 0 : index
    %c0_130 = arith.constant 0 : index
    %309 = vector.load %arg5[%c0_129, %c0_130] : memref<129x1xf32, #tpu.memory_space<vmem>>, vector<129x1xf32>
    %310 = tpu.concatenate %261, %307 in 0 : vector<32x128xf32>, vector<3x128xf32> -> vector<35x128xf32>
    %cst_131 = arith.constant dense<0.000000e+00> : vector<129x128xf32>
    %311 = tpu.matmul %308, %310, %cst_131 {dimension_numbers = #tpu.dot_dimension_numbers<[1], [0], [0], [1], [0, 0, 1, 1], [], []>} : vector<129x35xf32>, vector<35x128xf32>, vector<129x128xf32> -> vector<129x128xf32>
    %312 = vector.broadcast %309 : vector<129x1xf32> to vector<129x128xf32>
    %313 = arith.addf %311, %312 : vector<129x128xf32>
    %314 = vector.extract_strided_slice %313 {offsets = [0, 0], sizes = [32, 128], strides = [1, 1]} : vector<129x128xf32> to vector<32x128xf32>
    %cst_132 = arith.constant 5.000000e-01 : f32
    %315 = vector.broadcast %cst_132 : f32 to vector<32x128xf32>
    %316 = arith.mulf %315, %314 : vector<32x128xf32>
    %317 = math.tanh %316 : vector<32x128xf32>
    %cst_133 = arith.constant 5.000000e-01 : f32
    %318 = vector.broadcast %cst_133 : f32 to vector<32x128xf32>
    %319 = arith.mulf %318, %317 : vector<32x128xf32>
    %cst_134 = arith.constant 5.000000e-01 : f32
    %320 = vector.broadcast %cst_134 : f32 to vector<32x128xf32>
    %321 = arith.addf %319, %320 : vector<32x128xf32>
    %322 = vector.extract_strided_slice %313 {offsets = [32, 0], sizes = [32, 128], strides = [1, 1]} : vector<129x128xf32> to vector<32x128xf32>
    %cst_135 = arith.constant 5.000000e-01 : f32
    %323 = vector.broadcast %cst_135 : f32 to vector<32x128xf32>
    %324 = arith.mulf %323, %322 : vector<32x128xf32>
    %325 = math.tanh %324 : vector<32x128xf32>
    %cst_136 = arith.constant 5.000000e-01 : f32
    %326 = vector.broadcast %cst_136 : f32 to vector<32x128xf32>
    %327 = arith.mulf %326, %325 : vector<32x128xf32>
    %cst_137 = arith.constant 5.000000e-01 : f32
    %328 = vector.broadcast %cst_137 : f32 to vector<32x128xf32>
    %329 = arith.addf %327, %328 : vector<32x128xf32>
    %330 = vector.extract_strided_slice %313 {offsets = [96, 0], sizes = [32, 128], strides = [1, 1]} : vector<129x128xf32> to vector<32x128xf32>
    %331 = vector.extract_strided_slice %313 {offsets = [64, 0], sizes = [32, 128], strides = [1, 1]} : vector<129x128xf32> to vector<32x128xf32>
    %332 = arith.mulf %321, %331 : vector<32x128xf32>
    %333 = arith.addf %330, %332 : vector<32x128xf32>
    %334 = math.tanh %333 : vector<32x128xf32>
    %335 = arith.subf %261, %334 : vector<32x128xf32>
    %336 = arith.mulf %329, %335 : vector<32x128xf32>
    %337 = arith.addf %334, %336 : vector<32x128xf32>
    %338 = vector.extract_strided_slice %313 {offsets = [128, 0], sizes = [1, 128], strides = [1, 1]} : vector<129x128xf32> to vector<1x128xf32>
    %339 = arith.index_cast %c4_i32 : i32 to index
    %c0_138 = arith.constant 0 : index
    %c0_139 = arith.constant 0 : index
    %340 = vector.load %arg2[%339, %c0_138, %c0_139] : memref<8x3x128xf32, #tpu.memory_space<vmem>>, vector<1x3x128xf32>
    %341 = vector.shape_cast %340 : vector<1x3x128xf32> to vector<3x128xf32>
    %c0_140 = arith.constant 0 : index
    %c0_141 = arith.constant 0 : index
    %342 = vector.load %arg4[%c0_140, %c0_141] : memref<129x35xf32, #tpu.memory_space<vmem>>, vector<129x35xf32>
    %c0_142 = arith.constant 0 : index
    %c0_143 = arith.constant 0 : index
    %343 = vector.load %arg6[%c0_142, %c0_143] : memref<129x1xf32, #tpu.memory_space<vmem>>, vector<129x1xf32>
    %344 = tpu.concatenate %295, %341 in 0 : vector<32x128xf32>, vector<3x128xf32> -> vector<35x128xf32>
    %cst_144 = arith.constant dense<0.000000e+00> : vector<129x128xf32>
    %345 = tpu.matmul %342, %344, %cst_144 {dimension_numbers = #tpu.dot_dimension_numbers<[1], [0], [0], [1], [0, 0, 1, 1], [], []>} : vector<129x35xf32>, vector<35x128xf32>, vector<129x128xf32> -> vector<129x128xf32>
    %346 = vector.broadcast %343 : vector<129x1xf32> to vector<129x128xf32>
    %347 = arith.addf %345, %346 : vector<129x128xf32>
    %348 = vector.extract_strided_slice %347 {offsets = [0, 0], sizes = [32, 128], strides = [1, 1]} : vector<129x128xf32> to vector<32x128xf32>
    %cst_145 = arith.constant 5.000000e-01 : f32
    %349 = vector.broadcast %cst_145 : f32 to vector<32x128xf32>
    %350 = arith.mulf %349, %348 : vector<32x128xf32>
    %351 = math.tanh %350 : vector<32x128xf32>
    %cst_146 = arith.constant 5.000000e-01 : f32
    %352 = vector.broadcast %cst_146 : f32 to vector<32x128xf32>
    %353 = arith.mulf %352, %351 : vector<32x128xf32>
    %cst_147 = arith.constant 5.000000e-01 : f32
    %354 = vector.broadcast %cst_147 : f32 to vector<32x128xf32>
    %355 = arith.addf %353, %354 : vector<32x128xf32>
    %356 = vector.extract_strided_slice %347 {offsets = [32, 0], sizes = [32, 128], strides = [1, 1]} : vector<129x128xf32> to vector<32x128xf32>
    %cst_148 = arith.constant 5.000000e-01 : f32
    %357 = vector.broadcast %cst_148 : f32 to vector<32x128xf32>
    %358 = arith.mulf %357, %356 : vector<32x128xf32>
    %359 = math.tanh %358 : vector<32x128xf32>
    %cst_149 = arith.constant 5.000000e-01 : f32
    %360 = vector.broadcast %cst_149 : f32 to vector<32x128xf32>
    %361 = arith.mulf %360, %359 : vector<32x128xf32>
    %cst_150 = arith.constant 5.000000e-01 : f32
    %362 = vector.broadcast %cst_150 : f32 to vector<32x128xf32>
    %363 = arith.addf %361, %362 : vector<32x128xf32>
    %364 = vector.extract_strided_slice %347 {offsets = [96, 0], sizes = [32, 128], strides = [1, 1]} : vector<129x128xf32> to vector<32x128xf32>
    %365 = vector.extract_strided_slice %347 {offsets = [64, 0], sizes = [32, 128], strides = [1, 1]} : vector<129x128xf32> to vector<32x128xf32>
    %366 = arith.mulf %355, %365 : vector<32x128xf32>
    %367 = arith.addf %364, %366 : vector<32x128xf32>
    %368 = math.tanh %367 : vector<32x128xf32>
    %369 = arith.subf %295, %368 : vector<32x128xf32>
    %370 = arith.mulf %363, %369 : vector<32x128xf32>
    %371 = arith.addf %368, %370 : vector<32x128xf32>
    %372 = vector.extract_strided_slice %347 {offsets = [128, 0], sizes = [1, 128], strides = [1, 1]} : vector<129x128xf32> to vector<1x128xf32>
    %c1_i32_151 = arith.constant 1 : i32
    %373 = arith.subi %c4_i32, %c1_i32_151 : i32
    %c0_i32_152 = arith.constant 0 : i32
    %374 = arith.maxsi %373, %c0_i32_152 : i32
    %375 = arith.index_cast %374 : i32 to index
    %c0_153 = arith.constant 0 : index
    %376 = vector.load %arg9[%375, %c0_153] : memref<8x128xf32, #tpu.memory_space<vmem>>, vector<1x128xf32>
    tpu.vector_store %arg9[%375, %c0_153], %338 {strides = array<i32>} : memref<8x128xf32, #tpu.memory_space<vmem>>, vector<1x128xf32>,
    %c8_i32_154 = arith.constant 8 : i32
    %377 = arith.subi %c8_i32_154, %c4_i32 : i32
    %c7_i32_155 = arith.constant 7 : i32
    %378 = arith.minsi %377, %c7_i32_155 : i32
    %379 = arith.index_cast %378 : i32 to index
    %c0_156 = arith.constant 0 : index
    %380 = vector.load %arg10[%379, %c0_156] : memref<8x128xf32, #tpu.memory_space<vmem>>, vector<1x128xf32>
    tpu.vector_store %arg10[%379, %c0_156], %372 {strides = array<i32>} : memref<8x128xf32, #tpu.memory_space<vmem>>, vector<1x128xf32>,
    %c5_i32 = arith.constant 5 : i32
    %381 = arith.index_cast %c5_i32 : i32 to index
    %c0_157 = arith.constant 0 : index
    %c0_158 = arith.constant 0 : index
    %382 = vector.load %arg1[%381, %c0_157, %c0_158] : memref<8x3x128xf32, #tpu.memory_space<vmem>>, vector<1x3x128xf32>
    %383 = vector.shape_cast %382 : vector<1x3x128xf32> to vector<3x128xf32>
    %c0_159 = arith.constant 0 : index
    %c0_160 = arith.constant 0 : index
    %384 = vector.load %arg3[%c0_159, %c0_160] : memref<129x35xf32, #tpu.memory_space<vmem>>, vector<129x35xf32>
    %c0_161 = arith.constant 0 : index
    %c0_162 = arith.constant 0 : index
    %385 = vector.load %arg5[%c0_161, %c0_162] : memref<129x1xf32, #tpu.memory_space<vmem>>, vector<129x1xf32>
    %386 = tpu.concatenate %337, %383 in 0 : vector<32x128xf32>, vector<3x128xf32> -> vector<35x128xf32>
    %cst_163 = arith.constant dense<0.000000e+00> : vector<129x128xf32>
    %387 = tpu.matmul %384, %386, %cst_163 {dimension_numbers = #tpu.dot_dimension_numbers<[1], [0], [0], [1], [0, 0, 1, 1], [], []>} : vector<129x35xf32>, vector<35x128xf32>, vector<129x128xf32> -> vector<129x128xf32>
    %388 = vector.broadcast %385 : vector<129x1xf32> to vector<129x128xf32>
    %389 = arith.addf %387, %388 : vector<129x128xf32>
    %390 = vector.extract_strided_slice %389 {offsets = [0, 0], sizes = [32, 128], strides = [1, 1]} : vector<129x128xf32> to vector<32x128xf32>
    %cst_164 = arith.constant 5.000000e-01 : f32
    %391 = vector.broadcast %cst_164 : f32 to vector<32x128xf32>
    %392 = arith.mulf %391, %390 : vector<32x128xf32>
    %393 = math.tanh %392 : vector<32x128xf32>
    %cst_165 = arith.constant 5.000000e-01 : f32
    %394 = vector.broadcast %cst_165 : f32 to vector<32x128xf32>
    %395 = arith.mulf %394, %393 : vector<32x128xf32>
    %cst_166 = arith.constant 5.000000e-01 : f32
    %396 = vector.broadcast %cst_166 : f32 to vector<32x128xf32>
    %397 = arith.addf %395, %396 : vector<32x128xf32>
    %398 = vector.extract_strided_slice %389 {offsets = [32, 0], sizes = [32, 128], strides = [1, 1]} : vector<129x128xf32> to vector<32x128xf32>
    %cst_167 = arith.constant 5.000000e-01 : f32
    %399 = vector.broadcast %cst_167 : f32 to vector<32x128xf32>
    %400 = arith.mulf %399, %398 : vector<32x128xf32>
    %401 = math.tanh %400 : vector<32x128xf32>
    %cst_168 = arith.constant 5.000000e-01 : f32
    %402 = vector.broadcast %cst_168 : f32 to vector<32x128xf32>
    %403 = arith.mulf %402, %401 : vector<32x128xf32>
    %cst_169 = arith.constant 5.000000e-01 : f32
    %404 = vector.broadcast %cst_169 : f32 to vector<32x128xf32>
    %405 = arith.addf %403, %404 : vector<32x128xf32>
    %406 = vector.extract_strided_slice %389 {offsets = [96, 0], sizes = [32, 128], strides = [1, 1]} : vector<129x128xf32> to vector<32x128xf32>
    %407 = vector.extract_strided_slice %389 {offsets = [64, 0], sizes = [32, 128], strides = [1, 1]} : vector<129x128xf32> to vector<32x128xf32>
    %408 = arith.mulf %397, %407 : vector<32x128xf32>
    %409 = arith.addf %406, %408 : vector<32x128xf32>
    %410 = math.tanh %409 : vector<32x128xf32>
    %411 = arith.subf %337, %410 : vector<32x128xf32>
    %412 = arith.mulf %405, %411 : vector<32x128xf32>
    %413 = arith.addf %410, %412 : vector<32x128xf32>
    %414 = vector.extract_strided_slice %389 {offsets = [128, 0], sizes = [1, 128], strides = [1, 1]} : vector<129x128xf32> to vector<1x128xf32>
    %415 = arith.index_cast %c5_i32 : i32 to index
    %c0_170 = arith.constant 0 : index
    %c0_171 = arith.constant 0 : index
    %416 = vector.load %arg2[%415, %c0_170, %c0_171] : memref<8x3x128xf32, #tpu.memory_space<vmem>>, vector<1x3x128xf32>
    %417 = vector.shape_cast %416 : vector<1x3x128xf32> to vector<3x128xf32>
    %c0_172 = arith.constant 0 : index
    %c0_173 = arith.constant 0 : index
    %418 = vector.load %arg4[%c0_172, %c0_173] : memref<129x35xf32, #tpu.memory_space<vmem>>, vector<129x35xf32>
    %c0_174 = arith.constant 0 : index
    %c0_175 = arith.constant 0 : index
    %419 = vector.load %arg6[%c0_174, %c0_175] : memref<129x1xf32, #tpu.memory_space<vmem>>, vector<129x1xf32>
    %420 = tpu.concatenate %371, %417 in 0 : vector<32x128xf32>, vector<3x128xf32> -> vector<35x128xf32>
    %cst_176 = arith.constant dense<0.000000e+00> : vector<129x128xf32>
    %421 = tpu.matmul %418, %420, %cst_176 {dimension_numbers = #tpu.dot_dimension_numbers<[1], [0], [0], [1], [0, 0, 1, 1], [], []>} : vector<129x35xf32>, vector<35x128xf32>, vector<129x128xf32> -> vector<129x128xf32>
    %422 = vector.broadcast %419 : vector<129x1xf32> to vector<129x128xf32>
    %423 = arith.addf %421, %422 : vector<129x128xf32>
    %424 = vector.extract_strided_slice %423 {offsets = [0, 0], sizes = [32, 128], strides = [1, 1]} : vector<129x128xf32> to vector<32x128xf32>
    %cst_177 = arith.constant 5.000000e-01 : f32
    %425 = vector.broadcast %cst_177 : f32 to vector<32x128xf32>
    %426 = arith.mulf %425, %424 : vector<32x128xf32>
    %427 = math.tanh %426 : vector<32x128xf32>
    %cst_178 = arith.constant 5.000000e-01 : f32
    %428 = vector.broadcast %cst_178 : f32 to vector<32x128xf32>
    %429 = arith.mulf %428, %427 : vector<32x128xf32>
    %cst_179 = arith.constant 5.000000e-01 : f32
    %430 = vector.broadcast %cst_179 : f32 to vector<32x128xf32>
    %431 = arith.addf %429, %430 : vector<32x128xf32>
    %432 = vector.extract_strided_slice %423 {offsets = [32, 0], sizes = [32, 128], strides = [1, 1]} : vector<129x128xf32> to vector<32x128xf32>
    %cst_180 = arith.constant 5.000000e-01 : f32
    %433 = vector.broadcast %cst_180 : f32 to vector<32x128xf32>
    %434 = arith.mulf %433, %432 : vector<32x128xf32>
    %435 = math.tanh %434 : vector<32x128xf32>
    %cst_181 = arith.constant 5.000000e-01 : f32
    %436 = vector.broadcast %cst_181 : f32 to vector<32x128xf32>
    %437 = arith.mulf %436, %435 : vector<32x128xf32>
    %cst_182 = arith.constant 5.000000e-01 : f32
    %438 = vector.broadcast %cst_182 : f32 to vector<32x128xf32>
    %439 = arith.addf %437, %438 : vector<32x128xf32>
    %440 = vector.extract_strided_slice %423 {offsets = [96, 0], sizes = [32, 128], strides = [1, 1]} : vector<129x128xf32> to vector<32x128xf32>
    %441 = vector.extract_strided_slice %423 {offsets = [64, 0], sizes = [32, 128], strides = [1, 1]} : vector<129x128xf32> to vector<32x128xf32>
    %442 = arith.mulf %431, %441 : vector<32x128xf32>
    %443 = arith.addf %440, %442 : vector<32x128xf32>
    %444 = math.tanh %443 : vector<32x128xf32>
    %445 = arith.subf %371, %444 : vector<32x128xf32>
    %446 = arith.mulf %439, %445 : vector<32x128xf32>
    %447 = arith.addf %444, %446 : vector<32x128xf32>
    %448 = vector.extract_strided_slice %423 {offsets = [128, 0], sizes = [1, 128], strides = [1, 1]} : vector<129x128xf32> to vector<1x128xf32>
    %c1_i32_183 = arith.constant 1 : i32
    %449 = arith.subi %c5_i32, %c1_i32_183 : i32
    %c0_i32_184 = arith.constant 0 : i32
    %450 = arith.maxsi %449, %c0_i32_184 : i32
    %451 = arith.index_cast %450 : i32 to index
    %c0_185 = arith.constant 0 : index
    %452 = vector.load %arg9[%451, %c0_185] : memref<8x128xf32, #tpu.memory_space<vmem>>, vector<1x128xf32>
    tpu.vector_store %arg9[%451, %c0_185], %414 {strides = array<i32>} : memref<8x128xf32, #tpu.memory_space<vmem>>, vector<1x128xf32>,
    %c8_i32_186 = arith.constant 8 : i32
    %453 = arith.subi %c8_i32_186, %c5_i32 : i32
    %c7_i32_187 = arith.constant 7 : i32
    %454 = arith.minsi %453, %c7_i32_187 : i32
    %455 = arith.index_cast %454 : i32 to index
    %c0_188 = arith.constant 0 : index
    %456 = vector.load %arg10[%455, %c0_188] : memref<8x128xf32, #tpu.memory_space<vmem>>, vector<1x128xf32>
    tpu.vector_store %arg10[%455, %c0_188], %448 {strides = array<i32>} : memref<8x128xf32, #tpu.memory_space<vmem>>, vector<1x128xf32>,
    %c6_i32 = arith.constant 6 : i32
    %457 = arith.index_cast %c6_i32 : i32 to index
    %c0_189 = arith.constant 0 : index
    %c0_190 = arith.constant 0 : index
    %458 = vector.load %arg1[%457, %c0_189, %c0_190] : memref<8x3x128xf32, #tpu.memory_space<vmem>>, vector<1x3x128xf32>
    %459 = vector.shape_cast %458 : vector<1x3x128xf32> to vector<3x128xf32>
    %c0_191 = arith.constant 0 : index
    %c0_192 = arith.constant 0 : index
    %460 = vector.load %arg3[%c0_191, %c0_192] : memref<129x35xf32, #tpu.memory_space<vmem>>, vector<129x35xf32>
    %c0_193 = arith.constant 0 : index
    %c0_194 = arith.constant 0 : index
    %461 = vector.load %arg5[%c0_193, %c0_194] : memref<129x1xf32, #tpu.memory_space<vmem>>, vector<129x1xf32>
    %462 = tpu.concatenate %413, %459 in 0 : vector<32x128xf32>, vector<3x128xf32> -> vector<35x128xf32>
    %cst_195 = arith.constant dense<0.000000e+00> : vector<129x128xf32>
    %463 = tpu.matmul %460, %462, %cst_195 {dimension_numbers = #tpu.dot_dimension_numbers<[1], [0], [0], [1], [0, 0, 1, 1], [], []>} : vector<129x35xf32>, vector<35x128xf32>, vector<129x128xf32> -> vector<129x128xf32>
    %464 = vector.broadcast %461 : vector<129x1xf32> to vector<129x128xf32>
    %465 = arith.addf %463, %464 : vector<129x128xf32>
    %466 = vector.extract_strided_slice %465 {offsets = [0, 0], sizes = [32, 128], strides = [1, 1]} : vector<129x128xf32> to vector<32x128xf32>
    %cst_196 = arith.constant 5.000000e-01 : f32
    %467 = vector.broadcast %cst_196 : f32 to vector<32x128xf32>
    %468 = arith.mulf %467, %466 : vector<32x128xf32>
    %469 = math.tanh %468 : vector<32x128xf32>
    %cst_197 = arith.constant 5.000000e-01 : f32
    %470 = vector.broadcast %cst_197 : f32 to vector<32x128xf32>
    %471 = arith.mulf %470, %469 : vector<32x128xf32>
    %cst_198 = arith.constant 5.000000e-01 : f32
    %472 = vector.broadcast %cst_198 : f32 to vector<32x128xf32>
    %473 = arith.addf %471, %472 : vector<32x128xf32>
    %474 = vector.extract_strided_slice %465 {offsets = [32, 0], sizes = [32, 128], strides = [1, 1]} : vector<129x128xf32> to vector<32x128xf32>
    %cst_199 = arith.constant 5.000000e-01 : f32
    %475 = vector.broadcast %cst_199 : f32 to vector<32x128xf32>
    %476 = arith.mulf %475, %474 : vector<32x128xf32>
    %477 = math.tanh %476 : vector<32x128xf32>
    %cst_200 = arith.constant 5.000000e-01 : f32
    %478 = vector.broadcast %cst_200 : f32 to vector<32x128xf32>
    %479 = arith.mulf %478, %477 : vector<32x128xf32>
    %cst_201 = arith.constant 5.000000e-01 : f32
    %480 = vector.broadcast %cst_201 : f32 to vector<32x128xf32>
    %481 = arith.addf %479, %480 : vector<32x128xf32>
    %482 = vector.extract_strided_slice %465 {offsets = [96, 0], sizes = [32, 128], strides = [1, 1]} : vector<129x128xf32> to vector<32x128xf32>
    %483 = vector.extract_strided_slice %465 {offsets = [64, 0], sizes = [32, 128], strides = [1, 1]} : vector<129x128xf32> to vector<32x128xf32>
    %484 = arith.mulf %473, %483 : vector<32x128xf32>
    %485 = arith.addf %482, %484 : vector<32x128xf32>
    %486 = math.tanh %485 : vector<32x128xf32>
    %487 = arith.subf %413, %486 : vector<32x128xf32>
    %488 = arith.mulf %481, %487 : vector<32x128xf32>
    %489 = arith.addf %486, %488 : vector<32x128xf32>
    %490 = vector.extract_strided_slice %465 {offsets = [128, 0], sizes = [1, 128], strides = [1, 1]} : vector<129x128xf32> to vector<1x128xf32>
    %491 = arith.index_cast %c6_i32 : i32 to index
    %c0_202 = arith.constant 0 : index
    %c0_203 = arith.constant 0 : index
    %492 = vector.load %arg2[%491, %c0_202, %c0_203] : memref<8x3x128xf32, #tpu.memory_space<vmem>>, vector<1x3x128xf32>
    %493 = vector.shape_cast %492 : vector<1x3x128xf32> to vector<3x128xf32>
    %c0_204 = arith.constant 0 : index
    %c0_205 = arith.constant 0 : index
    %494 = vector.load %arg4[%c0_204, %c0_205] : memref<129x35xf32, #tpu.memory_space<vmem>>, vector<129x35xf32>
    %c0_206 = arith.constant 0 : index
    %c0_207 = arith.constant 0 : index
    %495 = vector.load %arg6[%c0_206, %c0_207] : memref<129x1xf32, #tpu.memory_space<vmem>>, vector<129x1xf32>
    %496 = tpu.concatenate %447, %493 in 0 : vector<32x128xf32>, vector<3x128xf32> -> vector<35x128xf32>
    %cst_208 = arith.constant dense<0.000000e+00> : vector<129x128xf32>
    %497 = tpu.matmul %494, %496, %cst_208 {dimension_numbers = #tpu.dot_dimension_numbers<[1], [0], [0], [1], [0, 0, 1, 1], [], []>} : vector<129x35xf32>, vector<35x128xf32>, vector<129x128xf32> -> vector<129x128xf32>
    %498 = vector.broadcast %495 : vector<129x1xf32> to vector<129x128xf32>
    %499 = arith.addf %497, %498 : vector<129x128xf32>
    %500 = vector.extract_strided_slice %499 {offsets = [0, 0], sizes = [32, 128], strides = [1, 1]} : vector<129x128xf32> to vector<32x128xf32>
    %cst_209 = arith.constant 5.000000e-01 : f32
    %501 = vector.broadcast %cst_209 : f32 to vector<32x128xf32>
    %502 = arith.mulf %501, %500 : vector<32x128xf32>
    %503 = math.tanh %502 : vector<32x128xf32>
    %cst_210 = arith.constant 5.000000e-01 : f32
    %504 = vector.broadcast %cst_210 : f32 to vector<32x128xf32>
    %505 = arith.mulf %504, %503 : vector<32x128xf32>
    %cst_211 = arith.constant 5.000000e-01 : f32
    %506 = vector.broadcast %cst_211 : f32 to vector<32x128xf32>
    %507 = arith.addf %505, %506 : vector<32x128xf32>
    %508 = vector.extract_strided_slice %499 {offsets = [32, 0], sizes = [32, 128], strides = [1, 1]} : vector<129x128xf32> to vector<32x128xf32>
    %cst_212 = arith.constant 5.000000e-01 : f32
    %509 = vector.broadcast %cst_212 : f32 to vector<32x128xf32>
    %510 = arith.mulf %509, %508 : vector<32x128xf32>
    %511 = math.tanh %510 : vector<32x128xf32>
    %cst_213 = arith.constant 5.000000e-01 : f32
    %512 = vector.broadcast %cst_213 : f32 to vector<32x128xf32>
    %513 = arith.mulf %512, %511 : vector<32x128xf32>
    %cst_214 = arith.constant 5.000000e-01 : f32
    %514 = vector.broadcast %cst_214 : f32 to vector<32x128xf32>
    %515 = arith.addf %513, %514 : vector<32x128xf32>
    %516 = vector.extract_strided_slice %499 {offsets = [96, 0], sizes = [32, 128], strides = [1, 1]} : vector<129x128xf32> to vector<32x128xf32>
    %517 = vector.extract_strided_slice %499 {offsets = [64, 0], sizes = [32, 128], strides = [1, 1]} : vector<129x128xf32> to vector<32x128xf32>
    %518 = arith.mulf %507, %517 : vector<32x128xf32>
    %519 = arith.addf %516, %518 : vector<32x128xf32>
    %520 = math.tanh %519 : vector<32x128xf32>
    %521 = arith.subf %447, %520 : vector<32x128xf32>
    %522 = arith.mulf %515, %521 : vector<32x128xf32>
    %523 = arith.addf %520, %522 : vector<32x128xf32>
    %524 = vector.extract_strided_slice %499 {offsets = [128, 0], sizes = [1, 128], strides = [1, 1]} : vector<129x128xf32> to vector<1x128xf32>
    %c1_i32_215 = arith.constant 1 : i32
    %525 = arith.subi %c6_i32, %c1_i32_215 : i32
    %c0_i32_216 = arith.constant 0 : i32
    %526 = arith.maxsi %525, %c0_i32_216 : i32
    %527 = arith.index_cast %526 : i32 to index
    %c0_217 = arith.constant 0 : index
    %528 = vector.load %arg9[%527, %c0_217] : memref<8x128xf32, #tpu.memory_space<vmem>>, vector<1x128xf32>
    tpu.vector_store %arg9[%527, %c0_217], %490 {strides = array<i32>} : memref<8x128xf32, #tpu.memory_space<vmem>>, vector<1x128xf32>,
    %c8_i32_218 = arith.constant 8 : i32
    %529 = arith.subi %c8_i32_218, %c6_i32 : i32
    %c7_i32_219 = arith.constant 7 : i32
    %530 = arith.minsi %529, %c7_i32_219 : i32
    %531 = arith.index_cast %530 : i32 to index
    %c0_220 = arith.constant 0 : index
    %532 = vector.load %arg10[%531, %c0_220] : memref<8x128xf32, #tpu.memory_space<vmem>>, vector<1x128xf32>
    tpu.vector_store %arg10[%531, %c0_220], %524 {strides = array<i32>} : memref<8x128xf32, #tpu.memory_space<vmem>>, vector<1x128xf32>,
    %c7_i32_221 = arith.constant 7 : i32
    %533 = arith.index_cast %c7_i32_221 : i32 to index
    %c0_222 = arith.constant 0 : index
    %c0_223 = arith.constant 0 : index
    %534 = vector.load %arg1[%533, %c0_222, %c0_223] : memref<8x3x128xf32, #tpu.memory_space<vmem>>, vector<1x3x128xf32>
    %535 = vector.shape_cast %534 : vector<1x3x128xf32> to vector<3x128xf32>
    %c0_224 = arith.constant 0 : index
    %c0_225 = arith.constant 0 : index
    %536 = vector.load %arg3[%c0_224, %c0_225] : memref<129x35xf32, #tpu.memory_space<vmem>>, vector<129x35xf32>
    %c0_226 = arith.constant 0 : index
    %c0_227 = arith.constant 0 : index
    %537 = vector.load %arg5[%c0_226, %c0_227] : memref<129x1xf32, #tpu.memory_space<vmem>>, vector<129x1xf32>
    %538 = tpu.concatenate %489, %535 in 0 : vector<32x128xf32>, vector<3x128xf32> -> vector<35x128xf32>
    %cst_228 = arith.constant dense<0.000000e+00> : vector<129x128xf32>
    %539 = tpu.matmul %536, %538, %cst_228 {dimension_numbers = #tpu.dot_dimension_numbers<[1], [0], [0], [1], [0, 0, 1, 1], [], []>} : vector<129x35xf32>, vector<35x128xf32>, vector<129x128xf32> -> vector<129x128xf32>
    %540 = vector.broadcast %537 : vector<129x1xf32> to vector<129x128xf32>
    %541 = arith.addf %539, %540 : vector<129x128xf32>
    %542 = vector.extract_strided_slice %541 {offsets = [0, 0], sizes = [32, 128], strides = [1, 1]} : vector<129x128xf32> to vector<32x128xf32>
    %cst_229 = arith.constant 5.000000e-01 : f32
    %543 = vector.broadcast %cst_229 : f32 to vector<32x128xf32>
    %544 = arith.mulf %543, %542 : vector<32x128xf32>
    %545 = math.tanh %544 : vector<32x128xf32>
    %cst_230 = arith.constant 5.000000e-01 : f32
    %546 = vector.broadcast %cst_230 : f32 to vector<32x128xf32>
    %547 = arith.mulf %546, %545 : vector<32x128xf32>
    %cst_231 = arith.constant 5.000000e-01 : f32
    %548 = vector.broadcast %cst_231 : f32 to vector<32x128xf32>
    %549 = arith.addf %547, %548 : vector<32x128xf32>
    %550 = vector.extract_strided_slice %541 {offsets = [32, 0], sizes = [32, 128], strides = [1, 1]} : vector<129x128xf32> to vector<32x128xf32>
    %cst_232 = arith.constant 5.000000e-01 : f32
    %551 = vector.broadcast %cst_232 : f32 to vector<32x128xf32>
    %552 = arith.mulf %551, %550 : vector<32x128xf32>
    %553 = math.tanh %552 : vector<32x128xf32>
    %cst_233 = arith.constant 5.000000e-01 : f32
    %554 = vector.broadcast %cst_233 : f32 to vector<32x128xf32>
    %555 = arith.mulf %554, %553 : vector<32x128xf32>
    %cst_234 = arith.constant 5.000000e-01 : f32
    %556 = vector.broadcast %cst_234 : f32 to vector<32x128xf32>
    %557 = arith.addf %555, %556 : vector<32x128xf32>
    %558 = vector.extract_strided_slice %541 {offsets = [96, 0], sizes = [32, 128], strides = [1, 1]} : vector<129x128xf32> to vector<32x128xf32>
    %559 = vector.extract_strided_slice %541 {offsets = [64, 0], sizes = [32, 128], strides = [1, 1]} : vector<129x128xf32> to vector<32x128xf32>
    %560 = arith.mulf %549, %559 : vector<32x128xf32>
    %561 = arith.addf %558, %560 : vector<32x128xf32>
    %562 = math.tanh %561 : vector<32x128xf32>
    %563 = arith.subf %489, %562 : vector<32x128xf32>
    %564 = arith.mulf %557, %563 : vector<32x128xf32>
    %565 = arith.addf %562, %564 : vector<32x128xf32>
    %566 = vector.extract_strided_slice %541 {offsets = [128, 0], sizes = [1, 128], strides = [1, 1]} : vector<129x128xf32> to vector<1x128xf32>
    %567 = arith.index_cast %c7_i32_221 : i32 to index
    %c0_235 = arith.constant 0 : index
    %c0_236 = arith.constant 0 : index
    %568 = vector.load %arg2[%567, %c0_235, %c0_236] : memref<8x3x128xf32, #tpu.memory_space<vmem>>, vector<1x3x128xf32>
    %569 = vector.shape_cast %568 : vector<1x3x128xf32> to vector<3x128xf32>
    %c0_237 = arith.constant 0 : index
    %c0_238 = arith.constant 0 : index
    %570 = vector.load %arg4[%c0_237, %c0_238] : memref<129x35xf32, #tpu.memory_space<vmem>>, vector<129x35xf32>
    %c0_239 = arith.constant 0 : index
    %c0_240 = arith.constant 0 : index
    %571 = vector.load %arg6[%c0_239, %c0_240] : memref<129x1xf32, #tpu.memory_space<vmem>>, vector<129x1xf32>
    %572 = tpu.concatenate %523, %569 in 0 : vector<32x128xf32>, vector<3x128xf32> -> vector<35x128xf32>
    %cst_241 = arith.constant dense<0.000000e+00> : vector<129x128xf32>
    %573 = tpu.matmul %570, %572, %cst_241 {dimension_numbers = #tpu.dot_dimension_numbers<[1], [0], [0], [1], [0, 0, 1, 1], [], []>} : vector<129x35xf32>, vector<35x128xf32>, vector<129x128xf32> -> vector<129x128xf32>
    %574 = vector.broadcast %571 : vector<129x1xf32> to vector<129x128xf32>
    %575 = arith.addf %573, %574 : vector<129x128xf32>
    %576 = vector.extract_strided_slice %575 {offsets = [0, 0], sizes = [32, 128], strides = [1, 1]} : vector<129x128xf32> to vector<32x128xf32>
    %cst_242 = arith.constant 5.000000e-01 : f32
    %577 = vector.broadcast %cst_242 : f32 to vector<32x128xf32>
    %578 = arith.mulf %577, %576 : vector<32x128xf32>
    %579 = math.tanh %578 : vector<32x128xf32>
    %cst_243 = arith.constant 5.000000e-01 : f32
    %580 = vector.broadcast %cst_243 : f32 to vector<32x128xf32>
    %581 = arith.mulf %580, %579 : vector<32x128xf32>
    %cst_244 = arith.constant 5.000000e-01 : f32
    %582 = vector.broadcast %cst_244 : f32 to vector<32x128xf32>
    %583 = arith.addf %581, %582 : vector<32x128xf32>
    %584 = vector.extract_strided_slice %575 {offsets = [32, 0], sizes = [32, 128], strides = [1, 1]} : vector<129x128xf32> to vector<32x128xf32>
    %cst_245 = arith.constant 5.000000e-01 : f32
    %585 = vector.broadcast %cst_245 : f32 to vector<32x128xf32>
    %586 = arith.mulf %585, %584 : vector<32x128xf32>
    %587 = math.tanh %586 : vector<32x128xf32>
    %cst_246 = arith.constant 5.000000e-01 : f32
    %588 = vector.broadcast %cst_246 : f32 to vector<32x128xf32>
    %589 = arith.mulf %588, %587 : vector<32x128xf32>
    %cst_247 = arith.constant 5.000000e-01 : f32
    %590 = vector.broadcast %cst_247 : f32 to vector<32x128xf32>
    %591 = arith.addf %589, %590 : vector<32x128xf32>
    %592 = vector.extract_strided_slice %575 {offsets = [96, 0], sizes = [32, 128], strides = [1, 1]} : vector<129x128xf32> to vector<32x128xf32>
    %593 = vector.extract_strided_slice %575 {offsets = [64, 0], sizes = [32, 128], strides = [1, 1]} : vector<129x128xf32> to vector<32x128xf32>
    %594 = arith.mulf %583, %593 : vector<32x128xf32>
    %595 = arith.addf %592, %594 : vector<32x128xf32>
    %596 = math.tanh %595 : vector<32x128xf32>
    %597 = arith.subf %523, %596 : vector<32x128xf32>
    %598 = arith.mulf %591, %597 : vector<32x128xf32>
    %599 = arith.addf %596, %598 : vector<32x128xf32>
    %600 = vector.extract_strided_slice %575 {offsets = [128, 0], sizes = [1, 128], strides = [1, 1]} : vector<129x128xf32> to vector<1x128xf32>
    %c1_i32_248 = arith.constant 1 : i32
    %601 = arith.subi %c7_i32_221, %c1_i32_248 : i32
    %c0_i32_249 = arith.constant 0 : i32
    %602 = arith.maxsi %601, %c0_i32_249 : i32
    %603 = arith.index_cast %602 : i32 to index
    %c0_250 = arith.constant 0 : index
    %604 = vector.load %arg9[%603, %c0_250] : memref<8x128xf32, #tpu.memory_space<vmem>>, vector<1x128xf32>
    tpu.vector_store %arg9[%603, %c0_250], %566 {strides = array<i32>} : memref<8x128xf32, #tpu.memory_space<vmem>>, vector<1x128xf32>,
    %c8_i32_251 = arith.constant 8 : i32
    %605 = arith.subi %c8_i32_251, %c7_i32_221 : i32
    %c7_i32_252 = arith.constant 7 : i32
    %606 = arith.minsi %605, %c7_i32_252 : i32
    %607 = arith.index_cast %606 : i32 to index
    %c0_253 = arith.constant 0 : index
    %608 = vector.load %arg10[%607, %c0_253] : memref<8x128xf32, #tpu.memory_space<vmem>>, vector<1x128xf32>
    tpu.vector_store %arg10[%607, %c0_253], %600 {strides = array<i32>} : memref<8x128xf32, #tpu.memory_space<vmem>>, vector<1x128xf32>,
    %c8_i32_254 = arith.constant 8 : i32
    %c0_255 = arith.constant 0 : index
    %c0_256 = arith.constant 0 : index
    %609 = vector.load %arg3[%c0_255, %c0_256] : memref<129x35xf32, #tpu.memory_space<vmem>>, vector<129x35xf32>
    %610 = vector.extract_strided_slice %609 {offsets = [128, 0], sizes = [1, 32], strides = [1, 1]} : vector<129x35xf32> to vector<1x32xf32>
    %c0_257 = arith.constant 0 : index
    %c0_258 = arith.constant 0 : index
    %611 = vector.load %arg4[%c0_257, %c0_258] : memref<129x35xf32, #tpu.memory_space<vmem>>, vector<129x35xf32>
    %612 = vector.extract_strided_slice %611 {offsets = [128, 0], sizes = [1, 32], strides = [1, 1]} : vector<129x35xf32> to vector<1x32xf32>
    %cst_259 = arith.constant dense<0.000000e+00> : vector<1x128xf32>
    %613 = tpu.matmul %610, %565, %cst_259 {dimension_numbers = #tpu.dot_dimension_numbers<[1], [0], [0], [1], [0, 0, 1, 1], [], []>} : vector<1x32xf32>, vector<32x128xf32>, vector<1x128xf32> -> vector<1x128xf32>
    %c7 = arith.constant 7 : index
    %c0_260 = arith.constant 0 : index
    %614 = vector.load %arg9[%c7, %c0_260] : memref<8x128xf32, #tpu.memory_space<vmem>>, vector<1x128xf32>
    tpu.vector_store %arg9[%c7, %c0_260], %613 {strides = array<i32>} : memref<8x128xf32, #tpu.memory_space<vmem>>, vector<1x128xf32>,
    %cst_261 = arith.constant dense<0.000000e+00> : vector<1x128xf32>
    %615 = tpu.matmul %612, %599, %cst_261 {dimension_numbers = #tpu.dot_dimension_numbers<[1], [0], [0], [1], [0, 0, 1, 1], [], []>} : vector<1x32xf32>, vector<32x128xf32>, vector<1x128xf32> -> vector<1x128xf32>
    %c0_262 = arith.constant 0 : index
    %c0_263 = arith.constant 0 : index
    %616 = vector.load %arg10[%c0_262, %c0_263] : memref<8x128xf32, #tpu.memory_space<vmem>>, vector<1x128xf32>
    tpu.vector_store %arg10[%c0_262, %c0_263], %615 {strides = array<i32>} : memref<8x128xf32, #tpu.memory_space<vmem>>, vector<1x128xf32>,
    %c0_264 = arith.constant 0 : index
    %c0_265 = arith.constant 0 : index
    %617 = vector.load %arg9[%c0_264, %c0_265] : memref<8x128xf32, #tpu.memory_space<vmem>>, vector<8x128xf32>
    %c0_266 = arith.constant 0 : index
    %c0_267 = arith.constant 0 : index
    %618 = vector.load %arg10[%c0_266, %c0_267] : memref<8x128xf32, #tpu.memory_space<vmem>>, vector<8x128xf32>
    %619 = arith.addf %617, %618 : vector<8x128xf32>
    %c0_268 = arith.constant 0 : index
    %c0_269 = arith.constant 0 : index
    %620 = vector.load %arg7[%c0_268, %c0_269] : memref<1x1xf32, #tpu.memory_space<vmem>>, vector<1x1xf32>
    %621 = vector.broadcast %620 : vector<1x1xf32> to vector<8x128xf32>
    %622 = arith.addf %619, %621 : vector<8x128xf32>
    %c0_270 = arith.constant 0 : index
    %c0_271 = arith.constant 0 : index
    %623 = vector.load %arg8[%c0_270, %c0_271] : memref<8x128xf32, #tpu.memory_space<vmem>>, vector<8x128xf32>
    tpu.vector_store %arg8[%c0_270, %c0_271], %622 {strides = array<i32>} : memref<8x128xf32, #tpu.memory_space<vmem>>, vector<8x128xf32>,
    return
  }
  func.func @transform_0(%arg0: i32) -> (i32, i32, i32) {
    %c0_i32 = arith.constant 0 : i32
    %c0_i32_0 = arith.constant 0 : i32
    %c0_i32_1 = arith.constant 0 : i32
    return %c0_i32, %c0_i32_0, %arg0 : i32, i32, i32
  }
  func.func @transform_1(%arg0: i32) -> (i32, i32, i32) {
    %c0_i32 = arith.constant 0 : i32
    %c0_i32_0 = arith.constant 0 : i32
    %c0_i32_1 = arith.constant 0 : i32
    return %c0_i32, %c0_i32_0, %arg0 : i32, i32, i32
  }
  func.func @transform_2(%arg0: i32) -> (i32, i32) {
    %c0_i32 = arith.constant 0 : i32
    %c0_i32_0 = arith.constant 0 : i32
    %c0_i32_1 = arith.constant 0 : i32
    return %c0_i32, %c0_i32_0 : i32, i32
  }
  func.func @transform_3(%arg0: i32) -> (i32, i32) {
    %c0_i32 = arith.constant 0 : i32
    %c0_i32_0 = arith.constant 0 : i32
    %c0_i32_1 = arith.constant 0 : i32
    return %c0_i32, %c0_i32_0 : i32, i32
  }
  func.func @transform_4(%arg0: i32) -> (i32, i32) {
    %c0_i32 = arith.constant 0 : i32
    %c0_i32_0 = arith.constant 0 : i32
    %c0_i32_1 = arith.constant 0 : i32
    return %c0_i32, %c0_i32_0 : i32, i32
  }
  func.func @transform_5(%arg0: i32) -> (i32, i32) {
    %c0_i32 = arith.constant 0 : i32
    %c0_i32_0 = arith.constant 0 : i32
    %c0_i32_1 = arith.constant 0 : i32
    return %c0_i32, %c0_i32_0 : i32, i32
  }
  func.func @transform_6(%arg0: i32) -> (i32, i32) {
    %c0_i32 = arith.constant 0 : i32
    %c0_i32_0 = arith.constant 0 : i32
    %c0_i32_1 = arith.constant 0 : i32
    return %c0_i32, %c0_i32_0 : i32, i32
  }
  func.func @transform_7(%arg0: i32) -> (i32, i32) {
    %c0_i32 = arith.constant 0 : i32
    %c0_i32_0 = arith.constant 0 : i32
    return %c0_i32, %arg0 : i32, i32
  }
}

</mosaic_0001>

<bundles_post_ra>
// kernel: tpu_custom_call.1
= control target key start
LH: loop header
LB: loop body
LE: loop exit
PB: predicated region body
PF: predicated region fallthrough
CT: control target
= control target key end

     0   :  { %s12277_s0 = inlined_call_operand.vmem [shape: f32[8,3,128], index: 0, kind: input, shape index: {}]   ;;  %s12278_s1 = inlined_call_operand.vmem [shape: f32[8,3,128], index: 1, kind: input, shape index: {}]   ;;  %s12279_s2 = inlined_call_operand.vmem [shape: f32[129,35], index: 2, kind: input, shape index: {}]   ;;  %s12280_s3 = inlined_call_operand.vmem [shape: f32[129,35], index: 3, kind: input, shape index: {}]   ;;  %s12281_s4 = inlined_call_operand.vmem [shape: f32[129,1], index: 4, kind: input, shape index: {}]   ;;  %s12282_s5 = inlined_call_operand.vmem [shape: f32[129,1], index: 5, kind: input, shape index: {}]   ;;  %s12283_s6 = inlined_call_operand.<no memory space> [shape: f32[1,1], index: 6, kind: input, shape index: {}]   ;;  %s12284_s7 = inlined_call_operand.hbm [shape: f32[8,128], index: 7, kind: output, shape index: {}]  }
   0x1   :  { %v12_v0 = vstv %s12283_s6 }
   0x2   :  { %13 = vst [vmem:[#allocation4] sm:$0x1] %v12_v0 }
   0x3   :  { %v12285_v1 = vmov 0.0|0.0   ;;  %v8558_v2 = vld [vmem:[%s12282_s5] sm:$0xff]  ;;  %v8506_v4 = vmov 0   ;;  %v8574_v5 = vld [vmem:[%s12282_s5 + $0x8] sm:$0xff]  ;;  %vm8507_vm0 = vmmov 0   ;;  %v12287_v7 = vmov 0.0  }
   0x4   :  { %7986 = vmatprep.subr.bf16.mxu0 %v12285_v1  ;;  %7990 = vmatprep.subr.bf16.mxu1 %v12285_v1  ;;  %v8563_v3 = vld [vmem:[%s12281_s4] sm:$0xff]  ;;  %v8579_v6 = vld [vmem:[%s12281_s4 + $0x8] sm:$0xff]  ;;  %vm201_vm1 = vcmask 1042432   ;;  %v8600_v10 = vld [vmem:[%s12281_s4 + $0x18] sm:$0xff]  ;;  %vm149_vm2 = vcmask 285696  }
   0x5   :  { %8096 = vset.pattern.permute.xlu1 %v8506_v4  ;;  %8095 = vset.pattern.permute.xlu0 %v8506_v4  ;;  %v411_v8 = vld [vmem:[%s12278_s1] sm:$0x7]  ;;  %v8605_v11 = vld [vmem:[%s12281_s4 + $0x10] sm:$0xff]  ;;  %v8622_v14 = vld [vmem:[%s12282_s5 + $0x18] sm:$0xff] }
   0x6   :  { %7987 = vmatpush3.bf16.msra.mxu0 %v12285_v1  ;;  %7991 = vmatpush3.bf16.msra.mxu1 %v12285_v1  ;;  %v29_v9 = vld [vmem:[%s12277_s0] sm:$0x7]  ;;  %v8627_v15 = vld [vmem:[%s12282_s5 + $0x10] sm:$0xff]  ;;  %v31_v16 = vld [vmem:[%s12279_s2 + $0x8] sm:$0xff] }
   0x7   :  { %448 = vperm.xlu1 %8096, %v8558_v2   ;;  %66 = vperm.xlu0 %8095, %v8563_v3   ;;  %v30_v12 = vld [vmem:[%s12279_s2] sm:$0xff]  ;;  %v413_v17 = vld [vmem:[%s12280_s3 + $0x8] sm:$0xff]  ;;  %v32_v20 = vld [vmem:[%s12279_s2 + $0x10] sm:$0xff] }
   0x8   :  { %7988 = vmatprep.subr.bf16.mxu0 %v12285_v1  ;;  %7992 = vmatprep.subr.bf16.mxu1 %v12285_v1  ;;  %v412_v13 = vld [vmem:[%s12280_s3] sm:$0xff]  ;;  %v8648_v18 = vld [vmem:[%s12281_s4 + $0x28] sm:$0xff]  ;;  %v414_v21 = vld [vmem:[%s12280_s3 + $0x10] sm:$0xff] }
   0x9   :  { %6998 = vmatprep.mubr.msk.f32.mxu0 %vm8507_vm0, %v12287_v7  ;;  %7059 = vmatprep.mubr.msk.f32.mxu1 %vm8507_vm0, %v12287_v7  ;;  %v8653_v19 = vld [vmem:[%s12281_s4 + $0x20] sm:$0xff]  ;;  %v8672_v22 = vld [vmem:[%s12281_s4 + $0x48] sm:$0xff]  ;;  %v33_v24 = vld [vmem:[%s12279_s2 + $0x18] sm:$0xff] }
   0xa   :  { %7989 = vmatpush3.bf16.msra.mxu0 %v12285_v1  ;;  %7993 = vmatpush3.bf16.msra.mxu1 %v12285_v1  ;;  %v8677_v23 = vld [vmem:[%s12281_s4 + $0x40] sm:$0xff]  ;;  %v415_v25 = vld [vmem:[%s12280_s3 + $0x18] sm:$0xff] }
   0xb   :  { %453 = vperm.xlu1 %8096, %v8574_v5   ;;  %71 = vperm.xlu0 %8095, %v8579_v6  }
   0xc   :  { %6996 = vmatprep.subr.mxu0 %v12287_v7  ;;  %7057 = vmatprep.subr.mxu1 %v12287_v7 }
   0xe   :  { %7058 = vmatpush3.msk.msra.mxu1 %vm201_vm1, %v411_v8  ;;  %6997 = vmatpush3.msk.msra.mxu0 %vm201_vm1, %v29_v9 }
   0xf   :  { %81 = vperm.xlu1 %8096, %v8600_v10   ;;  %76 = vperm.xlu0 %8095, %v8605_v11  }
  0x10   :  { %6999 = vmatmul.mubr.msk.f32.vlgmr.msra.gmra.mrb[0].mxu0 %vm149_vm2, %v30_v12  ;;  %7060 = vmatmul.mubr.msk.f32.vlgmr.msra.gmra.mrb[0].mxu1 %vm149_vm2, %v412_v13 }
  0x11   :  { %7062 = vmatprep.mubr.msk.f32.mxu1 %vm8507_vm0, %v12287_v7  ;;  %7001 = vmatprep.mubr.msk.f32.mxu0 %vm8507_vm0, %v12287_v7 }
  0x12   :  { %8000 = vmatprep.subr.bf16.mxu1 %v12285_v1  ;;  %7994 = vmatprep.subr.bf16.mxu0 %v12285_v1 }
  0x13   :  { %463 = vperm.xlu1 %8096, %v8622_v14   ;;  %458 = vperm.xlu0 %8095, %v8627_v15  }
  0x14   :  { %7002 = vmatmul.mubr.msk.f32.gmra.mrb[2].mxu0 %vm149_vm2, %v31_v16  ;;  %7063 = vmatmul.mubr.msk.f32.gmra.mrb[2].mxu1 %vm149_vm2, %v413_v17 }
  0x15   :  { %7065 = vmatprep.mubr.msk.f32.mxu1 %vm8507_vm0, %v12287_v7  ;;  %7004 = vmatprep.mubr.msk.f32.mxu0 %vm8507_vm0, %v12287_v7 }
  0x17   :  { %91 = vperm.xlu1 %8096, %v8648_v18   ;;  %86 = vperm.xlu0 %8095, %v8653_v19  }
  0x18   :  { %7005 = vmatmul.mubr.msk.f32.gmra.mrb[4].mxu0 %vm149_vm2, %v32_v20  ;;  %7066 = vmatmul.mubr.msk.f32.gmra.mrb[4].mxu1 %vm149_vm2, %v414_v21 }
  0x19   :  { %7068 = vmatprep.mubr.msk.f32.mxu1 %vm8507_vm0, %v12287_v7  ;;  %7007 = vmatprep.mubr.msk.f32.mxu0 %vm8507_vm0, %v12287_v7 }
  0x1a   :  { %14 = vsyncpa [#allocation6], 0  ;;  %v8696_v26 = vld [vmem:[%s12282_s5 + $0x28] sm:$0xff]  ;;  %v8701_v27 = vld [vmem:[%s12282_s5 + $0x20] sm:$0xff]  ;;  %vm6143_vm3 = vcmask 261120   ;;  %s8509_s28 = smov [#allocation5]  }
  0x1b   :  { %111 = vperm.xlu1 %8096, %v8672_v22   ;;  %106 = vperm.xlu0 %8095, %v8677_v23   ;;  %v34_v28 = vld [vmem:[%s12279_s2 + $0x20] sm:$0xff]  ;;  %v8720_v30 = vld [vmem:[%s12282_s5 + $0x48] sm:$0xff]  ;;  %v36_v36 = vld [vmem:[%s12279_s2 + $0x30] sm:$0xff]  ;;  %s6313_s29 = sshll.u32 %s8509_s28, 4  ;;  %s6314_s29 = int_to_ptr.vmem [resolvable:$true] %s6313_s29 }
  0x1c   :  { %7008 = vmatmul.mubr.msk.f32.gmra.mrb[6].mxu0 %vm149_vm2, %v33_v24  ;;  %7069 = vmatmul.mubr.msk.f32.gmra.mrb[6].mxu1 %vm149_vm2, %v415_v25  ;;  %v416_v29 = vld [vmem:[%s12280_s3 + $0x20] sm:$0xff]  ;;  %v35_v32 = vld [vmem:[%s12279_s2 + $0x28] sm:$0xff]  ;;  %v418_v37 = vld [vmem:[%s12280_s3 + $0x30] sm:$0xff]  ;;  %p8486_p1 = scmp.lt.s32.totalorder %s6314_s29, %s6314_s29 }
  0x1d   :  { %7071 = vmatprep.mubr.msk.f32.mxu1 %vm8507_vm0, %v12287_v7  ;;  %7010 = vmatprep.mubr.msk.f32.mxu0 %vm8507_vm0, %v12287_v7  ;;  %v8725_v31 = vld [vmem:[%s12282_s5 + $0x40] sm:$0xff]  ;;  %v417_v33 = vld [vmem:[%s12280_s3 + $0x28] sm:$0xff]  ;;  %v37_v40 = vld [vmem:[%s12279_s2 + $0x38] sm:$0xff] }
  0x1e   :  { %v8744_v34 = vld [vmem:[%s12281_s4 + $0x68] sm:$0xff]  ;;  %v8749_v35 = vld [vmem:[%s12281_s4 + $0x60] sm:$0xff]  ;;  %v419_v41 = vld [vmem:[%s12280_s3 + $0x38] sm:$0xff] }
  0x1f   :  { %473 = vperm.xlu1 %8096, %v8696_v26   ;;  %468 = vperm.xlu0 %8095, %v8701_v27   ;;  %v8768_v38 = vld [vmem:[%s12282_s5 + $0x68] sm:$0xff]  ;;  %v8773_v39 = vld [vmem:[%s12282_s5 + $0x60] sm:$0xff]  ;;  %v8792_v42 = vld [vmem:[%s12281_s4 + $0x38] sm:$0xff] }
  0x20   :  { %7011 = vmatmul.mubr.msk.f32.gmra.mrb[8].mxu0 %vm149_vm2, %v34_v28  ;;  %7072 = vmatmul.mubr.msk.f32.gmra.mrb[8].mxu1 %vm149_vm2, %v416_v29  ;;  %v8797_v43 = vld [vmem:[%s12281_s4 + $0x30] sm:$0xff]  ;;  %v38_v44 = vld [vmem:[%s12279_s2 + $0x40] sm:$0xff]  ;;  %v8816_v46 = vld [vmem:[%s12281_s4 + $0x58] sm:$0xff] }
  0x21   :  { %7074 = vmatprep.mubr.msk.f32.mxu1 %vm8507_vm0, %v12287_v7  ;;  %7013 = vmatprep.mubr.msk.f32.mxu0 %vm8507_vm0, %v12287_v7  ;;  %v420_v45 = vld [vmem:[%s12280_s3 + $0x40] sm:$0xff]  ;;  %v8821_v47 = vld [vmem:[%s12281_s4 + $0x50] sm:$0xff]  ;;  %v39_v48 = vld [vmem:[%s12279_s2 + $0x48] sm:$0xff] }
  0x22   :  { %v421_v49 = vld [vmem:[%s12280_s3 + $0x48] sm:$0xff]  ;;  %v8840_v50 = vld [vmem:[%s12282_s5 + $0x38] sm:$0xff]  ;;  %v8845_v51 = vld [vmem:[%s12282_s5 + $0x30] sm:$0xff] }
  0x23   :  { %493 = vperm.xlu1 %8096, %v8720_v30   ;;  %488 = vperm.xlu0 %8095, %v8725_v31   ;;  %v40_v52 = vld [vmem:[%s12279_s2 + $0x50] sm:$0xff]  ;;  %v8864_v54 = vld [vmem:[%s12282_s5 + $0x58] sm:$0xff]  ;;  %v42_v60 = vld [vmem:[%s12279_s2 + $0x60] sm:$0xff] }
  0x24   :  { %7014 = vmatmul.mubr.msk.f32.gmra.mrb[10].mxu0 %vm149_vm2, %v35_v32  ;;  %7075 = vmatmul.mubr.msk.f32.gmra.mrb[10].mxu1 %vm149_vm2, %v417_v33  ;;  %v422_v53 = vld [vmem:[%s12280_s3 + $0x50] sm:$0xff]  ;;  %v41_v56 = vld [vmem:[%s12279_s2 + $0x58] sm:$0xff]  ;;  %v424_v61 = vld [vmem:[%s12280_s3 + $0x60] sm:$0xff] }
  0x25   :  { %7077 = vmatprep.mubr.msk.f32.mxu1 %vm8507_vm0, %v12287_v7  ;;  %7016 = vmatprep.mubr.msk.f32.mxu0 %vm8507_vm0, %v12287_v7  ;;  %v8869_v55 = vld [vmem:[%s12282_s5 + $0x50] sm:$0xff]  ;;  %v423_v57 = vld [vmem:[%s12280_s3 + $0x58] sm:$0xff]  ;;  %v43_v0 = vld [vmem:[%s12279_s2 + $0x68] sm:$0xff] }
  0x26   :  { %v8888_v58 = vld [vmem:[%s12281_s4 + $0x78] sm:$0xff]  ;;  %v8893_v59 = vld [vmem:[%s12281_s4 + $0x70] sm:$0xff]  ;;  %v425_v4 = vld [vmem:[%s12280_s3 + $0x68] sm:$0xff] }
  0x27   :  { %131 = vperm.xlu1 %8096, %v8744_v34   ;;  %126 = vperm.xlu0 %8095, %v8749_v35   ;;  %v8912_v62 = vld [vmem:[%s12282_s5 + $0x78] sm:$0xff]  ;;  %v8917_v63 = vld [vmem:[%s12282_s5 + $0x70] sm:$0xff] }
  0x28   :  { %7017 = vmatmul.mubr.msk.f32.gmra.mrb[12].mxu0 %vm149_vm2, %v36_v36  ;;  %7078 = vmatmul.mubr.msk.f32.gmra.mrb[12].mxu1 %vm149_vm2, %v418_v37  ;;  %v44_v8 = vld [vmem:[%s12279_s2 + $0x70] sm:$0xff]  ;;  %v45_v12 = vld [vmem:[%s12279_s2 + $0x78] sm:$0xff] }
  0x29   :  { %7080 = vmatprep.mubr.msk.f32.mxu1 %vm8507_vm0, %v12287_v7  ;;  %7019 = vmatprep.mubr.msk.f32.mxu0 %vm8507_vm0, %v12287_v7  ;;  %v426_v9 = vld [vmem:[%s12280_s3 + $0x70] sm:$0xff]  ;;  %v427_v13 = vld [vmem:[%s12280_s3 + $0x78] sm:$0xff] }
  0x2b   :  { %513 = vperm.xlu1 %8096, %v8768_v38   ;;  %508 = vperm.xlu0 %8095, %v8773_v39  }
  0x2c   :  { %7020 = vmatmul.mubr.msk.f32.gmra.mrb[14].mxu0 %vm149_vm2, %v37_v40  ;;  %7081 = vmatmul.mubr.msk.f32.gmra.mrb[14].mxu1 %vm149_vm2, %v419_v41 }
  0x2d   :  { %7083 = vmatprep.mubr.msk.f32.mxu1 %vm8507_vm0, %v12287_v7  ;;  %7022 = vmatprep.mubr.msk.f32.mxu0 %vm8507_vm0, %v12287_v7 }
  0x2f   :  { %101 = vperm.xlu1 %8096, %v8792_v42   ;;  %96 = vperm.xlu0 %8095, %v8797_v43  }
  0x30   :  { %7023 = vmatmul.mubr.msk.f32.gmra.mrb[16].mxu0 %vm149_vm2, %v38_v44  ;;  %7084 = vmatmul.mubr.msk.f32.gmra.mrb[16].mxu1 %vm149_vm2, %v420_v45 }
  0x31   :  { %7086 = vmatprep.mubr.msk.f32.mxu1 %vm8507_vm0, %v12287_v7  ;;  %7025 = vmatprep.mubr.msk.f32.mxu0 %vm8507_vm0, %v12287_v7 }
  0x33   :  { %121 = vperm.xlu1 %8096, %v8816_v46   ;;  %116 = vperm.xlu0 %8095, %v8821_v47  }
  0x34   :  { %7026 = vmatmul.mubr.msk.f32.gmra.mrb[18].mxu0 %vm149_vm2, %v39_v48  ;;  %7087 = vmatmul.mubr.msk.f32.gmra.mrb[18].mxu1 %vm149_vm2, %v421_v49 }
  0x35   :  { %7089 = vmatprep.mubr.msk.f32.mxu1 %vm8507_vm0, %v12287_v7  ;;  %7028 = vmatprep.mubr.msk.f32.mxu0 %vm8507_vm0, %v12287_v7 }
  0x37   :  { %483 = vperm.xlu1 %8096, %v8840_v50   ;;  %478 = vperm.xlu0 %8095, %v8845_v51  }
  0x38   :  { %7029 = vmatmul.mubr.msk.f32.gmra.mrb[20].mxu0 %vm149_vm2, %v40_v52  ;;  %7090 = vmatmul.mubr.msk.f32.gmra.mrb[20].mxu1 %vm149_vm2, %v422_v53 }
  0x39   :  { %7092 = vmatprep.mubr.msk.f32.mxu1 %vm8507_vm0, %v12287_v7  ;;  %7031 = vmatprep.mubr.msk.f32.mxu0 %vm8507_vm0, %v12287_v7 }
  0x3b   :  { %503 = vperm.xlu1 %8096, %v8864_v54   ;;  %498 = vperm.xlu0 %8095, %v8869_v55  }
  0x3c   :  { %7032 = vmatmul.mubr.msk.f32.gmra.mrb[22].mxu0 %vm149_vm2, %v41_v56  ;;  %7093 = vmatmul.mubr.msk.f32.gmra.mrb[22].mxu1 %vm149_vm2, %v423_v57 }
  0x3d   :  { %7095 = vmatprep.mubr.msk.f32.mxu1 %vm8507_vm0, %v12287_v7  ;;  %7034 = vmatprep.mubr.msk.f32.mxu0 %vm8507_vm0, %v12287_v7 }
  0x3f   :  { %141 = vperm.xlu1 %8096, %v8888_v58   ;;  %136 = vperm.xlu0 %8095, %v8893_v59  }
  0x40   :  { %7035 = vmatmul.mubr.msk.f32.gmra.mrb[24].mxu0 %vm149_vm2, %v42_v60  ;;  %7096 = vmatmul.mubr.msk.f32.gmra.mrb[24].mxu1 %vm149_vm2, %v424_v61 }
  0x41   :  { %7098 = vmatprep.mubr.msk.f32.mxu1 %vm8507_vm0, %v12287_v7  ;;  %7037 = vmatprep.mubr.msk.f32.mxu0 %vm8507_vm0, %v12287_v7 }
  0x43   :  { %523 = vperm.xlu1 %8096, %v8912_v62   ;;  %518 = vperm.xlu0 %8095, %v8917_v63  }
  0x44   :  { %7038 = vmatmul.mubr.msk.f32.gmra.mrb[26].mxu0 %vm149_vm2, %v43_v0  ;;  %7099 = vmatmul.mubr.msk.f32.gmra.mrb[26].mxu1 %vm149_vm2, %v425_v4 }
  0x45   :  { %7101 = vmatprep.mubr.msk.f32.mxu1 %vm8507_vm0, %v12287_v7  ;;  %7040 = vmatprep.mubr.msk.f32.mxu0 %vm8507_vm0, %v12287_v7 }
  0x47   :  { %836 = vperm.xlu1 %8096, %v8579_v6   ;;  %831 = vperm.xlu0 %8095, %v8563_v3  }
  0x48   :  { %7041 = vmatmul.mubr.msk.f32.gmra.mrb[28].mxu0 %vm149_vm2, %v44_v8  ;;  %7102 = vmatmul.mubr.msk.f32.gmra.mrb[28].mxu1 %vm149_vm2, %v426_v9  ;;  %v428_v8 = vld [vmem:[%s12280_s3 + $0x80] sm:$0x1] }
  0x49   :  { %7104 = vmatprep.mubr.msk.f32.mxu1 %vm8507_vm0, %v12287_v7  ;;  %7043 = vmatprep.mubr.msk.f32.mxu0 %vm8507_vm0, %v12287_v7  ;;  %v46_v9 = vld [vmem:[%s12279_s2 + $0x80] sm:$0x1] }
  0x4b   :  { %1217 = vperm.xlu1 %8096, %v8574_v5   ;;  %1212 = vperm.xlu0 %8095, %v8558_v2  }
  0x4c   :  { %7044 = vmatmul.mubr.msk.f32.gmra.mrb[30].mxu0 %vm149_vm2, %v45_v12  ;;  %7105 = vmatmul.mubr.msk.f32.gmra.mrb[30].mxu1 %vm149_vm2, %v427_v13 }
  0x4d   :  { %7107 = vmatprep.mubr.msk.f32.mxu1 %vm8507_vm0, %v12287_v7  ;;  %7046 = vmatprep.mubr.msk.f32.mxu0 %vm8507_vm0, %v12287_v7 }
  0x4f   :  { %846 = vperm.xlu1 %8096, %v8600_v10   ;;  %841 = vperm.xlu0 %8095, %v8605_v11  }
  0x50   :  { %7108 = vmatmul.mubr.msk.f32.gmra.mrb[32].mxu1 %vm149_vm2, %v428_v8  ;;  %7047 = vmatmul.mubr.msk.f32.gmra.mrb[32].mxu0 %vm149_vm2, %v46_v9 }
  0x51   :  { %7181 = vmatprep.mubr.msk.f32.mxu1 %vm8507_vm0, %v12287_v7  ;;  %7120 = vmatprep.mubr.msk.f32.mxu0 %vm8507_vm0, %v12287_v7 }
  0x53   :  { %1227 = vperm.xlu1 %8096, %v8622_v14   ;;  %1222 = vperm.xlu0 %8095, %v8627_v15  }
  0x57   :  { %856 = vperm.xlu1 %8096, %v8648_v18   ;;  %851 = vperm.xlu0 %8095, %v8653_v19  }
  0x5b   :  { %876 = vperm.xlu1 %8096, %v8672_v22   ;;  %871 = vperm.xlu0 %8095, %v8677_v23  }
  0x5f   :  { %1237 = vperm.xlu1 %8096, %v8696_v26   ;;  %1232 = vperm.xlu0 %8095, %v8701_v27  }
  0x63   :  { %1257 = vperm.xlu1 %8096, %v8720_v30   ;;  %1252 = vperm.xlu0 %8095, %v8725_v31  }
  0x67   :  { %896 = vperm.xlu1 %8096, %v8744_v34   ;;  %891 = vperm.xlu0 %8095, %v8749_v35  }
  0x6b   :  { %1277 = vperm.xlu1 %8096, %v8768_v38   ;;  %1272 = vperm.xlu0 %8095, %v8773_v39  }
  0x6f   :  { %866 = vperm.xlu1 %8096, %v8792_v42   ;;  %861 = vperm.xlu0 %8095, %v8797_v43  }
  0x73   :  { %886 = vperm.xlu1 %8096, %v8816_v46   ;;  %881 = vperm.xlu0 %8095, %v8821_v47  }
  0x77   :  { %1247 = vperm.xlu1 %8096, %v8840_v50   ;;  %1242 = vperm.xlu0 %8095, %v8845_v51  }
  0x7b   :  { %1267 = vperm.xlu1 %8096, %v8864_v54   ;;  %1262 = vperm.xlu0 %8095, %v8869_v55  }
  0x7f   :  { %906 = vperm.xlu1 %8096, %v8888_v58   ;;  %901 = vperm.xlu0 %8095, %v8893_v59  }
  0x83   :  { %1287 = vperm.xlu1 %8096, %v8912_v62   ;;  %1282 = vperm.xlu0 %8095, %v8917_v63  }
  0x86   :  { %v8993_v16 = vpop.permute.xlu1 %448  ;;  %v8995_v17 = vpop.permute.xlu0 %66 }
  0x87   :  { %1600 = vperm.xlu1 %8096, %v8579_v6   ;;  %1595 = vperm.xlu0 %8095, %v8563_v3  }
  0x8a   :  { %v8999_v20 = vpop.permute.xlu1 %453  ;;  %v9001_v21 = vpop.permute.xlu0 %71 }
  0x8b   :  { %1981 = vperm.xlu1 %8096, %v8574_v5   ;;  %1976 = vperm.xlu0 %8095, %v8558_v2  }
  0x8e   :  { %v9005_v24 = vpop.permute.xlu1 %81  ;;  %v9007_v25 = vpop.permute.xlu0 %76 }
  0x8f   :  { %1610 = vperm.xlu1 %8096, %v8600_v10   ;;  %1605 = vperm.xlu0 %8095, %v8605_v11  }
  0x92   :  { %v9011_v28 = vpop.permute.xlu1 %463  ;;  %v9013_v29 = vpop.permute.xlu0 %458 }
  0x93   :  { %1991 = vperm.xlu1 %8096, %v8622_v14   ;;  %1986 = vperm.xlu0 %8095, %v8627_v15  }
  0x96   :  { %v9017_v32 = vpop.permute.xlu1 %91  ;;  %v9019_v33 = vpop.permute.xlu0 %86 }
  0x97   :  { %1620 = vperm.xlu1 %8096, %v8648_v18   ;;  %1615 = vperm.xlu0 %8095, %v8653_v19  }
  0x9a   :  { %v9023_v36 = vpop.permute.xlu1 %111  ;;  %v9025_v37 = vpop.permute.xlu0 %106 }
  0x9b   :  { %1640 = vperm.xlu1 %8096, %v8672_v22   ;;  %1635 = vperm.xlu0 %8095, %v8677_v23  }
  0x9e   :  { %v9029_v40 = vpop.permute.xlu1 %473  ;;  %v9031_v41 = vpop.permute.xlu0 %468 }
  0x9f   :  { %2001 = vperm.xlu1 %8096, %v8696_v26   ;;  %1996 = vperm.xlu0 %8095, %v8701_v27  }
  0xa2   :  { %v9035_v44 = vpop.permute.xlu1 %493  ;;  %v9037_v45 = vpop.permute.xlu0 %488 }
  0xa3   :  { %2021 = vperm.xlu1 %8096, %v8720_v30   ;;  %2016 = vperm.xlu0 %8095, %v8725_v31  }
  0xa6   :  { %v9041_v48 = vpop.permute.xlu1 %131  ;;  %v9043_v49 = vpop.permute.xlu0 %126 }
  0xa7   :  { %12341 = vst [vmem:[#allocation8_spill] sm:$0xff] %v9041_v48  ;;  %1660 = vperm.xlu1 %8096, %v8744_v34   ;;  %1655 = vperm.xlu0 %8095, %v8749_v35  }
  0xaa   :  { %v9047_v52 = vpop.permute.xlu1 %513  ;;  %v9049_v53 = vpop.permute.xlu0 %508 }
  0xab   :  { %12342 = vst [vmem:[#allocation9_spill] sm:$0xff] %v9047_v52  ;;  %2041 = vperm.xlu1 %8096, %v8768_v38   ;;  %2036 = vperm.xlu0 %8095, %v8773_v39  }
  0xae   :  { %v9053_v56 = vpop.permute.xlu1 %101  ;;  %v9055_v57 = vpop.permute.xlu0 %96 }
  0xaf   :  { %1630 = vperm.xlu1 %8096, %v8792_v42   ;;  %1625 = vperm.xlu0 %8095, %v8797_v43  }
  0xb2   :  { %v9059_v60 = vpop.permute.xlu1 %121  ;;  %v9061_v61 = vpop.permute.xlu0 %116 }
  0xb3   :  { %1650 = vperm.xlu1 %8096, %v8816_v46   ;;  %1645 = vperm.xlu0 %8095, %v8821_v47  }
  0xb6   :  { %v9065_v0 = vpop.permute.xlu1 %483  ;;  %v9067_v4 = vpop.permute.xlu0 %478 }
  0xb7   :  { %2011 = vperm.xlu1 %8096, %v8840_v50   ;;  %2006 = vperm.xlu0 %8095, %v8845_v51  }
  0xba   :  { %v9083_v12 = vpop.permute.xlu1 %503  ;;  %v9085_v13 = vpop.permute.xlu0 %498 }
  0xbb   :  { %2031 = vperm.xlu1 %8096, %v8864_v54   ;;  %2026 = vperm.xlu0 %8095, %v8869_v55  }
  0xbe   :  { %v9089_v1 = vpop.permute.xlu1 %141  ;;  %v9091_v48 = vpop.permute.xlu0 %136 }
  0xbf   :  { %12343 = vst [vmem:[#allocation10_spill] sm:$0xff] %v9089_v1  ;;  %12344 = vst [vmem:[#allocation11_spill] sm:$0xff] %v9091_v48  ;;  %1670 = vperm.xlu1 %8096, %v8888_v58   ;;  %1665 = vperm.xlu0 %8095, %v8893_v59  }
  0xc2   :  { %v9095_v8 = vpop.permute.xlu1 %523  ;;  %v9097_v9 = vpop.permute.xlu0 %518 }
  0xc3   :  { %12345 = vst [vmem:[#allocation12_spill] sm:$0xff] %v9095_v8  ;;  %12346 = vst [vmem:[#allocation13_spill] sm:$0xff] %v9097_v9  ;;  %2051 = vperm.xlu1 %8096, %v8912_v62   ;;  %2046 = vperm.xlu0 %8095, %v8917_v63  }
  0xc6   :  { %v9101_v7 = vpop.permute.xlu1 %836  ;;  %v9103_v52 = vpop.permute.xlu0 %831 }
  0xc7   :  { %12347 = vst [vmem:[#allocation14_spill] sm:$0xff] %v9101_v7  ;;  %2364 = vperm.xlu1 %8096, %v8579_v6   ;;  %2359 = vperm.xlu0 %8095, %v8563_v3  }
  0xca   :  { %v9107_v1 = vpop.permute.xlu1 %1217  ;;  %v9109_v48 = vpop.permute.xlu0 %1212 }
  0xcb   :  { %2745 = vperm.xlu1 %8096, %v8574_v5   ;;  %2740 = vperm.xlu0 %8095, %v8558_v2  }
  0xce   :  { %v9113_v8 = vpop.permute.xlu1 %846  ;;  %v9115_v9 = vpop.permute.xlu0 %841 }
  0xcf   :  { %2374 = vperm.xlu1 %8096, %v8600_v10   ;;  %2369 = vperm.xlu0 %8095, %v8605_v11  }
  0xd2   :  { %v9119_v7 = vpop.permute.xlu1 %1227  ;;  %v9121_v6 = vpop.permute.xlu0 %1222 }
  0xd3   :  { %2755 = vperm.xlu1 %8096, %v8622_v14   ;;  %2750 = vperm.xlu0 %8095, %v8627_v15  }
  0xd6   :  { %v9125_v3 = vpop.permute.xlu1 %856  ;;  %v9127_v5 = vpop.permute.xlu0 %851 }
  0xd7   :  { %12348 = vst [vmem:[#allocation15_spill] sm:$0xff] %v9125_v3  ;;  %12349 = vst [vmem:[#allocation16_spill] sm:$0xff] %v9127_v5  ;;  %2384 = vperm.xlu1 %8096, %v8648_v18   ;;  %2379 = vperm.xlu0 %8095, %v8653_v19  }
  0xda   :  { %v9131_v2 = vpop.permute.xlu1 %876  ;;  %v9133_v10 = vpop.permute.xlu0 %871 }
  0xdb   :  { %12350 = vst [vmem:[#allocation17_spill] sm:$0xff] %v9131_v2  ;;  %2404 = vperm.xlu1 %8096, %v8672_v22   ;;  %2399 = vperm.xlu0 %8095, %v8677_v23  }
  0xde   :  { %v9137_v11 = vpop.permute.xlu1 %1237  ;;  %v9139_v14 = vpop.permute.xlu0 %1232 }
  0xdf   :  { %12351 = vst [vmem:[#allocation18_spill] sm:$0xff] %v9137_v11  ;;  %12352 = vst [vmem:[#allocation19_spill] sm:$0xff] %v9139_v14  ;;  %2765 = vperm.xlu1 %8096, %v8696_v26   ;;  %2760 = vperm.xlu0 %8095, %v8701_v27  }
  0xe2   :  { %v9143_v15 = vpop.permute.xlu1 %1257  ;;  %v9145_v18 = vpop.permute.xlu0 %1252 }
  0xe3   :  { %12353 = vst [vmem:[#allocation20_spill] sm:$0xff] %v9143_v15  ;;  %12354 = vst [vmem:[#allocation21_spill] sm:$0xff] %v9145_v18  ;;  %v651_v19 = vpop.f32.mrb[0].mxu1  ;;  %2785 = vperm.xlu1 %8096, %v8720_v30   ;;  %2780 = vperm.xlu0 %8095, %v8725_v31   ;;  %v271_v22 = vpop.f32.mrb[0].mxu0 }
  0xe4   :  { %v7000_v3 = vpop.f32.mrb[1].mxu0  ;;  %v7061_v23 = vpop.f32.mrb[1].mxu1  ;;  %v652_v2 = vadd.f32 %v651_v19, %v8993_v16  ;;  %v272_v30 = vadd.f32 %v271_v22, %v8995_v17 }
  0xe6   :  { %v9149_v5 = vpop.permute.xlu1 %896  ;;  %v9151_v11 = vpop.permute.xlu0 %891  ;;  %v355_v18 = vmul.f32 0.5, %v272_v30 }
  0xe7   :  { %12355 = vst [vmem:[#allocation22_spill] sm:$0xff] %v9149_v5  ;;  %12356 = vst [vmem:[#allocation23_spill] sm:$0xff] %v9151_v11  ;;  %v656_v14 = vpop.f32.mrb[2].mxu1  ;;  %2424 = vperm.xlu1 %8096, %v8744_v34   ;;  %2419 = vperm.xlu0 %8095, %v8749_v35   ;;  %v276_v26 = vpop.f32.mrb[2].mxu0  ;;  %v735_v35 = vmul.f32 0.5, %v652_v2 }
  0xe8   :  { %v7003_v27 = vpop.f32.mrb[3].mxu0  ;;  %v7064_v15 = vpop.f32.mrb[3].mxu1  ;;  %v277_v17 = vadd.f32 %v276_v26, %v9001_v21 }
  0xe9   :  { %v657_v15 = vadd.f32 %v656_v14, %v8999_v20  ;;  %8097 = vtanh.f32 %v735_v35 }
  0xea   :  { %v9157_v31 = vpop.permute.xlu1 %1277  ;;  %v9159_v3 = vpop.permute.xlu0 %1272  ;;  %8099 = vtanh.f32 %v355_v18  ;;  %v356_v21 = vmul.f32 0.5, %v277_v17 }
  0xeb   :  { %v661_v23 = vpop.f32.mrb[4].mxu1  ;;  %2805 = vperm.xlu1 %8096, %v8768_v38   ;;  %2800 = vperm.xlu0 %8095, %v8773_v39   ;;  %v281_v5 = vpop.f32.mrb[4].mxu0 }
  0xec   :  { %v7006_v34 = vpop.f32.mrb[5].mxu0  ;;  %v7067_v11 = vpop.f32.mrb[5].mxu1  ;;  %v662_v2 = vadd.f32 %v661_v23, %v9013_v29  ;;  %v282_v20 = vadd.f32 %v281_v5, %v9007_v25 }
  0xed   :  { %v736_v11 = vmul.f32 0.5, %v657_v15 }
  0xee   :  { %v9164_v27 = vpop.permute.xlu1 %866  ;;  %v9166_v16 = vpop.permute.xlu0 %861  ;;  %v737_v29 = vmul.f32 0.5, %v662_v2  ;;  %v357_v18 = vmul.f32 0.5, %v282_v20 }
  0xef   :  { %v666_v19 = vpop.f32.mrb[6].mxu1  ;;  %2394 = vperm.xlu1 %8096, %v8792_v42   ;;  %2389 = vperm.xlu0 %8095, %v8797_v43   ;;  %v286_v38 = vpop.f32.mrb[6].mxu0  ;;  %8101 = vtanh.f32 %v736_v11 }
  0xf0   :  { %v7009_v39 = vpop.f32.mrb[7].mxu0  ;;  %v7070_v22 = vpop.f32.mrb[7].mxu1  ;;  %v667_v25 = vadd.f32 %v666_v19, %v9011_v28  ;;  %8103 = vtanh.f32 %v356_v21  ;;  %v287_v35 = vadd.f32 %v286_v38, %v9005_v24 }
  0xf1   :  { %8105 = vtanh.f32 %v737_v29 }
  0xf2   :  { %v9173_v14 = vpop.permute.xlu1 %886  ;;  %v9175_v30 = vpop.permute.xlu0 %881  ;;  %8107 = vtanh.f32 %v357_v18  ;;  %v738_v28 = vmul.f32 0.5, %v667_v25  ;;  %v358_v2 = vmul.f32 0.5, %v287_v35 }
  0xf3   :  { %v9177_v26 = vpop.f32.mrb[8].mxu1  ;;  %2414 = vperm.xlu1 %8096, %v8816_v46   ;;  %2409 = vperm.xlu0 %8095, %v8821_v47   ;;  %v9181_v42 = vpop.f32.mrb[8].mxu0 }
  0xf4   :  { %v7012_v43 = vpop.f32.mrb[9].mxu0  ;;  %v7073_v34 = vpop.f32.mrb[9].mxu1  ;;  %8109 = vtanh.f32 %v738_v28 }
  0xf5   :  { %v8098_v22 = vpop.eup %8097  ;;  %8111 = vtanh.f32 %v358_v2 }
  0xf6   :  { %v9184_v5 = vpop.permute.xlu1 %1247  ;;  %v9186_v23 = vpop.permute.xlu0 %1242 }
  0xf7   :  { %v9189_v15 = vpop.f32.mrb[10].mxu1  ;;  %2775 = vperm.xlu1 %8096, %v8840_v50   ;;  %2770 = vperm.xlu0 %8095, %v8845_v51   ;;  %v9193_v46 = vpop.f32.mrb[10].mxu0 }
  0xf8   :  { %v7015_v47 = vpop.f32.mrb[11].mxu0  ;;  %v7076_v17 = vpop.f32.mrb[11].mxu1 }
  0xf9   :  { %v8100_v51 = vpop.eup %8099 }
  0xfa   :  { %v9195_v19 = vpop.permute.xlu1 %1267  ;;  %v9197_v39 = vpop.permute.xlu0 %1262  ;;  %v363_v34 = vmul.f32 0.5, %v8100_v51 }
  0xfb   :  { %v9199_v24 = vpop.f32.mrb[12].mxu1  ;;  %2795 = vperm.xlu1 %8096, %v8864_v54   ;;  %2790 = vperm.xlu0 %8095, %v8869_v55   ;;  %v9203_v50 = vpop.f32.mrb[12].mxu0  ;;  %v743_v55 = vmul.f32 0.5, %v8098_v22 }
  0xfc   :  { %v7018_v38 = vpop.f32.mrb[13].mxu0  ;;  %v7079_v11 = vpop.f32.mrb[13].mxu1 }
  0xfd   :  { %v8102_v29 = vpop.eup %8101  ;;  %v367_v38 = vadd.f32 0.5, %v363_v34 }
  0xfe   :  { %v9205_v20 = vpop.permute.xlu1 %906  ;;  %v9207_v21 = vpop.permute.xlu0 %901 }
  0xff   :  { %12357 = vst [vmem:[#allocation24_spill] sm:$0xff] %v9205_v20  ;;  %12358 = vst [vmem:[#allocation25_spill] sm:$0xff] %v9207_v21  ;;  %v9209_v43 = vpop.f32.mrb[14].mxu1  ;;  %2434 = vperm.xlu1 %8096, %v8888_v58   ;;  %2429 = vperm.xlu0 %8095, %v8893_v59   ;;  %v9213_v54 = vpop.f32.mrb[14].mxu0  ;;  %v747_v59 = vadd.f32 0.5, %v743_v55  ;;  %v744_v20 = vmul.f32 0.5, %v8102_v29 }
 0x100   :  { %v7021_v18 = vpop.f32.mrb[15].mxu0  ;;  %v7082_v25 = vpop.f32.mrb[15].mxu1 }
 0x101   :  { %v8104_v35 = vpop.eup %8103 }
 0x102   :  { %v9215_v47 = vpop.permute.xlu1 %1287  ;;  %v9217_v17 = vpop.permute.xlu0 %1282 }
 0x103   :  { %12359 = vst [vmem:[#allocation26_spill] sm:$0xff] %v9215_v47  ;;  %12360 = vst [vmem:[#allocation27_spill] sm:$0xff] %v9217_v17  ;;  %v8106_v28 = vpop.eup %8105  ;;  %v691_v2 = vpop.f32.mrb[16].mxu1  ;;  %2815 = vperm.xlu1 %8096, %v8912_v62   ;;  %2810 = vperm.xlu0 %8095, %v8917_v63   ;;  %v9226_v47 = vld [vmem:[%s12281_s4 + $0x8] sm:$0xff]  ;;  %v9231_v62 = vld [vmem:[%s12281_s4] sm:$0xff]  ;;  %v364_v63 = vmul.f32 0.5, %v8104_v35 }
 0x104   :  { %v311_v58 = vpop.f32.mrb[16].mxu0  ;;  %v8108_v11 = vpop.eup %8107  ;;  %v692_v22 = vadd.f32 %v691_v2, %v9037_v45  ;;  %v748_v35 = vadd.f32 0.5, %v744_v20 }
 0x105   :  { %v312_v51 = vadd.f32 %v311_v58, %v9025_v37  ;;  %v7024_v18 = vpop.f32.mrb[17].mxu0  ;;  %v7085_v25 = vpop.f32.mrb[17].mxu1  ;;  %v745_v58 = vmul.f32 0.5, %v8106_v28  ;;  %v368_v21 = vadd.f32 0.5, %v364_v63  ;;  %v292_v63 = vadd.f32 %v9181_v42, %v9019_v33  ;;  %v9279_v33 = vld [vmem:[%s12281_s4 + $0x10] sm:$0xff] }
 0x106   :  { %v9233_v55 = vpop.permute.xlu1 %1600  ;;  %v9235_v34 = vpop.permute.xlu0 %1595  ;;  %v9237_v45 = vmul.f32 %v747_v59, %v692_v22  ;;  %v365_v18 = vmul.f32 0.5, %v8108_v11  ;;  %v9253_v22 = vld [vmem:[%s12282_s5] sm:$0xff] }
 0x107   :  { %12361 = vst [vmem:[#allocation28_spill] sm:$0xff] %v9233_v55  ;;  %12362 = vst [vmem:[#allocation29_spill] sm:$0xff] %v9235_v34  ;;  %v9239_v37 = vmul.f32 %v367_v38, %v312_v51  ;;  %v696_v29 = vpop.f32.mrb[18].mxu1  ;;  %3128 = vperm.xlu1 %8096, %v9226_v47   ;;  %3123 = vperm.xlu0 %8095, %v9231_v62   ;;  %v316_v2 = vpop.f32.mrb[18].mxu0  ;;  %v9248_v38 = vld [vmem:[%s12282_s5 + $0x8] sm:$0xff] }
 0x108   :  { %v8110_v25 = vpop.eup %8109  ;;  %v697_v17 = vadd.f32 %v696_v29, %v9035_v44  ;;  %v317_v55 = vadd.f32 %v316_v2, %v9023_v36  ;;  %v7027_v34 = vpop.f32.mrb[19].mxu0  ;;  %v672_v44 = vadd.f32 %v9177_v26, %v9031_v41  ;;  %v749_v29 = vadd.f32 0.5, %v745_v58 }
 0x109   :  { %v7088_v59 = vpop.f32.mrb[19].mxu1  ;;  %v8112_v28 = vpop.eup %8111  ;;  %v677_v58 = vadd.f32 %v9189_v15, %v9029_v40 }
 0x10a   :  { %v9257_v20 = vmul.f32 %v748_v35, %v697_v17  ;;  %v9259_v36 = vmul.f32 %v368_v21, %v317_v55  ;;  %v9261_v11 = vpop.permute.xlu1 %1981  ;;  %v9263_v51 = vpop.permute.xlu0 %1976  ;;  %v369_v59 = vadd.f32 0.5, %v365_v18  ;;  %v746_v55 = vmul.f32 0.5, %v8110_v25  ;;  %v9274_v35 = vld [vmem:[%s12281_s4 + $0x18] sm:$0xff] }
 0x10b   :  { %12363 = vst [vmem:[#allocation30_spill] sm:$0xff] %v9261_v11  ;;  %12364 = vst [vmem:[#allocation31_spill] sm:$0xff] %v9263_v51  ;;  %v701_v34 = vpop.f32.mrb[20].mxu1  ;;  %3509 = vperm.xlu1 %8096, %v9248_v38   ;;  %3504 = vperm.xlu0 %8095, %v9253_v22   ;;  %v321_v2 = vpop.f32.mrb[20].mxu0  ;;  %v366_v42 = vmul.f32 0.5, %v8112_v28 }
 0x10c   :  { %v702_v41 = vadd.f32 %v701_v34, %v9085_v13  ;;  %v322_v26 = vadd.f32 %v321_v2, %v9061_v61  ;;  %v7030_v21 = vpop.f32.mrb[21].mxu0  ;;  %v7091_v17 = vpop.f32.mrb[21].mxu1  ;;  %v751_v13 = vmul.f32 0.5, %v672_v44  ;;  %v371_v2 = vmul.f32 0.5, %v292_v63  ;;  %v9300_v63 = vld [vmem:[%s12282_s5 + $0x18] sm:$0xff] }
 0x10d   :  { %v297_v21 = vadd.f32 %v9193_v46, %v9017_v32  ;;  %v750_v15 = vadd.f32 0.5, %v746_v55  ;;  %v9305_v32 = vld [vmem:[%s12282_s5 + $0x10] sm:$0xff]  ;;  %v752_v46 = vmul.f32 0.5, %v677_v58 }
 0x10e   :  { %v9283_v18 = vmul.f32 %v749_v29, %v702_v41  ;;  %v9285_v61 = vmul.f32 %v369_v59, %v322_v26  ;;  %v9287_v25 = vpop.permute.xlu1 %1610  ;;  %v9289_v34 = vpop.permute.xlu0 %1605  ;;  %v370_v29 = vadd.f32 0.5, %v366_v42  ;;  %8113 = vtanh.f32 %v751_v13 }
 0x10f   :  { %12365 = vst [vmem:[#allocation32_spill] sm:$0xff] %v9287_v25  ;;  %12366 = vst [vmem:[#allocation33_spill] sm:$0xff] %v9289_v34  ;;  %v706_v17 = vpop.f32.mrb[22].mxu1  ;;  %3138 = vperm.xlu1 %8096, %v9274_v35   ;;  %3133 = vperm.xlu0 %8095, %v9279_v33   ;;  %v326_v28 = vpop.f32.mrb[22].mxu0  ;;  %8115 = vtanh.f32 %v371_v2  ;;  %v9326_v2 = vld [vmem:[%s12281_s4 + $0x28] sm:$0xff] }
 0x110   :  { %v707_v40 = vadd.f32 %v706_v17, %v9083_v12  ;;  %v327_v44 = vadd.f32 %v326_v28, %v9059_v60  ;;  %v7033_v59 = vpop.f32.mrb[23].mxu0  ;;  %v7094_v41 = vpop.f32.mrb[23].mxu1  ;;  %v682_v12 = vadd.f32 %v9199_v24, %v9067_v4  ;;  %v372_v17 = vmul.f32 0.5, %v297_v21 }
 0x111   :  { %v302_v28 = vadd.f32 %v9203_v50, %v9055_v57  ;;  %v9331_v57 = vld [vmem:[%s12281_s4 + $0x20] sm:$0xff]  ;;  %8117 = vtanh.f32 %v752_v46  ;;  %v687_v21 = vadd.f32 %v9209_v43, %v9065_v0  ;;  %v307_v41 = vadd.f32 %v9213_v54, %v9053_v56 }
 0x112   :  { %v9309_v26 = vmul.f32 %v750_v15, %v707_v40  ;;  %v9311_v60 = vmul.f32 %v370_v29, %v327_v44  ;;  %v9313_v55 = vpop.permute.xlu1 %1991  ;;  %v9315_v42 = vpop.permute.xlu0 %1986  ;;  %v753_v50 = vmul.f32 0.5, %v682_v12  ;;  %8119 = vtanh.f32 %v372_v17  ;;  %v12371_v0 = vld [vmem:[#allocation9_spill] sm:$0xff] }
 0x113   :  { %12367 = vst [vmem:[#allocation34_spill] sm:$0xff] %v9313_v55  ;;  %12368 = vst [vmem:[#allocation35_spill] sm:$0xff] %v9315_v42  ;;  %v711_v59 = vpop.f32.mrb[24].mxu1  ;;  %3519 = vperm.xlu1 %8096, %v9300_v63   ;;  %3514 = vperm.xlu0 %8095, %v9305_v32   ;;  %v331_v58 = vpop.f32.mrb[24].mxu0  ;;  %v373_v29 = vmul.f32 0.5, %v302_v28  ;;  %v9350_v17 = vld [vmem:[%s12281_s4 + $0x48] sm:$0xff] }
 0x114   :  { %v712_v4 = vadd.f32 %v711_v59, %v9049_v53  ;;  %v332_v24 = vadd.f32 %v331_v58, %v9043_v49  ;;  %v7036_v13 = vpop.f32.mrb[25].mxu0  ;;  %v7097_v40 = vpop.f32.mrb[25].mxu1  ;;  %v9355_v56 = vld [vmem:[%s12281_s4 + $0x40] sm:$0xff]  ;;  %v754_v54 = vmul.f32 0.5, %v687_v21 }
 0x115   :  { %v374_v40 = vmul.f32 0.5, %v307_v41 }
 0x116   :  { %v771_v53 = vadd.f32 %v9237_v45, %v712_v4  ;;  %v391_v49 = vadd.f32 %v9239_v37, %v332_v24  ;;  %v9337_v15 = vpop.permute.xlu1 %1620  ;;  %v9339_v44 = vpop.permute.xlu0 %1615  ;;  %v12372_v45 = vld [vmem:[#allocation8_spill] sm:$0xff] }
 0x117   :  { %12369 = vst [vmem:[#allocation36_spill] sm:$0xff] %v9337_v15  ;;  %12370 = vst [vmem:[#allocation37_spill] sm:$0xff] %v9339_v44  ;;  %v716_v59 = vpop.f32.mrb[26].mxu1  ;;  %3148 = vperm.xlu1 %8096, %v9326_v2   ;;  %3143 = vperm.xlu0 %8095, %v9331_v57   ;;  %v336_v46 = vpop.f32.mrb[26].mxu0 }
 0x118   :  { %8121 = vtanh.f32 %v771_v53  ;;  %v717_v43 = vadd.f32 %v716_v59, %v12371_v0  ;;  %v337_v37 = vadd.f32 %v336_v46, %v12372_v45  ;;  %v7039_v12 = vpop.f32.mrb[27].mxu0  ;;  %v7100_v58 = vpop.f32.mrb[27].mxu1 }
 0x119   :  { %8123 = vtanh.f32 %v391_v49  ;;  %v8114_v46 = vpop.eup %8113  ;;  %v12376_v49 = vld [vmem:[#allocation11_spill] sm:$0xff] }
 0x11a   :  { %8125 = vtanh.f32 %v753_v50  ;;  %v772_v28 = vadd.f32 %v9257_v20, %v717_v43  ;;  %v392_v4 = vadd.f32 %v9259_v36, %v337_v37  ;;  %v9359_v24 = vpop.permute.xlu1 %1640  ;;  %v9361_v13 = vpop.permute.xlu0 %1635  ;;  %v12375_v50 = vld [vmem:[#allocation13_spill] sm:$0xff] }
 0x11b   :  { %12373 = vst [vmem:[#allocation9_spill] sm:$0xff] %v9359_v24  ;;  %12374 = vst [vmem:[#allocation8_spill] sm:$0xff] %v9361_v13  ;;  %8127 = vtanh.f32 %v373_v29  ;;  %v721_v53 = vpop.f32.mrb[28].mxu1  ;;  %3168 = vperm.xlu1 %8096, %v9350_v17   ;;  %3163 = vperm.xlu0 %8095, %v9355_v56   ;;  %v341_v59 = vpop.f32.mrb[28].mxu0  ;;  %v9370_v43 = vld [vmem:[%s12282_s5 + $0x28] sm:$0xff]  ;;  %v9375_v29 = vld [vmem:[%s12282_s5 + $0x20] sm:$0xff] }
 0x11c   :  { %8129 = vtanh.f32 %v772_v28  ;;  %v722_v21 = vadd.f32 %v721_v53, %v12375_v50  ;;  %v342_v20 = vadd.f32 %v341_v59, %v12376_v49  ;;  %v7042_v0 = vpop.f32.mrb[29].mxu0  ;;  %v7103_v36 = vpop.f32.mrb[29].mxu1  ;;  %v759_v53 = vmul.f32 0.5, %v8114_v46 }
 0x11d   :  { %v8116_v41 = vpop.eup %8115  ;;  %8131 = vtanh.f32 %v392_v4  ;;  %v9390_v0 = vld [vmem:[%s12282_s5 + $0x48] sm:$0xff] }
 0x11e   :  { %8133 = vtanh.f32 %v754_v54  ;;  %v773_v45 = vadd.f32 %v9283_v18, %v722_v21  ;;  %v393_v37 = vadd.f32 %v9285_v61, %v342_v20  ;;  %v9379_v12 = vpop.permute.xlu1 %2001  ;;  %v9381_v58 = vpop.permute.xlu0 %1996  ;;  %v379_v49 = vmul.f32 0.5, %v8116_v41  ;;  %v12379_v54 = vld [vmem:[#allocation12_spill] sm:$0xff]  ;;  %v12380_v18 = vld [vmem:[#allocation10_spill] sm:$0xff] }
 0x11f   :  { %12377 = vst [vmem:[#allocation13_spill] sm:$0xff] %v9379_v12  ;;  %12378 = vst [vmem:[#allocation11_spill] sm:$0xff] %v9381_v58  ;;  %v8118_v28 = vpop.eup %8117  ;;  %8135 = vtanh.f32 %v374_v40  ;;  %v726_v59 = vpop.f32.mrb[30].mxu1  ;;  %3529 = vperm.xlu1 %8096, %v9370_v43   ;;  %3524 = vperm.xlu0 %8095, %v9375_v29   ;;  %v9395_v40 = vld [vmem:[%s12282_s5 + $0x40] sm:$0xff] }
 0x120   :  { %v346_v50 = vpop.f32.mrb[30].mxu0  ;;  %8137 = vtanh.f32 %v773_v45  ;;  %v727_v4 = vadd.f32 %v726_v59, %v12379_v54  ;;  %v7106_v20 = vpop.f32.mrb[31].mxu1  ;;  %v383_v15 = vadd.f32 0.5, %v379_v49 }
 0x121   :  { %v347_v21 = vadd.f32 %v346_v50, %v12380_v18  ;;  %v7045_v61 = vpop.f32.mrb[31].mxu0  ;;  %v8120_v46 = vpop.eup %8119  ;;  %8139 = vtanh.f32 %v393_v37  ;;  %v763_v18 = vadd.f32 0.5, %v759_v53 }
 0x122   :  { %v8122_v36 = vpop.eup %8121  ;;  %v774_v41 = vadd.f32 %v9309_v26, %v727_v4  ;;  %v9399_v59 = vpop.permute.xlu1 %2021  ;;  %v760_v61 = vmul.f32 0.5, %v8118_v28  ;;  %v380_v37 = vmul.f32 0.5, %v8120_v46  ;;  %v9408_v26 = vld [vmem:[%s12281_s4 + $0x68] sm:$0xff] }
 0x123   :  { %v394_v45 = vadd.f32 %v9311_v60, %v347_v21  ;;  %12381 = vst [vmem:[#allocation12_spill] sm:$0xff] %v9399_v59  ;;  %v9401_v50 = vpop.permute.xlu0 %2016  ;;  %v8124_v54 = vpop.eup %8123  ;;  %3549 = vperm.xlu1 %8096, %v9390_v0   ;;  %3544 = vperm.xlu0 %8095, %v9395_v40   ;;  %v779_v20 = vsub.f32 0.0, %v8122_v36  ;;  %v9413_v60 = vld [vmem:[%s12281_s4 + $0x60] sm:$0xff] }
 0x124   :  { %12382 = vst [vmem:[#allocation10_spill] sm:$0xff] %v9401_v50  ;;  %v8126_v12 = vpop.eup %8125  ;;  %8141 = vtanh.f32 %v774_v41  ;;  %v399_v28 = vsub.f32 0.0, %v8124_v54  ;;  %v764_v59 = vadd.f32 0.5, %v760_v61  ;;  %v384_v55 = vadd.f32 0.5, %v380_v37 }
 0x125   :  { %v8128_v53 = vpop.eup %8127  ;;  %8143 = vtanh.f32 %v394_v45  ;;  %v783_v4 = vmul.f32 %v779_v20, %v763_v18  ;;  %v761_v44 = vmul.f32 0.5, %v8126_v12  ;;  %v9426_v18 = vld [vmem:[%s12282_s5 + $0x68] sm:$0xff] }
 0x126   :  { %v8130_v21 = vpop.eup %8129  ;;  %v9415_v58 = vpop.permute.xlu1 %1660  ;;  %v403_v46 = vmul.f32 %v399_v28, %v383_v15  ;;  %v381_v45 = vmul.f32 0.5, %v8128_v53  ;;  %v9431_v15 = vld [vmem:[%s12282_s5 + $0x60] sm:$0xff] }
 0x127   :  { %12383 = vst [vmem:[#allocation38_spill] sm:$0xff] %v9415_v58  ;;  %v9417_v49 = vpop.permute.xlu0 %1655  ;;  %v8132_v41 = vpop.eup %8131  ;;  %3188 = vperm.xlu1 %8096, %v9408_v26   ;;  %3183 = vperm.xlu0 %8095, %v9413_v60   ;;  %v780_v24 = vsub.f32 0.0, %v8130_v21  ;;  %v9421_v50 = vadd.f32 %v8122_v36, %v783_v4 }
 0x128   :  { %12384 = vst [vmem:[#allocation39_spill] sm:$0xff] %v9417_v49  ;;  %v8134_v13 = vpop.eup %8133  ;;  %v400_v12 = vsub.f32 0.0, %v8132_v41  ;;  %v9433_v61 = vadd.f32 %v8124_v54, %v403_v46  ;;  %v765_v49 = vadd.f32 0.5, %v761_v44  ;;  %v385_v54 = vadd.f32 0.5, %v381_v45 }
 0x129   :  { %v8136_v20 = vpop.eup %8135  ;;  %v784_v28 = vmul.f32 %v780_v24, %v764_v59  ;;  %v762_v25 = vmul.f32 0.5, %v8134_v13  ;;  %v9446_v24 = vld [vmem:[%s12281_s4 + $0x38] sm:$0xff]  ;;  %v9455_v13 = vld [vmem:[%s12281_s4 + $0x30] sm:$0xff] }
 0x12a   :  { %v8138_v36 = vpop.eup %8137  ;;  %v9435_v4 = vpop.permute.xlu1 %2041  ;;  %v404_v53 = vmul.f32 %v400_v12, %v384_v55  ;;  %v382_v46 = vmul.f32 0.5, %v8136_v20 }
 0x12b   :  { %12385 = vst [vmem:[#allocation40_spill] sm:$0xff] %v9435_v4  ;;  %v9437_v37 = vpop.permute.xlu0 %2036  ;;  %v8140_v58 = vpop.eup %8139  ;;  %3569 = vperm.xlu1 %8096, %v9426_v18   ;;  %3564 = vperm.xlu0 %8095, %v9431_v15   ;;  %v9441_v42 = vadd.f32 %v8130_v21, %v784_v28  ;;  %v781_v34 = vsub.f32 0.0, %v8138_v36  ;;  %v766_v4 = vadd.f32 0.5, %v762_v25  ;;  %v9477_v25 = vld [vmem:[%s12281_s4 + $0x50] sm:$0xff] }
 0x12c   :  { %12386 = vst [vmem:[#allocation41_spill] sm:$0xff] %v9437_v37  ;;  %v9448_v59 = vadd.f32 %v8132_v41, %v404_v53  ;;  %v401_v55 = vsub.f32 0.0, %v8140_v58  ;;  %v386_v51 = vadd.f32 0.5, %v382_v46 }
 0x12d   :  { %v8001_v44 = vpack.c.bf16 %v9441_v42, %v9421_v50  ;;  %v785_v21 = vmul.f32 %v781_v34, %v765_v49  ;;  %v9470_v34 = vld [vmem:[%s12281_s4 + $0x58] sm:$0xff] }
 0x12e   :  { %v8142_v12 = vpop.eup %8141  ;;  %v9457_v45 = vpop.permute.xlu1 %1630  ;;  %v7995_v28 = vpack.c.bf16 %v9448_v59, %v9433_v61  ;;  %v405_v41 = vmul.f32 %v401_v55, %v385_v54  ;;  %v12389_v54 = vmov 0.0|0.0  }
 0x12f   :  { %12387 = vst [vmem:[#allocation42_spill] sm:$0xff] %v9457_v45  ;;  %v9459_v20 = vpop.permute.xlu0 %1625  ;;  %v8144_v53 = vpop.eup %8143  ;;  %3158 = vperm.xlu1 %8096, %v9446_v24   ;;  %8002 = vmatpush3.bf16.msra.mxu1 %v8001_v44  ;;  %v782_v37 = vsub.f32 0.0, %v8142_v12  ;;  %v9464_v11 = vadd.f32 %v8138_v36, %v785_v21 }
 0x130   :  { %12388 = vst [vmem:[#allocation43_spill] sm:$0xff] %v9459_v20  ;;  %3153 = vperm.xlu0 %8095, %v9455_v13   ;;  %7996 = vmatpush3.bf16.msra.mxu0 %v7995_v28  ;;  %v402_v49 = vsub.f32 0.0, %v8144_v53  ;;  %v9472_v45 = vadd.f32 %v8140_v58, %v405_v41  ;;  %v9492_v58 = vld [vmem:[%s12282_s5 + $0x38] sm:$0xff]  ;;  %v1176_v20 = vld [vmem:[%s12280_s3] sm:$0xff] }
 0x131   :  { %8003 = vmatprep.subr.bf16.mxu1 %v12389_v54  ;;  %7997 = vmatprep.subr.bf16.mxu0 %v12389_v54  ;;  %v786_v36 = vmul.f32 %v782_v37, %v766_v4 }
 0x132   :  { %v9481_v46 = vpop.permute.xlu1 %1650  ;;  %v406_v44 = vmul.f32 %v402_v49, %v386_v51  ;;  %v9501_v51 = vld [vmem:[%s12282_s5 + $0x30] sm:$0xff]  ;;  %v6376_v49 = vld [vmem:[%s12278_s1 + $0x4] sm:$0x7] }
 0x133   :  { %12390 = vst [vmem:[#allocation44_spill] sm:$0xff] %v9481_v46  ;;  %v9483_v55 = vpop.permute.xlu0 %1645  ;;  %3178 = vperm.xlu1 %8096, %v9470_v34   ;;  %v9486_v21 = vadd.f32 %v8142_v12, %v786_v36  ;;  %v12396_v36 = vmov 0.0   ;;  %v9553_v46 = vld [vmem:[%s12281_s4 + $0x70] sm:$0xff] }
 0x134   :  { %12391 = vst [vmem:[#allocation45_spill] sm:$0xff] %v9483_v55  ;;  %3173 = vperm.xlu0 %8095, %v9477_v25   ;;  %v9494_v28 = vadd.f32 %v8144_v53, %v406_v44  ;;  %v9514_v53 = vld [vmem:[%s12282_s5 + $0x58] sm:$0xff]  ;;  %v9524_v44 = vld [vmem:[%s12282_s5 + $0x50] sm:$0xff] }
 0x135   :  { %12392 = vst [vmem:[#allocation46_spill] sm:$0xff] %v9486_v21  ;;  %v8004_v4 = vpack.c.bf16 %v9486_v21, %v9464_v11  ;;  %v798_v21 = vld [vmem:[%s12279_s2 + $0x18] sm:$0xff] }
 0x136   :  { %12393 = vst [vmem:[#allocation47_spill] sm:$0xff] %v9494_v28  ;;  %v9503_v37 = vpop.permute.xlu1 %2011  ;;  %v7998_v41 = vpack.c.bf16 %v9494_v28, %v9472_v45 }
 0x137   :  { %12394 = vst [vmem:[#allocation48_spill] sm:$0xff] %v9503_v37  ;;  %v9505_v12 = vpop.permute.xlu0 %2006  ;;  %3539 = vperm.xlu1 %8096, %v9492_v58   ;;  %8005 = vmatpush3.bf16.msra.mxu1 %v8004_v4  ;;  %v6357_v4 = vld [vmem:[%s12277_s0 + $0x4] sm:$0x7] }
 0x138   :  { %12395 = vst [vmem:[#allocation49_spill] sm:$0xff] %v9505_v12  ;;  %3534 = vperm.xlu0 %8095, %v9501_v51   ;;  %7999 = vmatpush3.bf16.msra.mxu0 %v7998_v41  ;;  %v795_v12 = vld [vmem:[%s12279_s2] sm:$0xff] }
 0x139   :  { %7179 = vmatprep.subr.mxu1 %v12396_v36  ;;  %7118 = vmatprep.subr.mxu0 %v12396_v36 }
 0x13a   :  { %v9529_v41 = vpop.permute.xlu1 %2031 }
 0x13b   :  { %12397 = vst [vmem:[#allocation50_spill] sm:$0xff] %v9529_v41  ;;  %v9531_v37 = vpop.permute.xlu0 %2026  ;;  %3559 = vperm.xlu1 %8096, %v9514_v53   ;;  %7180 = vmatpush3.msk.msra.mxu1 %vm201_vm1, %v6376_v49  ;;  %v9546_v41 = vld [vmem:[%s12281_s4 + $0x78] sm:$0xff] }
 0x13c   :  { %12398 = vst [vmem:[#allocation51_spill] sm:$0xff] %v9531_v37  ;;  %3554 = vperm.xlu0 %8095, %v9524_v44   ;;  %7119 = vmatpush3.msk.msra.mxu0 %vm201_vm1, %v6357_v4  ;;  %v9575_v4 = vld [vmem:[%s12282_s5 + $0x78] sm:$0xff] }
 0x13d   :  { %7121 = vmatmul.mubr.msk.f32.vlgmr.msra.gmra.mrb[34].mxu0 %vm149_vm2, %v795_v12  ;;  %7182 = vmatmul.mubr.msk.f32.vlgmr.msra.gmra.mrb[34].mxu1 %vm149_vm2, %v1176_v20  ;;  %v796_v12 = vld [vmem:[%s12279_s2 + $0x8] sm:$0xff] }
 0x13e   :  { %v9555_v37 = vpop.permute.xlu1 %1670  ;;  %7184 = vmatprep.mubr.msk.f32.mxu1 %vm8507_vm0, %v12396_v36  ;;  %7123 = vmatprep.mubr.msk.f32.mxu0 %vm8507_vm0, %v12396_v36  ;;  %v1177_v20 = vld [vmem:[%s12280_s3 + $0x8] sm:$0xff] }
 0x13f   :  { %12399 = vst [vmem:[#allocation52_spill] sm:$0xff] %v9555_v37  ;;  %v9557_v49 = vpop.permute.xlu0 %1665  ;;  %3198 = vperm.xlu1 %8096, %v9546_v41   ;;  %8012 = vmatprep.subr.bf16.mxu1 %v12389_v54  ;;  %v9583_v37 = vld [vmem:[%s12282_s5 + $0x70] sm:$0xff] }
 0x140   :  { %12400 = vst [vmem:[#allocation53_spill] sm:$0xff] %v9557_v49  ;;  %3193 = vperm.xlu0 %8095, %v9553_v46   ;;  %8006 = vmatprep.subr.bf16.mxu0 %v12389_v54 }
 0x141   :  { %7124 = vmatmul.mubr.msk.f32.gmra.mrb[36].mxu0 %vm149_vm2, %v796_v12  ;;  %7185 = vmatmul.mubr.msk.f32.gmra.mrb[36].mxu1 %vm149_vm2, %v1177_v20  ;;  %v797_v12 = vld [vmem:[%s12279_s2 + $0x10] sm:$0xff] }
 0x142   :  { %v9585_v49 = vpop.permute.xlu1 %2051  ;;  %7187 = vmatprep.mubr.msk.f32.mxu1 %vm8507_vm0, %v12396_v36  ;;  %7126 = vmatprep.mubr.msk.f32.mxu0 %vm8507_vm0, %v12396_v36  ;;  %v1178_v20 = vld [vmem:[%s12280_s3 + $0x10] sm:$0xff] }
 0x143   :  { %12401 = vst [vmem:[#allocation54_spill] sm:$0xff] %v9585_v49  ;;  %v9587_v55 = vpop.permute.xlu0 %2046  ;;  %3579 = vperm.xlu1 %8096, %v9575_v4  }
 0x144   :  { %12402 = vst [vmem:[#allocation55_spill] sm:$0xff] %v9587_v55  ;;  %3574 = vperm.xlu0 %8095, %v9583_v37  }
 0x145   :  { %7127 = vmatmul.mubr.msk.f32.gmra.mrb[38].mxu0 %vm149_vm2, %v797_v12  ;;  %7188 = vmatmul.mubr.msk.f32.gmra.mrb[38].mxu1 %vm149_vm2, %v1178_v20  ;;  %v1179_v12 = vld [vmem:[%s12280_s3 + $0x18] sm:$0xff] }
 0x146   :  { %v9603_v49 = vpop.permute.xlu1 %2364  ;;  %7190 = vmatprep.mubr.msk.f32.mxu1 %vm8507_vm0, %v12396_v36  ;;  %7129 = vmatprep.mubr.msk.f32.mxu0 %vm8507_vm0, %v12396_v36 }
 0x147   :  { %12403 = vst [vmem:[#allocation56_spill] sm:$0xff] %v9603_v49  ;;  %v9605_v55 = vpop.permute.xlu0 %2359  ;;  %3892 = vperm.xlu1 %8096, %v9226_v47  }
 0x148   :  { %12404 = vst [vmem:[#allocation57_spill] sm:$0xff] %v9605_v55  ;;  %3887 = vperm.xlu0 %8095, %v9231_v62   ;;  %v799_v55 = vld [vmem:[%s12279_s2 + $0x20] sm:$0xff] }
 0x149   :  { %7130 = vmatmul.mubr.msk.f32.gmra.mrb[40].mxu0 %vm149_vm2, %v798_v21  ;;  %7191 = vmatmul.mubr.msk.f32.gmra.mrb[40].mxu1 %vm149_vm2, %v1179_v12  ;;  %v1180_v21 = vld [vmem:[%s12280_s3 + $0x20] sm:$0xff] }
 0x14a   :  { %v9621_v20 = vpop.permute.xlu1 %2745  ;;  %7193 = vmatprep.mubr.msk.f32.mxu1 %vm8507_vm0, %v12396_v36  ;;  %7132 = vmatprep.mubr.msk.f32.mxu0 %vm8507_vm0, %v12396_v36 }
 0x14b   :  { %12405 = vst [vmem:[#allocation58_spill] sm:$0xff] %v9621_v20  ;;  %v9623_v49 = vpop.permute.xlu0 %2740  ;;  %4273 = vperm.xlu1 %8096, %v9248_v38  }
 0x14c   :  { %12406 = vst [vmem:[#allocation59_spill] sm:$0xff] %v9623_v49  ;;  %4268 = vperm.xlu0 %8095, %v9253_v22   ;;  %v800_v49 = vld [vmem:[%s12279_s2 + $0x28] sm:$0xff] }
 0x14d   :  { %7133 = vmatmul.mubr.msk.f32.gmra.mrb[42].mxu0 %vm149_vm2, %v799_v55  ;;  %7194 = vmatmul.mubr.msk.f32.gmra.mrb[42].mxu1 %vm149_vm2, %v1180_v21  ;;  %v1181_v55 = vld [vmem:[%s12280_s3 + $0x28] sm:$0xff] }
 0x14e   :  { %v9639_v12 = vpop.permute.xlu1 %2374  ;;  %7196 = vmatprep.mubr.msk.f32.mxu1 %vm8507_vm0, %v12396_v36  ;;  %7135 = vmatprep.mubr.msk.f32.mxu0 %vm8507_vm0, %v12396_v36 }
 0x14f   :  { %12407 = vst [vmem:[#allocation60_spill] sm:$0xff] %v9639_v12  ;;  %v9641_v20 = vpop.permute.xlu0 %2369  ;;  %3902 = vperm.xlu1 %8096, %v9274_v35  }
 0x150   :  { %12408 = vst [vmem:[#allocation61_spill] sm:$0xff] %v9641_v20  ;;  %3897 = vperm.xlu0 %8095, %v9279_v33   ;;  %v801_v20 = vld [vmem:[%s12279_s2 + $0x30] sm:$0xff] }
 0x151   :  { %7136 = vmatmul.mubr.msk.f32.gmra.mrb[44].mxu0 %vm149_vm2, %v800_v49  ;;  %7197 = vmatmul.mubr.msk.f32.gmra.mrb[44].mxu1 %vm149_vm2, %v1181_v55  ;;  %v1182_v49 = vld [vmem:[%s12280_s3 + $0x30] sm:$0xff] }
 0x152   :  { %v9657_v21 = vpop.permute.xlu1 %2755  ;;  %7199 = vmatprep.mubr.msk.f32.mxu1 %vm8507_vm0, %v12396_v36  ;;  %7138 = vmatprep.mubr.msk.f32.mxu0 %vm8507_vm0, %v12396_v36 }
 0x153   :  { %12409 = vst [vmem:[#allocation62_spill] sm:$0xff] %v9657_v21  ;;  %v9659_v12 = vpop.permute.xlu0 %2750  ;;  %4283 = vperm.xlu1 %8096, %v9300_v63  }
 0x154   :  { %12410 = vst [vmem:[#allocation63_spill] sm:$0xff] %v9659_v12  ;;  %4278 = vperm.xlu0 %8095, %v9305_v32   ;;  %v802_v12 = vld [vmem:[%s12279_s2 + $0x38] sm:$0xff] }
 0x155   :  { %7139 = vmatmul.mubr.msk.f32.gmra.mrb[46].mxu0 %vm149_vm2, %v801_v20  ;;  %7200 = vmatmul.mubr.msk.f32.gmra.mrb[46].mxu1 %vm149_vm2, %v1182_v49  ;;  %v1183_v20 = vld [vmem:[%s12280_s3 + $0x38] sm:$0xff] }
 0x156   :  { %v9675_v55 = vpop.permute.xlu1 %2384  ;;  %7202 = vmatprep.mubr.msk.f32.mxu1 %vm8507_vm0, %v12396_v36  ;;  %7141 = vmatprep.mubr.msk.f32.mxu0 %vm8507_vm0, %v12396_v36 }
 0x157   :  { %12411 = vst [vmem:[#allocation64_spill] sm:$0xff] %v9675_v55  ;;  %v9677_v21 = vpop.permute.xlu0 %2379  ;;  %3912 = vperm.xlu1 %8096, %v9326_v2  }
 0x158   :  { %12412 = vst [vmem:[#allocation65_spill] sm:$0xff] %v9677_v21  ;;  %3907 = vperm.xlu0 %8095, %v9331_v57   ;;  %v803_v21 = vld [vmem:[%s12279_s2 + $0x40] sm:$0xff] }
 0x159   :  { %7142 = vmatmul.mubr.msk.f32.gmra.mrb[48].mxu0 %vm149_vm2, %v802_v12  ;;  %7203 = vmatmul.mubr.msk.f32.gmra.mrb[48].mxu1 %vm149_vm2, %v1183_v20  ;;  %v1184_v12 = vld [vmem:[%s12280_s3 + $0x40] sm:$0xff] }
 0x15a   :  { %v9693_v49 = vpop.permute.xlu1 %2404  ;;  %7205 = vmatprep.mubr.msk.f32.mxu1 %vm8507_vm0, %v12396_v36  ;;  %7144 = vmatprep.mubr.msk.f32.mxu0 %vm8507_vm0, %v12396_v36 }
 0x15b   :  { %12413 = vst [vmem:[#allocation66_spill] sm:$0xff] %v9693_v49  ;;  %v9695_v55 = vpop.permute.xlu0 %2399  ;;  %3932 = vperm.xlu1 %8096, %v9350_v17  }
 0x15c   :  { %12414 = vst [vmem:[#allocation67_spill] sm:$0xff] %v9695_v55  ;;  %3927 = vperm.xlu0 %8095, %v9355_v56   ;;  %v804_v55 = vld [vmem:[%s12279_s2 + $0x48] sm:$0xff] }
 0x15d   :  { %7145 = vmatmul.mubr.msk.f32.gmra.mrb[50].mxu0 %vm149_vm2, %v803_v21  ;;  %7206 = vmatmul.mubr.msk.f32.gmra.mrb[50].mxu1 %vm149_vm2, %v1184_v12  ;;  %v1185_v21 = vld [vmem:[%s12280_s3 + $0x48] sm:$0xff] }
 0x15e   :  { %v9711_v20 = vpop.permute.xlu1 %2765  ;;  %7208 = vmatprep.mubr.msk.f32.mxu1 %vm8507_vm0, %v12396_v36  ;;  %7147 = vmatprep.mubr.msk.f32.mxu0 %vm8507_vm0, %v12396_v36 }
 0x15f   :  { %12415 = vst [vmem:[#allocation68_spill] sm:$0xff] %v9711_v20  ;;  %v9713_v49 = vpop.permute.xlu0 %2760  ;;  %4293 = vperm.xlu1 %8096, %v9370_v43  }
 0x160   :  { %12416 = vst [vmem:[#allocation69_spill] sm:$0xff] %v9713_v49  ;;  %4288 = vperm.xlu0 %8095, %v9375_v29   ;;  %v805_v49 = vld [vmem:[%s12279_s2 + $0x50] sm:$0xff] }
 0x161   :  { %7148 = vmatmul.mubr.msk.f32.gmra.mrb[52].mxu0 %vm149_vm2, %v804_v55  ;;  %7209 = vmatmul.mubr.msk.f32.gmra.mrb[52].mxu1 %vm149_vm2, %v1185_v21  ;;  %v1186_v55 = vld [vmem:[%s12280_s3 + $0x50] sm:$0xff] }
 0x162   :  { %v9729_v12 = vpop.permute.xlu1 %2785  ;;  %7211 = vmatprep.mubr.msk.f32.mxu1 %vm8507_vm0, %v12396_v36  ;;  %7150 = vmatprep.mubr.msk.f32.mxu0 %vm8507_vm0, %v12396_v36 }
 0x163   :  { %12417 = vst [vmem:[#allocation70_spill] sm:$0xff] %v9729_v12  ;;  %v9731_v20 = vpop.permute.xlu0 %2780  ;;  %4313 = vperm.xlu1 %8096, %v9390_v0  }
 0x164   :  { %12418 = vst [vmem:[#allocation71_spill] sm:$0xff] %v9731_v20  ;;  %4308 = vperm.xlu0 %8095, %v9395_v40   ;;  %v806_v20 = vld [vmem:[%s12279_s2 + $0x58] sm:$0xff] }
 0x165   :  { %7151 = vmatmul.mubr.msk.f32.gmra.mrb[54].mxu0 %vm149_vm2, %v805_v49  ;;  %7212 = vmatmul.mubr.msk.f32.gmra.mrb[54].mxu1 %vm149_vm2, %v1186_v55  ;;  %v1187_v49 = vld [vmem:[%s12280_s3 + $0x58] sm:$0xff] }
 0x166   :  { %v9747_v21 = vpop.permute.xlu1 %2424  ;;  %7214 = vmatprep.mubr.msk.f32.mxu1 %vm8507_vm0, %v12396_v36  ;;  %7153 = vmatprep.mubr.msk.f32.mxu0 %vm8507_vm0, %v12396_v36 }
 0x167   :  { %12419 = vst [vmem:[#allocation72_spill] sm:$0xff] %v9747_v21  ;;  %v9749_v12 = vpop.permute.xlu0 %2419  ;;  %3952 = vperm.xlu1 %8096, %v9408_v26  }
 0x168   :  { %12420 = vst [vmem:[#allocation73_spill] sm:$0xff] %v9749_v12  ;;  %3947 = vperm.xlu0 %8095, %v9413_v60   ;;  %v807_v12 = vld [vmem:[%s12279_s2 + $0x60] sm:$0xff] }
 0x169   :  { %7154 = vmatmul.mubr.msk.f32.gmra.mrb[56].mxu0 %vm149_vm2, %v806_v20  ;;  %7215 = vmatmul.mubr.msk.f32.gmra.mrb[56].mxu1 %vm149_vm2, %v1187_v49  ;;  %v1188_v20 = vld [vmem:[%s12280_s3 + $0x60] sm:$0xff] }
 0x16a   :  { %v9765_v55 = vpop.permute.xlu1 %2805  ;;  %7217 = vmatprep.mubr.msk.f32.mxu1 %vm8507_vm0, %v12396_v36  ;;  %7156 = vmatprep.mubr.msk.f32.mxu0 %vm8507_vm0, %v12396_v36 }
 0x16b   :  { %12421 = vst [vmem:[#allocation74_spill] sm:$0xff] %v9765_v55  ;;  %v9767_v21 = vpop.permute.xlu0 %2800  ;;  %4333 = vperm.xlu1 %8096, %v9426_v18  }
 0x16c   :  { %12422 = vst [vmem:[#allocation75_spill] sm:$0xff] %v9767_v21  ;;  %4328 = vperm.xlu0 %8095, %v9431_v15   ;;  %v808_v21 = vld [vmem:[%s12279_s2 + $0x68] sm:$0xff] }
 0x16d   :  { %7157 = vmatmul.mubr.msk.f32.gmra.mrb[58].mxu0 %vm149_vm2, %v807_v12  ;;  %7218 = vmatmul.mubr.msk.f32.gmra.mrb[58].mxu1 %vm149_vm2, %v1188_v20  ;;  %v1189_v12 = vld [vmem:[%s12280_s3 + $0x68] sm:$0xff] }
 0x16e   :  { %v9783_v49 = vpop.permute.xlu1 %2394  ;;  %7220 = vmatprep.mubr.msk.f32.mxu1 %vm8507_vm0, %v12396_v36  ;;  %7159 = vmatprep.mubr.msk.f32.mxu0 %vm8507_vm0, %v12396_v36 }
 0x16f   :  { %12423 = vst [vmem:[#allocation76_spill] sm:$0xff] %v9783_v49  ;;  %v9785_v55 = vpop.permute.xlu0 %2389  ;;  %3922 = vperm.xlu1 %8096, %v9446_v24  }
 0x170   :  { %12424 = vst [vmem:[#allocation77_spill] sm:$0xff] %v9785_v55  ;;  %3917 = vperm.xlu0 %8095, %v9455_v13   ;;  %v809_v55 = vld [vmem:[%s12279_s2 + $0x70] sm:$0xff] }
 0x171   :  { %7160 = vmatmul.mubr.msk.f32.gmra.mrb[60].mxu0 %vm149_vm2, %v808_v21  ;;  %7221 = vmatmul.mubr.msk.f32.gmra.mrb[60].mxu1 %vm149_vm2, %v1189_v12  ;;  %v1190_v21 = vld [vmem:[%s12280_s3 + $0x70] sm:$0xff] }
 0x172   :  { %v9801_v20 = vpop.permute.xlu1 %2414  ;;  %7223 = vmatprep.mubr.msk.f32.mxu1 %vm8507_vm0, %v12396_v36  ;;  %7162 = vmatprep.mubr.msk.f32.mxu0 %vm8507_vm0, %v12396_v36 }
 0x173   :  { %12425 = vst [vmem:[#allocation78_spill] sm:$0xff] %v9801_v20  ;;  %v9803_v49 = vpop.permute.xlu0 %2409  ;;  %3942 = vperm.xlu1 %8096, %v9470_v34  }
 0x174   :  { %12426 = vst [vmem:[#allocation79_spill] sm:$0xff] %v9803_v49  ;;  %3937 = vperm.xlu0 %8095, %v9477_v25   ;;  %v810_v49 = vld [vmem:[%s12279_s2 + $0x78] sm:$0xff] }
 0x175   :  { %7163 = vmatmul.mubr.msk.f32.gmra.mrb[62].mxu0 %vm149_vm2, %v809_v55  ;;  %7224 = vmatmul.mubr.msk.f32.gmra.mrb[62].mxu1 %vm149_vm2, %v1190_v21  ;;  %v1191_v55 = vld [vmem:[%s12280_s3 + $0x78] sm:$0xff] }
 0x176   :  { %v9819_v12 = vpop.permute.xlu1 %2775  ;;  %7226 = vmatprep.mubr.msk.f32.mxu1 %vm8507_vm0, %v12396_v36  ;;  %7165 = vmatprep.mubr.msk.f32.mxu0 %vm8507_vm0, %v12396_v36 }
 0x177   :  { %12427 = vst [vmem:[#allocation80_spill] sm:$0xff] %v9819_v12  ;;  %v9821_v20 = vpop.permute.xlu0 %2770  ;;  %4303 = vperm.xlu1 %8096, %v9492_v58  }
 0x178   :  { %12428 = vst [vmem:[#allocation81_spill] sm:$0xff] %v9821_v20  ;;  %4298 = vperm.xlu0 %8095, %v9501_v51   ;;  %v1192_v20 = vld [vmem:[%s12280_s3 + $0x80] sm:$0x1] }
 0x179   :  { %7166 = vmatmul.mubr.msk.f32.gmra.mrb[64].mxu0 %vm149_vm2, %v810_v49  ;;  %7227 = vmatmul.mubr.msk.f32.gmra.mrb[64].mxu1 %vm149_vm2, %v1191_v55  ;;  %v811_v49 = vld [vmem:[%s12279_s2 + $0x80] sm:$0x1] }
 0x17a   :  { %v9837_v21 = vpop.permute.xlu1 %2795  ;;  %7229 = vmatprep.mubr.msk.f32.mxu1 %vm8507_vm0, %v12396_v36  ;;  %7168 = vmatprep.mubr.msk.f32.mxu0 %vm8507_vm0, %v12396_v36 }
 0x17b   :  { %12429 = vst [vmem:[#allocation82_spill] sm:$0xff] %v9837_v21  ;;  %v9839_v12 = vpop.permute.xlu0 %2790  ;;  %4323 = vperm.xlu1 %8096, %v9514_v53  }
 0x17c   :  { %12430 = vst [vmem:[#allocation83_spill] sm:$0xff] %v9839_v12  ;;  %4318 = vperm.xlu0 %8095, %v9524_v44  }
 0x17d   :  { %7230 = vmatmul.mubr.msk.f32.gmra.mrb[66].mxu1 %vm149_vm2, %v1192_v20  ;;  %7169 = vmatmul.mubr.msk.f32.gmra.mrb[66].mxu0 %vm149_vm2, %v811_v49 }
 0x17e   :  { %v9855_v55 = vpop.permute.xlu1 %2434  ;;  %7242 = vmatprep.mubr.msk.f32.mxu0 %vm8507_vm0, %v12396_v36  ;;  %7303 = vmatprep.mubr.msk.f32.mxu1 %vm8507_vm0, %v12396_v36 }
 0x17f   :  { %12431 = vst [vmem:[#allocation84_spill] sm:$0xff] %v9855_v55  ;;  %v9857_v21 = vpop.permute.xlu0 %2429  ;;  %3962 = vperm.xlu1 %8096, %v9546_v41  }
 0x180   :  { %12432 = vst [vmem:[#allocation85_spill] sm:$0xff] %v9857_v21  ;;  %3957 = vperm.xlu0 %8095, %v9553_v46  }
 0x182   :  { %v9865_v12 = vpop.permute.xlu1 %2815 }
 0x183   :  { %12433 = vst [vmem:[#allocation86_spill] sm:$0xff] %v9865_v12  ;;  %v9867_v54 = vpop.permute.xlu0 %2810  ;;  %4343 = vperm.xlu1 %8096, %v9575_v4   ;;  %v9882_v12 = vpop.f32.mrb[32].mxu1 }
 0x184   :  { %12434 = vst [vmem:[#allocation87_spill] sm:$0xff] %v9867_v54  ;;  %4338 = vperm.xlu0 %8095, %v9583_v37   ;;  %v9884_v54 = vpop.f32.mrb[32].mxu0  ;;  %v7109_v36 = vpop.f32.mrb[33].mxu1 }
 0x186   :  { %v9871_v20 = vpop.permute.xlu1 %3128 }
 0x187   :  { %12435 = vst [vmem:[#allocation88_spill] sm:$0xff] %v9871_v20  ;;  %v9873_v49 = vpop.permute.xlu0 %3123  ;;  %4656 = vperm.xlu1 %8096, %v9226_v47   ;;  %v7048_v20 = vpop.f32.mrb[33].mxu0 }
 0x188   :  { %12436 = vst [vmem:[#allocation89_spill] sm:$0xff] %v9873_v49  ;;  %4651 = vperm.xlu0 %8095, %v9231_v62  }
 0x18a   :  { %v9877_v55 = vpop.permute.xlu1 %3509 }
 0x18b   :  { %12437 = vst [vmem:[#allocation90_spill] sm:$0xff] %v9877_v55  ;;  %v9879_v21 = vpop.permute.xlu0 %3504  ;;  %5037 = vperm.xlu1 %8096, %v9248_v38  }
 0x18c   :  { %12438 = vst [vmem:[#allocation91_spill] sm:$0xff] %v9879_v21  ;;  %5032 = vperm.xlu0 %8095, %v9253_v22  }
 0x18e   :  { %v9887_v28 = vpop.permute.xlu1 %3138 }
 0x18f   :  { %12439 = vst [vmem:[#allocation92_spill] sm:$0xff] %v9887_v28  ;;  %v9889_v49 = vpop.permute.xlu0 %3133  ;;  %4666 = vperm.xlu1 %8096, %v9274_v35  }
 0x190   :  { %12440 = vst [vmem:[#allocation93_spill] sm:$0xff] %v9889_v49  ;;  %4661 = vperm.xlu0 %8095, %v9279_v33  }
 0x192   :  { %v9893_v47 = vpop.permute.xlu1 %3519 }
 0x193   :  { %12441 = vst [vmem:[#allocation94_spill] sm:$0xff] %v9893_v47  ;;  %v9895_v62 = vpop.permute.xlu0 %3514  ;;  %5047 = vperm.xlu1 %8096, %v9300_v63  }
 0x194   :  { %12442 = vst [vmem:[#allocation95_spill] sm:$0xff] %v9895_v62  ;;  %5042 = vperm.xlu0 %8095, %v9305_v32  }
 0x196   :  { %v9899_v55 = vpop.permute.xlu1 %3148 }
 0x197   :  { %12443 = vst [vmem:[#allocation96_spill] sm:$0xff] %v9899_v55  ;;  %v9901_v36 = vpop.permute.xlu0 %3143  ;;  %4676 = vperm.xlu1 %8096, %v9326_v2  }
 0x198   :  { %12444 = vst [vmem:[#allocation97_spill] sm:$0xff] %v9901_v36  ;;  %4671 = vperm.xlu0 %8095, %v9331_v57  }
 0x19a   :  { %v9905_v20 = vpop.permute.xlu1 %3168 }
 0x19b   :  { %12445 = vst [vmem:[#allocation98_spill] sm:$0xff] %v9905_v20  ;;  %v9907_v28 = vpop.permute.xlu0 %3163  ;;  %4696 = vperm.xlu1 %8096, %v9350_v17  }
 0x19c   :  { %12446 = vst [vmem:[#allocation99_spill] sm:$0xff] %v9907_v28  ;;  %4691 = vperm.xlu0 %8095, %v9355_v56  }
 0x19e   :  { %v9911_v47 = vpop.permute.xlu1 %3529 }
 0x19f   :  { %12447 = vst [vmem:[#allocation100_spill] sm:$0xff] %v9911_v47  ;;  %v9913_v62 = vpop.permute.xlu0 %3524  ;;  %5057 = vperm.xlu1 %8096, %v9370_v43  }
 0x1a0   :  { %12448 = vst [vmem:[#allocation101_spill] sm:$0xff] %v9913_v62  ;;  %5052 = vperm.xlu0 %8095, %v9375_v29  }
 0x1a2   :  { %v9917_v55 = vpop.permute.xlu1 %3549 }
 0x1a3   :  { %12449 = vst [vmem:[#allocation102_spill] sm:$0xff] %v9917_v55  ;;  %v9919_v36 = vpop.permute.xlu0 %3544  ;;  %5077 = vperm.xlu1 %8096, %v9390_v0  }
 0x1a4   :  { %12450 = vst [vmem:[#allocation103_spill] sm:$0xff] %v9919_v36  ;;  %5072 = vperm.xlu0 %8095, %v9395_v40  }
 0x1a6   :  { %v9923_v20 = vpop.permute.xlu1 %3188 }
 0x1a7   :  { %12451 = vst [vmem:[#allocation104_spill] sm:$0xff] %v9923_v20  ;;  %v9925_v28 = vpop.permute.xlu0 %3183  ;;  %4716 = vperm.xlu1 %8096, %v9408_v26  }
 0x1a8   :  { %12452 = vst [vmem:[#allocation105_spill] sm:$0xff] %v9925_v28  ;;  %4711 = vperm.xlu0 %8095, %v9413_v60  }
 0x1aa   :  { %v9929_v47 = vpop.permute.xlu1 %3569 }
 0x1ab   :  { %12453 = vst [vmem:[#allocation106_spill] sm:$0xff] %v9929_v47  ;;  %v9931_v62 = vpop.permute.xlu0 %3564  ;;  %5097 = vperm.xlu1 %8096, %v9426_v18  }
 0x1ac   :  { %12454 = vst [vmem:[#allocation107_spill] sm:$0xff] %v9931_v62  ;;  %5092 = vperm.xlu0 %8095, %v9431_v15  }
 0x1ae   :  { %v9935_v55 = vpop.permute.xlu1 %3158 }
 0x1af   :  { %12455 = vst [vmem:[#allocation108_spill] sm:$0xff] %v9935_v55  ;;  %v9937_v36 = vpop.permute.xlu0 %3153  ;;  %4686 = vperm.xlu1 %8096, %v9446_v24  }
 0x1b0   :  { %12456 = vst [vmem:[#allocation109_spill] sm:$0xff] %v9937_v36  ;;  %4681 = vperm.xlu0 %8095, %v9455_v13  }
 0x1b2   :  { %v9941_v20 = vpop.permute.xlu1 %3178 }
 0x1b3   :  { %12457 = vst [vmem:[#allocation110_spill] sm:$0xff] %v9941_v20  ;;  %v9943_v28 = vpop.permute.xlu0 %3173  ;;  %4706 = vperm.xlu1 %8096, %v9470_v34  }
 0x1b4   :  { %12458 = vst [vmem:[#allocation111_spill] sm:$0xff] %v9943_v28  ;;  %4701 = vperm.xlu0 %8095, %v9477_v25  }
 0x1b6   :  { %v9947_v47 = vpop.permute.xlu1 %3539 }
 0x1b7   :  { %12459 = vst [vmem:[#allocation112_spill] sm:$0xff] %v9947_v47  ;;  %v9949_v62 = vpop.permute.xlu0 %3534  ;;  %5067 = vperm.xlu1 %8096, %v9492_v58  }
 0x1b8   :  { %12460 = vst [vmem:[#allocation113_spill] sm:$0xff] %v9949_v62  ;;  %5062 = vperm.xlu0 %8095, %v9501_v51  }
 0x1ba   :  { %v9953_v55 = vpop.permute.xlu1 %3559 }
 0x1bb   :  { %12461 = vst [vmem:[#allocation114_spill] sm:$0xff] %v9953_v55  ;;  %v9955_v36 = vpop.permute.xlu0 %3554  ;;  %5087 = vperm.xlu1 %8096, %v9514_v53   ;;  %v5397_v55 = vld [vmem:[%s12281_s4 + $0x8] sm:$0xff] }
 0x1bc   :  { %12462 = vst [vmem:[#allocation115_spill] sm:$0xff] %v9955_v36  ;;  %5082 = vperm.xlu0 %8095, %v9524_v44  }
 0x1be   :  { %v9959_v20 = vpop.permute.xlu1 %3198 }
 0x1bf   :  { %12463 = vst [vmem:[#allocation116_spill] sm:$0xff] %v9959_v20  ;;  %v9961_v28 = vpop.permute.xlu0 %3193  ;;  %4726 = vperm.xlu1 %8096, %v9546_v41   ;;  %v5396_v20 = vld [vmem:[%s12281_s4] sm:$0xff] }
 0x1c0   :  { %12464 = vst [vmem:[#allocation117_spill] sm:$0xff] %v9961_v28  ;;  %4721 = vperm.xlu0 %8095, %v9553_v46  }
 0x1c2   :  { %v9965_v47 = vpop.permute.xlu1 %3579 }
 0x1c3   :  { %12465 = vst [vmem:[#allocation118_spill] sm:$0xff] %v9965_v47  ;;  %v9967_v62 = vpop.permute.xlu0 %3574  ;;  %5107 = vperm.xlu1 %8096, %v9575_v4  }
 0x1c4   :  { %12466 = vst [vmem:[#allocation119_spill] sm:$0xff] %v9967_v62  ;;  %5102 = vperm.xlu0 %8095, %v9583_v37  }
 0x1c6   :  { %v9977_v28 = vpop.permute.xlu1 %3892 }
 0x1c7   :  { %12467 = vst [vmem:[#allocation120_spill] sm:$0xff] %v9977_v28  ;;  %v9979_v36 = vpop.permute.xlu0 %3887  ;;  %5420 = vperm.xlu1 %8096, %v5397_v55  }
 0x1c8   :  { %12468 = vst [vmem:[#allocation121_spill] sm:$0xff] %v9979_v36  ;;  %5415 = vperm.xlu0 %8095, %v5396_v20   ;;  %v12600_v36 = vld [vmem:[#allocation30_spill] sm:$0xff] }
 0x1ca   :  { %v9981_v47 = vpop.permute.xlu1 %4273 }
 0x1cb   :  { %12469 = vst [vmem:[#allocation122_spill] sm:$0xff] %v9981_v47  ;;  %v9983_v62 = vpop.permute.xlu0 %4268  ;;  %5801 = vperm.xlu1 %8096, %v9248_v38  }
 0x1cc   :  { %12470 = vst [vmem:[#allocation123_spill] sm:$0xff] %v9983_v62  ;;  %5796 = vperm.xlu0 %8095, %v9253_v22  }
 0x1ce   :  { %v9987_v49 = vpop.permute.xlu1 %3902 }
 0x1cf   :  { %12471 = vst [vmem:[#allocation124_spill] sm:$0xff] %v9987_v49  ;;  %v9989_v21 = vpop.permute.xlu0 %3897  ;;  %5430 = vperm.xlu1 %8096, %v9274_v35  }
 0x1d0   :  { %12472 = vst [vmem:[#allocation125_spill] sm:$0xff] %v9989_v21  ;;  %5425 = vperm.xlu0 %8095, %v9279_v33  }
 0x1d2   :  { %v9993_v28 = vpop.permute.xlu1 %4283 }
 0x1d3   :  { %12473 = vst [vmem:[#allocation126_spill] sm:$0xff] %v9993_v28  ;;  %v9995_v55 = vpop.permute.xlu0 %4278  ;;  %5811 = vperm.xlu1 %8096, %v9300_v63  }
 0x1d4   :  { %12474 = vst [vmem:[#allocation127_spill] sm:$0xff] %v9995_v55  ;;  %5806 = vperm.xlu0 %8095, %v9305_v32   ;;  %v12599_v55 = vld [vmem:[#allocation28_spill] sm:$0xff] }
 0x1d6   :  { %v9999_v20 = vpop.permute.xlu1 %3912 }
 0x1d7   :  { %12475 = vst [vmem:[#allocation128_spill] sm:$0xff] %v9999_v20  ;;  %v10001_v38 = vpop.permute.xlu0 %3907  ;;  %5440 = vperm.xlu1 %8096, %v9326_v2  }
 0x1d8   :  { %12476 = vst [vmem:[#allocation129_spill] sm:$0xff] %v10001_v38  ;;  %5435 = vperm.xlu0 %8095, %v9331_v57  }
 0x1da   :  { %v10005_v22 = vpop.permute.xlu1 %3932 }
 0x1db   :  { %12477 = vst [vmem:[#allocation130_spill] sm:$0xff] %v10005_v22  ;;  %v10007_v35 = vpop.permute.xlu0 %3927  ;;  %5460 = vperm.xlu1 %8096, %v9350_v17  }
 0x1dc   :  { %12478 = vst [vmem:[#allocation131_spill] sm:$0xff] %v10007_v35  ;;  %5455 = vperm.xlu0 %8095, %v9355_v56  }
 0x1de   :  { %v10011_v33 = vpop.permute.xlu1 %4293 }
 0x1df   :  { %12479 = vst [vmem:[#allocation132_spill] sm:$0xff] %v10011_v33  ;;  %v10013_v63 = vpop.permute.xlu0 %4288  ;;  %5821 = vperm.xlu1 %8096, %v9370_v43  }
 0x1e0   :  { %12480 = vst [vmem:[#allocation133_spill] sm:$0xff] %v10013_v63  ;;  %5816 = vperm.xlu0 %8095, %v9375_v29  }
 0x1e2   :  { %v10017_v32 = vpop.permute.xlu1 %4313 }
 0x1e3   :  { %12481 = vst [vmem:[#allocation134_spill] sm:$0xff] %v10017_v32  ;;  %v10019_v2 = vpop.permute.xlu0 %4308  ;;  %5841 = vperm.xlu1 %8096, %v9390_v0   ;;  %v12597_v32 = vld [vmem:[#allocation29_spill] sm:$0xff] }
 0x1e4   :  { %12482 = vst [vmem:[#allocation135_spill] sm:$0xff] %v10019_v2  ;;  %5836 = vperm.xlu0 %8095, %v9395_v40  }
 0x1e6   :  { %v10023_v57 = vpop.permute.xlu1 %3952 }
 0x1e7   :  { %12483 = vst [vmem:[#allocation136_spill] sm:$0xff] %v10023_v57  ;;  %v10025_v17 = vpop.permute.xlu0 %3947  ;;  %5480 = vperm.xlu1 %8096, %v9408_v26  }
 0x1e8   :  { %12484 = vst [vmem:[#allocation137_spill] sm:$0xff] %v10025_v17  ;;  %5475 = vperm.xlu0 %8095, %v9413_v60  }
 0x1ea   :  { %v10029_v56 = vpop.permute.xlu1 %4333 }
 0x1eb   :  { %12485 = vst [vmem:[#allocation138_spill] sm:$0xff] %v10029_v56  ;;  %v10031_v43 = vpop.permute.xlu0 %4328  ;;  %5861 = vperm.xlu1 %8096, %v9426_v18  }
 0x1ec   :  { %12486 = vst [vmem:[#allocation139_spill] sm:$0xff] %v10031_v43  ;;  %5856 = vperm.xlu0 %8095, %v9431_v15  }
 0x1ee   :  { %v10035_v29 = vpop.permute.xlu1 %3922 }
 0x1ef   :  { %12487 = vst [vmem:[#allocation140_spill] sm:$0xff] %v10035_v29  ;;  %v10037_v0 = vpop.permute.xlu0 %3917  ;;  %5450 = vperm.xlu1 %8096, %v9446_v24  }
 0x1f0   :  { %12488 = vst [vmem:[#allocation141_spill] sm:$0xff] %v10037_v0  ;;  %5445 = vperm.xlu0 %8095, %v9455_v13   ;;  %v12522_v0 = vld [vmem:[#allocation21_spill] sm:$0xff] }
 0x1f2   :  { %v10041_v40 = vpop.permute.xlu1 %3942 }
 0x1f3   :  { %12489 = vst [vmem:[#allocation142_spill] sm:$0xff] %v10041_v40  ;;  %v10043_v26 = vpop.permute.xlu0 %3937  ;;  %5470 = vperm.xlu1 %8096, %v9470_v34  }
 0x1f4   :  { %12490 = vst [vmem:[#allocation143_spill] sm:$0xff] %v10043_v26  ;;  %5465 = vperm.xlu0 %8095, %v9477_v25  }
 0x1f6   :  { %v10047_v60 = vpop.permute.xlu1 %4303 }
 0x1f7   :  { %12491 = vst [vmem:[#allocation144_spill] sm:$0xff] %v10047_v60  ;;  %v10049_v18 = vpop.permute.xlu0 %4298  ;;  %5831 = vperm.xlu1 %8096, %v9492_v58  }
 0x1f8   :  { %12492 = vst [vmem:[#allocation145_spill] sm:$0xff] %v10049_v18  ;;  %5826 = vperm.xlu0 %8095, %v9501_v51   ;;  %v445_v51 = vld [vmem:[%s12282_s5 + $0x80] sm:$0x1] }
 0x1fa   :  { %v10053_v15 = vpop.permute.xlu1 %4323 }
 0x1fb   :  { %12493 = vst [vmem:[#allocation146_spill] sm:$0xff] %v10053_v15  ;;  %v10055_v24 = vpop.permute.xlu0 %4318  ;;  %5851 = vperm.xlu1 %8096, %v9514_v53   ;;  %v63_v53 = vld [vmem:[%s12281_s4 + $0x80] sm:$0x1] }
 0x1fc   :  { %12494 = vst [vmem:[#allocation147_spill] sm:$0xff] %v10055_v24  ;;  %5846 = vperm.xlu0 %8095, %v9524_v44  }
 0x1fe   :  { %v10059_v13 = vpop.permute.xlu1 %3962 }
 0x1ff   :  { %12495 = vst [vmem:[#allocation148_spill] sm:$0xff] %v10059_v13  ;;  %v10061_v34 = vpop.permute.xlu0 %3957  ;;  %5490 = vperm.xlu1 %8096, %v9546_v41  }
 0x200   :  { %12496 = vst [vmem:[#allocation149_spill] sm:$0xff] %v10061_v34  ;;  %5485 = vperm.xlu0 %8095, %v9553_v46   ;;  %v1209_v46 = vld [vmem:[%s12282_s5 + $0x80] sm:$0x1] }
 0x202   :  { %v10065_v25 = vpop.permute.xlu1 %4343 }
 0x203   :  { %12497 = vst [vmem:[#allocation150_spill] sm:$0xff] %v10065_v25  ;;  %v10067_v58 = vpop.permute.xlu0 %4338  ;;  %5871 = vperm.xlu1 %8096, %v9575_v4  }
 0x204   :  { %12498 = vst [vmem:[#allocation151_spill] sm:$0xff] %v10067_v58  ;;  %5866 = vperm.xlu0 %8095, %v9583_v37   ;;  %v828_v37 = vld [vmem:[%s12281_s4 + $0x80] sm:$0x1] }
 0x205   :  { %v2356_v58 = vld [vmem:[%s12281_s4 + $0x80] sm:$0x1] }
 0x206   :  { %v10077_v44 = vpop.permute.xlu1 %4656 }
 0x207   :  { %12499 = vst [vmem:[#allocation152_spill] sm:$0xff] %v10077_v44  ;;  %v10079_v41 = vpop.permute.xlu0 %4651  ;;  %528 = vperm.xlu1 %8096, %v445_v51   ;;  %v1973_v44 = vld [vmem:[%s12282_s5 + $0x80] sm:$0x1] }
 0x208   :  { %12500 = vst [vmem:[#allocation153_spill] sm:$0xff] %v10079_v41  ;;  %146 = vperm.xlu0 %8095, %v63_v53   ;;  %v1592_v51 = vld [vmem:[%s12281_s4 + $0x80] sm:$0x1] }
 0x20a   :  { %v10087_v4 = vpop.permute.xlu1 %5037 }
 0x20b   :  { %12501 = vst [vmem:[#allocation154_spill] sm:$0xff] %v10087_v4  ;;  %v10089_v25 = vpop.permute.xlu0 %5032  ;;  %1292 = vperm.xlu1 %8096, %v1209_v46   ;;  %v2737_v46 = vld [vmem:[%s12282_s5 + $0x80] sm:$0x1] }
 0x20c   :  { %12502 = vst [vmem:[#allocation155_spill] sm:$0xff] %v10089_v25  ;;  %911 = vperm.xlu0 %8095, %v828_v37  }
 0x20e   :  { %v10097_v53 = vpop.permute.xlu1 %4666 }
 0x20f   :  { %12503 = vst [vmem:[#allocation156_spill] sm:$0xff] %v10097_v53  ;;  %v10099_v41 = vpop.permute.xlu0 %4661  ;;  %2056 = vperm.xlu1 %8096, %v1973_v44  }
 0x210   :  { %12504 = vst [vmem:[#allocation157_spill] sm:$0xff] %v10099_v41  ;;  %v1415_v13 = vpop.f32.mrb[34].mxu1  ;;  %1675 = vperm.xlu0 %8095, %v1592_v51   ;;  %v1034_v4 = vpop.f32.mrb[34].mxu0  ;;  %v3501_v51 = vld [vmem:[%s12282_s5 + $0x80] sm:$0x1] }
 0x211   :  { %v7122_v37 = vpop.f32.mrb[35].mxu0  ;;  %v7183_v25 = vpop.f32.mrb[35].mxu1 }
 0x212   :  { %v10107_v34 = vpop.permute.xlu1 %5047  ;;  %v3120_v25 = vld [vmem:[%s12281_s4 + $0x80] sm:$0x1]  ;;  %v1416_v37 = vadd.f32 %v1415_v13, %v9109_v48 }
 0x213   :  { %12505 = vst [vmem:[#allocation158_spill] sm:$0xff] %v10107_v34  ;;  %v10109_v56 = vpop.permute.xlu0 %5042  ;;  %2820 = vperm.xlu1 %8096, %v2737_v46   ;;  %v1035_v34 = vadd.f32 %v1034_v4, %v9103_v52  ;;  %v3884_v48 = vld [vmem:[%s12281_s4 + $0x80] sm:$0x1] }
 0x214   :  { %12506 = vst [vmem:[#allocation159_spill] sm:$0xff] %v10109_v56  ;;  %v1420_v53 = vpop.f32.mrb[36].mxu1  ;;  %2439 = vperm.xlu0 %8095, %v2356_v58   ;;  %v1039_v44 = vpop.f32.mrb[36].mxu0  ;;  %v1499_v13 = vmul.f32 0.5, %v1416_v37 }
 0x215   :  { %v7125_v41 = vpop.f32.mrb[37].mxu0  ;;  %v7186_v57 = vpop.f32.mrb[37].mxu1  ;;  %v1118_v52 = vmul.f32 0.5, %v1035_v34  ;;  %v1421_v4 = vadd.f32 %v1420_v53, %v9107_v1  ;;  %v4648_v34 = vld [vmem:[%s12281_s4 + $0x80] sm:$0x1] }
 0x216   :  { %v10118_v60 = vpop.permute.xlu1 %4676  ;;  %v4265_v57 = vld [vmem:[%s12282_s5 + $0x80] sm:$0x1]  ;;  %8145 = vtanh.f32 %v1499_v13 }
 0x217   :  { %12507 = vst [vmem:[#allocation160_spill] sm:$0xff] %v10118_v60  ;;  %v10121_v46 = vpop.permute.xlu0 %4671  ;;  %3584 = vperm.xlu1 %8096, %v3501_v51   ;;  %8147 = vtanh.f32 %v1118_v52  ;;  %v5793_v13 = vld [vmem:[%s12282_s5 + $0x80] sm:$0x1] }
 0x218   :  { %12508 = vst [vmem:[#allocation161_spill] sm:$0xff] %v10121_v46  ;;  %v1425_v58 = vpop.f32.mrb[38].mxu1  ;;  %3203 = vperm.xlu0 %8095, %v3120_v25   ;;  %v1044_v56 = vpop.f32.mrb[38].mxu0  ;;  %v12511_v25 = vld [vmem:[#allocation14_spill] sm:$0xff]  ;;  %v5412_v52 = vld [vmem:[%s12281_s4 + $0x80] sm:$0x1] }
 0x219   :  { %v7128_v41 = vpop.f32.mrb[39].mxu0  ;;  %v7189_v29 = vpop.f32.mrb[39].mxu1  ;;  %v1040_v46 = vadd.f32 %v1039_v44, %v12511_v25  ;;  %v1426_v1 = vadd.f32 %v1425_v58, %v9121_v6  ;;  %v1500_v44 = vmul.f32 0.5, %v1421_v4  ;;  %v1045_v37 = vadd.f32 %v1044_v56, %v9115_v9 }
 0x21a   :  { %v10129_v60 = vpop.permute.xlu1 %4696  ;;  %v5029_v29 = vld [vmem:[%s12282_s5 + $0x80] sm:$0x1] }
 0x21b   :  { %12509 = vst [vmem:[#allocation162_spill] sm:$0xff] %v10129_v60  ;;  %v10132_v51 = vpop.permute.xlu0 %4691  ;;  %4348 = vperm.xlu1 %8096, %v4265_v57   ;;  %v1501_v9 = vmul.f32 0.5, %v1426_v1  ;;  %8149 = vtanh.f32 %v1500_v44  ;;  %v6625_v1 = vld [vmem:[#allocation4] ss:$0 sm:$0xff] }
 0x21c   :  { %12510 = vst [vmem:[#allocation163_spill] sm:$0xff] %v10132_v51  ;;  %v1430_v43 = vpop.f32.mrb[40].mxu1  ;;  %3967 = vperm.xlu0 %8095, %v3884_v48   ;;  %v1049_v17 = vpop.f32.mrb[40].mxu0  ;;  %v1119_v48 = vmul.f32 0.5, %v1040_v46  ;;  %v1120_v46 = vmul.f32 0.5, %v1045_v37 }
 0x21d   :  { %v7131_v41 = vpop.f32.mrb[41].mxu0  ;;  %v7192_v18 = vpop.f32.mrb[41].mxu1  ;;  %v1431_v4 = vadd.f32 %v1430_v43, %v9119_v7 }
 0x21e   :  { %v10142_v53 = vpop.permute.xlu1 %5057  ;;  %8151 = vtanh.f32 %v1119_v48  ;;  %v1050_v41 = vadd.f32 %v1049_v17, %v9113_v8 }
 0x21f   :  { %12512 = vst [vmem:[#allocation14_spill] sm:$0xff] %v10142_v53  ;;  %v10145_v57 = vpop.permute.xlu0 %5052  ;;  %5112 = vperm.xlu1 %8096, %v5029_v29   ;;  %8153 = vtanh.f32 %v1501_v9  ;;  %v1502_v44 = vmul.f32 0.5, %v1431_v4 }
 0x220   :  { %12513 = vst [vmem:[#allocation164_spill] sm:$0xff] %v10145_v57  ;;  %v10147_v25 = vpop.f32.mrb[42].mxu1  ;;  %4731 = vperm.xlu0 %8095, %v4648_v34   ;;  %v10149_v18 = vpop.f32.mrb[42].mxu0  ;;  %8155 = vtanh.f32 %v1120_v46  ;;  %v1121_v37 = vmul.f32 0.5, %v1050_v41 }
 0x221   :  { %v7134_v6 = vpop.f32.mrb[43].mxu0  ;;  %v7195_v58 = vpop.f32.mrb[43].mxu1  ;;  %8157 = vtanh.f32 %v1502_v44 }
 0x222   :  { %v10157_v56 = vpop.permute.xlu1 %5077  ;;  %v8146_v43 = vpop.eup %8145  ;;  %8159 = vtanh.f32 %v1121_v37 }
 0x223   :  { %12514 = vst [vmem:[#allocation165_spill] sm:$0xff] %v10157_v56  ;;  %v10160_v29 = vpop.permute.xlu0 %5072  ;;  %5876 = vperm.xlu1 %8096, %v5793_v13   ;;  %v8148_v17 = vpop.eup %8147  ;;  %v1507_v9 = vmul.f32 0.5, %v8146_v43 }
 0x224   :  { %12515 = vst [vmem:[#allocation166_spill] sm:$0xff] %v10160_v29  ;;  %v10163_v34 = vpop.f32.mrb[44].mxu1  ;;  %5495 = vperm.xlu0 %8095, %v5412_v52   ;;  %v10165_v6 = vpop.f32.mrb[44].mxu0  ;;  %v1126_v46 = vmul.f32 0.5, %v8148_v17 }
 0x225   :  { %v7137_v58 = vpop.f32.mrb[45].mxu0  ;;  %v7198_v53 = vpop.f32.mrb[45].mxu1 }
 0x226   :  { %v10167_v57 = vpop.permute.xlu1 %4716  ;;  %v8150_v41 = vpop.eup %8149  ;;  %v1130_v44 = vadd.f32 0.5, %v1126_v46 }
 0x227   :  { %12516 = vst [vmem:[#allocation167_spill] sm:$0xff] %v10167_v57  ;;  %v10169_v7 = vpop.permute.xlu0 %4711  ;;  %v1508_v17 = vmul.f32 0.5, %v8150_v41 }
 0x228   :  { %12517 = vst [vmem:[#allocation168_spill] sm:$0xff] %v10169_v7  ;;  %v10171_v48 = vpop.f32.mrb[46].mxu1  ;;  %6302 = vperm.xlu0 %8095, %v6625_v1   ;;  %v10173_v8 = vpop.f32.mrb[46].mxu0 }
 0x229   :  { %v7140_v13 = vpop.f32.mrb[47].mxu0  ;;  %v7201_v52 = vpop.f32.mrb[47].mxu1 }
 0x22a   :  { %v10175_v58 = vpop.permute.xlu1 %5097  ;;  %v8152_v56 = vpop.eup %8151 }
 0x22b   :  { %12518 = vst [vmem:[#allocation169_spill] sm:$0xff] %v10175_v58  ;;  %v10177_v53 = vpop.permute.xlu0 %5092  ;;  %v8154_v52 = vpop.eup %8153  ;;  %v1127_v37 = vmul.f32 0.5, %v8152_v56  ;;  %v12525_v56 = vld [vmem:[#allocation17_spill] sm:$0xff] }
 0x22c   :  { %12519 = vst [vmem:[#allocation170_spill] sm:$0xff] %v10177_v53  ;;  %v10179_v4 = vpop.f32.mrb[48].mxu0  ;;  %v10181_v57 = vpop.f32.mrb[48].mxu1  ;;  %v1511_v53 = vadd.f32 0.5, %v1507_v9  ;;  %v1509_v46 = vmul.f32 0.5, %v8154_v52 }
 0x22d   :  { %v7143_v7 = vpop.f32.mrb[49].mxu0  ;;  %v7204_v1 = vpop.f32.mrb[49].mxu1 }
 0x22e   :  { %v10183_v60 = vpop.permute.xlu1 %4686  ;;  %v8156_v43 = vpop.eup %8155 }
 0x22f   :  { %12520 = vst [vmem:[#allocation171_spill] sm:$0xff] %v10183_v60  ;;  %v10185_v13 = vpop.permute.xlu0 %4681  ;;  %v1128_v20 = vmul.f32 0.5, %v8156_v43  ;;  %v8158_v41 = vpop.eup %8157 }
 0x230   :  { %12521 = vst [vmem:[#allocation172_spill] sm:$0xff] %v10185_v13  ;;  %v1074_v58 = vpop.f32.mrb[50].mxu0  ;;  %v1455_v29 = vpop.f32.mrb[50].mxu1 }
 0x231   :  { %v1075_v51 = vadd.f32 %v1074_v58, %v9133_v10  ;;  %v1456_v15 = vadd.f32 %v1455_v29, %v12522_v0  ;;  %v7146_v40 = vpop.f32.mrb[51].mxu0  ;;  %v7207_v7 = vpop.f32.mrb[51].mxu1  ;;  %v1131_v10 = vadd.f32 0.5, %v1127_v37  ;;  %v12526_v58 = vld [vmem:[#allocation20_spill] sm:$0xff] }
 0x232   :  { %v10189_v1 = vpop.permute.xlu1 %4706  ;;  %v1512_v40 = vadd.f32 0.5, %v1508_v17 }
 0x233   :  { %12523 = vst [vmem:[#allocation21_spill] sm:$0xff] %v10189_v1  ;;  %v10191_v33 = vmul.f32 %v1130_v44, %v1075_v51  ;;  %v10193_v60 = vmul.f32 %v1511_v53, %v1456_v15  ;;  %v10195_v13 = vpop.permute.xlu0 %4701  ;;  %v8160_v1 = vpop.eup %8159  ;;  %v12528_v15 = vld [vmem:[#allocation16_spill] sm:$0xff] }
 0x234   :  { %12524 = vst [vmem:[#allocation173_spill] sm:$0xff] %v10195_v13  ;;  %v1079_v9 = vpop.f32.mrb[52].mxu0  ;;  %v1460_v24 = vpop.f32.mrb[52].mxu1  ;;  %v1055_v53 = vadd.f32 %v10149_v18, %v12528_v15  ;;  %v12530_v13 = vld [vmem:[#allocation19_spill] sm:$0xff] }
 0x235   :  { %v1080_v26 = vadd.f32 %v1079_v9, %v12525_v56  ;;  %v1461_v0 = vadd.f32 %v1460_v24, %v12526_v58  ;;  %v7149_v29 = vpop.f32.mrb[53].mxu0  ;;  %v7210_v7 = vpop.f32.mrb[53].mxu1  ;;  %v1436_v37 = vadd.f32 %v10147_v25, %v12530_v13  ;;  %v1132_v24 = vadd.f32 0.5, %v1128_v20 }
 0x236   :  { %v10199_v51 = vpop.permute.xlu1 %5067  ;;  %v1513_v56 = vadd.f32 0.5, %v1509_v46  ;;  %v1510_v58 = vmul.f32 0.5, %v8158_v41  ;;  %v1129_v29 = vmul.f32 0.5, %v8160_v1  ;;  %v1134_v15 = vmul.f32 0.5, %v1055_v53  ;;  %v12534_v1 = vld [vmem:[#allocation18_spill] sm:$0xff] }
 0x237   :  { %12527 = vst [vmem:[#allocation17_spill] sm:$0xff] %v10199_v51  ;;  %v10203_v44 = vmul.f32 %v1131_v10, %v1080_v26  ;;  %v10205_v52 = vmul.f32 %v1512_v40, %v1461_v0  ;;  %v10207_v43 = vpop.permute.xlu0 %5062  ;;  %v12531_v10 = vld [vmem:[#allocation15_spill] sm:$0xff]  ;;  %v1515_v13 = vmul.f32 0.5, %v1436_v37 }
 0x238   :  { %12529 = vst [vmem:[#allocation20_spill] sm:$0xff] %v10207_v43  ;;  %v1084_v9 = vpop.f32.mrb[54].mxu0  ;;  %v1465_v17 = vpop.f32.mrb[54].mxu1  ;;  %v1060_v0 = vadd.f32 %v10165_v6, %v12531_v10  ;;  %8161 = vtanh.f32 %v1134_v15 }
 0x239   :  { %v1085_v7 = vadd.f32 %v1084_v9, %v9175_v30  ;;  %v1466_v51 = vadd.f32 %v1465_v17, %v9197_v39  ;;  %v7152_v18 = vpop.f32.mrb[55].mxu0  ;;  %v7213_v26 = vpop.f32.mrb[55].mxu1  ;;  %v1441_v30 = vadd.f32 %v10163_v34, %v12534_v1  ;;  %v1133_v9 = vadd.f32 0.5, %v1129_v29 }
 0x23a   :  { %v10215_v40 = vpop.permute.xlu1 %5087  ;;  %v1514_v17 = vadd.f32 0.5, %v1510_v58  ;;  %8163 = vtanh.f32 %v1515_v13  ;;  %v12537_v26 = vld [vmem:[#allocation23_spill] sm:$0xff] }
 0x23b   :  { %12532 = vst [vmem:[#allocation16_spill] sm:$0xff] %v10215_v40  ;;  %v10217_v43 = vmul.f32 %v1132_v24, %v1085_v7  ;;  %v10219_v25 = vmul.f32 %v1513_v56, %v1466_v51  ;;  %v10221_v20 = vpop.permute.xlu0 %5082  ;;  %v1135_v24 = vmul.f32 0.5, %v1060_v0  ;;  %v1065_v51 = vadd.f32 %v10173_v8, %v9166_v16 }
 0x23c   :  { %12533 = vst [vmem:[#allocation19_spill] sm:$0xff] %v10221_v20  ;;  %v1089_v46 = vpop.f32.mrb[56].mxu0  ;;  %v1470_v39 = vpop.f32.mrb[56].mxu1 }
 0x23d   :  { %v1090_v41 = vadd.f32 %v1089_v46, %v9173_v14  ;;  %v1471_v6 = vadd.f32 %v1470_v39, %v9195_v19  ;;  %v7155_v18 = vpop.f32.mrb[57].mxu0  ;;  %v7216_v53 = vpop.f32.mrb[57].mxu1  ;;  %v1516_v14 = vmul.f32 0.5, %v1441_v30  ;;  %v1446_v19 = vadd.f32 %v10171_v48, %v9186_v23 }
 0x23e   :  { %v10227_v7 = vpop.permute.xlu1 %4726  ;;  %8165 = vtanh.f32 %v1135_v24  ;;  %v1136_v8 = vmul.f32 0.5, %v1065_v51  ;;  %v1070_v46 = vadd.f32 %v10179_v4, %v9164_v27 }
 0x23f   :  { %12535 = vst [vmem:[#allocation15_spill] sm:$0xff] %v10227_v7  ;;  %v10231_v37 = vmul.f32 %v1133_v9, %v1090_v41  ;;  %v10233_v34 = vmul.f32 %v1514_v17, %v1471_v6  ;;  %v10235_v56 = vpop.permute.xlu0 %4721  ;;  %8167 = vtanh.f32 %v1516_v14  ;;  %v1517_v48 = vmul.f32 0.5, %v1446_v19  ;;  %v12540_v9 = vld [vmem:[#allocation22_spill] sm:$0xff] }
 0x240   :  { %12536 = vst [vmem:[#allocation18_spill] sm:$0xff] %v10235_v56  ;;  %v1094_v58 = vpop.f32.mrb[58].mxu0  ;;  %v1475_v29 = vpop.f32.mrb[58].mxu1 }
 0x241   :  { %v1095_v10 = vadd.f32 %v1094_v58, %v12537_v26  ;;  %v1476_v0 = vadd.f32 %v1475_v29, %v9159_v3  ;;  %v7158_v15 = vpop.f32.mrb[59].mxu0  ;;  %v7219_v1 = vpop.f32.mrb[59].mxu1  ;;  %v1451_v3 = vadd.f32 %v10181_v57, %v9184_v5  ;;  %v12544_v58 = vld [vmem:[#allocation27_spill] sm:$0xff] }
 0x242   :  { %v10241_v16 = vpop.permute.xlu1 %5107  ;;  %v8162_v14 = vpop.eup %8161 }
 0x243   :  { %12538 = vst [vmem:[#allocation23_spill] sm:$0xff] %v10241_v16  ;;  %v1154_v13 = vadd.f32 %v10191_v33, %v1095_v10  ;;  %v1535_v30 = vadd.f32 %v10193_v60, %v1476_v0  ;;  %v10247_v23 = vpop.permute.xlu0 %5102  ;;  %v1137_v60 = vmul.f32 0.5, %v1070_v46  ;;  %v1518_v5 = vmul.f32 0.5, %v1451_v3  ;;  %v12547_v3 = vld [vmem:[#allocation24_spill] sm:$0xff] }
 0x244   :  { %12539 = vst [vmem:[#allocation174_spill] sm:$0xff] %v10247_v23  ;;  %v1099_v39 = vpop.f32.mrb[60].mxu0  ;;  %v1480_v41 = vpop.f32.mrb[60].mxu1  ;;  %v1142_v46 = vmul.f32 0.5, %v8162_v14 }
 0x245   :  { %8169 = vtanh.f32 %v1154_v13  ;;  %v1100_v6 = vadd.f32 %v1099_v39, %v12540_v9  ;;  %v1481_v17 = vadd.f32 %v1480_v41, %v9157_v31  ;;  %v7161_v18 = vpop.f32.mrb[61].mxu0  ;;  %v7222_v27 = vpop.f32.mrb[61].mxu1  ;;  %v12543_v31 = vld [vmem:[#allocation25_spill] sm:$0xff]  ;;  %v12548_v41 = vld [vmem:[#allocation26_spill] sm:$0xff] }
 0x246   :  { %8171 = vtanh.f32 %v1535_v30  ;;  %v10253_v33 = vpop.permute.xlu1 %5420  ;;  %v8164_v0 = vpop.eup %8163 }
 0x247   :  { %12541 = vst [vmem:[#allocation22_spill] sm:$0xff] %v10253_v33  ;;  %8173 = vtanh.f32 %v1136_v8  ;;  %v1155_v4 = vadd.f32 %v10203_v44, %v1100_v6  ;;  %v1536_v53 = vadd.f32 %v10205_v52, %v1481_v17  ;;  %v10257_v24 = vpop.permute.xlu0 %5415  ;;  %v1575_v33 = vld [vmem:[%s12279_s2 + $0x80] sm:$0x1] }
 0x248   :  { %12542 = vst [vmem:[#allocation175_spill] sm:$0xff] %v10257_v24  ;;  %8175 = vtanh.f32 %v1517_v48  ;;  %v1104_v57 = vpop.f32.mrb[62].mxu0  ;;  %v1485_v51 = vpop.f32.mrb[62].mxu1  ;;  %v1523_v48 = vmul.f32 0.5, %v8164_v0 }
 0x249   :  { %8177 = vtanh.f32 %v1155_v4  ;;  %v1105_v19 = vadd.f32 %v1104_v57, %v12543_v31  ;;  %v1486_v29 = vadd.f32 %v1485_v51, %v12544_v58  ;;  %v7164_v26 = vpop.f32.mrb[63].mxu0  ;;  %v7225_v10 = vpop.f32.mrb[63].mxu1 }
 0x24a   :  { %8179 = vtanh.f32 %v1536_v53  ;;  %v10261_v15 = vpop.permute.xlu1 %5801  ;;  %v8166_v8 = vpop.eup %8165  ;;  %v1527_v58 = vadd.f32 0.5, %v1523_v48 }
 0x24b   :  { %12545 = vst [vmem:[#allocation25_spill] sm:$0xff] %v10261_v15  ;;  %8181 = vtanh.f32 %v1137_v60  ;;  %v1156_v44 = vadd.f32 %v10217_v43, %v1105_v19  ;;  %v1537_v52 = vadd.f32 %v10219_v25, %v1486_v29  ;;  %v10265_v1 = vpop.permute.xlu0 %5796  ;;  %v8168_v18 = vpop.eup %8167  ;;  %v1143_v57 = vmul.f32 0.5, %v8166_v8  ;;  %v10659_v15 = vld [vmem:[%s12280_s3 + $0x78] sm:$0xff] }
 0x24c   :  { %12546 = vst [vmem:[#allocation27_spill] sm:$0xff] %v10265_v1  ;;  %8183 = vtanh.f32 %v1518_v5  ;;  %v1109_v13 = vpop.f32.mrb[64].mxu0  ;;  %v1490_v30 = vpop.f32.mrb[64].mxu1  ;;  %v1146_v5 = vadd.f32 0.5, %v1142_v46  ;;  %v1524_v29 = vmul.f32 0.5, %v8168_v18  ;;  %12596 = vst [vmem:[#allocation215_spill] sm:$0xff] %v10659_v15 }
 0x24d   :  { %8185 = vtanh.f32 %v1156_v44  ;;  %v1110_v39 = vadd.f32 %v1109_v13, %v12547_v3  ;;  %v1491_v9 = vadd.f32 %v1490_v30, %v12548_v41  ;;  %v7167_v6 = vpop.f32.mrb[65].mxu0  ;;  %v7228_v17 = vpop.f32.mrb[65].mxu1  ;;  %v1147_v13 = vadd.f32 0.5, %v1143_v57  ;;  %v1956_v1 = vld [vmem:[%s12280_s3 + $0x80] sm:$0x1] }
 0x24e   :  { %8187 = vtanh.f32 %v1537_v52  ;;  %v10269_v43 = vpop.permute.xlu1 %5430 }
 0x24f   :  { %12549 = vst [vmem:[#allocation24_spill] sm:$0xff] %v10269_v43  ;;  %v8170_v25 = vpop.eup %8169  ;;  %v1157_v27 = vadd.f32 %v10231_v37, %v1110_v39  ;;  %v1538_v60 = vadd.f32 %v10233_v34, %v1491_v9  ;;  %v10273_v4 = vpop.permute.xlu0 %5425  ;;  %v10634_v43 = vld [vmem:[%s12279_s2 + $0x70] sm:$0xff] }
 0x250   :  { %12550 = vst [vmem:[#allocation26_spill] sm:$0xff] %v10273_v4  ;;  %v8172_v53 = vpop.eup %8171  ;;  %v1162_v51 = vsub.f32 %v9433_v61, %v8170_v25  ;;  %v10276_v14 = vpop.f32.mrb[66].mxu1  ;;  %12593 = vst [vmem:[#allocation212_spill] sm:$0xff] %v10634_v43  ;;  %v10652_v4 = vld [vmem:[%s12279_s2 + $0x78] sm:$0xff] }
 0x251   :  { %v10278_v31 = vpop.f32.mrb[66].mxu0  ;;  %v8174_v19 = vpop.eup %8173  ;;  %8189 = vtanh.f32 %v1157_v27  ;;  %v1543_v26 = vsub.f32 %v9421_v50, %v8172_v53  ;;  %v1528_v50 = vadd.f32 0.5, %v1524_v29  ;;  %12595 = vst [vmem:[#allocation214_spill] sm:$0xff] %v10652_v4 }
 0x252   :  { %v7170_v37 = vpop.f32.mrb[67].mxu0  ;;  %v7231_v10 = vpop.f32.mrb[67].mxu1  ;;  %8191 = vtanh.f32 %v1538_v60  ;;  %v1166_v44 = vmul.f32 %v1162_v51, %v1146_v5  ;;  %v1144_v30 = vmul.f32 0.5, %v8174_v19 }
 0x253   :  { %v8176_v34 = vpop.eup %8175  ;;  %v10281_v0 = vpop.permute.xlu1 %5811  ;;  %v1547_v61 = vmul.f32 %v1543_v26, %v1527_v58 }
 0x254   :  { %12551 = vst [vmem:[#allocation176_spill] sm:$0xff] %v10281_v0  ;;  %v8178_v52 = vpop.eup %8177  ;;  %v10283_v8 = vpop.permute.xlu0 %5806  ;;  %v10286_v3 = vadd.f32 %v8170_v25, %v1166_v44  ;;  %v1525_v41 = vmul.f32 0.5, %v8176_v34  ;;  %v1148_v19 = vadd.f32 0.5, %v1144_v30  ;;  %v10623_v0 = vld [vmem:[%s12280_s3 + $0x68] sm:$0xff] }
 0x255   :  { %12552 = vst [vmem:[#allocation177_spill] sm:$0xff] %v10283_v8  ;;  %v8180_v46 = vpop.eup %8179  ;;  %v1163_v48 = vsub.f32 %v9448_v59, %v8178_v52  ;;  %v10289_v6 = vadd.f32 %v8172_v53, %v1547_v61  ;;  %12592 = vst [vmem:[#allocation211_spill] sm:$0xff] %v10623_v0  ;;  %v10641_v8 = vld [vmem:[%s12280_s3 + $0x70] sm:$0xff] }
 0x256   :  { %v8182_v39 = vpop.eup %8181  ;;  %v1544_v9 = vsub.f32 %v9441_v42, %v8180_v46  ;;  %v1529_v29 = vadd.f32 0.5, %v1525_v41  ;;  %v12559_v41 = vld [vmem:[#allocation46_spill] sm:$0xff]  ;;  %12594 = vst [vmem:[#allocation213_spill] sm:$0xff] %v10641_v8 }
 0x257   :  { %v8184_v17 = vpop.eup %8183  ;;  %v10291_v18 = vpop.permute.xlu1 %5440  ;;  %v1167_v27 = vmul.f32 %v1163_v48, %v1147_v13  ;;  %v1145_v59 = vmul.f32 0.5, %v8182_v39 }
 0x258   :  { %12553 = vst [vmem:[#allocation178_spill] sm:$0xff] %v10291_v18  ;;  %v8186_v60 = vpop.eup %8185  ;;  %v10293_v5 = vpop.permute.xlu0 %5435  ;;  %v1548_v57 = vmul.f32 %v1544_v9, %v1528_v50  ;;  %v1526_v26 = vmul.f32 0.5, %v8184_v17  ;;  %v12558_v50 = vmov 0.0|0.0  }
 0x259   :  { %12554 = vst [vmem:[#allocation179_spill] sm:$0xff] %v10293_v5  ;;  %v8188_v51 = vpop.eup %8187  ;;  %v10295_v25 = vadd.f32 %v8178_v52, %v1167_v27  ;;  %v1164_v58 = vsub.f32 %v9472_v45, %v8186_v60  ;;  %v1149_v30 = vadd.f32 0.5, %v1145_v59 }
 0x25a   :  { %v10298_v42 = vadd.f32 %v8180_v46, %v1548_v57  ;;  %v1545_v53 = vsub.f32 %v9464_v11, %v8188_v51  ;;  %v12557_v46 = vld [vmem:[#allocation47_spill] sm:$0xff]  ;;  %v1530_v11 = vadd.f32 0.5, %v1526_v26 }
 0x25b   :  { %v10301_v37 = vpop.permute.xlu1 %5460  ;;  %v8007_v10 = vpack.c.bf16 %v10295_v25, %v10286_v3  ;;  %v1168_v34 = vmul.f32 %v1164_v58, %v1148_v19  ;;  %v8190_v44 = vpop.eup %8189 }
 0x25c   :  { %12555 = vst [vmem:[#allocation180_spill] sm:$0xff] %v10301_v37  ;;  %v10305_v61 = vpop.permute.xlu0 %5455  ;;  %v8013_v52 = vpack.c.bf16 %v10298_v42, %v10289_v6  ;;  %v1549_v13 = vmul.f32 %v1545_v53, %v1529_v29  ;;  %v8192_v45 = vpop.eup %8191  ;;  %v1165_v48 = vsub.f32 %v12557_v46, %v8190_v44  ;;  %v10530_v37 = vld [vmem:[%s12280_s3 + $0x40] sm:$0xff] }
 0x25d   :  { %12556 = vst [vmem:[#allocation181_spill] sm:$0xff] %v10305_v61  ;;  %8008 = vmatpush3.bf16.msra.mxu0 %v8007_v10  ;;  %v10310_v39 = vadd.f32 %v8186_v60, %v1168_v34  ;;  %v1546_v9 = vsub.f32 %v12559_v41, %v8192_v45  ;;  %v12564_v10 = vmov 0.0   ;;  %v6395_v34 = vld [vmem:[%s12277_s0 + $0x8] sm:$0x7]  ;;  %12582 = vst [vmem:[#allocation201_spill] sm:$0xff] %v10530_v37 }
 0x25e   :  { %8014 = vmatpush3.bf16.msra.mxu1 %v8013_v52  ;;  %8009 = vmatprep.subr.bf16.mxu0 %v12558_v50  ;;  %v10314_v17 = vadd.f32 %v8188_v51, %v1549_v13  ;;  %v1169_v57 = vmul.f32 %v1165_v48, %v1149_v30  ;;  %v6414_v52 = vld [vmem:[%s12278_s1 + $0x8] sm:$0x7]  ;;  %v10346_v13 = vld [vmem:[%s12279_s2] sm:$0xff] }
 0x25f   :  { %v10316_v27 = vpop.permute.xlu1 %5821  ;;  %8015 = vmatprep.subr.bf16.mxu1 %v12558_v50  ;;  %v1550_v59 = vmul.f32 %v1546_v9, %v1530_v11  ;;  %v10353_v30 = vld [vmem:[%s12280_s3] sm:$0xff]  ;;  %v10368_v48 = vld [vmem:[%s12279_s2 + $0x8] sm:$0xff] }
 0x260   :  { %12560 = vst [vmem:[#allocation47_spill] sm:$0xff] %v10316_v27  ;;  %v10319_v19 = vpop.permute.xlu0 %5816  ;;  %v10321_v58 = vadd.f32 %v8190_v44, %v1169_v57  ;;  %v10377_v41 = vld [vmem:[%s12280_s3 + $0x8] sm:$0xff]  ;;  %v10392_v57 = vld [vmem:[%s12279_s2 + $0x10] sm:$0xff] }
 0x261   :  { %12561 = vst [vmem:[#allocation46_spill] sm:$0xff] %v10319_v19  ;;  %v10323_v60 = vadd.f32 %v8192_v45, %v1550_v59  ;;  %v10480_v27 = vld [vmem:[%s12279_s2 + $0x30] sm:$0xff]  ;;  %v10511_v19 = vld [vmem:[%s12280_s3 + $0x38] sm:$0xff] }
 0x262   :  { %v8010_v26 = vpack.c.bf16 %v10321_v58, %v10310_v39 }
 0x263   :  { %v10325_v29 = vpop.permute.xlu1 %5841  ;;  %v8016_v51 = vpack.c.bf16 %v10323_v60, %v10314_v17 }
 0x264   :  { %12562 = vst [vmem:[#allocation182_spill] sm:$0xff] %v10325_v29  ;;  %v10329_v53 = vpop.permute.xlu0 %5836  ;;  %8011 = vmatpush3.bf16.msra.mxu0 %v8010_v26  ;;  %v10401_v26 = vld [vmem:[%s12280_s3 + $0x10] sm:$0xff] }
 0x265   :  { %12563 = vst [vmem:[#allocation183_spill] sm:$0xff] %v10329_v53  ;;  %8017 = vmatpush3.bf16.msra.mxu1 %v8016_v51  ;;  %7240 = vmatprep.subr.mxu0 %v12564_v10 }
 0x266   :  { %7301 = vmatprep.subr.mxu1 %v12564_v10 }
 0x267   :  { %v10337_v44 = vpop.permute.xlu1 %5480 }
 0x268   :  { %12565 = vst [vmem:[#allocation184_spill] sm:$0xff] %v10337_v44  ;;  %v10348_v45 = vpop.permute.xlu0 %5475  ;;  %7241 = vmatpush3.msk.msra.mxu0 %vm201_vm1, %v6395_v34  ;;  %v10414_v34 = vld [vmem:[%s12279_s2 + $0x18] sm:$0xff] }
 0x269   :  { %12566 = vst [vmem:[#allocation185_spill] sm:$0xff] %v10348_v45  ;;  %7302 = vmatpush3.msk.msra.mxu1 %vm201_vm1, %v6414_v52  ;;  %7243 = vmatmul.mubr.msk.f32.vlgmr.msra.gmra.mrb[68].mxu0 %vm149_vm2, %v10346_v13  ;;  %v10445_v45 = vld [vmem:[%s12280_s3 + $0x20] sm:$0xff] }
 0x26a   :  { %7304 = vmatmul.mubr.msk.f32.vlgmr.msra.gmra.mrb[68].mxu1 %vm149_vm2, %v10353_v30  ;;  %7245 = vmatprep.mubr.msk.f32.mxu0 %vm8507_vm0, %v12564_v10 }
 0x26b   :  { %v10361_v46 = vpop.permute.xlu1 %5861  ;;  %7306 = vmatprep.mubr.msk.f32.mxu1 %vm8507_vm0, %v12564_v10  ;;  %8018 = vmatprep.subr.bf16.mxu0 %v12558_v50 }
 0x26c   :  { %12567 = vst [vmem:[#allocation186_spill] sm:$0xff] %v10361_v46  ;;  %v10370_v11 = vpop.permute.xlu0 %5856  ;;  %8024 = vmatprep.subr.bf16.mxu1 %v12558_v50  ;;  %v10423_v46 = vld [vmem:[%s12280_s3 + $0x18] sm:$0xff] }
 0x26d   :  { %12568 = vst [vmem:[#allocation187_spill] sm:$0xff] %v10370_v11  ;;  %7246 = vmatmul.mubr.msk.f32.gmra.mrb[70].mxu0 %vm149_vm2, %v10368_v48 }
 0x26e   :  { %7307 = vmatmul.mubr.msk.f32.gmra.mrb[70].mxu1 %vm149_vm2, %v10377_v41  ;;  %7248 = vmatprep.mubr.msk.f32.mxu0 %vm8507_vm0, %v12564_v10 }
 0x26f   :  { %v10385_v9 = vpop.permute.xlu1 %5450  ;;  %7309 = vmatprep.mubr.msk.f32.mxu1 %vm8507_vm0, %v12564_v10 }
 0x270   :  { %12569 = vst [vmem:[#allocation188_spill] sm:$0xff] %v10385_v9  ;;  %v10394_v59 = vpop.permute.xlu0 %5445  ;;  %v10436_v9 = vld [vmem:[%s12279_s2 + $0x20] sm:$0xff] }
 0x271   :  { %12570 = vst [vmem:[#allocation189_spill] sm:$0xff] %v10394_v59  ;;  %7249 = vmatmul.mubr.msk.f32.gmra.mrb[72].mxu0 %vm149_vm2, %v10392_v57 }
 0x272   :  { %7310 = vmatmul.mubr.msk.f32.gmra.mrb[72].mxu1 %vm149_vm2, %v10401_v26  ;;  %7251 = vmatprep.mubr.msk.f32.mxu0 %vm8507_vm0, %v12564_v10 }
 0x273   :  { %v10407_v51 = vpop.permute.xlu1 %5470  ;;  %7312 = vmatprep.mubr.msk.f32.mxu1 %vm8507_vm0, %v12564_v10 }
 0x274   :  { %12571 = vst [vmem:[#allocation190_spill] sm:$0xff] %v10407_v51  ;;  %v10416_v52 = vpop.permute.xlu0 %5465  ;;  %v10467_v51 = vld [vmem:[%s12280_s3 + $0x28] sm:$0xff] }
 0x275   :  { %12572 = vst [vmem:[#allocation191_spill] sm:$0xff] %v10416_v52  ;;  %7252 = vmatmul.mubr.msk.f32.gmra.mrb[74].mxu0 %vm149_vm2, %v10414_v34 }
 0x276   :  { %7313 = vmatmul.mubr.msk.f32.gmra.mrb[74].mxu1 %vm149_vm2, %v10423_v46  ;;  %7254 = vmatprep.mubr.msk.f32.mxu0 %vm8507_vm0, %v12564_v10 }
 0x277   :  { %v10429_v44 = vpop.permute.xlu1 %5831  ;;  %7315 = vmatprep.mubr.msk.f32.mxu1 %vm8507_vm0, %v12564_v10 }
 0x278   :  { %12573 = vst [vmem:[#allocation192_spill] sm:$0xff] %v10429_v44  ;;  %v10438_v11 = vpop.permute.xlu0 %5826 }
 0x279   :  { %12574 = vst [vmem:[#allocation193_spill] sm:$0xff] %v10438_v11  ;;  %7255 = vmatmul.mubr.msk.f32.gmra.mrb[76].mxu0 %vm149_vm2, %v10436_v9  ;;  %v10458_v11 = vld [vmem:[%s12279_s2 + $0x28] sm:$0xff] }
 0x27a   :  { %7316 = vmatmul.mubr.msk.f32.gmra.mrb[76].mxu1 %vm149_vm2, %v10445_v45  ;;  %7257 = vmatprep.mubr.msk.f32.mxu0 %vm8507_vm0, %v12564_v10 }
 0x27b   :  { %v10451_v44 = vpop.permute.xlu1 %5851  ;;  %7318 = vmatprep.mubr.msk.f32.mxu1 %vm8507_vm0, %v12564_v10 }
 0x27c   :  { %12575 = vst [vmem:[#allocation194_spill] sm:$0xff] %v10451_v44  ;;  %v10460_v59 = vpop.permute.xlu0 %5846 }
 0x27d   :  { %12576 = vst [vmem:[#allocation195_spill] sm:$0xff] %v10460_v59  ;;  %7258 = vmatmul.mubr.msk.f32.gmra.mrb[78].mxu0 %vm149_vm2, %v10458_v11  ;;  %v10489_v59 = vld [vmem:[%s12280_s3 + $0x30] sm:$0xff] }
 0x27e   :  { %7319 = vmatmul.mubr.msk.f32.gmra.mrb[78].mxu1 %vm149_vm2, %v10467_v51  ;;  %7260 = vmatprep.mubr.msk.f32.mxu0 %vm8507_vm0, %v12564_v10 }
 0x27f   :  { %v10473_v44 = vpop.permute.xlu1 %5490  ;;  %7321 = vmatprep.mubr.msk.f32.mxu1 %vm8507_vm0, %v12564_v10 }
 0x280   :  { %12577 = vst [vmem:[#allocation196_spill] sm:$0xff] %v10473_v44  ;;  %v10482_v18 = vpop.permute.xlu0 %5485 }
 0x281   :  { %12578 = vst [vmem:[#allocation197_spill] sm:$0xff] %v10482_v18  ;;  %7261 = vmatmul.mubr.msk.f32.gmra.mrb[80].mxu0 %vm149_vm2, %v10480_v27  ;;  %v10502_v18 = vld [vmem:[%s12279_s2 + $0x38] sm:$0xff] }
 0x282   :  { %7322 = vmatmul.mubr.msk.f32.gmra.mrb[80].mxu1 %vm149_vm2, %v10489_v59  ;;  %7263 = vmatprep.mubr.msk.f32.mxu0 %vm8507_vm0, %v12564_v10 }
 0x283   :  { %v10495_v44 = vpop.permute.xlu1 %5871  ;;  %7324 = vmatprep.mubr.msk.f32.mxu1 %vm8507_vm0, %v12564_v10 }
 0x284   :  { %12579 = vst [vmem:[#allocation198_spill] sm:$0xff] %v10495_v44  ;;  %v10504_v52 = vpop.permute.xlu0 %5866 }
 0x285   :  { %12580 = vst [vmem:[#allocation199_spill] sm:$0xff] %v10504_v52  ;;  %7264 = vmatmul.mubr.msk.f32.gmra.mrb[82].mxu0 %vm149_vm2, %v10502_v18  ;;  %v10522_v52 = vld [vmem:[%s12279_s2 + $0x40] sm:$0xff] }
 0x286   :  { %7325 = vmatmul.mubr.msk.f32.gmra.mrb[82].mxu1 %vm149_vm2, %v10511_v19  ;;  %7266 = vmatprep.mubr.msk.f32.mxu0 %vm8507_vm0, %v12564_v10  ;;  %12581 = vst [vmem:[#allocation200_spill] sm:$0xff] %v10522_v52 }
 0x287   :  { %v529_v44 = vpop.permute.xlu1 %528  ;;  %7327 = vmatprep.mubr.msk.f32.mxu1 %vm8507_vm0, %v12564_v10 }
 0x288   :  { %v732_v29 = vadd.f32 %v9882_v12, %v529_v44  ;;  %v147_v5 = vpop.permute.xlu0 %146  ;;  %v10542_v44 = vld [vmem:[%s12279_s2 + $0x48] sm:$0xff] }
 0x289   :  { %v352_v53 = vadd.f32 %v9884_v54, %v147_v5  ;;  %7267 = vmatmul.mubr.msk.f32.gmra.mrb[84].mxu0 %vm149_vm2, %v10522_v52  ;;  %12583 = vst [vmem:[#allocation202_spill] sm:$0xff] %v10542_v44  ;;  %v10550_v5 = vld [vmem:[%s12280_s3 + $0x48] sm:$0xff]  ;;  %v12612_v52 = vld [vmem:[#allocation51_spill] sm:$0xff] }
 0x28a   :  { %792 = vst [vmem:[#allocation3 + $0x7] sm:$0x1] %v732_v29  ;;  %7328 = vmatmul.mubr.msk.f32.gmra.mrb[84].mxu1 %vm149_vm2, %v10530_v37  ;;  %7269 = vmatprep.mubr.msk.f32.mxu0 %vm8507_vm0, %v12564_v10  ;;  %12584 = vst [vmem:[#allocation203_spill] sm:$0xff] %v10550_v5 }
 0x28b   :  { %791 = vst [vmem:[#allocation2] sm:$0x1] %v352_v53  ;;  %v1293_v12 = vpop.permute.xlu1 %1292  ;;  %7330 = vmatprep.mubr.msk.f32.mxu1 %vm8507_vm0, %v12564_v10  ;;  %v10587_v53 = vld [vmem:[%s12280_s3 + $0x58] sm:$0xff] }
 0x28c   :  { %v1496_v61 = vadd.f32 %v10276_v14, %v1293_v12  ;;  %v912_v54 = vpop.permute.xlu0 %911  ;;  %v10562_v14 = vld [vmem:[%s12279_s2 + $0x50] sm:$0xff]  ;;  %12588 = vst [vmem:[#allocation207_spill] sm:$0xff] %v10587_v53  ;;  %v10598_v12 = vld [vmem:[%s12279_s2 + $0x60] sm:$0xff] }
 0x28d   :  { %v1115_v29 = vadd.f32 %v10278_v31, %v912_v54  ;;  %7270 = vmatmul.mubr.msk.f32.gmra.mrb[86].mxu0 %vm149_vm2, %v10542_v44  ;;  %12585 = vst [vmem:[#allocation204_spill] sm:$0xff] %v10562_v14  ;;  %v10569_v31 = vld [vmem:[%s12280_s3 + $0x50] sm:$0xff]  ;;  %12589 = vst [vmem:[#allocation208_spill] sm:$0xff] %v10598_v12  ;;  %v10605_v54 = vld [vmem:[%s12280_s3 + $0x60] sm:$0xff] }
 0x28e   :  { %1556 = vst [vmem:[#allocation3 + $0x7] sm:$0x1] %v1496_v61  ;;  %7331 = vmatmul.mubr.msk.f32.gmra.mrb[86].mxu1 %vm149_vm2, %v10550_v5  ;;  %7272 = vmatprep.mubr.msk.f32.mxu0 %vm8507_vm0, %v12564_v10  ;;  %12586 = vst [vmem:[#allocation205_spill] sm:$0xff] %v10569_v31  ;;  %v10580_v61 = vld [vmem:[%s12279_s2 + $0x58] sm:$0xff] }
 0x28f   :  { %1555 = vst [vmem:[#allocation2] sm:$0x1] %v1115_v29  ;;  %7333 = vmatprep.mubr.msk.f32.mxu1 %vm8507_vm0, %v12564_v10  ;;  %12587 = vst [vmem:[#allocation206_spill] sm:$0xff] %v10580_v61  ;;  %v10616_v29 = vld [vmem:[%s12279_s2 + $0x68] sm:$0xff]  ;;  %v12609_v5 = vld [vmem:[#allocation12_spill] sm:$0xff] }
 0x290   :  { %12590 = vst [vmem:[#allocation209_spill] sm:$0xff] %v10605_v54  ;;  %12591 = vst [vmem:[#allocation210_spill] sm:$0xff] %v10616_v29 }
 0x291   :  { %7273 = vmatmul.mubr.msk.f32.gmra.mrb[88].mxu0 %vm149_vm2, %v10562_v14 }
 0x292   :  { %7334 = vmatmul.mubr.msk.f32.gmra.mrb[88].mxu1 %vm149_vm2, %v10569_v31  ;;  %7275 = vmatprep.mubr.msk.f32.mxu0 %vm8507_vm0, %v12564_v10 }
 0x293   :  { %7336 = vmatprep.mubr.msk.f32.mxu1 %vm8507_vm0, %v12564_v10 }
 0x295   :  { %7276 = vmatmul.mubr.msk.f32.gmra.mrb[90].mxu0 %vm149_vm2, %v10580_v61 }
 0x296   :  { %7337 = vmatmul.mubr.msk.f32.gmra.mrb[90].mxu1 %vm149_vm2, %v10587_v53  ;;  %7278 = vmatprep.mubr.msk.f32.mxu0 %vm8507_vm0, %v12564_v10 }
 0x297   :  { %7339 = vmatprep.mubr.msk.f32.mxu1 %vm8507_vm0, %v12564_v10 }
 0x299   :  { %7279 = vmatmul.mubr.msk.f32.gmra.mrb[92].mxu0 %vm149_vm2, %v10598_v12 }
 0x29a   :  { %7340 = vmatmul.mubr.msk.f32.gmra.mrb[92].mxu1 %vm149_vm2, %v10605_v54  ;;  %7281 = vmatprep.mubr.msk.f32.mxu0 %vm8507_vm0, %v12564_v10 }
 0x29b   :  { %7342 = vmatprep.mubr.msk.f32.mxu1 %vm8507_vm0, %v12564_v10 }
 0x29d   :  { %7282 = vmatmul.mubr.msk.f32.gmra.mrb[94].mxu0 %vm149_vm2, %v10616_v29 }
 0x29e   :  { %7343 = vmatmul.mubr.msk.f32.gmra.mrb[94].mxu1 %vm149_vm2, %v10623_v0  ;;  %7284 = vmatprep.mubr.msk.f32.mxu0 %vm8507_vm0, %v12564_v10  ;;  %v12606_v0 = vld [vmem:[#allocation10_spill] sm:$0xff] }
 0x29f   :  { %7345 = vmatprep.mubr.msk.f32.mxu1 %vm8507_vm0, %v12564_v10 }
 0x2a1   :  { %7285 = vmatmul.mubr.msk.f32.gmra.mrb[96].mxu0 %vm149_vm2, %v10634_v43 }
 0x2a2   :  { %7346 = vmatmul.mubr.msk.f32.gmra.mrb[96].mxu1 %vm149_vm2, %v10641_v8  ;;  %7287 = vmatprep.mubr.msk.f32.mxu0 %vm8507_vm0, %v12564_v10 }
 0x2a3   :  { %7348 = vmatprep.mubr.msk.f32.mxu1 %vm8507_vm0, %v12564_v10 }
 0x2a5   :  { %7288 = vmatmul.mubr.msk.f32.gmra.mrb[98].mxu0 %vm149_vm2, %v10652_v4 }
 0x2a6   :  { %7349 = vmatmul.mubr.msk.f32.gmra.mrb[98].mxu1 %vm149_vm2, %v10659_v15  ;;  %7290 = vmatprep.mubr.msk.f32.mxu0 %vm8507_vm0, %v12564_v10 }
 0x2a7   :  { %7351 = vmatprep.mubr.msk.f32.mxu1 %vm8507_vm0, %v12564_v10 }
 0x2a9   :  { %7291 = vmatmul.mubr.msk.f32.gmra.mrb[100].mxu0 %vm149_vm2, %v1575_v33  ;;  %v12598_v33 = vld [vmem:[#allocation31_spill] sm:$0xff] }
 0x2aa   :  { %7352 = vmatmul.mubr.msk.f32.gmra.mrb[100].mxu1 %vm149_vm2, %v1956_v1  ;;  %7364 = vmatprep.mubr.msk.f32.mxu0 %vm8507_vm0, %v12564_v10 }
 0x2ab   :  { %7425 = vmatprep.mubr.msk.f32.mxu1 %vm8507_vm0, %v12564_v10 }
 0x33c   :  { %v1798_v24 = vpop.f32.mrb[68].mxu0 }
 0x33d   :  { %v2179_v16 = vpop.f32.mrb[68].mxu1  ;;  %v7244_v7 = vpop.f32.mrb[69].mxu0  ;;  %v1799_v38 = vadd.f32 %v1798_v24, %v12597_v32 }
 0x33e   :  { %v7305_v23 = vpop.f32.mrb[69].mxu1  ;;  %v2180_v2 = vadd.f32 %v2179_v16, %v12598_v33  ;;  %v12602_v33 = vld [vmem:[#allocation35_spill] sm:$0xff] }
 0x33f   :  { %v1882_v49 = vmul.f32 0.5, %v1799_v38 }
 0x340   :  { %v1803_v56 = vpop.f32.mrb[70].mxu0  ;;  %v2263_v62 = vmul.f32 0.5, %v2180_v2  ;;  %v12603_v2 = vld [vmem:[#allocation32_spill] sm:$0xff] }
 0x341   :  { %v2184_v40 = vpop.f32.mrb[70].mxu1  ;;  %v7247_v20 = vpop.f32.mrb[71].mxu0  ;;  %v1804_v21 = vadd.f32 %v1803_v56, %v12599_v55  ;;  %8193 = vtanh.f32 %v1882_v49  ;;  %v12604_v49 = vld [vmem:[#allocation34_spill] sm:$0xff] }
 0x342   :  { %v7308_v63 = vpop.f32.mrb[71].mxu1  ;;  %v2185_v7 = vadd.f32 %v2184_v40, %v12600_v36  ;;  %v12601_v20 = vld [vmem:[#allocation33_spill] sm:$0xff]  ;;  %8195 = vtanh.f32 %v2263_v62 }
 0x343   :  { %v1883_v63 = vmul.f32 0.5, %v1804_v21 }
 0x344   :  { %v1808_v22 = vpop.f32.mrb[72].mxu0  ;;  %v2264_v16 = vmul.f32 0.5, %v2185_v7 }
 0x345   :  { %v2189_v1 = vpop.f32.mrb[72].mxu1  ;;  %v7250_v35 = vpop.f32.mrb[73].mxu0  ;;  %v1809_v32 = vadd.f32 %v1808_v22, %v12601_v20  ;;  %8197 = vtanh.f32 %v1883_v63 }
 0x346   :  { %v7311_v28 = vpop.f32.mrb[73].mxu1  ;;  %v2190_v35 = vadd.f32 %v2189_v1, %v12602_v33  ;;  %8199 = vtanh.f32 %v2264_v16 }
 0x347   :  { %v1884_v55 = vmul.f32 0.5, %v1809_v32 }
 0x348   :  { %v1813_v47 = vpop.f32.mrb[74].mxu0  ;;  %v2265_v40 = vmul.f32 0.5, %v2190_v35 }
 0x349   :  { %v2194_v23 = vpop.f32.mrb[74].mxu1  ;;  %v7253_v15 = vpop.f32.mrb[75].mxu0  ;;  %v1814_v56 = vadd.f32 %v1813_v47, %v12603_v2  ;;  %8201 = vtanh.f32 %v1884_v55 }
 0x34a   :  { %v7314_v4 = vpop.f32.mrb[75].mxu1  ;;  %v2195_v21 = vadd.f32 %v2194_v23, %v12604_v49  ;;  %8203 = vtanh.f32 %v2265_v40 }
 0x34b   :  { %v1885_v4 = vmul.f32 0.5, %v1814_v56  ;;  %v8194_v47 = vpop.eup %8193 }
 0x34c   :  { %v1818_v24 = vpop.f32.mrb[76].mxu0  ;;  %v8196_v32 = vpop.eup %8195  ;;  %v1890_v23 = vmul.f32 0.5, %v8194_v47 }
 0x34d   :  { %v2199_v28 = vpop.f32.mrb[76].mxu1  ;;  %v7256_v38 = vpop.f32.mrb[77].mxu0  ;;  %8205 = vtanh.f32 %v1885_v4  ;;  %v2271_v55 = vmul.f32 0.5, %v8196_v32 }
 0x34e   :  { %v7317_v8 = vpop.f32.mrb[77].mxu1 }
 0x34f   :  { %v2266_v8 = vmul.f32 0.5, %v2195_v21  ;;  %v8198_v38 = vpop.eup %8197  ;;  %v12605_v21 = vld [vmem:[#allocation8_spill] sm:$0xff]  ;;  %v2275_v47 = vadd.f32 0.5, %v2271_v55 }
 0x350   :  { %v10688_v36 = vpop.f32.mrb[78].mxu0  ;;  %v8200_v56 = vpop.eup %8199  ;;  %v1891_v49 = vmul.f32 0.5, %v8198_v38 }
 0x351   :  { %v10691_v15 = vpop.f32.mrb[78].mxu1  ;;  %v7259_v22 = vpop.f32.mrb[79].mxu0  ;;  %8207 = vtanh.f32 %v2266_v8  ;;  %v2272_v4 = vmul.f32 0.5, %v8200_v56 }
 0x352   :  { %v7320_v62 = vpop.f32.mrb[79].mxu1  ;;  %v1895_v31 = vadd.f32 0.5, %v1891_v49 }
 0x353   :  { %v1894_v62 = vadd.f32 0.5, %v1890_v23  ;;  %v8202_v43 = vpop.eup %8201  ;;  %v2276_v44 = vadd.f32 0.5, %v2272_v4 }
 0x354   :  { %v10693_v1 = vpop.f32.mrb[80].mxu0  ;;  %v8204_v54 = vpop.eup %8203  ;;  %v1892_v32 = vmul.f32 0.5, %v8202_v43 }
 0x355   :  { %v10695_v7 = vpop.f32.mrb[80].mxu1  ;;  %v7262_v63 = vpop.f32.mrb[81].mxu0  ;;  %v2273_v23 = vmul.f32 0.5, %v8204_v54 }
 0x356   :  { %v7323_v20 = vpop.f32.mrb[81].mxu1  ;;  %v1896_v49 = vadd.f32 0.5, %v1892_v32 }
 0x358   :  { %v10697_v16 = vpop.f32.mrb[82].mxu0 }
 0x359   :  { %v10699_v33 = vpop.f32.mrb[82].mxu1  ;;  %v7265_v35 = vpop.f32.mrb[83].mxu0 }
 0x35a   :  { %v7326_v2 = vpop.f32.mrb[83].mxu1 }
 0x35b   :  { %v12607_v2 = vld [vmem:[#allocation9_spill] sm:$0xff] }
 0x35c   :  { %v1838_v40 = vpop.f32.mrb[84].mxu0 }
 0x35d   :  { %v1839_v22 = vadd.f32 %v1838_v40, %v12605_v21  ;;  %v2219_v63 = vpop.f32.mrb[84].mxu1  ;;  %v7268_v20 = vpop.f32.mrb[85].mxu0  ;;  %v12608_v21 = vld [vmem:[#allocation37_spill] sm:$0xff] }
 0x35e   :  { %v2220_v29 = vadd.f32 %v2219_v63, %v12606_v0  ;;  %v7329_v8 = vpop.f32.mrb[85].mxu1  ;;  %v8206_v40 = vpop.eup %8205  ;;  %v1819_v20 = vadd.f32 %v1818_v24, %v12608_v21  ;;  %v12610_v63 = vld [vmem:[#allocation11_spill] sm:$0xff]  ;;  %v2277_v21 = vadd.f32 0.5, %v2273_v23 }
 0x35f   :  { %v1914_v12 = vmul.f32 %v1894_v62, %v1839_v22  ;;  %v8208_v55 = vpop.eup %8207  ;;  %v2200_v8 = vadd.f32 %v2199_v28, %v12610_v63  ;;  %v1893_v43 = vmul.f32 0.5, %v8206_v40 }
 0x360   :  { %v2295_v35 = vmul.f32 %v2275_v47, %v2220_v29  ;;  %v1843_v53 = vpop.f32.mrb[86].mxu0  ;;  %v12611_v47 = vld [vmem:[#allocation45_spill] sm:$0xff]  ;;  %v2274_v37 = vmul.f32 0.5, %v8208_v55  ;;  %v1898_v54 = vmul.f32 0.5, %v1819_v20  ;;  %v12616_v20 = vld [vmem:[#allocation50_spill] sm:$0xff] }
 0x361   :  { %v1844_v61 = vadd.f32 %v1843_v53, %v12607_v2  ;;  %v2224_v38 = vpop.f32.mrb[86].mxu1  ;;  %v7271_v14 = vpop.f32.mrb[87].mxu0  ;;  %v2279_v4 = vmul.f32 0.5, %v2200_v8  ;;  %v1897_v63 = vadd.f32 0.5, %v1893_v43 }
 0x362   :  { %v2225_v56 = vadd.f32 %v2224_v38, %v12609_v5  ;;  %v7332_v0 = vpop.f32.mrb[87].mxu1  ;;  %v12613_v38 = vld [vmem:[#allocation36_spill] sm:$0xff]  ;;  %8209 = vtanh.f32 %v1898_v54  ;;  %v2278_v23 = vadd.f32 0.5, %v2274_v37 }
 0x363   :  { %v1915_v22 = vmul.f32 %v1895_v31, %v1844_v61  ;;  %v1824_v0 = vadd.f32 %v10688_v36, %v12613_v38  ;;  %v12614_v31 = vld [vmem:[#allocation13_spill] sm:$0xff]  ;;  %8211 = vtanh.f32 %v2279_v4 }
 0x364   :  { %v2296_v29 = vmul.f32 %v2276_v44, %v2225_v56  ;;  %v1848_v62 = vpop.f32.mrb[88].mxu0  ;;  %v2205_v44 = vadd.f32 %v10691_v15, %v12614_v31  ;;  %v12615_v56 = vld [vmem:[#allocation44_spill] sm:$0xff]  ;;  %v12618_v15 = vld [vmem:[#allocation49_spill] sm:$0xff] }
 0x365   :  { %v1849_v53 = vadd.f32 %v1848_v62, %v12611_v47  ;;  %v2229_v2 = vpop.f32.mrb[88].mxu1  ;;  %v7274_v14 = vpop.f32.mrb[89].mxu0  ;;  %v1899_v8 = vmul.f32 0.5, %v1824_v0  ;;  %v12620_v31 = vld [vmem:[#allocation41_spill] sm:$0xff]  ;;  %v12621_v0 = vld [vmem:[#allocation42_spill] sm:$0xff] }
 0x366   :  { %v2230_v24 = vadd.f32 %v2229_v2, %v12612_v52  ;;  %v7335_v5 = vpop.f32.mrb[89].mxu1  ;;  %v12617_v2 = vld [vmem:[#allocation43_spill] sm:$0xff]  ;;  %v2210_v14 = vadd.f32 %v10695_v7, %v12618_v15 }
 0x367   :  { %v1916_v28 = vmul.f32 %v1896_v49, %v1849_v53  ;;  %v1829_v36 = vadd.f32 %v10693_v1, %v12617_v2  ;;  %v2280_v49 = vmul.f32 0.5, %v2205_v44  ;;  %8213 = vtanh.f32 %v1899_v8 }
 0x368   :  { %v2297_v61 = vmul.f32 %v2277_v21, %v2230_v24  ;;  %v1853_v40 = vpop.f32.mrb[90].mxu0  ;;  %v12619_v21 = vld [vmem:[#allocation39_spill] sm:$0xff]  ;;  %v1834_v1 = vadd.f32 %v10697_v16, %v12621_v0  ;;  %v2281_v44 = vmul.f32 0.5, %v2210_v14 }
 0x369   :  { %v1854_v32 = vadd.f32 %v1853_v40, %v12615_v56  ;;  %v2234_v62 = vpop.f32.mrb[90].mxu1  ;;  %v7277_v55 = vpop.f32.mrb[91].mxu0  ;;  %v1900_v4 = vmul.f32 0.5, %v1829_v36  ;;  %8215 = vtanh.f32 %v2280_v49 }
 0x36a   :  { %v2235_v52 = vadd.f32 %v2234_v62, %v12616_v20  ;;  %v7338_v47 = vpop.f32.mrb[91].mxu1  ;;  %v12623_v55 = vld [vmem:[#allocation38_spill] sm:$0xff]  ;;  %v1901_v36 = vmul.f32 0.5, %v1834_v1 }
 0x36b   :  { %v1917_v53 = vmul.f32 %v1897_v63, %v1854_v32  ;;  %v12622_v32 = vld [vmem:[#allocation48_spill] sm:$0xff] }
 0x36c   :  { %v10719_v24 = vmul.f32 %v2278_v23, %v2235_v52  ;;  %v1858_v43 = vpop.f32.mrb[92].mxu0  ;;  %v2215_v7 = vadd.f32 %v10699_v33, %v12622_v32  ;;  %v12624_v47 = vld [vmem:[#allocation40_spill] sm:$0xff] }
 0x36d   :  { %v1859_v5 = vadd.f32 %v1858_v43, %v12619_v21  ;;  %v2239_v54 = vpop.f32.mrb[92].mxu1  ;;  %v7280_v38 = vpop.f32.mrb[93].mxu0 }
 0x36e   :  { %v2240_v37 = vadd.f32 %v2239_v54, %v12620_v31  ;;  %v7341_v40 = vpop.f32.mrb[93].mxu1  ;;  %v2282_v49 = vmul.f32 0.5, %v2215_v7  ;;  %v12626_v54 = vld [vmem:[#allocation55_spill] sm:$0xff] }
 0x36f   :  { %v1918_v56 = vadd.f32 %v1914_v12, %v1859_v5  ;;  %v8210_v12 = vpop.eup %8209 }
 0x370   :  { %v2299_v63 = vadd.f32 %v2295_v35, %v2240_v37  ;;  %v1863_v62 = vpop.f32.mrb[94].mxu0  ;;  %v8212_v33 = vpop.eup %8211  ;;  %v12625_v35 = vld [vmem:[#allocation53_spill] sm:$0xff]  ;;  %v1906_v37 = vmul.f32 0.5, %v8210_v12 }
 0x371   :  { %8217 = vtanh.f32 %v1918_v56  ;;  %v1864_v20 = vadd.f32 %v1863_v62, %v12623_v55  ;;  %v2244_v52 = vpop.f32.mrb[94].mxu1  ;;  %v7283_v23 = vpop.f32.mrb[95].mxu0 }
 0x372   :  { %8219 = vtanh.f32 %v2299_v63  ;;  %v2245_v8 = vadd.f32 %v2244_v52, %v12624_v47  ;;  %v7344_v2 = vpop.f32.mrb[95].mxu1  ;;  %v8214_v1 = vpop.eup %8213  ;;  %v12628_v63 = vld [vmem:[#allocation54_spill] sm:$0xff]  ;;  %v1910_v23 = vadd.f32 0.5, %v1906_v37 }
 0x373   :  { %8221 = vtanh.f32 %v1900_v4  ;;  %v1919_v16 = vadd.f32 %v1915_v22, %v1864_v20  ;;  %v2287_v4 = vmul.f32 0.5, %v8212_v33  ;;  %v8216_v7 = vpop.eup %8215  ;;  %v2057_v52 = vpop.permute.xlu1 %2056 }
 0x374   :  { %8223 = vtanh.f32 %v2281_v44  ;;  %v2300_v15 = vadd.f32 %v2296_v29, %v2245_v8  ;;  %v1868_v14 = vpop.f32.mrb[96].mxu0  ;;  %v12627_v29 = vld [vmem:[#allocation52_spill] sm:$0xff]  ;;  %v1676_v8 = vpop.permute.xlu0 %1675 }
 0x375   :  { %8225 = vtanh.f32 %v1919_v16  ;;  %v1869_v43 = vadd.f32 %v1868_v14, %v12625_v35  ;;  %v2249_v21 = vpop.f32.mrb[96].mxu1  ;;  %v7286_v5 = vpop.f32.mrb[97].mxu0  ;;  %v2291_v2 = vadd.f32 0.5, %v2287_v4 }
 0x376   :  { %8227 = vtanh.f32 %v2300_v15  ;;  %v2250_v38 = vadd.f32 %v2249_v21, %v12626_v54  ;;  %v7347_v31 = vpop.f32.mrb[97].mxu1  ;;  %v2288_v15 = vmul.f32 0.5, %v8216_v7 }
 0x377   :  { %8229 = vtanh.f32 %v1901_v36  ;;  %v1920_v40 = vadd.f32 %v1916_v28, %v1869_v43 }
 0x378   :  { %8231 = vtanh.f32 %v2282_v49  ;;  %v2301_v22 = vadd.f32 %v2297_v61, %v2250_v38  ;;  %v1873_v0 = vpop.f32.mrb[98].mxu0  ;;  %v1907_v61 = vmul.f32 0.5, %v8214_v1 }
 0x379   :  { %8233 = vtanh.f32 %v1920_v40  ;;  %v1874_v56 = vadd.f32 %v1873_v0, %v12627_v29  ;;  %v2254_v44 = vpop.f32.mrb[98].mxu1  ;;  %v7289_v32 = vpop.f32.mrb[99].mxu0  ;;  %v2292_v0 = vadd.f32 0.5, %v2288_v15 }
 0x37a   :  { %8235 = vtanh.f32 %v2301_v22  ;;  %v2255_v62 = vadd.f32 %v2254_v44, %v12628_v63  ;;  %v7350_v55 = vpop.f32.mrb[99].mxu1  ;;  %v1911_v37 = vadd.f32 0.5, %v1907_v61 }
 0x37b   :  { %v8218_v20 = vpop.eup %8217  ;;  %v1921_v47 = vadd.f32 %v1917_v53, %v1874_v56 }
 0x37c   :  { %v8220_v28 = vpop.eup %8219  ;;  %v2302_v36 = vadd.f32 %v10719_v24, %v2255_v62  ;;  %v1878_v16 = vpop.f32.mrb[100].mxu0  ;;  %v1926_v12 = vsub.f32 %v10286_v3, %v8218_v20 }
 0x37d   :  { %v8222_v49 = vpop.eup %8221  ;;  %8237 = vtanh.f32 %v1921_v47  ;;  %v1879_v14 = vadd.f32 %v1878_v16, %v1676_v8  ;;  %v2259_v33 = vpop.f32.mrb[100].mxu1  ;;  %v2307_v35 = vsub.f32 %v10289_v6, %v8220_v28 }
 0x37e   :  { %v7292_v43 = vpop.f32.mrb[101].mxu0  ;;  %v8224_v21 = vpop.eup %8223  ;;  %8239 = vtanh.f32 %v2302_v36  ;;  %v2260_v53 = vadd.f32 %v2259_v33, %v2057_v52  ;;  %v1930_v5 = vmul.f32 %v1926_v12, %v1910_v23  ;;  %v1908_v40 = vmul.f32 0.5, %v8222_v49 }
 0x37f   :  { %v7353_v54 = vpop.f32.mrb[101].mxu1  ;;  %v8226_v38 = vpop.eup %8225  ;;  %2319 = vst [vmem:[#allocation2 + $0x1] sm:$0x1] %v1879_v14  ;;  %v2311_v31 = vmul.f32 %v2307_v35, %v2291_v2  ;;  %v2289_v6 = vmul.f32 0.5, %v8224_v21 }
 0x380   :  { %v8228_v24 = vpop.eup %8227  ;;  %2320 = vst [vmem:[#allocation3 + $0x6] sm:$0x1] %v2260_v53  ;;  %v1927_v3 = vsub.f32 %v10295_v25, %v8226_v38  ;;  %v10737_v4 = vadd.f32 %v8218_v20, %v1930_v5  ;;  %v1912_v62 = vadd.f32 0.5, %v1908_v40  ;;  %v6452_v5 = vld [vmem:[%s12278_s1 + $0xc] sm:$0x7] }
 0x381   :  { %v8230_v22 = vpop.eup %8229  ;;  %v2308_v1 = vsub.f32 %v10298_v42, %v8228_v24  ;;  %v10740_v29 = vadd.f32 %v8220_v28, %v2311_v31  ;;  %v2293_v20 = vadd.f32 0.5, %v2289_v6  ;;  %v2339_v54 = vld [vmem:[%s12279_s2 + $0x80] sm:$0x1] }
 0x382   :  { %v8232_v56 = vpop.eup %8231  ;;  %v1931_v44 = vmul.f32 %v1927_v3, %v1911_v37  ;;  %v1909_v55 = vmul.f32 0.5, %v8230_v22 }
 0x383   :  { %v8234_v32 = vpop.eup %8233  ;;  %v2312_v7 = vmul.f32 %v2308_v1, %v2292_v0  ;;  %v2290_v23 = vmul.f32 0.5, %v8232_v56  ;;  %v12645_v1 = vld [vmem:[#allocation57_spill] sm:$0xff] }
 0x384   :  { %v8236_v63 = vpop.eup %8235  ;;  %v10742_v52 = vadd.f32 %v8226_v38, %v1931_v44  ;;  %v1928_v25 = vsub.f32 %v10310_v39, %v8234_v32  ;;  %v1913_v12 = vadd.f32 0.5, %v1909_v55  ;;  %v2720_v38 = vld [vmem:[%s12280_s3 + $0x80] sm:$0x1] }
 0x385   :  { %v10745_v47 = vadd.f32 %v8228_v24, %v2312_v7  ;;  %v2309_v8 = vsub.f32 %v10314_v17, %v8236_v63  ;;  %v2294_v15 = vadd.f32 0.5, %v2290_v23 }
 0x386   :  { %v8019_v42 = vpack.c.bf16 %v10742_v52, %v10737_v4  ;;  %v1932_v28 = vmul.f32 %v1928_v25, %v1912_v62 }
 0x387   :  { %v8238_v2 = vpop.eup %8237  ;;  %v8025_v61 = vpack.c.bf16 %v10745_v47, %v10740_v29  ;;  %v2313_v36 = vmul.f32 %v2309_v8, %v2293_v20  ;;  %v12647_v20 = vld [vmem:[#allocation56_spill] sm:$0xff] }
 0x388   :  { %v8240_v16 = vpop.eup %8239  ;;  %8020 = vmatpush3.bf16.msra.mxu0 %v8019_v42  ;;  %v1929_v39 = vsub.f32 %v10321_v58, %v8238_v2  ;;  %v10753_v49 = vadd.f32 %v8234_v32, %v1932_v28  ;;  %v12646_v32 = vld [vmem:[#allocation59_spill] sm:$0xff]  ;;  %v12648_v28 = vld [vmem:[#allocation58_spill] sm:$0xff] }
 0x389   :  { %8026 = vmatpush3.bf16.msra.mxu1 %v8025_v61  ;;  %8021 = vmatprep.subr.bf16.mxu0 %v12558_v50  ;;  %v2310_v17 = vsub.f32 %v10323_v60, %v8240_v16  ;;  %v10757_v14 = vadd.f32 %v8236_v63, %v2313_v36  ;;  %v6433_v60 = vld [vmem:[%s12277_s0 + $0xc] sm:$0x7] }
 0x38a   :  { %8027 = vmatprep.subr.bf16.mxu1 %v12558_v50  ;;  %v1933_v33 = vmul.f32 %v1929_v39, %v1913_v12  ;;  %v12649_v39 = vld [vmem:[#allocation61_spill] sm:$0xff] }
 0x38b   :  { %v2314_v35 = vmul.f32 %v2310_v17, %v2294_v15 }
 0x38c   :  { %v10760_v43 = vadd.f32 %v8238_v2, %v1933_v33 }
 0x38d   :  { %v10762_v21 = vadd.f32 %v8240_v16, %v2314_v35  ;;  %v12650_v35 = vld [vmem:[#allocation63_spill] sm:$0xff] }
 0x38e   :  { %v8022_v58 = vpack.c.bf16 %v10760_v43, %v10753_v49 }
 0x38f   :  { %v8028_v53 = vpack.c.bf16 %v10762_v21, %v10757_v14 }
 0x390   :  { %8023 = vmatpush3.bf16.msra.mxu0 %v8022_v58 }
 0x391   :  { %8029 = vmatpush3.bf16.msra.mxu1 %v8028_v53  ;;  %7362 = vmatprep.subr.mxu0 %v12564_v10 }
 0x392   :  { %7423 = vmatprep.subr.mxu1 %v12564_v10 }
 0x394   :  { %7363 = vmatpush3.msk.msra.mxu0 %vm201_vm1, %v6433_v60 }
 0x395   :  { %7424 = vmatpush3.msk.msra.mxu1 %vm201_vm1, %v6452_v5  ;;  %7365 = vmatmul.mubr.msk.f32.vlgmr.msra.gmra.mrb[102].mxu0 %vm149_vm2, %v10346_v13  ;;  %v12630_v13 = vld [vmem:[#allocation201_spill] sm:$0xff] }
 0x396   :  { %7426 = vmatmul.mubr.msk.f32.vlgmr.msra.gmra.mrb[102].mxu1 %vm149_vm2, %v10353_v30  ;;  %7367 = vmatprep.mubr.msk.f32.mxu0 %vm8507_vm0, %v12564_v10  ;;  %v12634_v30 = vld [vmem:[#allocation205_spill] sm:$0xff] }
 0x397   :  { %7428 = vmatprep.mubr.msk.f32.mxu1 %vm8507_vm0, %v12564_v10  ;;  %8030 = vmatprep.subr.bf16.mxu0 %v12558_v50 }
 0x398   :  { %8036 = vmatprep.subr.bf16.mxu1 %v12558_v50 }
 0x399   :  { %7368 = vmatmul.mubr.msk.f32.gmra.mrb[104].mxu0 %vm149_vm2, %v10368_v48  ;;  %v12636_v48 = vld [vmem:[#allocation207_spill] sm:$0xff] }
 0x39a   :  { %7429 = vmatmul.mubr.msk.f32.gmra.mrb[104].mxu1 %vm149_vm2, %v10377_v41  ;;  %7370 = vmatprep.mubr.msk.f32.mxu0 %vm8507_vm0, %v12564_v10  ;;  %v12638_v41 = vld [vmem:[#allocation209_spill] sm:$0xff] }
 0x39b   :  { %7431 = vmatprep.mubr.msk.f32.mxu1 %vm8507_vm0, %v12564_v10 }
 0x39d   :  { %7371 = vmatmul.mubr.msk.f32.gmra.mrb[106].mxu0 %vm149_vm2, %v10392_v57  ;;  %v12640_v57 = vld [vmem:[#allocation211_spill] sm:$0xff] }
 0x39e   :  { %7432 = vmatmul.mubr.msk.f32.gmra.mrb[106].mxu1 %vm149_vm2, %v10401_v26  ;;  %7373 = vmatprep.mubr.msk.f32.mxu0 %vm8507_vm0, %v12564_v10  ;;  %v12642_v26 = vld [vmem:[#allocation213_spill] sm:$0xff] }
 0x39f   :  { %7434 = vmatprep.mubr.msk.f32.mxu1 %vm8507_vm0, %v12564_v10 }
 0x3a1   :  { %7374 = vmatmul.mubr.msk.f32.gmra.mrb[108].mxu0 %vm149_vm2, %v10414_v34  ;;  %v12644_v34 = vld [vmem:[#allocation215_spill] sm:$0xff] }
 0x3a2   :  { %7435 = vmatmul.mubr.msk.f32.gmra.mrb[108].mxu1 %vm149_vm2, %v10423_v46  ;;  %7376 = vmatprep.mubr.msk.f32.mxu0 %vm8507_vm0, %v12564_v10  ;;  %v12635_v46 = vld [vmem:[#allocation206_spill] sm:$0xff] }
 0x3a3   :  { %7437 = vmatprep.mubr.msk.f32.mxu1 %vm8507_vm0, %v12564_v10 }
 0x3a5   :  { %7377 = vmatmul.mubr.msk.f32.gmra.mrb[110].mxu0 %vm149_vm2, %v10436_v9  ;;  %v12639_v9 = vld [vmem:[#allocation210_spill] sm:$0xff] }
 0x3a6   :  { %7438 = vmatmul.mubr.msk.f32.gmra.mrb[110].mxu1 %vm149_vm2, %v10445_v45  ;;  %7379 = vmatprep.mubr.msk.f32.mxu0 %vm8507_vm0, %v12564_v10  ;;  %v12633_v45 = vld [vmem:[#allocation204_spill] sm:$0xff] }
 0x3a7   :  { %7440 = vmatprep.mubr.msk.f32.mxu1 %vm8507_vm0, %v12564_v10 }
 0x3a9   :  { %7380 = vmatmul.mubr.msk.f32.gmra.mrb[112].mxu0 %vm149_vm2, %v10458_v11  ;;  %v12637_v11 = vld [vmem:[#allocation208_spill] sm:$0xff] }
 0x3aa   :  { %7441 = vmatmul.mubr.msk.f32.gmra.mrb[112].mxu1 %vm149_vm2, %v10467_v51  ;;  %7382 = vmatprep.mubr.msk.f32.mxu0 %vm8507_vm0, %v12564_v10  ;;  %v12643_v51 = vld [vmem:[#allocation214_spill] sm:$0xff] }
 0x3ab   :  { %7443 = vmatprep.mubr.msk.f32.mxu1 %vm8507_vm0, %v12564_v10 }
 0x3ad   :  { %7383 = vmatmul.mubr.msk.f32.gmra.mrb[114].mxu0 %vm149_vm2, %v10480_v27  ;;  %v12629_v27 = vld [vmem:[#allocation200_spill] sm:$0xff] }
 0x3ae   :  { %7444 = vmatmul.mubr.msk.f32.gmra.mrb[114].mxu1 %vm149_vm2, %v10489_v59  ;;  %7385 = vmatprep.mubr.msk.f32.mxu0 %vm8507_vm0, %v12564_v10  ;;  %v12641_v59 = vld [vmem:[#allocation212_spill] sm:$0xff] }
 0x3af   :  { %7446 = vmatprep.mubr.msk.f32.mxu1 %vm8507_vm0, %v12564_v10 }
 0x3b1   :  { %7386 = vmatmul.mubr.msk.f32.gmra.mrb[116].mxu0 %vm149_vm2, %v10502_v18  ;;  %v12631_v18 = vld [vmem:[#allocation202_spill] sm:$0xff] }
 0x3b2   :  { %7447 = vmatmul.mubr.msk.f32.gmra.mrb[116].mxu1 %vm149_vm2, %v10511_v19  ;;  %7388 = vmatprep.mubr.msk.f32.mxu0 %vm8507_vm0, %v12564_v10  ;;  %v12632_v19 = vld [vmem:[#allocation203_spill] sm:$0xff] }
 0x3b3   :  { %7449 = vmatprep.mubr.msk.f32.mxu1 %vm8507_vm0, %v12564_v10 }
 0x3b5   :  { %7389 = vmatmul.mubr.msk.f32.gmra.mrb[118].mxu0 %vm149_vm2, %v12629_v27 }
 0x3b6   :  { %7450 = vmatmul.mubr.msk.f32.gmra.mrb[118].mxu1 %vm149_vm2, %v12630_v13  ;;  %7391 = vmatprep.mubr.msk.f32.mxu0 %vm8507_vm0, %v12564_v10  ;;  %v12651_v13 = vld [vmem:[#allocation60_spill] sm:$0xff] }
 0x3b7   :  { %7452 = vmatprep.mubr.msk.f32.mxu1 %vm8507_vm0, %v12564_v10 }
 0x3b9   :  { %7392 = vmatmul.mubr.msk.f32.gmra.mrb[120].mxu0 %vm149_vm2, %v12631_v18 }
 0x3ba   :  { %7453 = vmatmul.mubr.msk.f32.gmra.mrb[120].mxu1 %vm149_vm2, %v12632_v19  ;;  %7394 = vmatprep.mubr.msk.f32.mxu0 %vm8507_vm0, %v12564_v10 }
 0x3bb   :  { %7455 = vmatprep.mubr.msk.f32.mxu1 %vm8507_vm0, %v12564_v10 }
 0x3bd   :  { %7395 = vmatmul.mubr.msk.f32.gmra.mrb[122].mxu0 %vm149_vm2, %v12633_v45 }
 0x3be   :  { %7456 = vmatmul.mubr.msk.f32.gmra.mrb[122].mxu1 %vm149_vm2, %v12634_v30  ;;  %7397 = vmatprep.mubr.msk.f32.mxu0 %vm8507_vm0, %v12564_v10  ;;  %v12652_v30 = vld [vmem:[#allocation62_spill] sm:$0xff] }
 0x3bf   :  { %7458 = vmatprep.mubr.msk.f32.mxu1 %vm8507_vm0, %v12564_v10 }
 0x3c1   :  { %7398 = vmatmul.mubr.msk.f32.gmra.mrb[124].mxu0 %vm149_vm2, %v12635_v46 }
 0x3c2   :  { %7459 = vmatmul.mubr.msk.f32.gmra.mrb[124].mxu1 %vm149_vm2, %v12636_v48  ;;  %7400 = vmatprep.mubr.msk.f32.mxu0 %vm8507_vm0, %v12564_v10 }
 0x3c3   :  { %7461 = vmatprep.mubr.msk.f32.mxu1 %vm8507_vm0, %v12564_v10 }
 0x3c5   :  { %7401 = vmatmul.mubr.msk.f32.gmra.mrb[126].mxu0 %vm149_vm2, %v12637_v11 }
 0x3c6   :  { %7462 = vmatmul.mubr.msk.f32.gmra.mrb[126].mxu1 %vm149_vm2, %v12638_v41  ;;  %7403 = vmatprep.mubr.msk.f32.mxu0 %vm8507_vm0, %v12564_v10 }
 0x3c7   :  { %7464 = vmatprep.mubr.msk.f32.mxu1 %vm8507_vm0, %v12564_v10 }
 0x3c9   :  { %7404 = vmatmul.mubr.msk.f32.gmra.mrb[128].mxu0 %vm149_vm2, %v12639_v9 }
 0x3ca   :  { %7465 = vmatmul.mubr.msk.f32.gmra.mrb[128].mxu1 %vm149_vm2, %v12640_v57  ;;  %7406 = vmatprep.mubr.msk.f32.mxu0 %vm8507_vm0, %v12564_v10 }
 0x3cb   :  { %7467 = vmatprep.mubr.msk.f32.mxu1 %vm8507_vm0, %v12564_v10 }
 0x3cd   :  { %7407 = vmatmul.mubr.msk.f32.gmra.mrb[130].mxu0 %vm149_vm2, %v12641_v59 }
 0x3ce   :  { %7468 = vmatmul.mubr.msk.f32.gmra.mrb[130].mxu1 %vm149_vm2, %v12642_v26  ;;  %7409 = vmatprep.mubr.msk.f32.mxu0 %vm8507_vm0, %v12564_v10 }
 0x3cf   :  { %7470 = vmatprep.mubr.msk.f32.mxu1 %vm8507_vm0, %v12564_v10 }
 0x3d1   :  { %7410 = vmatmul.mubr.msk.f32.gmra.mrb[132].mxu0 %vm149_vm2, %v12643_v51 }
 0x3d2   :  { %7471 = vmatmul.mubr.msk.f32.gmra.mrb[132].mxu1 %vm149_vm2, %v12644_v34  ;;  %7412 = vmatprep.mubr.msk.f32.mxu0 %vm8507_vm0, %v12564_v10 }
 0x3d3   :  { %7473 = vmatprep.mubr.msk.f32.mxu1 %vm8507_vm0, %v12564_v10 }
 0x3d5   :  { %7413 = vmatmul.mubr.msk.f32.gmra.mrb[134].mxu0 %vm149_vm2, %v2339_v54 }
 0x3d6   :  { %7474 = vmatmul.mubr.msk.f32.gmra.mrb[134].mxu1 %vm149_vm2, %v2720_v38  ;;  %7486 = vmatprep.mubr.msk.f32.mxu0 %vm8507_vm0, %v12564_v10 }
 0x3d7   :  { %7547 = vmatprep.mubr.msk.f32.mxu1 %vm8507_vm0, %v12564_v10 }
 0x468   :  { %v2562_v31 = vpop.f32.mrb[102].mxu0 }
 0x469   :  { %v2943_v24 = vpop.f32.mrb[102].mxu1  ;;  %v7366_v37 = vpop.f32.mrb[103].mxu0  ;;  %v2563_v56 = vadd.f32 %v2562_v31, %v12645_v1 }
 0x46a   :  { %v7427_v40 = vpop.f32.mrb[103].mxu1  ;;  %v2944_v7 = vadd.f32 %v2943_v24, %v12646_v32 }
 0x46b   :  { %v2646_v25 = vmul.f32 0.5, %v2563_v56 }
 0x46c   :  { %v2567_v3 = vpop.f32.mrb[104].mxu0  ;;  %v3027_v42 = vmul.f32 0.5, %v2944_v7 }
 0x46d   :  { %v2948_v22 = vpop.f32.mrb[104].mxu1  ;;  %v7369_v0 = vpop.f32.mrb[105].mxu0  ;;  %v2568_v23 = vadd.f32 %v2567_v3, %v12647_v20  ;;  %8241 = vtanh.f32 %v2646_v25  ;;  %v12654_v20 = vld [vmem:[#allocation71_spill] sm:$0xff] }
 0x46e   :  { %v7430_v6 = vpop.f32.mrb[105].mxu1  ;;  %v2949_v2 = vadd.f32 %v2948_v22, %v12648_v28  ;;  %8243 = vtanh.f32 %v3027_v42 }
 0x46f   :  { %v2647_v12 = vmul.f32 0.5, %v2568_v23 }
 0x470   :  { %v2572_v44 = vpop.f32.mrb[106].mxu0  ;;  %v3028_v33 = vmul.f32 0.5, %v2949_v2 }
 0x471   :  { %v2953_v63 = vpop.f32.mrb[106].mxu1  ;;  %v7372_v62 = vpop.f32.mrb[107].mxu0  ;;  %v2573_v15 = vadd.f32 %v2572_v44, %v12649_v39  ;;  %8245 = vtanh.f32 %v2647_v12  ;;  %v12653_v44 = vld [vmem:[#allocation67_spill] sm:$0xff]  ;;  %v12655_v12 = vld [vmem:[#allocation66_spill] sm:$0xff] }
 0x472   :  { %v7433_v55 = vpop.f32.mrb[107].mxu1  ;;  %v2954_v58 = vadd.f32 %v2953_v63, %v12650_v35  ;;  %8247 = vtanh.f32 %v3028_v33 }
 0x473   :  { %v2648_v27 = vmul.f32 0.5, %v2573_v15 }
 0x474   :  { %v2577_v8 = vpop.f32.mrb[108].mxu0  ;;  %v3029_v45 = vmul.f32 0.5, %v2954_v58 }
 0x475   :  { %v2958_v61 = vpop.f32.mrb[108].mxu1  ;;  %v7375_v36 = vpop.f32.mrb[109].mxu0  ;;  %v2578_v18 = vadd.f32 %v2577_v8, %v12651_v13  ;;  %8249 = vtanh.f32 %v2648_v27  ;;  %v12657_v13 = vld [vmem:[#allocation70_spill] sm:$0xff] }
 0x476   :  { %v7436_v16 = vpop.f32.mrb[109].mxu1  ;;  %v2959_v46 = vadd.f32 %v2958_v61, %v12652_v30  ;;  %8251 = vtanh.f32 %v3029_v45 }
 0x477   :  { %v2649_v9 = vmul.f32 0.5, %v2578_v18  ;;  %v8242_v34 = vpop.eup %8241 }
 0x478   :  { %v2582_v17 = vpop.f32.mrb[110].mxu0  ;;  %v3030_v59 = vmul.f32 0.5, %v2959_v46  ;;  %v8244_v38 = vpop.eup %8243  ;;  %v2654_v24 = vmul.f32 0.5, %v8242_v34 }
 0x479   :  { %v2963_v53 = vpop.f32.mrb[110].mxu1  ;;  %v7378_v60 = vpop.f32.mrb[111].mxu0  ;;  %8253 = vtanh.f32 %v2649_v9  ;;  %v3035_v22 = vmul.f32 0.5, %v8244_v38 }
 0x47a   :  { %v7439_v5 = vpop.f32.mrb[111].mxu1  ;;  %8255 = vtanh.f32 %v3030_v59  ;;  %v2658_v7 = vadd.f32 0.5, %v2654_v24 }
 0x47b   :  { %v8246_v3 = vpop.eup %8245  ;;  %v3039_v8 = vadd.f32 0.5, %v3035_v22  ;;  %v12656_v5 = vld [vmem:[#allocation65_spill] sm:$0xff] }
 0x47c   :  { %v10927_v19 = vpop.f32.mrb[112].mxu0  ;;  %v8248_v6 = vpop.eup %8247  ;;  %v2655_v56 = vmul.f32 0.5, %v8246_v3  ;;  %v2583_v27 = vadd.f32 %v2582_v17, %v12656_v5 }
 0x47d   :  { %v10930_v48 = vpop.f32.mrb[112].mxu1  ;;  %v7381_v11 = vpop.f32.mrb[113].mxu0  ;;  %v3036_v25 = vmul.f32 0.5, %v8248_v6  ;;  %v12660_v6 = vld [vmem:[#allocation83_spill] sm:$0xff] }
 0x47e   :  { %v7442_v41 = vpop.f32.mrb[113].mxu1  ;;  %v2659_v15 = vadd.f32 0.5, %v2655_v56  ;;  %v12658_v11 = vld [vmem:[#allocation69_spill] sm:$0xff] }
 0x47f   :  { %v8250_v55 = vpop.eup %8249  ;;  %v3040_v45 = vadd.f32 0.5, %v3036_v25  ;;  %v2964_v41 = vadd.f32 %v2963_v53, %v12658_v11 }
 0x480   :  { %v10932_v57 = vpop.f32.mrb[114].mxu0  ;;  %v8252_v28 = vpop.eup %8251  ;;  %v2656_v16 = vmul.f32 0.5, %v8250_v55 }
 0x481   :  { %v10934_v26 = vpop.f32.mrb[114].mxu1  ;;  %v7384_v51 = vpop.f32.mrb[115].mxu0  ;;  %v3037_v60 = vmul.f32 0.5, %v8252_v28 }
 0x482   :  { %v7445_v54 = vpop.f32.mrb[115].mxu1  ;;  %v2660_v24 = vadd.f32 0.5, %v2656_v16 }
 0x483   :  { %v8254_v58 = vpop.eup %8253  ;;  %v12659_v54 = vld [vmem:[#allocation79_spill] sm:$0xff] }
 0x484   :  { %v10936_v31 = vpop.f32.mrb[116].mxu0  ;;  %v8256_v46 = vpop.eup %8255  ;;  %v2657_v34 = vmul.f32 0.5, %v8254_v58 }
 0x485   :  { %v10938_v37 = vpop.f32.mrb[116].mxu1  ;;  %v7387_v40 = vpop.f32.mrb[117].mxu0  ;;  %v3038_v22 = vmul.f32 0.5, %v8256_v46  ;;  %v12668_v46 = vld [vmem:[#allocation75_spill] sm:$0xff] }
 0x486   :  { %v7448_v0 = vpop.f32.mrb[117].mxu1 }
 0x487   :  { %v2662_v0 = vmul.f32 0.5, %v2583_v27 }
 0x488   :  { %v2602_v1 = vpop.f32.mrb[118].mxu0 }
 0x489   :  { %v2603_v32 = vadd.f32 %v2602_v1, %v12653_v44  ;;  %v2983_v63 = vpop.f32.mrb[118].mxu1  ;;  %v7390_v62 = vpop.f32.mrb[119].mxu0  ;;  %v3041_v1 = vadd.f32 0.5, %v3037_v60  ;;  %v3043_v44 = vmul.f32 0.5, %v2964_v41  ;;  %8257 = vtanh.f32 %v2662_v0 }
 0x48a   :  { %v2984_v23 = vadd.f32 %v2983_v63, %v12654_v20  ;;  %v7451_v42 = vpop.f32.mrb[119].mxu1  ;;  %v12662_v63 = vld [vmem:[#allocation68_spill] sm:$0xff]  ;;  %v12663_v20 = vld [vmem:[#allocation78_spill] sm:$0xff] }
 0x48b   :  { %v2678_v2 = vmul.f32 %v2658_v7, %v2603_v32  ;;  %v12661_v32 = vld [vmem:[#allocation64_spill] sm:$0xff]  ;;  %v2969_v62 = vadd.f32 %v10930_v48, %v12662_v63  ;;  %8259 = vtanh.f32 %v3043_v44  ;;  %v12666_v48 = vld [vmem:[#allocation81_spill] sm:$0xff] }
 0x48c   :  { %v3059_v61 = vmul.f32 %v3039_v8, %v2984_v23  ;;  %v2607_v36 = vpop.f32.mrb[120].mxu0  ;;  %v2588_v7 = vadd.f32 %v10927_v19, %v12661_v32  ;;  %v2661_v8 = vadd.f32 0.5, %v2657_v34  ;;  %v2974_v60 = vadd.f32 %v10934_v26, %v12666_v48  ;;  %v12669_v34 = vld [vmem:[#allocation76_spill] sm:$0xff] }
 0x48d   :  { %v2608_v39 = vadd.f32 %v2607_v36, %v12655_v12  ;;  %v2988_v33 = vpop.f32.mrb[120].mxu1  ;;  %v7393_v35 = vpop.f32.mrb[121].mxu0  ;;  %v12664_v36 = vld [vmem:[#allocation82_spill] sm:$0xff]  ;;  %v3042_v12 = vadd.f32 0.5, %v3038_v22  ;;  %v3044_v58 = vmul.f32 0.5, %v2969_v62  ;;  %v12671_v22 = vld [vmem:[#allocation72_spill] sm:$0xff] }
 0x48e   :  { %v2989_v18 = vadd.f32 %v2988_v33, %v12657_v13  ;;  %v7454_v30 = vpop.f32.mrb[121].mxu1  ;;  %v12665_v33 = vld [vmem:[#allocation77_spill] sm:$0xff] }
 0x48f   :  { %v2679_v9 = vmul.f32 %v2659_v15, %v2608_v39  ;;  %v2663_v15 = vmul.f32 0.5, %v2588_v7  ;;  %v2593_v19 = vadd.f32 %v10932_v57, %v12665_v33  ;;  %v12667_v13 = vld [vmem:[#allocation73_spill] sm:$0xff]  ;;  %v2598_v57 = vadd.f32 %v10936_v31, %v12669_v34 }
 0x490   :  { %v3060_v59 = vmul.f32 %v3040_v45, %v2989_v18  ;;  %v2612_v51 = vpop.f32.mrb[122].mxu0 }
 0x491   :  { %v2613_v38 = vadd.f32 %v2612_v51, %v12659_v54  ;;  %v2993_v40 = vpop.f32.mrb[122].mxu1  ;;  %v7396_v3 = vpop.f32.mrb[123].mxu0  ;;  %8261 = vtanh.f32 %v2663_v15  ;;  %v2664_v51 = vmul.f32 0.5, %v2593_v19  ;;  %v2665_v32 = vmul.f32 0.5, %v2598_v57 }
 0x492   :  { %v2994_v17 = vadd.f32 %v2993_v40, %v12660_v6  ;;  %v7457_v56 = vpop.f32.mrb[123].mxu1  ;;  %8263 = vtanh.f32 %v3044_v58 }
 0x493   :  { %v2680_v53 = vmul.f32 %v2660_v24, %v2613_v38  ;;  %v3045_v38 = vmul.f32 0.5, %v2974_v60  ;;  %v12670_v24 = vld [vmem:[#allocation80_spill] sm:$0xff]  ;;  %v12676_v60 = vld [vmem:[#allocation86_spill] sm:$0xff] }
 0x494   :  { %v3061_v55 = vmul.f32 %v3041_v1, %v2994_v17  ;;  %v2617_v25 = vpop.f32.mrb[124].mxu0  ;;  %v2979_v26 = vadd.f32 %v10938_v37, %v12670_v24  ;;  %v12672_v1 = vld [vmem:[#allocation74_spill] sm:$0xff] }
 0x495   :  { %v2618_v23 = vadd.f32 %v2617_v25, %v12663_v20  ;;  %v2998_v42 = vpop.f32.mrb[124].mxu1  ;;  %v7399_v28 = vpop.f32.mrb[125].mxu0 }
 0x496   :  { %v2999_v16 = vadd.f32 %v2998_v42, %v12664_v36  ;;  %v7460_v39 = vpop.f32.mrb[125].mxu1  ;;  %v3046_v7 = vmul.f32 0.5, %v2979_v26 }
 0x497   :  { %v2681_v35 = vmul.f32 %v2661_v8, %v2618_v23  ;;  %v12674_v8 = vld [vmem:[#allocation87_spill] sm:$0xff] }
 0x498   :  { %v10958_v5 = vmul.f32 %v3042_v12, %v2999_v16  ;;  %v2622_v27 = vpop.f32.mrb[126].mxu0 }
 0x499   :  { %v2623_v18 = vadd.f32 %v2622_v27, %v12667_v13  ;;  %v3003_v45 = vpop.f32.mrb[126].mxu1  ;;  %v7402_v30 = vpop.f32.mrb[127].mxu0 }
 0x49a   :  { %v3004_v11 = vadd.f32 %v3003_v45, %v12668_v46  ;;  %v7463_v41 = vpop.f32.mrb[127].mxu1  ;;  %v2821_v45 = vpop.permute.xlu1 %2820 }
 0x49b   :  { %v2682_v54 = vadd.f32 %v2678_v2, %v2623_v18  ;;  %v8258_v2 = vpop.eup %8257 }
 0x49c   :  { %v3063_v40 = vadd.f32 %v3059_v61, %v3004_v11  ;;  %v2627_v3 = vpop.f32.mrb[128].mxu0  ;;  %v8260_v37 = vpop.eup %8259  ;;  %v12673_v61 = vld [vmem:[#allocation85_spill] sm:$0xff]  ;;  %v2670_v36 = vmul.f32 0.5, %v8258_v2 }
 0x49d   :  { %8265 = vtanh.f32 %v2682_v54  ;;  %v2628_v0 = vadd.f32 %v2627_v3, %v12671_v22  ;;  %v3008_v6 = vpop.f32.mrb[128].mxu1  ;;  %v7405_v17 = vpop.f32.mrb[129].mxu0  ;;  %v3051_v12 = vmul.f32 0.5, %v8260_v37 }
 0x49e   :  { %8267 = vtanh.f32 %v3063_v40  ;;  %v3009_v56 = vadd.f32 %v3008_v6, %v12672_v1  ;;  %v7466_v44 = vpop.f32.mrb[129].mxu1  ;;  %v8262_v15 = vpop.eup %8261  ;;  %v2674_v30 = vadd.f32 0.5, %v2670_v36 }
 0x49f   :  { %8269 = vtanh.f32 %v2664_v51  ;;  %v2683_v31 = vadd.f32 %v2679_v9, %v2628_v0  ;;  %v8264_v48 = vpop.eup %8263  ;;  %v2440_v11 = vpop.permute.xlu0 %2439  ;;  %v3055_v41 = vadd.f32 0.5, %v3051_v12 }
 0x4a0   :  { %8271 = vtanh.f32 %v3045_v38  ;;  %v3064_v63 = vadd.f32 %v3060_v59, %v3009_v56  ;;  %v2632_v62 = vpop.f32.mrb[130].mxu0  ;;  %v12675_v59 = vld [vmem:[#allocation84_spill] sm:$0xff]  ;;  %v3052_v38 = vmul.f32 0.5, %v8264_v48 }
 0x4a1   :  { %8273 = vtanh.f32 %v2683_v31  ;;  %v2633_v25 = vadd.f32 %v2632_v62, %v12673_v61  ;;  %v3013_v20 = vpop.f32.mrb[130].mxu1  ;;  %v7408_v23 = vpop.f32.mrb[131].mxu0 }
 0x4a2   :  { %8275 = vtanh.f32 %v3064_v63  ;;  %v3014_v42 = vadd.f32 %v3013_v20, %v12674_v8  ;;  %v7469_v28 = vpop.f32.mrb[131].mxu1  ;;  %v3056_v2 = vadd.f32 0.5, %v3052_v38  ;;  %v11092_v38 = vld [vmem:[%s12279_s2 + $0x20] sm:$0xff] }
 0x4a3   :  { %8277 = vtanh.f32 %v2665_v32  ;;  %v2684_v16 = vadd.f32 %v2680_v53, %v2633_v25 }
 0x4a4   :  { %8279 = vtanh.f32 %v3046_v7  ;;  %v3065_v9 = vadd.f32 %v3061_v55, %v3014_v42  ;;  %v2637_v39 = vpop.f32.mrb[132].mxu0  ;;  %v2671_v55 = vmul.f32 0.5, %v8262_v15 }
 0x4a5   :  { %8281 = vtanh.f32 %v2684_v16  ;;  %v2638_v33 = vadd.f32 %v2637_v39, %v12675_v59  ;;  %v3018_v19 = vpop.f32.mrb[132].mxu1  ;;  %v7411_v58 = vpop.f32.mrb[133].mxu0 }
 0x4a6   :  { %8283 = vtanh.f32 %v3065_v9  ;;  %v3019_v27 = vadd.f32 %v3018_v19, %v12676_v60  ;;  %v7472_v13 = vpop.f32.mrb[133].mxu1  ;;  %v2675_v56 = vadd.f32 0.5, %v2671_v55  ;;  %v11043_v55 = vld [vmem:[%s12280_s3 + $0x8] sm:$0xff] }
 0x4a7   :  { %v8266_v18 = vpop.eup %8265  ;;  %v2685_v46 = vadd.f32 %v2681_v35, %v2638_v33 }
 0x4a8   :  { %v8268_v53 = vpop.eup %8267  ;;  %v3066_v51 = vadd.f32 %v10958_v5, %v3019_v27  ;;  %v2642_v34 = vpop.f32.mrb[134].mxu0  ;;  %v2690_v57 = vsub.f32 %v10737_v4, %v8266_v18 }
 0x4a9   :  { %v8270_v54 = vpop.eup %8269  ;;  %8285 = vtanh.f32 %v2685_v46  ;;  %v2643_v24 = vadd.f32 %v2642_v34, %v2440_v11  ;;  %v3023_v26 = vpop.f32.mrb[134].mxu1  ;;  %v3071_v40 = vsub.f32 %v10740_v29, %v8268_v53  ;;  %v6490_v46 = vld [vmem:[%s12278_s1 + $0x10] sm:$0x7]  ;;  %v11023_v11 = vld [vmem:[%s12280_s3] sm:$0xff] }
 0x4aa   :  { %v7414_v3 = vpop.f32.mrb[135].mxu0  ;;  %v8272_v22 = vpop.eup %8271  ;;  %8287 = vtanh.f32 %v3066_v51  ;;  %v3024_v35 = vadd.f32 %v3023_v26, %v2821_v45  ;;  %v2694_v0 = vmul.f32 %v2690_v57, %v2674_v30  ;;  %v2672_v44 = vmul.f32 0.5, %v8270_v54  ;;  %v11056_v51 = vld [vmem:[%s12279_s2 + $0x10] sm:$0xff]  ;;  %v11074_v57 = vld [vmem:[%s12279_s2 + $0x18] sm:$0xff]  ;;  %v11110_v26 = vld [vmem:[%s12279_s2 + $0x28] sm:$0xff] }
 0x4ab   :  { %v7475_v6 = vpop.f32.mrb[135].mxu1  ;;  %v8274_v17 = vpop.eup %8273  ;;  %3083 = vst [vmem:[#allocation2 + $0x2] sm:$0x1] %v2643_v24  ;;  %v3075_v1 = vmul.f32 %v3071_v40, %v3055_v41  ;;  %v3053_v29 = vmul.f32 0.5, %v8272_v22  ;;  %v11036_v41 = vld [vmem:[%s12279_s2 + $0x8] sm:$0xff]  ;;  %v11063_v34 = vld [vmem:[%s12280_s3 + $0x10] sm:$0xff] }
 0x4ac   :  { %v8276_v5 = vpop.eup %8275  ;;  %3084 = vst [vmem:[#allocation3 + $0x5] sm:$0x1] %v3024_v35  ;;  %v2691_v4 = vsub.f32 %v10742_v52, %v8274_v17  ;;  %v10976_v32 = vadd.f32 %v8266_v18, %v2694_v0  ;;  %v2676_v23 = vadd.f32 0.5, %v2672_v44  ;;  %v11081_v54 = vld [vmem:[%s12280_s3 + $0x18] sm:$0xff]  ;;  %v11099_v24 = vld [vmem:[%s12280_s3 + $0x20] sm:$0xff]  ;;  %v11117_v40 = vld [vmem:[%s12280_s3 + $0x28] sm:$0xff] }
 0x4ad   :  { %v8278_v31 = vpop.eup %8277  ;;  %v3072_v7 = vsub.f32 %v10745_v47, %v8276_v5  ;;  %v10979_v63 = vadd.f32 %v8268_v53, %v3075_v1  ;;  %v3057_v28 = vadd.f32 0.5, %v3053_v29  ;;  %v11018_v53 = vld [vmem:[%s12279_s2] sm:$0xff]  ;;  %v11128_v3 = vld [vmem:[%s12279_s2 + $0x30] sm:$0xff]  ;;  %v11146_v35 = vld [vmem:[%s12279_s2 + $0x38] sm:$0xff] }
 0x4ae   :  { %v8280_v62 = vpop.eup %8279  ;;  %v2695_v37 = vmul.f32 %v2691_v4, %v2675_v56  ;;  %v2673_v8 = vmul.f32 0.5, %v8278_v31  ;;  %v11135_v22 = vld [vmem:[%s12280_s3 + $0x30] sm:$0xff]  ;;  %v11153_v0 = vld [vmem:[%s12280_s3 + $0x38] sm:$0xff]  ;;  %v11164_v6 = vld [vmem:[%s12279_s2 + $0x40] sm:$0xff] }
 0x4af   :  { %v8282_v61 = vpop.eup %8281  ;;  %v3076_v25 = vmul.f32 %v3072_v7, %v3056_v2  ;;  %v3054_v36 = vmul.f32 0.5, %v8280_v62  ;;  %12677 = vst [vmem:[#allocation29_spill] sm:$0xff] %v11164_v6  ;;  %v11182_v1 = vld [vmem:[%s12279_s2 + $0x48] sm:$0xff]  ;;  %v11200_v56 = vld [vmem:[%s12279_s2 + $0x50] sm:$0xff]  ;;  %v11218_v4 = vld [vmem:[%s12279_s2 + $0x58] sm:$0xff] }
 0x4b0   :  { %v8284_v20 = vpop.eup %8283  ;;  %v10981_v42 = vadd.f32 %v8274_v17, %v2695_v37  ;;  %v2692_v52 = vsub.f32 %v10753_v49, %v8282_v61  ;;  %v2677_v19 = vadd.f32 0.5, %v2673_v8  ;;  %v11171_v17 = vld [vmem:[%s12280_s3 + $0x40] sm:$0xff]  ;;  %12679 = vst [vmem:[#allocation28_spill] sm:$0xff] %v11182_v1  ;;  %12681 = vst [vmem:[#allocation33_spill] sm:$0xff] %v11200_v56  ;;  %v11207_v44 = vld [vmem:[%s12280_s3 + $0x50] sm:$0xff] }
 0x4b1   :  { %v10984_v16 = vadd.f32 %v8276_v5, %v3076_v25  ;;  %v3073_v12 = vsub.f32 %v10757_v14, %v8284_v20  ;;  %v3058_v48 = vadd.f32 0.5, %v3054_v36  ;;  %12678 = vst [vmem:[#allocation31_spill] sm:$0xff] %v11171_v17  ;;  %v11189_v5 = vld [vmem:[%s12280_s3 + $0x48] sm:$0xff]  ;;  %12682 = vst [vmem:[#allocation35_spill] sm:$0xff] %v11207_v44  ;;  %v11225_v31 = vld [vmem:[%s12280_s3 + $0x58] sm:$0xff] }
 0x4b2   :  { %v8031_v47 = vpack.c.bf16 %v10981_v42, %v10976_v32  ;;  %v2696_v9 = vmul.f32 %v2692_v52, %v2676_v23  ;;  %12680 = vst [vmem:[#allocation30_spill] sm:$0xff] %v11189_v5  ;;  %12683 = vst [vmem:[#allocation32_spill] sm:$0xff] %v11218_v4  ;;  %v11236_v2 = vld [vmem:[%s12279_s2 + $0x60] sm:$0xff]  ;;  %v11254_v7 = vld [vmem:[%s12279_s2 + $0x68] sm:$0xff] }
 0x4b3   :  { %v8286_v39 = vpop.eup %8285  ;;  %v8037_v15 = vpack.c.bf16 %v10984_v16, %v10979_v63  ;;  %v3077_v59 = vmul.f32 %v3073_v12, %v3057_v28  ;;  %12684 = vst [vmem:[#allocation34_spill] sm:$0xff] %v11225_v31  ;;  %12685 = vst [vmem:[#allocation8_spill] sm:$0xff] %v11236_v2  ;;  %v11243_v29 = vld [vmem:[%s12280_s3 + $0x60] sm:$0xff]  ;;  %v11261_v62 = vld [vmem:[%s12280_s3 + $0x68] sm:$0xff] }
 0x4b4   :  { %v8288_v33 = vpop.eup %8287  ;;  %8032 = vmatpush3.bf16.msra.mxu0 %v8031_v47  ;;  %v2693_v49 = vsub.f32 %v10760_v43, %v8286_v39  ;;  %v10992_v58 = vadd.f32 %v8282_v61, %v2696_v9  ;;  %12686 = vst [vmem:[#allocation10_spill] sm:$0xff] %v11243_v29  ;;  %12687 = vst [vmem:[#allocation9_spill] sm:$0xff] %v11254_v7  ;;  %v11272_v37 = vld [vmem:[%s12279_s2 + $0x70] sm:$0xff]  ;;  %v11290_v25 = vld [vmem:[%s12279_s2 + $0x78] sm:$0xff] }
 0x4b5   :  { %8038 = vmatpush3.bf16.msra.mxu1 %v8037_v15  ;;  %8033 = vmatprep.subr.bf16.mxu0 %v12558_v50  ;;  %v3074_v14 = vsub.f32 %v10762_v21, %v8288_v33  ;;  %v10996_v60 = vadd.f32 %v8284_v20, %v3077_v59  ;;  %v6471_v21 = vld [vmem:[%s12277_s0 + $0x10] sm:$0x7]  ;;  %12688 = vst [vmem:[#allocation37_spill] sm:$0xff] %v11261_v62  ;;  %12689 = vst [vmem:[#allocation12_spill] sm:$0xff] %v11272_v37  ;;  %v11297_v20 = vld [vmem:[%s12280_s3 + $0x78] sm:$0xff] }
 0x4b6   :  { %8039 = vmatprep.subr.bf16.mxu1 %v12558_v50  ;;  %v2697_v27 = vmul.f32 %v2693_v49, %v2677_v19  ;;  %v11279_v61 = vld [vmem:[%s12280_s3 + $0x70] sm:$0xff]  ;;  %12691 = vst [vmem:[#allocation45_spill] sm:$0xff] %v11290_v25  ;;  %12692 = vst [vmem:[#allocation51_spill] sm:$0xff] %v11297_v20  ;;  %v3103_v23 = vld [vmem:[%s12279_s2 + $0x80] sm:$0x1] }
 0x4b7   :  { %v3078_v13 = vmul.f32 %v3074_v14, %v3058_v48  ;;  %12690 = vst [vmem:[#allocation11_spill] sm:$0xff] %v11279_v61  ;;  %v3484_v8 = vld [vmem:[%s12280_s3 + $0x80] sm:$0x1]  ;;  %v12693_v59 = vld [vmem:[#allocation89_spill] sm:$0xff]  ;;  %v12694_v49 = vld [vmem:[#allocation91_spill] sm:$0xff] }
 0x4b8   :  { %v10999_v18 = vadd.f32 %v8286_v39, %v2697_v27 }
 0x4b9   :  { %v11001_v45 = vadd.f32 %v8288_v33, %v3078_v13 }
 0x4ba   :  { %v8034_v43 = vpack.c.bf16 %v10999_v18, %v10992_v58 }
 0x4bb   :  { %v8040_v30 = vpack.c.bf16 %v11001_v45, %v10996_v60 }
 0x4bc   :  { %8035 = vmatpush3.bf16.msra.mxu0 %v8034_v43 }
 0x4bd   :  { %8041 = vmatpush3.bf16.msra.mxu1 %v8040_v30  ;;  %7484 = vmatprep.subr.mxu0 %v12564_v10  ;;  %v12695_v30 = vld [vmem:[#allocation88_spill] sm:$0xff] }
 0x4be   :  { %7545 = vmatprep.subr.mxu1 %v12564_v10 }
 0x4c0   :  { %7485 = vmatpush3.msk.msra.mxu0 %vm201_vm1, %v6471_v21 }
 0x4c1   :  { %7546 = vmatpush3.msk.msra.mxu1 %vm201_vm1, %v6490_v46  ;;  %7487 = vmatmul.mubr.msk.f32.vlgmr.msra.gmra.mrb[136].mxu0 %vm149_vm2, %v11018_v53 }
 0x4c2   :  { %7548 = vmatmul.mubr.msk.f32.vlgmr.msra.gmra.mrb[136].mxu1 %vm149_vm2, %v11023_v11  ;;  %7489 = vmatprep.mubr.msk.f32.mxu0 %vm8507_vm0, %v12564_v10 }
 0x4c3   :  { %7550 = vmatprep.mubr.msk.f32.mxu1 %vm8507_vm0, %v12564_v10  ;;  %8042 = vmatprep.subr.bf16.mxu0 %v12558_v50 }
 0x4c4   :  { %8048 = vmatprep.subr.bf16.mxu1 %v12558_v50 }
 0x4c5   :  { %7490 = vmatmul.mubr.msk.f32.gmra.mrb[138].mxu0 %vm149_vm2, %v11036_v41 }
 0x4c6   :  { %7551 = vmatmul.mubr.msk.f32.gmra.mrb[138].mxu1 %vm149_vm2, %v11043_v55  ;;  %7492 = vmatprep.mubr.msk.f32.mxu0 %vm8507_vm0, %v12564_v10 }
 0x4c7   :  { %7553 = vmatprep.mubr.msk.f32.mxu1 %vm8507_vm0, %v12564_v10 }
 0x4c9   :  { %7493 = vmatmul.mubr.msk.f32.gmra.mrb[140].mxu0 %vm149_vm2, %v11056_v51 }
 0x4ca   :  { %7554 = vmatmul.mubr.msk.f32.gmra.mrb[140].mxu1 %vm149_vm2, %v11063_v34  ;;  %7495 = vmatprep.mubr.msk.f32.mxu0 %vm8507_vm0, %v12564_v10 }
 0x4cb   :  { %7556 = vmatprep.mubr.msk.f32.mxu1 %vm8507_vm0, %v12564_v10 }
 0x4cd   :  { %7496 = vmatmul.mubr.msk.f32.gmra.mrb[142].mxu0 %vm149_vm2, %v11074_v57 }
 0x4ce   :  { %7557 = vmatmul.mubr.msk.f32.gmra.mrb[142].mxu1 %vm149_vm2, %v11081_v54  ;;  %7498 = vmatprep.mubr.msk.f32.mxu0 %vm8507_vm0, %v12564_v10 }
 0x4cf   :  { %7559 = vmatprep.mubr.msk.f32.mxu1 %vm8507_vm0, %v12564_v10 }
 0x4d1   :  { %7499 = vmatmul.mubr.msk.f32.gmra.mrb[144].mxu0 %vm149_vm2, %v11092_v38 }
 0x4d2   :  { %7560 = vmatmul.mubr.msk.f32.gmra.mrb[144].mxu1 %vm149_vm2, %v11099_v24  ;;  %7501 = vmatprep.mubr.msk.f32.mxu0 %vm8507_vm0, %v12564_v10 }
 0x4d3   :  { %7562 = vmatprep.mubr.msk.f32.mxu1 %vm8507_vm0, %v12564_v10 }
 0x4d5   :  { %7502 = vmatmul.mubr.msk.f32.gmra.mrb[146].mxu0 %vm149_vm2, %v11110_v26 }
 0x4d6   :  { %7563 = vmatmul.mubr.msk.f32.gmra.mrb[146].mxu1 %vm149_vm2, %v11117_v40  ;;  %7504 = vmatprep.mubr.msk.f32.mxu0 %vm8507_vm0, %v12564_v10 }
 0x4d7   :  { %7565 = vmatprep.mubr.msk.f32.mxu1 %vm8507_vm0, %v12564_v10 }
 0x4d9   :  { %7505 = vmatmul.mubr.msk.f32.gmra.mrb[148].mxu0 %vm149_vm2, %v11128_v3 }
 0x4da   :  { %7566 = vmatmul.mubr.msk.f32.gmra.mrb[148].mxu1 %vm149_vm2, %v11135_v22  ;;  %7507 = vmatprep.mubr.msk.f32.mxu0 %vm8507_vm0, %v12564_v10 }
 0x4db   :  { %7568 = vmatprep.mubr.msk.f32.mxu1 %vm8507_vm0, %v12564_v10 }
 0x4dd   :  { %7508 = vmatmul.mubr.msk.f32.gmra.mrb[150].mxu0 %vm149_vm2, %v11146_v35 }
 0x4de   :  { %7569 = vmatmul.mubr.msk.f32.gmra.mrb[150].mxu1 %vm149_vm2, %v11153_v0  ;;  %7510 = vmatprep.mubr.msk.f32.mxu0 %vm8507_vm0, %v12564_v10 }
 0x4df   :  { %7571 = vmatprep.mubr.msk.f32.mxu1 %vm8507_vm0, %v12564_v10 }
 0x4e1   :  { %7511 = vmatmul.mubr.msk.f32.gmra.mrb[152].mxu0 %vm149_vm2, %v11164_v6  ;;  %v12708_v6 = vld [vmem:[#allocation115_spill] sm:$0xff] }
 0x4e2   :  { %7572 = vmatmul.mubr.msk.f32.gmra.mrb[152].mxu1 %vm149_vm2, %v11171_v17  ;;  %7513 = vmatprep.mubr.msk.f32.mxu0 %vm8507_vm0, %v12564_v10 }
 0x4e3   :  { %7574 = vmatprep.mubr.msk.f32.mxu1 %vm8507_vm0, %v12564_v10 }
 0x4e5   :  { %7514 = vmatmul.mubr.msk.f32.gmra.mrb[154].mxu0 %vm149_vm2, %v11182_v1 }
 0x4e6   :  { %7575 = vmatmul.mubr.msk.f32.gmra.mrb[154].mxu1 %vm149_vm2, %v11189_v5  ;;  %7516 = vmatprep.mubr.msk.f32.mxu0 %vm8507_vm0, %v12564_v10  ;;  %v12705_v5 = vld [vmem:[#allocation102_spill] sm:$0xff] }
 0x4e7   :  { %7577 = vmatprep.mubr.msk.f32.mxu1 %vm8507_vm0, %v12564_v10 }
 0x4e9   :  { %7517 = vmatmul.mubr.msk.f32.gmra.mrb[156].mxu0 %vm149_vm2, %v11200_v56 }
 0x4ea   :  { %7578 = vmatmul.mubr.msk.f32.gmra.mrb[156].mxu1 %vm149_vm2, %v11207_v44  ;;  %7519 = vmatprep.mubr.msk.f32.mxu0 %vm8507_vm0, %v12564_v10 }
 0x4eb   :  { %7580 = vmatprep.mubr.msk.f32.mxu1 %vm8507_vm0, %v12564_v10 }
 0x4ed   :  { %7520 = vmatmul.mubr.msk.f32.gmra.mrb[158].mxu0 %vm149_vm2, %v11218_v4 }
 0x4ee   :  { %7581 = vmatmul.mubr.msk.f32.gmra.mrb[158].mxu1 %vm149_vm2, %v11225_v31  ;;  %7522 = vmatprep.mubr.msk.f32.mxu0 %vm8507_vm0, %v12564_v10 }
 0x4ef   :  { %7583 = vmatprep.mubr.msk.f32.mxu1 %vm8507_vm0, %v12564_v10 }
 0x4f1   :  { %7523 = vmatmul.mubr.msk.f32.gmra.mrb[160].mxu0 %vm149_vm2, %v11236_v2 }
 0x4f2   :  { %7584 = vmatmul.mubr.msk.f32.gmra.mrb[160].mxu1 %vm149_vm2, %v11243_v29  ;;  %7525 = vmatprep.mubr.msk.f32.mxu0 %vm8507_vm0, %v12564_v10 }
 0x4f3   :  { %7586 = vmatprep.mubr.msk.f32.mxu1 %vm8507_vm0, %v12564_v10 }
 0x4f5   :  { %7526 = vmatmul.mubr.msk.f32.gmra.mrb[162].mxu0 %vm149_vm2, %v11254_v7 }
 0x4f6   :  { %7587 = vmatmul.mubr.msk.f32.gmra.mrb[162].mxu1 %vm149_vm2, %v11261_v62  ;;  %7528 = vmatprep.mubr.msk.f32.mxu0 %vm8507_vm0, %v12564_v10  ;;  %v12702_v62 = vld [vmem:[#allocation103_spill] sm:$0xff] }
 0x4f7   :  { %7589 = vmatprep.mubr.msk.f32.mxu1 %vm8507_vm0, %v12564_v10 }
 0x4f9   :  { %7529 = vmatmul.mubr.msk.f32.gmra.mrb[164].mxu0 %vm149_vm2, %v11272_v37 }
 0x4fa   :  { %7590 = vmatmul.mubr.msk.f32.gmra.mrb[164].mxu1 %vm149_vm2, %v11279_v61  ;;  %7531 = vmatprep.mubr.msk.f32.mxu0 %vm8507_vm0, %v12564_v10 }
 0x4fb   :  { %7592 = vmatprep.mubr.msk.f32.mxu1 %vm8507_vm0, %v12564_v10 }
 0x4fd   :  { %7532 = vmatmul.mubr.msk.f32.gmra.mrb[166].mxu0 %vm149_vm2, %v11290_v25 }
 0x4fe   :  { %7593 = vmatmul.mubr.msk.f32.gmra.mrb[166].mxu1 %vm149_vm2, %v11297_v20  ;;  %7534 = vmatprep.mubr.msk.f32.mxu0 %vm8507_vm0, %v12564_v10 }
 0x4ff   :  { %7595 = vmatprep.mubr.msk.f32.mxu1 %vm8507_vm0, %v12564_v10 }
 0x501   :  { %7535 = vmatmul.mubr.msk.f32.gmra.mrb[168].mxu0 %vm149_vm2, %v3103_v23 }
 0x502   :  { %7596 = vmatmul.mubr.msk.f32.gmra.mrb[168].mxu1 %vm149_vm2, %v3484_v8  ;;  %7608 = vmatprep.mubr.msk.f32.mxu0 %vm8507_vm0, %v12564_v10  ;;  %v12696_v8 = vld [vmem:[#allocation90_spill] sm:$0xff] }
 0x503   :  { %7669 = vmatprep.mubr.msk.f32.mxu1 %vm8507_vm0, %v12564_v10 }
 0x594   :  { %v3326_v52 = vpop.f32.mrb[136].mxu0 }
 0x595   :  { %v3707_v28 = vpop.f32.mrb[136].mxu1  ;;  %v7488_v36 = vpop.f32.mrb[137].mxu0  ;;  %v3327_v33 = vadd.f32 %v3326_v52, %v12693_v59 }
 0x596   :  { %v7549_v12 = vpop.f32.mrb[137].mxu1  ;;  %v3708_v48 = vadd.f32 %v3707_v28, %v12694_v49  ;;  %v12698_v49 = vld [vmem:[#allocation95_spill] sm:$0xff] }
 0x597   :  { %v3410_v43 = vmul.f32 0.5, %v3327_v33 }
 0x598   :  { %v3331_v47 = vpop.f32.mrb[138].mxu0  ;;  %v3791_v23 = vmul.f32 0.5, %v3708_v48  ;;  %v12699_v48 = vld [vmem:[#allocation92_spill] sm:$0xff] }
 0x599   :  { %v3712_v9 = vpop.f32.mrb[138].mxu1  ;;  %v7491_v39 = vpop.f32.mrb[139].mxu0  ;;  %v3332_v21 = vadd.f32 %v3331_v47, %v12695_v30  ;;  %8289 = vtanh.f32 %v3410_v43 }
 0x59a   :  { %v7552_v15 = vpop.f32.mrb[139].mxu1  ;;  %v3713_v36 = vadd.f32 %v3712_v9, %v12696_v8  ;;  %8291 = vtanh.f32 %v3791_v23 }
 0x59b   :  { %v3411_v39 = vmul.f32 0.5, %v3332_v21  ;;  %v12697_v15 = vld [vmem:[#allocation93_spill] sm:$0xff] }
 0x59c   :  { %v3336_v19 = vpop.f32.mrb[140].mxu0  ;;  %v3792_v28 = vmul.f32 0.5, %v3713_v36 }
 0x59d   :  { %v3717_v14 = vpop.f32.mrb[140].mxu1  ;;  %v7494_v27 = vpop.f32.mrb[141].mxu0  ;;  %v3337_v52 = vadd.f32 %v3336_v19, %v12697_v15  ;;  %8293 = vtanh.f32 %v3411_v39 }
 0x59e   :  { %v7555_v13 = vpop.f32.mrb[141].mxu1  ;;  %v3718_v27 = vadd.f32 %v3717_v14, %v12698_v49  ;;  %8295 = vtanh.f32 %v3792_v28 }
 0x59f   :  { %v3412_v47 = vmul.f32 0.5, %v3337_v52 }
 0x5a0   :  { %v3341_v46 = vpop.f32.mrb[142].mxu0 }
 0x5a1   :  { %v3722_v12 = vpop.f32.mrb[142].mxu1  ;;  %v7497_v20 = vpop.f32.mrb[143].mxu0  ;;  %v3342_v30 = vadd.f32 %v3341_v46, %v12699_v48  ;;  %8297 = vtanh.f32 %v3412_v47 }
 0x5a2   :  { %v7558_v25 = vpop.f32.mrb[143].mxu1  ;;  %v12700_v20 = vld [vmem:[#allocation94_spill] sm:$0xff] }
 0x5a3   :  { %v3793_v25 = vmul.f32 0.5, %v3718_v27  ;;  %v3723_v43 = vadd.f32 %v3722_v12, %v12700_v20  ;;  %v3413_v8 = vmul.f32 0.5, %v3342_v30  ;;  %v8290_v46 = vpop.eup %8289 }
 0x5a4   :  { %v3346_v59 = vpop.f32.mrb[144].mxu0  ;;  %v8292_v52 = vpop.eup %8291  ;;  %v3418_v12 = vmul.f32 0.5, %v8290_v46 }
 0x5a5   :  { %v3727_v13 = vpop.f32.mrb[144].mxu1  ;;  %v7500_v33 = vpop.f32.mrb[145].mxu0  ;;  %8299 = vtanh.f32 %v3793_v25  ;;  %v3799_v47 = vmul.f32 0.5, %v8292_v52 }
 0x5a6   :  { %v7561_v61 = vpop.f32.mrb[145].mxu1  ;;  %8301 = vtanh.f32 %v3413_v8 }
 0x5a7   :  { %v3794_v61 = vmul.f32 0.5, %v3723_v43  ;;  %v8294_v33 = vpop.eup %8293  ;;  %v12701_v43 = vld [vmem:[#allocation99_spill] sm:$0xff]  ;;  %v3803_v46 = vadd.f32 0.5, %v3799_v47 }
 0x5a8   :  { %v11326_v9 = vpop.f32.mrb[146].mxu0  ;;  %v8296_v30 = vpop.eup %8295  ;;  %v3419_v20 = vmul.f32 0.5, %v8294_v33 }
 0x5a9   :  { %v11329_v21 = vpop.f32.mrb[146].mxu1  ;;  %v7503_v19 = vpop.f32.mrb[147].mxu0  ;;  %8303 = vtanh.f32 %v3794_v61  ;;  %v3800_v8 = vmul.f32 0.5, %v8296_v30 }
 0x5aa   :  { %v7564_v23 = vpop.f32.mrb[147].mxu1  ;;  %v3423_v44 = vadd.f32 0.5, %v3419_v20 }
 0x5ab   :  { %v3422_v23 = vadd.f32 0.5, %v3418_v12  ;;  %v8298_v37 = vpop.eup %8297  ;;  %v3804_v1 = vadd.f32 0.5, %v3800_v8 }
 0x5ac   :  { %v11331_v14 = vpop.f32.mrb[148].mxu0  ;;  %v3420_v52 = vmul.f32 0.5, %v8298_v37 }
 0x5ad   :  { %v11333_v36 = vpop.f32.mrb[148].mxu1  ;;  %v7506_v39 = vpop.f32.mrb[149].mxu0 }
 0x5ae   :  { %v7567_v15 = vpop.f32.mrb[149].mxu1  ;;  %v3424_v20 = vadd.f32 0.5, %v3420_v52 }
 0x5af   :  { %v8300_v29 = vpop.eup %8299 }
 0x5b0   :  { %v11335_v28 = vpop.f32.mrb[150].mxu0  ;;  %v3801_v12 = vmul.f32 0.5, %v8300_v29 }
 0x5b1   :  { %v11337_v49 = vpop.f32.mrb[150].mxu1  ;;  %v7509_v27 = vpop.f32.mrb[151].mxu0 }
 0x5b2   :  { %v7570_v48 = vpop.f32.mrb[151].mxu1 }
 0x5b3   :  { %v12703_v48 = vld [vmem:[#allocation98_spill] sm:$0xff] }
 0x5b4   :  { %v3366_v25 = vpop.f32.mrb[152].mxu0 }
 0x5b5   :  { %v3367_v19 = vadd.f32 %v3366_v25, %v12701_v43  ;;  %v3747_v39 = vpop.f32.mrb[152].mxu1  ;;  %v7512_v15 = vpop.f32.mrb[153].mxu0  ;;  %v12704_v43 = vld [vmem:[#allocation97_spill] sm:$0xff] }
 0x5b6   :  { %v3748_v7 = vadd.f32 %v3747_v39, %v12702_v62  ;;  %v7573_v61 = vpop.f32.mrb[153].mxu1  ;;  %v8302_v25 = vpop.eup %8301  ;;  %v3347_v15 = vadd.f32 %v3346_v59, %v12704_v43  ;;  %v12706_v39 = vld [vmem:[#allocation101_spill] sm:$0xff]  ;;  %v3805_v43 = vadd.f32 0.5, %v3801_v12 }
 0x5b7   :  { %v3442_v2 = vmul.f32 %v3422_v23, %v3367_v19  ;;  %v8304_v47 = vpop.eup %8303  ;;  %v3728_v61 = vadd.f32 %v3727_v13, %v12706_v39  ;;  %v3421_v37 = vmul.f32 0.5, %v8302_v25 }
 0x5b8   :  { %v3823_v27 = vmul.f32 %v3803_v46, %v3748_v7  ;;  %v3371_v31 = vpop.f32.mrb[154].mxu0  ;;  %v12707_v46 = vld [vmem:[#allocation111_spill] sm:$0xff]  ;;  %v3802_v17 = vmul.f32 0.5, %v8304_v47  ;;  %v3426_v29 = vmul.f32 0.5, %v3347_v15  ;;  %v12712_v15 = vld [vmem:[#allocation114_spill] sm:$0xff] }
 0x5b9   :  { %v3372_v4 = vadd.f32 %v3371_v31, %v12703_v48  ;;  %v3752_v33 = vpop.f32.mrb[154].mxu1  ;;  %v7515_v56 = vpop.f32.mrb[155].mxu0  ;;  %v3807_v8 = vmul.f32 0.5, %v3728_v61  ;;  %v3425_v39 = vadd.f32 0.5, %v3421_v37 }
 0x5ba   :  { %v3753_v30 = vadd.f32 %v3752_v33, %v12705_v5  ;;  %v7576_v62 = vpop.f32.mrb[155].mxu1  ;;  %v12709_v33 = vld [vmem:[#allocation96_spill] sm:$0xff]  ;;  %8305 = vtanh.f32 %v3426_v29  ;;  %v3806_v12 = vadd.f32 0.5, %v3802_v17 }
 0x5bb   :  { %v3443_v19 = vmul.f32 %v3423_v44, %v3372_v4  ;;  %v3352_v62 = vadd.f32 %v11326_v9, %v12709_v33  ;;  %v12710_v44 = vld [vmem:[#allocation100_spill] sm:$0xff]  ;;  %8307 = vtanh.f32 %v3807_v8 }
 0x5bc   :  { %v3824_v7 = vmul.f32 %v3804_v1, %v3753_v30  ;;  %v3376_v23 = vpop.f32.mrb[156].mxu0  ;;  %v3733_v1 = vadd.f32 %v11329_v21, %v12710_v44  ;;  %v12711_v30 = vld [vmem:[#allocation110_spill] sm:$0xff]  ;;  %v12714_v21 = vld [vmem:[#allocation113_spill] sm:$0xff]  ;;  %v12716_v44 = vld [vmem:[#allocation107_spill] sm:$0xff] }
 0x5bd   :  { %v3377_v31 = vadd.f32 %v3376_v23, %v12707_v46  ;;  %v3757_v48 = vpop.f32.mrb[156].mxu1  ;;  %v7518_v56 = vpop.f32.mrb[157].mxu0  ;;  %v3427_v61 = vmul.f32 0.5, %v3352_v62  ;;  %v12717_v62 = vld [vmem:[#allocation108_spill] sm:$0xff] }
 0x5be   :  { %v3758_v59 = vadd.f32 %v3757_v48, %v12708_v6  ;;  %v7579_v5 = vpop.f32.mrb[157].mxu1  ;;  %v12713_v48 = vld [vmem:[#allocation109_spill] sm:$0xff]  ;;  %v3738_v56 = vadd.f32 %v11333_v36, %v12714_v21 }
 0x5bf   :  { %v3444_v13 = vmul.f32 %v3424_v20, %v3377_v31  ;;  %v3357_v9 = vadd.f32 %v11331_v14, %v12713_v48  ;;  %v3808_v20 = vmul.f32 0.5, %v3733_v1  ;;  %8309 = vtanh.f32 %v3427_v61 }
 0x5c0   :  { %v3825_v4 = vmul.f32 %v3805_v43, %v3758_v59  ;;  %v3381_v25 = vpop.f32.mrb[158].mxu0  ;;  %v12715_v43 = vld [vmem:[#allocation105_spill] sm:$0xff]  ;;  %v3362_v14 = vadd.f32 %v11335_v28, %v12717_v62  ;;  %v3809_v1 = vmul.f32 0.5, %v3738_v56 }
 0x5c1   :  { %v3382_v52 = vadd.f32 %v3381_v25, %v12711_v30  ;;  %v3762_v23 = vpop.f32.mrb[158].mxu1  ;;  %v7521_v47 = vpop.f32.mrb[159].mxu0  ;;  %v3428_v8 = vmul.f32 0.5, %v3357_v9  ;;  %8311 = vtanh.f32 %v3808_v20 }
 0x5c2   :  { %v3763_v6 = vadd.f32 %v3762_v23, %v12712_v15  ;;  %v7582_v46 = vpop.f32.mrb[159].mxu1  ;;  %v12719_v47 = vld [vmem:[#allocation104_spill] sm:$0xff]  ;;  %v3429_v9 = vmul.f32 0.5, %v3362_v14 }
 0x5c3   :  { %v3445_v31 = vmul.f32 %v3425_v39, %v3382_v52  ;;  %v12718_v52 = vld [vmem:[#allocation112_spill] sm:$0xff]  ;;  %v12720_v46 = vld [vmem:[#allocation106_spill] sm:$0xff] }
 0x5c4   :  { %v11357_v59 = vmul.f32 %v3806_v12, %v3763_v6  ;;  %v3386_v37 = vpop.f32.mrb[160].mxu0  ;;  %v3743_v36 = vadd.f32 %v11337_v49, %v12718_v52 }
 0x5c5   :  { %v3387_v5 = vadd.f32 %v3386_v37, %v12715_v43  ;;  %v3767_v29 = vpop.f32.mrb[160].mxu1  ;;  %v7524_v33 = vpop.f32.mrb[161].mxu0 }
 0x5c6   :  { %v3768_v17 = vadd.f32 %v3767_v29, %v12716_v44  ;;  %v7585_v25 = vpop.f32.mrb[161].mxu1  ;;  %v3810_v20 = vmul.f32 0.5, %v3743_v36  ;;  %v12722_v29 = vld [vmem:[#allocation119_spill] sm:$0xff] }
 0x5c7   :  { %v3446_v30 = vadd.f32 %v3442_v2, %v3387_v5  ;;  %v8306_v2 = vpop.eup %8305 }
 0x5c8   :  { %v3827_v39 = vadd.f32 %v3823_v27, %v3768_v17  ;;  %v3391_v23 = vpop.f32.mrb[162].mxu0  ;;  %v8308_v49 = vpop.eup %8307  ;;  %v12721_v27 = vld [vmem:[#allocation117_spill] sm:$0xff]  ;;  %v3434_v17 = vmul.f32 0.5, %v8306_v2 }
 0x5c9   :  { %8313 = vtanh.f32 %v3446_v30  ;;  %v3392_v15 = vadd.f32 %v3391_v23, %v12719_v47  ;;  %v3772_v6 = vpop.f32.mrb[162].mxu1  ;;  %v7527_v12 = vpop.f32.mrb[163].mxu0 }
 0x5ca   :  { %8315 = vtanh.f32 %v3827_v39  ;;  %v3773_v61 = vadd.f32 %v3772_v6, %v12720_v46  ;;  %v7588_v48 = vpop.f32.mrb[163].mxu1  ;;  %v8310_v14 = vpop.eup %8309  ;;  %v12724_v39 = vld [vmem:[#allocation118_spill] sm:$0xff]  ;;  %v3438_v12 = vadd.f32 0.5, %v3434_v17 }
 0x5cb   :  { %8317 = vtanh.f32 %v3428_v8  ;;  %v3447_v28 = vadd.f32 %v3443_v19, %v3392_v15  ;;  %v3815_v8 = vmul.f32 0.5, %v8308_v49  ;;  %v8312_v36 = vpop.eup %8311  ;;  %v3585_v6 = vpop.permute.xlu1 %3584 }
 0x5cc   :  { %8319 = vtanh.f32 %v3809_v1  ;;  %v3828_v21 = vadd.f32 %v3824_v7, %v3773_v61  ;;  %v3396_v56 = vpop.f32.mrb[164].mxu0  ;;  %v12723_v7 = vld [vmem:[#allocation116_spill] sm:$0xff]  ;;  %v3204_v61 = vpop.permute.xlu0 %3203 }
 0x5cd   :  { %8321 = vtanh.f32 %v3447_v28  ;;  %v3397_v37 = vadd.f32 %v3396_v56, %v12721_v27  ;;  %v3777_v43 = vpop.f32.mrb[164].mxu1  ;;  %v7530_v5 = vpop.f32.mrb[165].mxu0  ;;  %v3819_v48 = vadd.f32 0.5, %v3815_v8 }
 0x5ce   :  { %8323 = vtanh.f32 %v3828_v21  ;;  %v3778_v33 = vadd.f32 %v3777_v43, %v12722_v29  ;;  %v7591_v44 = vpop.f32.mrb[165].mxu1  ;;  %v3816_v21 = vmul.f32 0.5, %v8312_v36 }
 0x5cf   :  { %8325 = vtanh.f32 %v3429_v9  ;;  %v3448_v25 = vadd.f32 %v3444_v13, %v3397_v37 }
 0x5d0   :  { %8327 = vtanh.f32 %v3810_v20  ;;  %v3829_v19 = vadd.f32 %v3825_v4, %v3778_v33  ;;  %v3401_v62 = vpop.f32.mrb[166].mxu0  ;;  %v3435_v4 = vmul.f32 0.5, %v8310_v14 }
 0x5d1   :  { %8329 = vtanh.f32 %v3448_v25  ;;  %v3402_v30 = vadd.f32 %v3401_v62, %v12723_v7  ;;  %v3782_v1 = vpop.f32.mrb[166].mxu1  ;;  %v7533_v52 = vpop.f32.mrb[167].mxu0  ;;  %v3820_v62 = vadd.f32 0.5, %v3816_v21 }
 0x5d2   :  { %8331 = vtanh.f32 %v3829_v19  ;;  %v3783_v23 = vadd.f32 %v3782_v1, %v12724_v39  ;;  %v7594_v47 = vpop.f32.mrb[167].mxu1  ;;  %v3439_v17 = vadd.f32 0.5, %v3435_v4 }
 0x5d3   :  { %v8314_v15 = vpop.eup %8313  ;;  %v3449_v46 = vadd.f32 %v3445_v31, %v3402_v30 }
 0x5d4   :  { %v8316_v13 = vpop.eup %8315  ;;  %v3830_v9 = vadd.f32 %v11357_v59, %v3783_v23  ;;  %v3406_v28 = vpop.f32.mrb[168].mxu0  ;;  %v3454_v2 = vsub.f32 %v10976_v32, %v8314_v15 }
 0x5d5   :  { %v8318_v20 = vpop.eup %8317  ;;  %8333 = vtanh.f32 %v3449_v46  ;;  %v3407_v56 = vadd.f32 %v3406_v28, %v3204_v61  ;;  %v3787_v49 = vpop.f32.mrb[168].mxu1  ;;  %v3835_v27 = vsub.f32 %v10979_v63, %v8316_v13 }
 0x5d6   :  { %v7536_v37 = vpop.f32.mrb[169].mxu0  ;;  %v8320_v43 = vpop.eup %8319  ;;  %8335 = vtanh.f32 %v3830_v9  ;;  %v3788_v31 = vadd.f32 %v3787_v49, %v3585_v6  ;;  %v3458_v5 = vmul.f32 %v3454_v2, %v3438_v12  ;;  %v3436_v25 = vmul.f32 0.5, %v8318_v20 }
 0x5d7   :  { %v7597_v29 = vpop.f32.mrb[169].mxu1  ;;  %v8322_v33 = vpop.eup %8321  ;;  %3847 = vst [vmem:[#allocation2 + $0x3] sm:$0x1] %v3407_v56  ;;  %v3839_v44 = vmul.f32 %v3835_v27, %v3819_v48  ;;  %v3817_v63 = vmul.f32 0.5, %v8320_v43 }
 0x5d8   :  { %v8324_v59 = vpop.eup %8323  ;;  %3848 = vst [vmem:[#allocation3 + $0x4] sm:$0x1] %v3788_v31  ;;  %v3455_v32 = vsub.f32 %v10981_v42, %v8322_v33  ;;  %v11375_v8 = vadd.f32 %v8314_v15, %v3458_v5  ;;  %v3440_v23 = vadd.f32 0.5, %v3436_v25  ;;  %v6528_v5 = vld [vmem:[%s12278_s1 + $0x14] sm:$0x7] }
 0x5d9   :  { %v8326_v19 = vpop.eup %8325  ;;  %v3836_v14 = vsub.f32 %v10984_v16, %v8324_v59  ;;  %v11378_v7 = vadd.f32 %v8316_v13, %v3839_v44  ;;  %v3821_v15 = vadd.f32 0.5, %v3817_v63  ;;  %v3867_v29 = vld [vmem:[%s12279_s2 + $0x80] sm:$0x1] }
 0x5da   :  { %v8328_v30 = vpop.eup %8327  ;;  %v3459_v1 = vmul.f32 %v3455_v32, %v3439_v17  ;;  %v3437_v47 = vmul.f32 0.5, %v8326_v19 }
 0x5db   :  { %v8330_v52 = vpop.eup %8329  ;;  %v3840_v36 = vmul.f32 %v3836_v14, %v3820_v62  ;;  %v3818_v12 = vmul.f32 0.5, %v8328_v30  ;;  %v12741_v14 = vld [vmem:[#allocation121_spill] sm:$0xff] }
 0x5dc   :  { %v8332_v39 = vpop.eup %8331  ;;  %v11380_v6 = vadd.f32 %v8322_v33, %v3459_v1  ;;  %v3456_v42 = vsub.f32 %v10992_v58, %v8330_v52  ;;  %v3441_v2 = vadd.f32 0.5, %v3437_v47  ;;  %v4248_v33 = vld [vmem:[%s12280_s3 + $0x80] sm:$0x1] }
 0x5dd   :  { %v11383_v46 = vadd.f32 %v8324_v59, %v3840_v36  ;;  %v3837_v61 = vsub.f32 %v10996_v60, %v8332_v39  ;;  %v3822_v21 = vadd.f32 0.5, %v3818_v12 }
 0x5de   :  { %v8043_v16 = vpack.c.bf16 %v11380_v6, %v11375_v8  ;;  %v3460_v13 = vmul.f32 %v3456_v42, %v3440_v23 }
 0x5df   :  { %v8334_v48 = vpop.eup %8333  ;;  %v8049_v4 = vpack.c.bf16 %v11383_v46, %v11378_v7  ;;  %v3841_v9 = vmul.f32 %v3837_v61, %v3821_v15  ;;  %v12743_v15 = vld [vmem:[#allocation120_spill] sm:$0xff] }
 0x5e0   :  { %v8336_v28 = vpop.eup %8335  ;;  %8044 = vmatpush3.bf16.msra.mxu0 %v8043_v16  ;;  %v3457_v58 = vsub.f32 %v10999_v18, %v8334_v48  ;;  %v11391_v20 = vadd.f32 %v8330_v52, %v3460_v13  ;;  %v12742_v52 = vld [vmem:[#allocation123_spill] sm:$0xff]  ;;  %v12744_v13 = vld [vmem:[#allocation122_spill] sm:$0xff] }
 0x5e1   :  { %8050 = vmatpush3.bf16.msra.mxu1 %v8049_v4  ;;  %8045 = vmatprep.subr.bf16.mxu0 %v12558_v50  ;;  %v3838_v60 = vsub.f32 %v11001_v45, %v8336_v28  ;;  %v11395_v56 = vadd.f32 %v8332_v39, %v3841_v9  ;;  %v6509_v45 = vld [vmem:[%s12277_s0 + $0x14] sm:$0x7] }
 0x5e2   :  { %8051 = vmatprep.subr.bf16.mxu1 %v12558_v50  ;;  %v3461_v49 = vmul.f32 %v3457_v58, %v3441_v2  ;;  %v12745_v58 = vld [vmem:[#allocation125_spill] sm:$0xff] }
 0x5e3   :  { %v3842_v27 = vmul.f32 %v3838_v60, %v3822_v21 }
 0x5e4   :  { %v11398_v37 = vadd.f32 %v8334_v48, %v3461_v49 }
 0x5e5   :  { %v11400_v43 = vadd.f32 %v8336_v28, %v3842_v27  ;;  %v12746_v27 = vld [vmem:[#allocation127_spill] sm:$0xff] }
 0x5e6   :  { %v8046_v18 = vpack.c.bf16 %v11398_v37, %v11391_v20 }
 0x5e7   :  { %v8052_v31 = vpack.c.bf16 %v11400_v43, %v11395_v56 }
 0x5e8   :  { %8047 = vmatpush3.bf16.msra.mxu0 %v8046_v18 }
 0x5e9   :  { %8053 = vmatpush3.bf16.msra.mxu1 %v8052_v31  ;;  %7606 = vmatprep.subr.mxu0 %v12564_v10 }
 0x5ea   :  { %7667 = vmatprep.subr.mxu1 %v12564_v10 }
 0x5ec   :  { %7607 = vmatpush3.msk.msra.mxu0 %vm201_vm1, %v6509_v45 }
 0x5ed   :  { %7668 = vmatpush3.msk.msra.mxu1 %vm201_vm1, %v6528_v5  ;;  %7609 = vmatmul.mubr.msk.f32.vlgmr.msra.gmra.mrb[170].mxu0 %vm149_vm2, %v11018_v53  ;;  %v12725_v53 = vld [vmem:[#allocation29_spill] sm:$0xff] }
 0x5ee   :  { %7670 = vmatmul.mubr.msk.f32.vlgmr.msra.gmra.mrb[170].mxu1 %vm149_vm2, %v11023_v11  ;;  %7611 = vmatprep.mubr.msk.f32.mxu0 %vm8507_vm0, %v12564_v10  ;;  %v12726_v11 = vld [vmem:[#allocation31_spill] sm:$0xff] }
 0x5ef   :  { %7672 = vmatprep.mubr.msk.f32.mxu1 %vm8507_vm0, %v12564_v10  ;;  %8054 = vmatprep.subr.bf16.mxu0 %v12558_v50 }
 0x5f0   :  { %8060 = vmatprep.subr.bf16.mxu1 %v12558_v50 }
 0x5f1   :  { %7612 = vmatmul.mubr.msk.f32.gmra.mrb[172].mxu0 %vm149_vm2, %v11036_v41  ;;  %v12727_v41 = vld [vmem:[#allocation28_spill] sm:$0xff] }
 0x5f2   :  { %7673 = vmatmul.mubr.msk.f32.gmra.mrb[172].mxu1 %vm149_vm2, %v11043_v55  ;;  %7614 = vmatprep.mubr.msk.f32.mxu0 %vm8507_vm0, %v12564_v10  ;;  %v12728_v55 = vld [vmem:[#allocation30_spill] sm:$0xff] }
 0x5f3   :  { %7675 = vmatprep.mubr.msk.f32.mxu1 %vm8507_vm0, %v12564_v10 }
 0x5f5   :  { %7615 = vmatmul.mubr.msk.f32.gmra.mrb[174].mxu0 %vm149_vm2, %v11056_v51  ;;  %v12729_v51 = vld [vmem:[#allocation33_spill] sm:$0xff] }
 0x5f6   :  { %7676 = vmatmul.mubr.msk.f32.gmra.mrb[174].mxu1 %vm149_vm2, %v11063_v34  ;;  %7617 = vmatprep.mubr.msk.f32.mxu0 %vm8507_vm0, %v12564_v10  ;;  %v12730_v34 = vld [vmem:[#allocation35_spill] sm:$0xff] }
 0x5f7   :  { %7678 = vmatprep.mubr.msk.f32.mxu1 %vm8507_vm0, %v12564_v10 }
 0x5f9   :  { %7618 = vmatmul.mubr.msk.f32.gmra.mrb[176].mxu0 %vm149_vm2, %v11074_v57  ;;  %v12731_v57 = vld [vmem:[#allocation32_spill] sm:$0xff] }
 0x5fa   :  { %7679 = vmatmul.mubr.msk.f32.gmra.mrb[176].mxu1 %vm149_vm2, %v11081_v54  ;;  %7620 = vmatprep.mubr.msk.f32.mxu0 %vm8507_vm0, %v12564_v10  ;;  %v12732_v54 = vld [vmem:[#allocation34_spill] sm:$0xff] }
 0x5fb   :  { %7681 = vmatprep.mubr.msk.f32.mxu1 %vm8507_vm0, %v12564_v10 }
 0x5fd   :  { %7621 = vmatmul.mubr.msk.f32.gmra.mrb[178].mxu0 %vm149_vm2, %v11092_v38  ;;  %v12733_v38 = vld [vmem:[#allocation8_spill] sm:$0xff] }
 0x5fe   :  { %7682 = vmatmul.mubr.msk.f32.gmra.mrb[178].mxu1 %vm149_vm2, %v11099_v24  ;;  %7623 = vmatprep.mubr.msk.f32.mxu0 %vm8507_vm0, %v12564_v10  ;;  %v12734_v24 = vld [vmem:[#allocation10_spill] sm:$0xff] }
 0x5ff   :  { %7684 = vmatprep.mubr.msk.f32.mxu1 %vm8507_vm0, %v12564_v10 }
 0x601   :  { %7624 = vmatmul.mubr.msk.f32.gmra.mrb[180].mxu0 %vm149_vm2, %v11110_v26  ;;  %v12735_v26 = vld [vmem:[#allocation9_spill] sm:$0xff] }
 0x602   :  { %7685 = vmatmul.mubr.msk.f32.gmra.mrb[180].mxu1 %vm149_vm2, %v11117_v40  ;;  %7626 = vmatprep.mubr.msk.f32.mxu0 %vm8507_vm0, %v12564_v10  ;;  %v12736_v40 = vld [vmem:[#allocation37_spill] sm:$0xff] }
 0x603   :  { %7687 = vmatprep.mubr.msk.f32.mxu1 %vm8507_vm0, %v12564_v10 }
 0x605   :  { %7627 = vmatmul.mubr.msk.f32.gmra.mrb[182].mxu0 %vm149_vm2, %v11128_v3  ;;  %v12737_v3 = vld [vmem:[#allocation12_spill] sm:$0xff] }
 0x606   :  { %7688 = vmatmul.mubr.msk.f32.gmra.mrb[182].mxu1 %vm149_vm2, %v11135_v22  ;;  %7629 = vmatprep.mubr.msk.f32.mxu0 %vm8507_vm0, %v12564_v10  ;;  %v12738_v22 = vld [vmem:[#allocation11_spill] sm:$0xff] }
 0x607   :  { %7690 = vmatprep.mubr.msk.f32.mxu1 %vm8507_vm0, %v12564_v10 }
 0x609   :  { %7630 = vmatmul.mubr.msk.f32.gmra.mrb[184].mxu0 %vm149_vm2, %v11146_v35  ;;  %v12739_v35 = vld [vmem:[#allocation45_spill] sm:$0xff] }
 0x60a   :  { %7691 = vmatmul.mubr.msk.f32.gmra.mrb[184].mxu1 %vm149_vm2, %v11153_v0  ;;  %7632 = vmatprep.mubr.msk.f32.mxu0 %vm8507_vm0, %v12564_v10  ;;  %v12740_v0 = vld [vmem:[#allocation51_spill] sm:$0xff] }
 0x60b   :  { %7693 = vmatprep.mubr.msk.f32.mxu1 %vm8507_vm0, %v12564_v10 }
 0x60d   :  { %7633 = vmatmul.mubr.msk.f32.gmra.mrb[186].mxu0 %vm149_vm2, %v12725_v53 }
 0x60e   :  { %7694 = vmatmul.mubr.msk.f32.gmra.mrb[186].mxu1 %vm149_vm2, %v12726_v11  ;;  %7635 = vmatprep.mubr.msk.f32.mxu0 %vm8507_vm0, %v12564_v10  ;;  %v12747_v11 = vld [vmem:[#allocation124_spill] sm:$0xff] }
 0x60f   :  { %7696 = vmatprep.mubr.msk.f32.mxu1 %vm8507_vm0, %v12564_v10 }
 0x611   :  { %7636 = vmatmul.mubr.msk.f32.gmra.mrb[188].mxu0 %vm149_vm2, %v12727_v41 }
 0x612   :  { %7697 = vmatmul.mubr.msk.f32.gmra.mrb[188].mxu1 %vm149_vm2, %v12728_v55  ;;  %7638 = vmatprep.mubr.msk.f32.mxu0 %vm8507_vm0, %v12564_v10 }
 0x613   :  { %7699 = vmatprep.mubr.msk.f32.mxu1 %vm8507_vm0, %v12564_v10 }
 0x615   :  { %7639 = vmatmul.mubr.msk.f32.gmra.mrb[190].mxu0 %vm149_vm2, %v12729_v51 }
 0x616   :  { %7700 = vmatmul.mubr.msk.f32.gmra.mrb[190].mxu1 %vm149_vm2, %v12730_v34  ;;  %7641 = vmatprep.mubr.msk.f32.mxu0 %vm8507_vm0, %v12564_v10  ;;  %v12748_v34 = vld [vmem:[#allocation126_spill] sm:$0xff] }
 0x617   :  { %7702 = vmatprep.mubr.msk.f32.mxu1 %vm8507_vm0, %v12564_v10 }
 0x619   :  { %7642 = vmatmul.mubr.msk.f32.gmra.mrb[192].mxu0 %vm149_vm2, %v12731_v57 }
 0x61a   :  { %7703 = vmatmul.mubr.msk.f32.gmra.mrb[192].mxu1 %vm149_vm2, %v12732_v54  ;;  %7644 = vmatprep.mubr.msk.f32.mxu0 %vm8507_vm0, %v12564_v10 }
 0x61b   :  { %7705 = vmatprep.mubr.msk.f32.mxu1 %vm8507_vm0, %v12564_v10 }
 0x61d   :  { %7645 = vmatmul.mubr.msk.f32.gmra.mrb[194].mxu0 %vm149_vm2, %v12733_v38 }
 0x61e   :  { %7706 = vmatmul.mubr.msk.f32.gmra.mrb[194].mxu1 %vm149_vm2, %v12734_v24  ;;  %7647 = vmatprep.mubr.msk.f32.mxu0 %vm8507_vm0, %v12564_v10 }
 0x61f   :  { %7708 = vmatprep.mubr.msk.f32.mxu1 %vm8507_vm0, %v12564_v10 }
 0x621   :  { %7648 = vmatmul.mubr.msk.f32.gmra.mrb[196].mxu0 %vm149_vm2, %v12735_v26 }
 0x622   :  { %7709 = vmatmul.mubr.msk.f32.gmra.mrb[196].mxu1 %vm149_vm2, %v12736_v40  ;;  %7650 = vmatprep.mubr.msk.f32.mxu0 %vm8507_vm0, %v12564_v10 }
 0x623   :  { %7711 = vmatprep.mubr.msk.f32.mxu1 %vm8507_vm0, %v12564_v10 }
 0x625   :  { %7651 = vmatmul.mubr.msk.f32.gmra.mrb[198].mxu0 %vm149_vm2, %v12737_v3 }
 0x626   :  { %7712 = vmatmul.mubr.msk.f32.gmra.mrb[198].mxu1 %vm149_vm2, %v12738_v22  ;;  %7653 = vmatprep.mubr.msk.f32.mxu0 %vm8507_vm0, %v12564_v10 }
 0x627   :  { %7714 = vmatprep.mubr.msk.f32.mxu1 %vm8507_vm0, %v12564_v10 }
 0x629   :  { %7654 = vmatmul.mubr.msk.f32.gmra.mrb[200].mxu0 %vm149_vm2, %v12739_v35 }
 0x62a   :  { %7715 = vmatmul.mubr.msk.f32.gmra.mrb[200].mxu1 %vm149_vm2, %v12740_v0  ;;  %7656 = vmatprep.mubr.msk.f32.mxu0 %vm8507_vm0, %v12564_v10 }
 0x62b   :  { %7717 = vmatprep.mubr.msk.f32.mxu1 %vm8507_vm0, %v12564_v10 }
 0x62d   :  { %7657 = vmatmul.mubr.msk.f32.gmra.mrb[202].mxu0 %vm149_vm2, %v3867_v29 }
 0x62e   :  { %7718 = vmatmul.mubr.msk.f32.gmra.mrb[202].mxu1 %vm149_vm2, %v4248_v33  ;;  %7730 = vmatprep.mubr.msk.f32.mxu0 %vm8507_vm0, %v12564_v10 }
 0x62f   :  { %7791 = vmatprep.mubr.msk.f32.mxu1 %vm8507_vm0, %v12564_v10 }
 0x6c0   :  { %v4090_v44 = vpop.f32.mrb[170].mxu0 }
 0x6c1   :  { %v4471_v59 = vpop.f32.mrb[170].mxu1  ;;  %v7610_v17 = vpop.f32.mrb[171].mxu0  ;;  %v4091_v30 = vadd.f32 %v4090_v44, %v12741_v14 }
 0x6c2   :  { %v7671_v25 = vpop.f32.mrb[171].mxu1  ;;  %v4472_v36 = vadd.f32 %v4471_v59, %v12742_v52 }
 0x6c3   :  { %v4174_v42 = vmul.f32 0.5, %v4091_v30 }
 0x6c4   :  { %v4095_v32 = vpop.f32.mrb[172].mxu0  ;;  %v4555_v16 = vmul.f32 0.5, %v4472_v36 }
 0x6c5   :  { %v4476_v19 = vpop.f32.mrb[172].mxu1  ;;  %v7613_v62 = vpop.f32.mrb[173].mxu0  ;;  %v4096_v12 = vadd.f32 %v4095_v32, %v12743_v15  ;;  %8337 = vtanh.f32 %v4174_v42  ;;  %v12750_v15 = vld [vmem:[#allocation135_spill] sm:$0xff] }
 0x6c6   :  { %v7674_v63 = vpop.f32.mrb[173].mxu1  ;;  %v4477_v48 = vadd.f32 %v4476_v19, %v12744_v13  ;;  %8339 = vtanh.f32 %v4555_v16 }
 0x6c7   :  { %v4175_v2 = vmul.f32 0.5, %v4096_v12 }
 0x6c8   :  { %v4100_v1 = vpop.f32.mrb[174].mxu0  ;;  %v4556_v49 = vmul.f32 0.5, %v4477_v48 }
 0x6c9   :  { %v4481_v39 = vpop.f32.mrb[174].mxu1  ;;  %v7616_v23 = vpop.f32.mrb[175].mxu0  ;;  %v4101_v21 = vadd.f32 %v4100_v1, %v12745_v58  ;;  %8341 = vtanh.f32 %v4175_v2  ;;  %v12749_v1 = vld [vmem:[#allocation131_spill] sm:$0xff]  ;;  %v12751_v2 = vld [vmem:[#allocation130_spill] sm:$0xff] }
 0x6ca   :  { %v7677_v47 = vpop.f32.mrb[175].mxu1  ;;  %v4482_v18 = vadd.f32 %v4481_v39, %v12746_v27  ;;  %8343 = vtanh.f32 %v4556_v49 }
 0x6cb   :  { %v4176_v53 = vmul.f32 0.5, %v4101_v21 }
 0x6cc   :  { %v4105_v61 = vpop.f32.mrb[176].mxu0  ;;  %v4557_v51 = vmul.f32 0.5, %v4482_v18 }
 0x6cd   :  { %v4486_v4 = vpop.f32.mrb[176].mxu1  ;;  %v7619_v9 = vpop.f32.mrb[177].mxu0  ;;  %v4106_v41 = vadd.f32 %v4105_v61, %v12747_v11  ;;  %8345 = vtanh.f32 %v4176_v53  ;;  %v12753_v11 = vld [vmem:[#allocation134_spill] sm:$0xff] }
 0x6ce   :  { %v7680_v28 = vpop.f32.mrb[177].mxu1  ;;  %v4487_v57 = vadd.f32 %v4486_v4, %v12748_v34  ;;  %8347 = vtanh.f32 %v4557_v51 }
 0x6cf   :  { %v4177_v26 = vmul.f32 0.5, %v4106_v41  ;;  %v8338_v0 = vpop.eup %8337 }
 0x6d0   :  { %v4110_v60 = vpop.f32.mrb[178].mxu0  ;;  %v4558_v3 = vmul.f32 0.5, %v4487_v57  ;;  %v8340_v33 = vpop.eup %8339  ;;  %v4182_v59 = vmul.f32 0.5, %v8338_v0 }
 0x6d1   :  { %v4491_v31 = vpop.f32.mrb[178].mxu1  ;;  %v7622_v45 = vpop.f32.mrb[179].mxu0  ;;  %8349 = vtanh.f32 %v4177_v26  ;;  %v4563_v19 = vmul.f32 0.5, %v8340_v33 }
 0x6d2   :  { %v7683_v5 = vpop.f32.mrb[179].mxu1  ;;  %8351 = vtanh.f32 %v4558_v3  ;;  %v4186_v36 = vadd.f32 0.5, %v4182_v59 }
 0x6d3   :  { %v8342_v32 = vpop.eup %8341  ;;  %v4567_v61 = vadd.f32 0.5, %v4563_v19  ;;  %v12752_v5 = vld [vmem:[#allocation129_spill] sm:$0xff] }
 0x6d4   :  { %v11565_v55 = vpop.f32.mrb[180].mxu0  ;;  %v8344_v63 = vpop.eup %8343  ;;  %v4183_v30 = vmul.f32 0.5, %v8342_v32  ;;  %v4111_v53 = vadd.f32 %v4110_v60, %v12752_v5 }
 0x6d5   :  { %v11568_v54 = vpop.f32.mrb[180].mxu1  ;;  %v7625_v38 = vpop.f32.mrb[181].mxu0  ;;  %v4564_v42 = vmul.f32 0.5, %v8344_v63  ;;  %v12756_v63 = vld [vmem:[#allocation147_spill] sm:$0xff] }
 0x6d6   :  { %v7686_v24 = vpop.f32.mrb[181].mxu1  ;;  %v4187_v21 = vadd.f32 0.5, %v4183_v30  ;;  %v12754_v38 = vld [vmem:[#allocation133_spill] sm:$0xff] }
 0x6d7   :  { %v8346_v47 = vpop.eup %8345  ;;  %v4568_v51 = vadd.f32 0.5, %v4564_v42  ;;  %v4492_v24 = vadd.f32 %v4491_v31, %v12754_v38 }
 0x6d8   :  { %v11570_v40 = vpop.f32.mrb[182].mxu0  ;;  %v8348_v13 = vpop.eup %8347  ;;  %v4184_v28 = vmul.f32 0.5, %v8346_v47 }
 0x6d9   :  { %v11572_v22 = vpop.f32.mrb[182].mxu1  ;;  %v7628_v35 = vpop.f32.mrb[183].mxu0  ;;  %v4565_v45 = vmul.f32 0.5, %v8348_v13 }
 0x6da   :  { %v7689_v29 = vpop.f32.mrb[183].mxu1  ;;  %v4188_v59 = vadd.f32 0.5, %v4184_v28 }
 0x6db   :  { %v8350_v18 = vpop.eup %8349  ;;  %v12755_v29 = vld [vmem:[#allocation143_spill] sm:$0xff] }
 0x6dc   :  { %v11574_v44 = vpop.f32.mrb[184].mxu0  ;;  %v8352_v57 = vpop.eup %8351  ;;  %v4185_v0 = vmul.f32 0.5, %v8350_v18 }
 0x6dd   :  { %v11576_v17 = vpop.f32.mrb[184].mxu1  ;;  %v7631_v25 = vpop.f32.mrb[185].mxu0  ;;  %v4566_v19 = vmul.f32 0.5, %v8352_v57  ;;  %v12764_v57 = vld [vmem:[#allocation139_spill] sm:$0xff] }
 0x6de   :  { %v7692_v62 = vpop.f32.mrb[185].mxu1 }
 0x6df   :  { %v4190_v62 = vmul.f32 0.5, %v4111_v53 }
 0x6e0   :  { %v4130_v14 = vpop.f32.mrb[186].mxu0 }
 0x6e1   :  { %v4131_v52 = vadd.f32 %v4130_v14, %v12749_v1  ;;  %v4511_v39 = vpop.f32.mrb[186].mxu1  ;;  %v7634_v23 = vpop.f32.mrb[187].mxu0  ;;  %v4569_v14 = vadd.f32 0.5, %v4565_v45  ;;  %v4571_v1 = vmul.f32 0.5, %v4492_v24  ;;  %8353 = vtanh.f32 %v4190_v62 }
 0x6e2   :  { %v4512_v12 = vadd.f32 %v4511_v39, %v12750_v15  ;;  %v7695_v16 = vpop.f32.mrb[187].mxu1  ;;  %v12758_v39 = vld [vmem:[#allocation132_spill] sm:$0xff]  ;;  %v12759_v15 = vld [vmem:[#allocation142_spill] sm:$0xff] }
 0x6e3   :  { %v4206_v48 = vmul.f32 %v4186_v36, %v4131_v52  ;;  %v12757_v52 = vld [vmem:[#allocation128_spill] sm:$0xff]  ;;  %v4497_v23 = vadd.f32 %v11568_v54, %v12758_v39  ;;  %8355 = vtanh.f32 %v4571_v1  ;;  %v12762_v54 = vld [vmem:[#allocation145_spill] sm:$0xff] }
 0x6e4   :  { %v4587_v4 = vmul.f32 %v4567_v61, %v4512_v12  ;;  %v4135_v9 = vpop.f32.mrb[188].mxu0  ;;  %v4116_v36 = vadd.f32 %v11565_v55, %v12757_v52  ;;  %v4189_v61 = vadd.f32 0.5, %v4185_v0  ;;  %v4502_v45 = vadd.f32 %v11572_v22, %v12762_v54  ;;  %v12765_v0 = vld [vmem:[#allocation140_spill] sm:$0xff] }
 0x6e5   :  { %v4136_v58 = vadd.f32 %v4135_v9, %v12751_v2  ;;  %v4516_v49 = vpop.f32.mrb[188].mxu1  ;;  %v7637_v27 = vpop.f32.mrb[189].mxu0  ;;  %v12760_v9 = vld [vmem:[#allocation146_spill] sm:$0xff]  ;;  %v4570_v2 = vadd.f32 0.5, %v4566_v19  ;;  %v4572_v18 = vmul.f32 0.5, %v4497_v23  ;;  %v12767_v19 = vld [vmem:[#allocation136_spill] sm:$0xff] }
 0x6e6   :  { %v4517_v41 = vadd.f32 %v4516_v49, %v12753_v11  ;;  %v7698_v34 = vpop.f32.mrb[189].mxu1  ;;  %v12761_v49 = vld [vmem:[#allocation141_spill] sm:$0xff] }
 0x6e7   :  { %v4207_v26 = vmul.f32 %v4187_v21, %v4136_v58  ;;  %v4191_v21 = vmul.f32 0.5, %v4116_v36  ;;  %v4121_v55 = vadd.f32 %v11570_v40, %v12761_v49  ;;  %v12763_v11 = vld [vmem:[#allocation137_spill] sm:$0xff]  ;;  %v4126_v40 = vadd.f32 %v11574_v44, %v12765_v0 }
 0x6e8   :  { %v4588_v3 = vmul.f32 %v4568_v51, %v4517_v41  ;;  %v4140_v35 = vpop.f32.mrb[190].mxu0 }
 0x6e9   :  { %v4141_v33 = vadd.f32 %v4140_v35, %v12755_v29  ;;  %v4521_v25 = vpop.f32.mrb[190].mxu1  ;;  %v7640_v32 = vpop.f32.mrb[191].mxu0  ;;  %8357 = vtanh.f32 %v4191_v21  ;;  %v4192_v35 = vmul.f32 0.5, %v4121_v55  ;;  %v4193_v52 = vmul.f32 0.5, %v4126_v40 }
 0x6ea   :  { %v4522_v60 = vadd.f32 %v4521_v25, %v12756_v63  ;;  %v7701_v30 = vpop.f32.mrb[191].mxu1  ;;  %8359 = vtanh.f32 %v4572_v18 }
 0x6eb   :  { %v4208_v31 = vmul.f32 %v4188_v59, %v4141_v33  ;;  %v4573_v33 = vmul.f32 0.5, %v4502_v45  ;;  %v12766_v59 = vld [vmem:[#allocation144_spill] sm:$0xff]  ;;  %v12772_v45 = vld [vmem:[#allocation150_spill] sm:$0xff] }
 0x6ec   :  { %v4589_v47 = vmul.f32 %v4569_v14, %v4522_v60  ;;  %v4145_v42 = vpop.f32.mrb[192].mxu0  ;;  %v4507_v22 = vadd.f32 %v11576_v17, %v12766_v59  ;;  %v12768_v14 = vld [vmem:[#allocation138_spill] sm:$0xff] }
 0x6ed   :  { %v4146_v12 = vadd.f32 %v4145_v42, %v12759_v15  ;;  %v4526_v16 = vpop.f32.mrb[192].mxu1  ;;  %v7643_v13 = vpop.f32.mrb[193].mxu0 }
 0x6ee   :  { %v4527_v28 = vadd.f32 %v4526_v16, %v12760_v9  ;;  %v7704_v58 = vpop.f32.mrb[193].mxu1  ;;  %v4574_v36 = vmul.f32 0.5, %v4507_v22 }
 0x6ef   :  { %v4209_v27 = vmul.f32 %v4189_v61, %v4146_v12  ;;  %v12770_v61 = vld [vmem:[#allocation151_spill] sm:$0xff] }
 0x6f0   :  { %v11596_v5 = vmul.f32 %v4570_v2, %v4527_v28  ;;  %v4150_v53 = vpop.f32.mrb[194].mxu0 }
 0x6f1   :  { %v4151_v41 = vadd.f32 %v4150_v53, %v12763_v11  ;;  %v4531_v51 = vpop.f32.mrb[194].mxu1  ;;  %v7646_v34 = vpop.f32.mrb[195].mxu0 }
 0x6f2   :  { %v4532_v38 = vadd.f32 %v4531_v51, %v12764_v57  ;;  %v7707_v24 = vpop.f32.mrb[195].mxu1  ;;  %v4349_v51 = vpop.permute.xlu1 %4348 }
 0x6f3   :  { %v4210_v29 = vadd.f32 %v4206_v48, %v4151_v41  ;;  %v8354_v48 = vpop.eup %8353 }
 0x6f4   :  { %v4591_v25 = vadd.f32 %v4587_v4, %v4532_v38  ;;  %v4155_v32 = vpop.f32.mrb[196].mxu0  ;;  %v8356_v17 = vpop.eup %8355  ;;  %v12769_v4 = vld [vmem:[#allocation149_spill] sm:$0xff]  ;;  %v4198_v9 = vmul.f32 0.5, %v8354_v48 }
 0x6f5   :  { %8361 = vtanh.f32 %v4210_v29  ;;  %v4156_v62 = vadd.f32 %v4155_v32, %v12767_v19  ;;  %v4536_v63 = vpop.f32.mrb[196].mxu1  ;;  %v7649_v60 = vpop.f32.mrb[197].mxu0  ;;  %v4579_v2 = vmul.f32 0.5, %v8356_v17 }
 0x6f6   :  { %8363 = vtanh.f32 %v4591_v25  ;;  %v4537_v30 = vadd.f32 %v4536_v63, %v12768_v14  ;;  %v7710_v1 = vpop.f32.mrb[197].mxu1  ;;  %v8358_v21 = vpop.eup %8357  ;;  %v4202_v34 = vadd.f32 0.5, %v4198_v9 }
 0x6f7   :  { %8365 = vtanh.f32 %v4192_v35  ;;  %v4211_v44 = vadd.f32 %v4207_v26, %v4156_v62  ;;  %v8360_v54 = vpop.eup %8359  ;;  %v3968_v38 = vpop.permute.xlu0 %3967  ;;  %v4583_v24 = vadd.f32 0.5, %v4579_v2 }
 0x6f8   :  { %8367 = vtanh.f32 %v4573_v33  ;;  %v4592_v39 = vadd.f32 %v4588_v3, %v4537_v30  ;;  %v4160_v23 = vpop.f32.mrb[198].mxu0  ;;  %v12771_v3 = vld [vmem:[#allocation148_spill] sm:$0xff]  ;;  %v4580_v33 = vmul.f32 0.5, %v8360_v54 }
 0x6f9   :  { %8369 = vtanh.f32 %v4211_v44  ;;  %v4161_v42 = vadd.f32 %v4160_v23, %v12769_v4  ;;  %v4541_v15 = vpop.f32.mrb[198].mxu1  ;;  %v7652_v12 = vpop.f32.mrb[199].mxu0 }
 0x6fa   :  { %8371 = vtanh.f32 %v4592_v39  ;;  %v4542_v16 = vadd.f32 %v4541_v15, %v12770_v61  ;;  %v7713_v13 = vpop.f32.mrb[199].mxu1  ;;  %v4584_v48 = vadd.f32 0.5, %v4580_v33  ;;  %v11730_v33 = vld [vmem:[%s12279_s2 + $0x20] sm:$0xff] }
 0x6fb   :  { %8373 = vtanh.f32 %v4193_v52  ;;  %v4212_v28 = vadd.f32 %v4208_v31, %v4161_v42 }
 0x6fc   :  { %8375 = vtanh.f32 %v4574_v36  ;;  %v4593_v26 = vadd.f32 %v4589_v47, %v4542_v16  ;;  %v4165_v58 = vpop.f32.mrb[200].mxu0  ;;  %v4199_v47 = vmul.f32 0.5, %v8358_v21 }
 0x6fd   :  { %8377 = vtanh.f32 %v4212_v28  ;;  %v4166_v49 = vadd.f32 %v4165_v58, %v12771_v3  ;;  %v4546_v55 = vpop.f32.mrb[200].mxu1  ;;  %v7655_v18 = vpop.f32.mrb[201].mxu0 }
 0x6fe   :  { %8379 = vtanh.f32 %v4593_v26  ;;  %v4547_v53 = vadd.f32 %v4546_v55, %v12772_v45  ;;  %v7716_v11 = vpop.f32.mrb[201].mxu1  ;;  %v4203_v30 = vadd.f32 0.5, %v4199_v47  ;;  %v11681_v47 = vld [vmem:[%s12280_s3 + $0x8] sm:$0xff] }
 0x6ff   :  { %v8362_v41 = vpop.eup %8361  ;;  %v4213_v57 = vadd.f32 %v4209_v27, %v4166_v49 }
 0x700   :  { %v8364_v31 = vpop.eup %8363  ;;  %v4594_v35 = vadd.f32 %v11596_v5, %v4547_v53  ;;  %v4170_v0 = vpop.f32.mrb[202].mxu0  ;;  %v4218_v40 = vsub.f32 %v11375_v8, %v8362_v41 }
 0x701   :  { %v8366_v29 = vpop.eup %8365  ;;  %8381 = vtanh.f32 %v4213_v57  ;;  %v4171_v59 = vadd.f32 %v4170_v0, %v3968_v38  ;;  %v4551_v22 = vpop.f32.mrb[202].mxu1  ;;  %v4599_v25 = vsub.f32 %v11378_v7, %v8364_v31  ;;  %v6566_v57 = vld [vmem:[%s12278_s1 + $0x18] sm:$0x7]  ;;  %v11661_v38 = vld [vmem:[%s12280_s3] sm:$0xff]  ;;  %v11701_v0 = vld [vmem:[%s12280_s3 + $0x10] sm:$0xff] }
 0x702   :  { %v7658_v32 = vpop.f32.mrb[203].mxu0  ;;  %v8368_v19 = vpop.eup %8367  ;;  %8383 = vtanh.f32 %v4594_v35  ;;  %v4552_v27 = vadd.f32 %v4551_v22, %v4349_v51  ;;  %v4222_v62 = vmul.f32 %v4218_v40, %v4202_v34  ;;  %v4200_v1 = vmul.f32 0.5, %v8366_v29  ;;  %v11694_v35 = vld [vmem:[%s12279_s2 + $0x10] sm:$0xff]  ;;  %v11712_v40 = vld [vmem:[%s12279_s2 + $0x18] sm:$0xff]  ;;  %v11748_v22 = vld [vmem:[%s12279_s2 + $0x28] sm:$0xff] }
 0x703   :  { %v7719_v63 = vpop.f32.mrb[203].mxu1  ;;  %v8370_v60 = vpop.eup %8369  ;;  %4611 = vst [vmem:[#allocation2 + $0x4] sm:$0x1] %v4171_v59  ;;  %v4603_v14 = vmul.f32 %v4599_v25, %v4583_v24  ;;  %v4581_v7 = vmul.f32 0.5, %v8368_v19  ;;  %v11674_v24 = vld [vmem:[%s12279_s2 + $0x8] sm:$0xff]  ;;  %v11719_v29 = vld [vmem:[%s12280_s3 + $0x18] sm:$0xff] }
 0x704   :  { %v8372_v5 = vpop.eup %8371  ;;  %4612 = vst [vmem:[#allocation3 + $0x3] sm:$0x1] %v4552_v27  ;;  %v4219_v8 = vsub.f32 %v11380_v6, %v8370_v60  ;;  %v11614_v52 = vadd.f32 %v8362_v41, %v4222_v62  ;;  %v4204_v12 = vadd.f32 0.5, %v4200_v1  ;;  %v11737_v59 = vld [vmem:[%s12280_s3 + $0x20] sm:$0xff]  ;;  %v11755_v25 = vld [vmem:[%s12280_s3 + $0x28] sm:$0xff]  ;;  %v11766_v32 = vld [vmem:[%s12279_s2 + $0x30] sm:$0xff] }
 0x705   :  { %v8374_v44 = vpop.eup %8373  ;;  %v4600_v36 = vsub.f32 %v11383_v46, %v8372_v5  ;;  %v11617_v39 = vadd.f32 %v8364_v31, %v4603_v14  ;;  %v4585_v13 = vadd.f32 0.5, %v4581_v7  ;;  %v11656_v31 = vld [vmem:[%s12279_s2] sm:$0xff]  ;;  %v11773_v19 = vld [vmem:[%s12280_s3 + $0x30] sm:$0xff]  ;;  %v11784_v27 = vld [vmem:[%s12279_s2 + $0x38] sm:$0xff] }
 0x706   :  { %v8376_v23 = vpop.eup %8375  ;;  %v4223_v17 = vmul.f32 %v4219_v8, %v4203_v30  ;;  %v4201_v61 = vmul.f32 0.5, %v8374_v44  ;;  %v11791_v62 = vld [vmem:[%s12280_s3 + $0x38] sm:$0xff]  ;;  %v11802_v63 = vld [vmem:[%s12279_s2 + $0x40] sm:$0xff]  ;;  %v11820_v14 = vld [vmem:[%s12279_s2 + $0x48] sm:$0xff] }
 0x707   :  { %v8378_v4 = vpop.eup %8377  ;;  %v4604_v42 = vmul.f32 %v4600_v36, %v4584_v48  ;;  %v4582_v9 = vmul.f32 0.5, %v8376_v23  ;;  %12773 = vst [vmem:[#allocation36_spill] sm:$0xff] %v11802_v63  ;;  %12775 = vst [vmem:[#allocation44_spill] sm:$0xff] %v11820_v14  ;;  %v11838_v30 = vld [vmem:[%s12279_s2 + $0x50] sm:$0xff]  ;;  %v11856_v8 = vld [vmem:[%s12279_s2 + $0x58] sm:$0xff] }
 0x708   :  { %v8380_v15 = vpop.eup %8379  ;;  %v11619_v16 = vadd.f32 %v8370_v60, %v4223_v17  ;;  %v4220_v6 = vsub.f32 %v11391_v20, %v8378_v4  ;;  %v4205_v55 = vadd.f32 0.5, %v4201_v61  ;;  %v11809_v60 = vld [vmem:[%s12280_s3 + $0x40] sm:$0xff]  ;;  %12777 = vst [vmem:[#allocation43_spill] sm:$0xff] %v11838_v30  ;;  %v11845_v1 = vld [vmem:[%s12280_s3 + $0x50] sm:$0xff]  ;;  %12779 = vst [vmem:[#allocation39_spill] sm:$0xff] %v11856_v8 }
 0x709   :  { %v11622_v28 = vadd.f32 %v8372_v5, %v4604_v42  ;;  %v4601_v2 = vsub.f32 %v11395_v56, %v8380_v15  ;;  %v4586_v54 = vadd.f32 0.5, %v4582_v9  ;;  %12774 = vst [vmem:[#allocation13_spill] sm:$0xff] %v11809_v60  ;;  %v11827_v5 = vld [vmem:[%s12280_s3 + $0x48] sm:$0xff]  ;;  %12778 = vst [vmem:[#allocation49_spill] sm:$0xff] %v11845_v1  ;;  %v11863_v44 = vld [vmem:[%s12280_s3 + $0x58] sm:$0xff] }
 0x70a   :  { %v8055_v46 = vpack.c.bf16 %v11619_v16, %v11614_v52  ;;  %v4224_v26 = vmul.f32 %v4220_v6, %v4204_v12  ;;  %12776 = vst [vmem:[#allocation50_spill] sm:$0xff] %v11827_v5  ;;  %12780 = vst [vmem:[#allocation41_spill] sm:$0xff] %v11863_v44  ;;  %v11874_v48 = vld [vmem:[%s12279_s2 + $0x60] sm:$0xff]  ;;  %v11892_v36 = vld [vmem:[%s12279_s2 + $0x68] sm:$0xff] }
 0x70b   :  { %v8382_v58 = vpop.eup %8381  ;;  %v8061_v21 = vpack.c.bf16 %v11622_v28, %v11617_v39  ;;  %v4605_v3 = vmul.f32 %v4601_v2, %v4585_v13  ;;  %12781 = vst [vmem:[#allocation42_spill] sm:$0xff] %v11874_v48  ;;  %v11881_v7 = vld [vmem:[%s12280_s3 + $0x60] sm:$0xff]  ;;  %12783 = vst [vmem:[#allocation38_spill] sm:$0xff] %v11892_v36  ;;  %v11899_v23 = vld [vmem:[%s12280_s3 + $0x68] sm:$0xff] }
 0x70c   :  { %v8384_v49 = vpop.eup %8383  ;;  %8056 = vmatpush3.bf16.msra.mxu0 %v8055_v46  ;;  %v4221_v20 = vsub.f32 %v11398_v37, %v8382_v58  ;;  %v11630_v18 = vadd.f32 %v8378_v4, %v4224_v26  ;;  %12782 = vst [vmem:[#allocation48_spill] sm:$0xff] %v11881_v7  ;;  %12784 = vst [vmem:[#allocation40_spill] sm:$0xff] %v11899_v23  ;;  %v11910_v17 = vld [vmem:[%s12279_s2 + $0x70] sm:$0xff]  ;;  %v11928_v42 = vld [vmem:[%s12279_s2 + $0x78] sm:$0xff] }
 0x70d   :  { %8062 = vmatpush3.bf16.msra.mxu1 %v8061_v21  ;;  %8057 = vmatprep.subr.bf16.mxu0 %v12558_v50  ;;  %v4602_v56 = vsub.f32 %v11400_v43, %v8384_v49  ;;  %v11634_v45 = vadd.f32 %v8380_v15, %v4605_v3  ;;  %v6547_v43 = vld [vmem:[%s12277_s0 + $0x18] sm:$0x7]  ;;  %12785 = vst [vmem:[#allocation53_spill] sm:$0xff] %v11910_v17  ;;  %v11917_v4 = vld [vmem:[%s12280_s3 + $0x70] sm:$0xff]  ;;  %12787 = vst [vmem:[#allocation52_spill] sm:$0xff] %v11928_v42 }
 0x70e   :  { %8063 = vmatprep.subr.bf16.mxu1 %v12558_v50  ;;  %v4225_v53 = vmul.f32 %v4221_v20, %v4205_v55  ;;  %12786 = vst [vmem:[#allocation55_spill] sm:$0xff] %v11917_v4  ;;  %v11935_v15 = vld [vmem:[%s12280_s3 + $0x78] sm:$0xff]  ;;  %v4631_v12 = vld [vmem:[%s12279_s2 + $0x80] sm:$0x1]  ;;  %v12789_v3 = vld [vmem:[#allocation153_spill] sm:$0xff] }
 0x70f   :  { %v4606_v11 = vmul.f32 %v4602_v56, %v4586_v54  ;;  %12788 = vst [vmem:[#allocation54_spill] sm:$0xff] %v11935_v15  ;;  %v5012_v61 = vld [vmem:[%s12280_s3 + $0x80] sm:$0x1]  ;;  %v12790_v20 = vld [vmem:[#allocation155_spill] sm:$0xff] }
 0x710   :  { %v11637_v41 = vadd.f32 %v8382_v58, %v4225_v53 }
 0x711   :  { %v11639_v51 = vadd.f32 %v8384_v49, %v4606_v11 }
 0x712   :  { %v8058_v37 = vpack.c.bf16 %v11637_v41, %v11630_v18 }
 0x713   :  { %v8064_v34 = vpack.c.bf16 %v11639_v51, %v11634_v45 }
 0x714   :  { %8059 = vmatpush3.bf16.msra.mxu0 %v8058_v37 }
 0x715   :  { %8065 = vmatpush3.bf16.msra.mxu1 %v8064_v34  ;;  %7728 = vmatprep.subr.mxu0 %v12564_v10  ;;  %v12791_v34 = vld [vmem:[#allocation152_spill] sm:$0xff] }
 0x716   :  { %7789 = vmatprep.subr.mxu1 %v12564_v10 }
 0x718   :  { %7729 = vmatpush3.msk.msra.mxu0 %vm201_vm1, %v6547_v43 }
 0x719   :  { %7790 = vmatpush3.msk.msra.mxu1 %vm201_vm1, %v6566_v57  ;;  %7731 = vmatmul.mubr.msk.f32.vlgmr.msra.gmra.mrb[204].mxu0 %vm149_vm2, %v11656_v31 }
 0x71a   :  { %7792 = vmatmul.mubr.msk.f32.vlgmr.msra.gmra.mrb[204].mxu1 %vm149_vm2, %v11661_v38  ;;  %7733 = vmatprep.mubr.msk.f32.mxu0 %vm8507_vm0, %v12564_v10 }
 0x71b   :  { %7794 = vmatprep.mubr.msk.f32.mxu1 %vm8507_vm0, %v12564_v10  ;;  %8066 = vmatprep.subr.bf16.mxu0 %v12558_v50 }
 0x71c   :  { %8072 = vmatprep.subr.bf16.mxu1 %v12558_v50 }
 0x71d   :  { %7734 = vmatmul.mubr.msk.f32.gmra.mrb[206].mxu0 %vm149_vm2, %v11674_v24 }
 0x71e   :  { %7795 = vmatmul.mubr.msk.f32.gmra.mrb[206].mxu1 %vm149_vm2, %v11681_v47  ;;  %7736 = vmatprep.mubr.msk.f32.mxu0 %vm8507_vm0, %v12564_v10 }
 0x71f   :  { %7797 = vmatprep.mubr.msk.f32.mxu1 %vm8507_vm0, %v12564_v10 }
 0x721   :  { %7737 = vmatmul.mubr.msk.f32.gmra.mrb[208].mxu0 %vm149_vm2, %v11694_v35 }
 0x722   :  { %7798 = vmatmul.mubr.msk.f32.gmra.mrb[208].mxu1 %vm149_vm2, %v11701_v0  ;;  %7739 = vmatprep.mubr.msk.f32.mxu0 %vm8507_vm0, %v12564_v10 }
 0x723   :  { %7800 = vmatprep.mubr.msk.f32.mxu1 %vm8507_vm0, %v12564_v10 }
 0x725   :  { %7740 = vmatmul.mubr.msk.f32.gmra.mrb[210].mxu0 %vm149_vm2, %v11712_v40 }
 0x726   :  { %7801 = vmatmul.mubr.msk.f32.gmra.mrb[210].mxu1 %vm149_vm2, %v11719_v29  ;;  %7742 = vmatprep.mubr.msk.f32.mxu0 %vm8507_vm0, %v12564_v10 }
 0x727   :  { %7803 = vmatprep.mubr.msk.f32.mxu1 %vm8507_vm0, %v12564_v10 }
 0x729   :  { %7743 = vmatmul.mubr.msk.f32.gmra.mrb[212].mxu0 %vm149_vm2, %v11730_v33 }
 0x72a   :  { %7804 = vmatmul.mubr.msk.f32.gmra.mrb[212].mxu1 %vm149_vm2, %v11737_v59  ;;  %7745 = vmatprep.mubr.msk.f32.mxu0 %vm8507_vm0, %v12564_v10 }
 0x72b   :  { %7806 = vmatprep.mubr.msk.f32.mxu1 %vm8507_vm0, %v12564_v10 }
 0x72d   :  { %7746 = vmatmul.mubr.msk.f32.gmra.mrb[214].mxu0 %vm149_vm2, %v11748_v22 }
 0x72e   :  { %7807 = vmatmul.mubr.msk.f32.gmra.mrb[214].mxu1 %vm149_vm2, %v11755_v25  ;;  %7748 = vmatprep.mubr.msk.f32.mxu0 %vm8507_vm0, %v12564_v10 }
 0x72f   :  { %7809 = vmatprep.mubr.msk.f32.mxu1 %vm8507_vm0, %v12564_v10 }
 0x731   :  { %7749 = vmatmul.mubr.msk.f32.gmra.mrb[216].mxu0 %vm149_vm2, %v11766_v32 }
 0x732   :  { %7810 = vmatmul.mubr.msk.f32.gmra.mrb[216].mxu1 %vm149_vm2, %v11773_v19  ;;  %7751 = vmatprep.mubr.msk.f32.mxu0 %vm8507_vm0, %v12564_v10 }
 0x733   :  { %7812 = vmatprep.mubr.msk.f32.mxu1 %vm8507_vm0, %v12564_v10 }
 0x735   :  { %7752 = vmatmul.mubr.msk.f32.gmra.mrb[218].mxu0 %vm149_vm2, %v11784_v27 }
 0x736   :  { %7813 = vmatmul.mubr.msk.f32.gmra.mrb[218].mxu1 %vm149_vm2, %v11791_v62  ;;  %7754 = vmatprep.mubr.msk.f32.mxu0 %vm8507_vm0, %v12564_v10 }
 0x737   :  { %7815 = vmatprep.mubr.msk.f32.mxu1 %vm8507_vm0, %v12564_v10 }
 0x739   :  { %7755 = vmatmul.mubr.msk.f32.gmra.mrb[220].mxu0 %vm149_vm2, %v11802_v63  ;;  %v12804_v63 = vld [vmem:[#allocation19_spill] sm:$0xff] }
 0x73a   :  { %7816 = vmatmul.mubr.msk.f32.gmra.mrb[220].mxu1 %vm149_vm2, %v11809_v60  ;;  %7757 = vmatprep.mubr.msk.f32.mxu0 %vm8507_vm0, %v12564_v10 }
 0x73b   :  { %7818 = vmatprep.mubr.msk.f32.mxu1 %vm8507_vm0, %v12564_v10 }
 0x73d   :  { %7758 = vmatmul.mubr.msk.f32.gmra.mrb[222].mxu0 %vm149_vm2, %v11820_v14 }
 0x73e   :  { %7819 = vmatmul.mubr.msk.f32.gmra.mrb[222].mxu1 %vm149_vm2, %v11827_v5  ;;  %7760 = vmatprep.mubr.msk.f32.mxu0 %vm8507_vm0, %v12564_v10  ;;  %v12801_v5 = vld [vmem:[#allocation165_spill] sm:$0xff] }
 0x73f   :  { %7821 = vmatprep.mubr.msk.f32.mxu1 %vm8507_vm0, %v12564_v10 }
 0x741   :  { %7761 = vmatmul.mubr.msk.f32.gmra.mrb[224].mxu0 %vm149_vm2, %v11838_v30 }
 0x742   :  { %7822 = vmatmul.mubr.msk.f32.gmra.mrb[224].mxu1 %vm149_vm2, %v11845_v1  ;;  %7763 = vmatprep.mubr.msk.f32.mxu0 %vm8507_vm0, %v12564_v10 }
 0x743   :  { %7824 = vmatprep.mubr.msk.f32.mxu1 %vm8507_vm0, %v12564_v10 }
 0x745   :  { %7764 = vmatmul.mubr.msk.f32.gmra.mrb[226].mxu0 %vm149_vm2, %v11856_v8 }
 0x746   :  { %7825 = vmatmul.mubr.msk.f32.gmra.mrb[226].mxu1 %vm149_vm2, %v11863_v44  ;;  %7766 = vmatprep.mubr.msk.f32.mxu0 %vm8507_vm0, %v12564_v10 }
 0x747   :  { %7827 = vmatprep.mubr.msk.f32.mxu1 %vm8507_vm0, %v12564_v10 }
 0x749   :  { %7767 = vmatmul.mubr.msk.f32.gmra.mrb[228].mxu0 %vm149_vm2, %v11874_v48 }
 0x74a   :  { %7828 = vmatmul.mubr.msk.f32.gmra.mrb[228].mxu1 %vm149_vm2, %v11881_v7  ;;  %7769 = vmatprep.mubr.msk.f32.mxu0 %vm8507_vm0, %v12564_v10 }
 0x74b   :  { %7830 = vmatprep.mubr.msk.f32.mxu1 %vm8507_vm0, %v12564_v10 }
 0x74d   :  { %7770 = vmatmul.mubr.msk.f32.gmra.mrb[230].mxu0 %vm149_vm2, %v11892_v36 }
 0x74e   :  { %7831 = vmatmul.mubr.msk.f32.gmra.mrb[230].mxu1 %vm149_vm2, %v11899_v23  ;;  %7772 = vmatprep.mubr.msk.f32.mxu0 %vm8507_vm0, %v12564_v10  ;;  %v12798_v23 = vld [vmem:[#allocation166_spill] sm:$0xff] }
 0x74f   :  { %7833 = vmatprep.mubr.msk.f32.mxu1 %vm8507_vm0, %v12564_v10 }
 0x751   :  { %7773 = vmatmul.mubr.msk.f32.gmra.mrb[232].mxu0 %vm149_vm2, %v11910_v17 }
 0x752   :  { %7834 = vmatmul.mubr.msk.f32.gmra.mrb[232].mxu1 %vm149_vm2, %v11917_v4  ;;  %7775 = vmatprep.mubr.msk.f32.mxu0 %vm8507_vm0, %v12564_v10 }
 0x753   :  { %7836 = vmatprep.mubr.msk.f32.mxu1 %vm8507_vm0, %v12564_v10 }
 0x755   :  { %7776 = vmatmul.mubr.msk.f32.gmra.mrb[234].mxu0 %vm149_vm2, %v11928_v42 }
 0x756   :  { %7837 = vmatmul.mubr.msk.f32.gmra.mrb[234].mxu1 %vm149_vm2, %v11935_v15  ;;  %7778 = vmatprep.mubr.msk.f32.mxu0 %vm8507_vm0, %v12564_v10 }
 0x757   :  { %7839 = vmatprep.mubr.msk.f32.mxu1 %vm8507_vm0, %v12564_v10 }
 0x759   :  { %7779 = vmatmul.mubr.msk.f32.gmra.mrb[236].mxu0 %vm149_vm2, %v4631_v12 }
 0x75a   :  { %7840 = vmatmul.mubr.msk.f32.gmra.mrb[236].mxu1 %vm149_vm2, %v5012_v61  ;;  %7852 = vmatprep.mubr.msk.f32.mxu0 %vm8507_vm0, %v12564_v10  ;;  %v12792_v61 = vld [vmem:[#allocation154_spill] sm:$0xff] }
 0x75b   :  { %7913 = vmatprep.mubr.msk.f32.mxu1 %vm8507_vm0, %v12564_v10 }
 0x7ec   :  { %v4854_v6 = vpop.f32.mrb[204].mxu0 }
 0x7ed   :  { %v5235_v13 = vpop.f32.mrb[204].mxu1  ;;  %v7732_v9 = vpop.f32.mrb[205].mxu0  ;;  %v4855_v49 = vadd.f32 %v4854_v6, %v12789_v3 }
 0x7ee   :  { %v7793_v2 = vpop.f32.mrb[205].mxu1  ;;  %v5236_v54 = vadd.f32 %v5235_v13, %v12790_v20  ;;  %v12794_v20 = vld [vmem:[#allocation159_spill] sm:$0xff] }
 0x7ef   :  { %v4938_v37 = vmul.f32 0.5, %v4855_v49 }
 0x7f0   :  { %v4859_v46 = vpop.f32.mrb[206].mxu0  ;;  %v5319_v12 = vmul.f32 0.5, %v5236_v54  ;;  %v12795_v54 = vld [vmem:[#allocation156_spill] sm:$0xff] }
 0x7f1   :  { %v5240_v26 = vpop.f32.mrb[206].mxu1  ;;  %v7735_v58 = vpop.f32.mrb[207].mxu0  ;;  %v4860_v43 = vadd.f32 %v4859_v46, %v12791_v34  ;;  %8385 = vtanh.f32 %v4938_v37 }
 0x7f2   :  { %v7796_v21 = vpop.f32.mrb[207].mxu1  ;;  %v5241_v9 = vadd.f32 %v5240_v26, %v12792_v61  ;;  %8387 = vtanh.f32 %v5319_v12 }
 0x7f3   :  { %v4939_v58 = vmul.f32 0.5, %v4860_v43  ;;  %v12793_v21 = vld [vmem:[#allocation157_spill] sm:$0xff] }
 0x7f4   :  { %v4864_v55 = vpop.f32.mrb[208].mxu0  ;;  %v5320_v13 = vmul.f32 0.5, %v5241_v9 }
 0x7f5   :  { %v5245_v56 = vpop.f32.mrb[208].mxu1  ;;  %v7738_v53 = vpop.f32.mrb[209].mxu0  ;;  %v4865_v6 = vadd.f32 %v4864_v55, %v12793_v21  ;;  %8389 = vtanh.f32 %v4939_v58 }
 0x7f6   :  { %v7799_v11 = vpop.f32.mrb[209].mxu1  ;;  %v5246_v53 = vadd.f32 %v5245_v56, %v12794_v20  ;;  %8391 = vtanh.f32 %v5320_v13 }
 0x7f7   :  { %v4940_v46 = vmul.f32 0.5, %v4865_v6 }
 0x7f8   :  { %v4869_v57 = vpop.f32.mrb[210].mxu0 }
 0x7f9   :  { %v5250_v2 = vpop.f32.mrb[210].mxu1  ;;  %v7741_v15 = vpop.f32.mrb[211].mxu0  ;;  %v4870_v34 = vadd.f32 %v4869_v57, %v12795_v54  ;;  %8393 = vtanh.f32 %v4940_v46 }
 0x7fa   :  { %v7802_v42 = vpop.f32.mrb[211].mxu1  ;;  %v12796_v15 = vld [vmem:[#allocation158_spill] sm:$0xff] }
 0x7fb   :  { %v5321_v42 = vmul.f32 0.5, %v5246_v53  ;;  %v5251_v37 = vadd.f32 %v5250_v2, %v12796_v15  ;;  %v4941_v61 = vmul.f32 0.5, %v4870_v34  ;;  %v8386_v57 = vpop.eup %8385 }
 0x7fc   :  { %v4874_v3 = vpop.f32.mrb[212].mxu0  ;;  %v8388_v6 = vpop.eup %8387  ;;  %v4946_v2 = vmul.f32 0.5, %v8386_v57 }
 0x7fd   :  { %v5255_v11 = vpop.f32.mrb[212].mxu1  ;;  %v7744_v49 = vpop.f32.mrb[213].mxu0  ;;  %8395 = vtanh.f32 %v5321_v42  ;;  %v5327_v46 = vmul.f32 0.5, %v8388_v6 }
 0x7fe   :  { %v7805_v4 = vpop.f32.mrb[213].mxu1  ;;  %8397 = vtanh.f32 %v4941_v61 }
 0x7ff   :  { %v5322_v4 = vmul.f32 0.5, %v5251_v37  ;;  %v8390_v49 = vpop.eup %8389  ;;  %v12797_v37 = vld [vmem:[#allocation163_spill] sm:$0xff]  ;;  %v5331_v57 = vadd.f32 0.5, %v5327_v46 }
 0x800   :  { %v11964_v26 = vpop.f32.mrb[214].mxu0  ;;  %v8392_v34 = vpop.eup %8391  ;;  %v4947_v15 = vmul.f32 0.5, %v8390_v49 }
 0x801   :  { %v11967_v43 = vpop.f32.mrb[214].mxu1  ;;  %v7747_v55 = vpop.f32.mrb[215].mxu0  ;;  %8399 = vtanh.f32 %v5322_v4  ;;  %v5328_v61 = vmul.f32 0.5, %v8392_v34 }
 0x802   :  { %v7808_v12 = vpop.f32.mrb[215].mxu1  ;;  %v4951_v1 = vadd.f32 0.5, %v4947_v15 }
 0x803   :  { %v4950_v12 = vadd.f32 0.5, %v4946_v2  ;;  %v8394_v17 = vpop.eup %8393  ;;  %v5332_v14 = vadd.f32 0.5, %v5328_v61 }
 0x804   :  { %v11969_v56 = vpop.f32.mrb[216].mxu0  ;;  %v4948_v6 = vmul.f32 0.5, %v8394_v17 }
 0x805   :  { %v11971_v9 = vpop.f32.mrb[216].mxu1  ;;  %v7750_v58 = vpop.f32.mrb[217].mxu0 }
 0x806   :  { %v7811_v21 = vpop.f32.mrb[217].mxu1  ;;  %v4952_v15 = vadd.f32 0.5, %v4948_v6 }
 0x807   :  { %v8396_v7 = vpop.eup %8395 }
 0x808   :  { %v11973_v13 = vpop.f32.mrb[218].mxu0  ;;  %v5329_v2 = vmul.f32 0.5, %v8396_v7 }
 0x809   :  { %v11975_v20 = vpop.f32.mrb[218].mxu1  ;;  %v7753_v53 = vpop.f32.mrb[219].mxu0 }
 0x80a   :  { %v7814_v54 = vpop.f32.mrb[219].mxu1 }
 0x80b   :  { %v12799_v54 = vld [vmem:[#allocation162_spill] sm:$0xff] }
 0x80c   :  { %v4894_v42 = vpop.f32.mrb[220].mxu0 }
 0x80d   :  { %v4895_v55 = vadd.f32 %v4894_v42, %v12797_v37  ;;  %v5275_v58 = vpop.f32.mrb[220].mxu1  ;;  %v7756_v21 = vpop.f32.mrb[221].mxu0  ;;  %v12800_v37 = vld [vmem:[#allocation161_spill] sm:$0xff] }
 0x80e   :  { %v5276_v36 = vadd.f32 %v5275_v58, %v12798_v23  ;;  %v7817_v4 = vpop.f32.mrb[221].mxu1  ;;  %v8398_v42 = vpop.eup %8397  ;;  %v4875_v21 = vadd.f32 %v4874_v3, %v12800_v37  ;;  %v12802_v58 = vld [vmem:[#allocation164_spill] sm:$0xff]  ;;  %v5333_v37 = vadd.f32 0.5, %v5329_v2 }
 0x80f   :  { %v4970_v48 = vmul.f32 %v4950_v12, %v4895_v55  ;;  %v8400_v46 = vpop.eup %8399  ;;  %v5256_v4 = vadd.f32 %v5255_v11, %v12802_v58  ;;  %v4949_v17 = vmul.f32 0.5, %v8398_v42 }
 0x810   :  { %v5351_v53 = vmul.f32 %v5331_v57, %v5276_v36  ;;  %v4899_v44 = vpop.f32.mrb[222].mxu0  ;;  %v12803_v57 = vld [vmem:[#allocation173_spill] sm:$0xff]  ;;  %v5330_v60 = vmul.f32 0.5, %v8400_v46  ;;  %v4954_v7 = vmul.f32 0.5, %v4875_v21  ;;  %v12808_v21 = vld [vmem:[#allocation16_spill] sm:$0xff] }
 0x811   :  { %v4900_v8 = vadd.f32 %v4899_v44, %v12799_v54  ;;  %v5280_v49 = vpop.f32.mrb[222].mxu1  ;;  %v7759_v30 = vpop.f32.mrb[223].mxu0  ;;  %v5335_v61 = vmul.f32 0.5, %v5256_v4  ;;  %v4953_v58 = vadd.f32 0.5, %v4949_v17 }
 0x812   :  { %v5281_v34 = vadd.f32 %v5280_v49, %v12801_v5  ;;  %v7820_v23 = vpop.f32.mrb[223].mxu1  ;;  %v12805_v49 = vld [vmem:[#allocation160_spill] sm:$0xff]  ;;  %8401 = vtanh.f32 %v4954_v7  ;;  %v5334_v2 = vadd.f32 0.5, %v5330_v60 }
 0x813   :  { %v4971_v55 = vmul.f32 %v4951_v1, %v4900_v8  ;;  %v4880_v23 = vadd.f32 %v11964_v26, %v12805_v49  ;;  %v12806_v1 = vld [vmem:[#allocation14_spill] sm:$0xff]  ;;  %8403 = vtanh.f32 %v5335_v61 }
 0x814   :  { %v5352_v36 = vmul.f32 %v5332_v14, %v5281_v34  ;;  %v4904_v12 = vpop.f32.mrb[224].mxu0  ;;  %v5261_v14 = vadd.f32 %v11967_v43, %v12806_v1  ;;  %v12807_v34 = vld [vmem:[#allocation21_spill] sm:$0xff]  ;;  %v12810_v43 = vld [vmem:[#allocation20_spill] sm:$0xff]  ;;  %v12812_v1 = vld [vmem:[#allocation170_spill] sm:$0xff] }
 0x815   :  { %v4905_v44 = vadd.f32 %v4904_v12, %v12803_v57  ;;  %v5285_v54 = vpop.f32.mrb[224].mxu1  ;;  %v7762_v30 = vpop.f32.mrb[225].mxu0  ;;  %v4955_v4 = vmul.f32 0.5, %v4880_v23  ;;  %v12813_v23 = vld [vmem:[#allocation171_spill] sm:$0xff] }
 0x816   :  { %v5286_v3 = vadd.f32 %v5285_v54, %v12804_v63  ;;  %v7823_v5 = vpop.f32.mrb[225].mxu1  ;;  %v12809_v54 = vld [vmem:[#allocation172_spill] sm:$0xff]  ;;  %v5266_v30 = vadd.f32 %v11971_v9, %v12810_v43 }
 0x817   :  { %v4972_v11 = vmul.f32 %v4952_v15, %v4905_v44  ;;  %v4885_v26 = vadd.f32 %v11969_v56, %v12809_v54  ;;  %v5336_v15 = vmul.f32 0.5, %v5261_v14  ;;  %8405 = vtanh.f32 %v4955_v4 }
 0x818   :  { %v5353_v8 = vmul.f32 %v5333_v37, %v5286_v3  ;;  %v4909_v42 = vpop.f32.mrb[226].mxu0  ;;  %v12811_v37 = vld [vmem:[#allocation168_spill] sm:$0xff]  ;;  %v4890_v56 = vadd.f32 %v11973_v13, %v12813_v23  ;;  %v5337_v14 = vmul.f32 0.5, %v5266_v30 }
 0x819   :  { %v4910_v6 = vadd.f32 %v4909_v42, %v12807_v34  ;;  %v5290_v12 = vpop.f32.mrb[226].mxu1  ;;  %v7765_v46 = vpop.f32.mrb[227].mxu0  ;;  %v4956_v61 = vmul.f32 0.5, %v4885_v26  ;;  %8407 = vtanh.f32 %v5336_v15 }
 0x81a   :  { %v5291_v63 = vadd.f32 %v5290_v12, %v12808_v21  ;;  %v7826_v57 = vpop.f32.mrb[227].mxu1  ;;  %v12815_v46 = vld [vmem:[#allocation167_spill] sm:$0xff]  ;;  %v4957_v26 = vmul.f32 0.5, %v4890_v56 }
 0x81b   :  { %v4973_v44 = vmul.f32 %v4953_v58, %v4910_v6  ;;  %v12814_v6 = vld [vmem:[#allocation17_spill] sm:$0xff] }
 0x81c   :  { %v11995_v3 = vmul.f32 %v5334_v2, %v5291_v63  ;;  %v4914_v17 = vpop.f32.mrb[228].mxu0  ;;  %v5271_v9 = vadd.f32 %v11975_v20, %v12814_v6  ;;  %v12816_v57 = vld [vmem:[#allocation169_spill] sm:$0xff] }
 0x81d   :  { %v4915_v5 = vadd.f32 %v4914_v17, %v12811_v37  ;;  %v5295_v7 = vpop.f32.mrb[228].mxu1  ;;  %v7768_v49 = vpop.f32.mrb[229].mxu0 }
 0x81e   :  { %v5296_v60 = vadd.f32 %v5295_v7, %v12812_v1  ;;  %v7829_v42 = vpop.f32.mrb[229].mxu1  ;;  %v5338_v15 = vmul.f32 0.5, %v5271_v9  ;;  %v12818_v7 = vld [vmem:[#allocation174_spill] sm:$0xff] }
 0x81f   :  { %v4974_v34 = vadd.f32 %v4970_v48, %v4915_v5  ;;  %v8402_v48 = vpop.eup %8401 }
 0x820   :  { %v5355_v58 = vadd.f32 %v5351_v53, %v5296_v60  ;;  %v4919_v12 = vpop.f32.mrb[230].mxu0  ;;  %v8404_v20 = vpop.eup %8403  ;;  %v12817_v53 = vld [vmem:[#allocation18_spill] sm:$0xff]  ;;  %v4962_v60 = vmul.f32 0.5, %v8402_v48 }
 0x821   :  { %8409 = vtanh.f32 %v4974_v34  ;;  %v4920_v21 = vadd.f32 %v4919_v12, %v12815_v46  ;;  %v5300_v63 = vpop.f32.mrb[230].mxu1  ;;  %v7771_v2 = vpop.f32.mrb[231].mxu0 }
 0x822   :  { %8411 = vtanh.f32 %v5355_v58  ;;  %v5301_v4 = vadd.f32 %v5300_v63, %v12816_v57  ;;  %v7832_v54 = vpop.f32.mrb[231].mxu1  ;;  %v8406_v56 = vpop.eup %8405  ;;  %v12820_v58 = vld [vmem:[#allocation23_spill] sm:$0xff]  ;;  %v4966_v2 = vadd.f32 0.5, %v4962_v60 }
 0x823   :  { %8413 = vtanh.f32 %v4956_v61  ;;  %v4975_v13 = vadd.f32 %v4971_v55, %v4920_v21  ;;  %v5343_v61 = vmul.f32 0.5, %v8404_v20  ;;  %v8408_v9 = vpop.eup %8407  ;;  %v5113_v63 = vpop.permute.xlu1 %5112 }
 0x824   :  { %8415 = vtanh.f32 %v5337_v14  ;;  %v5356_v43 = vadd.f32 %v5352_v36, %v5301_v4  ;;  %v4924_v30 = vpop.f32.mrb[232].mxu0  ;;  %v12819_v36 = vld [vmem:[#allocation15_spill] sm:$0xff]  ;;  %v4732_v4 = vpop.permute.xlu0 %4731 }
 0x825   :  { %8417 = vtanh.f32 %v4975_v13  ;;  %v4925_v17 = vadd.f32 %v4924_v30, %v12817_v53  ;;  %v5305_v37 = vpop.f32.mrb[232].mxu1  ;;  %v7774_v5 = vpop.f32.mrb[233].mxu0  ;;  %v5347_v54 = vadd.f32 0.5, %v5343_v61 }
 0x826   :  { %8419 = vtanh.f32 %v5356_v43  ;;  %v5306_v49 = vadd.f32 %v5305_v37, %v12818_v7  ;;  %v7835_v1 = vpop.f32.mrb[233].mxu1  ;;  %v5344_v43 = vmul.f32 0.5, %v8408_v9 }
 0x827   :  { %8421 = vtanh.f32 %v4957_v26  ;;  %v4976_v42 = vadd.f32 %v4972_v11, %v4925_v17 }
 0x828   :  { %8423 = vtanh.f32 %v5338_v15  ;;  %v5357_v55 = vadd.f32 %v5353_v8, %v5306_v49  ;;  %v4929_v23 = vpop.f32.mrb[234].mxu0  ;;  %v4963_v8 = vmul.f32 0.5, %v8406_v56 }
 0x829   :  { %8425 = vtanh.f32 %v4976_v42  ;;  %v4930_v34 = vadd.f32 %v4929_v23, %v12819_v36  ;;  %v5310_v14 = vpop.f32.mrb[234].mxu1  ;;  %v7777_v6 = vpop.f32.mrb[235].mxu0  ;;  %v5348_v23 = vadd.f32 0.5, %v5344_v43 }
 0x82a   :  { %8427 = vtanh.f32 %v5357_v55  ;;  %v5311_v12 = vadd.f32 %v5310_v14, %v12820_v58  ;;  %v7838_v46 = vpop.f32.mrb[235].mxu1  ;;  %v4967_v60 = vadd.f32 0.5, %v4963_v8 }
 0x82b   :  { %v8410_v21 = vpop.eup %8409  ;;  %v4977_v57 = vadd.f32 %v4973_v44, %v4930_v34 }
 0x82c   :  { %v8412_v11 = vpop.eup %8411  ;;  %v5358_v26 = vadd.f32 %v11995_v3, %v5311_v12  ;;  %v4934_v13 = vpop.f32.mrb[236].mxu0  ;;  %v4982_v48 = vsub.f32 %v11614_v52, %v8410_v21 }
 0x82d   :  { %v8414_v15 = vpop.eup %8413  ;;  %8429 = vtanh.f32 %v4977_v57  ;;  %v4935_v30 = vadd.f32 %v4934_v13, %v4732_v4  ;;  %v5315_v20 = vpop.f32.mrb[236].mxu1  ;;  %v5363_v53 = vsub.f32 %v11617_v39, %v8412_v11 }
 0x82e   :  { %v7780_v17 = vpop.f32.mrb[237].mxu0  ;;  %v8416_v37 = vpop.eup %8415  ;;  %8431 = vtanh.f32 %v5358_v26  ;;  %v5316_v44 = vadd.f32 %v5315_v20, %v5113_v63  ;;  %v4986_v5 = vmul.f32 %v4982_v48, %v4966_v2  ;;  %v4964_v42 = vmul.f32 0.5, %v8414_v15 }
 0x82f   :  { %v7841_v7 = vpop.f32.mrb[237].mxu1  ;;  %v8418_v49 = vpop.eup %8417  ;;  %5375 = vst [vmem:[#allocation2 + $0x5] sm:$0x1] %v4935_v30  ;;  %v5367_v1 = vmul.f32 %v5363_v53, %v5347_v54  ;;  %v5345_v39 = vmul.f32 0.5, %v8416_v37 }
 0x830   :  { %v8420_v3 = vpop.eup %8419  ;;  %5376 = vst [vmem:[#allocation3 + $0x2] sm:$0x1] %v5316_v44  ;;  %v4983_v52 = vsub.f32 %v11619_v16, %v8418_v49  ;;  %v12013_v61 = vadd.f32 %v8410_v21, %v4986_v5  ;;  %v4968_v12 = vadd.f32 0.5, %v4964_v42  ;;  %v6604_v5 = vld [vmem:[%s12278_s1 + $0x1c] sm:$0x7] }
 0x831   :  { %v8422_v55 = vpop.eup %8421  ;;  %v5364_v56 = vsub.f32 %v11622_v28, %v8420_v3  ;;  %v12016_v36 = vadd.f32 %v8412_v11, %v5367_v1  ;;  %v5349_v21 = vadd.f32 0.5, %v5345_v39  ;;  %v5395_v7 = vld [vmem:[%s12279_s2 + $0x80] sm:$0x1] }
 0x832   :  { %v8424_v34 = vpop.eup %8423  ;;  %v4987_v14 = vmul.f32 %v4983_v52, %v4967_v60  ;;  %v4965_v46 = vmul.f32 0.5, %v8422_v55 }
 0x833   :  { %v8426_v6 = vpop.eup %8425  ;;  %v5368_v9 = vmul.f32 %v5364_v56, %v5348_v23  ;;  %v5346_v2 = vmul.f32 0.5, %v8424_v34  ;;  %v12837_v56 = vld [vmem:[#allocation175_spill] sm:$0xff] }
 0x834   :  { %v8428_v58 = vpop.eup %8427  ;;  %v12018_v63 = vadd.f32 %v8418_v49, %v4987_v14  ;;  %v4984_v16 = vsub.f32 %v11630_v18, %v8426_v6  ;;  %v4969_v48 = vadd.f32 0.5, %v4965_v46  ;;  %v5776_v49 = vld [vmem:[%s12280_s3 + $0x80] sm:$0x1] }
 0x835   :  { %v12021_v57 = vadd.f32 %v8420_v3, %v5368_v9  ;;  %v5365_v4 = vsub.f32 %v11634_v45, %v8428_v58  ;;  %v5350_v43 = vadd.f32 0.5, %v5346_v2 }
 0x836   :  { %v8067_v28 = vpack.c.bf16 %v12018_v63, %v12013_v61  ;;  %v4988_v11 = vmul.f32 %v4984_v16, %v4968_v12 }
 0x837   :  { %v8430_v54 = vpop.eup %8429  ;;  %v8073_v8 = vpack.c.bf16 %v12021_v57, %v12016_v36  ;;  %v5369_v26 = vmul.f32 %v5365_v4, %v5349_v21  ;;  %v12839_v21 = vld [vmem:[#allocation22_spill] sm:$0xff] }
 0x838   :  { %v8432_v13 = vpop.eup %8431  ;;  %8068 = vmatpush3.bf16.msra.mxu0 %v8067_v28  ;;  %v4985_v18 = vsub.f32 %v11637_v41, %v8430_v54  ;;  %v12029_v15 = vadd.f32 %v8426_v6, %v4988_v11  ;;  %v12838_v6 = vld [vmem:[#allocation27_spill] sm:$0xff]  ;;  %v12840_v28 = vld [vmem:[#allocation25_spill] sm:$0xff] }
 0x839   :  { %8074 = vmatpush3.bf16.msra.mxu1 %v8073_v8  ;;  %8069 = vmatprep.subr.bf16.mxu0 %v12558_v50  ;;  %v5366_v45 = vsub.f32 %v11639_v51, %v8432_v13  ;;  %v12033_v30 = vadd.f32 %v8428_v58, %v5369_v26  ;;  %v6585_v51 = vld [vmem:[%s12277_s0 + $0x1c] sm:$0x7] }
 0x83a   :  { %8075 = vmatprep.subr.bf16.mxu1 %v12558_v50  ;;  %v4989_v20 = vmul.f32 %v4985_v18, %v4969_v48  ;;  %v12841_v48 = vld [vmem:[#allocation26_spill] sm:$0xff] }
 0x83b   :  { %v5370_v53 = vmul.f32 %v5366_v45, %v5350_v43 }
 0x83c   :  { %v12036_v17 = vadd.f32 %v8430_v54, %v4989_v20  ;;  %v12842_v20 = vld [vmem:[#allocation177_spill] sm:$0xff] }
 0x83d   :  { %v12038_v37 = vadd.f32 %v8432_v13, %v5370_v53 }
 0x83e   :  { %v8070_v41 = vpack.c.bf16 %v12036_v17, %v12029_v15 }
 0x83f   :  { %v8076_v44 = vpack.c.bf16 %v12038_v37, %v12033_v30 }
 0x840   :  { %8071 = vmatpush3.bf16.msra.mxu0 %v8070_v41 }
 0x841   :  { %8077 = vmatpush3.bf16.msra.mxu1 %v8076_v44  ;;  %7850 = vmatprep.subr.mxu0 %v12564_v10 }
 0x842   :  { %7911 = vmatprep.subr.mxu1 %v12564_v10 }
 0x844   :  { %7851 = vmatpush3.msk.msra.mxu0 %vm201_vm1, %v6585_v51 }
 0x845   :  { %7912 = vmatpush3.msk.msra.mxu1 %vm201_vm1, %v6604_v5  ;;  %7853 = vmatmul.mubr.msk.f32.vlgmr.msra.gmra.mrb[238].mxu0 %vm149_vm2, %v11656_v31  ;;  %v12821_v31 = vld [vmem:[#allocation36_spill] sm:$0xff] }
 0x846   :  { %7914 = vmatmul.mubr.msk.f32.vlgmr.msra.gmra.mrb[238].mxu1 %vm149_vm2, %v11661_v38  ;;  %7855 = vmatprep.mubr.msk.f32.mxu0 %vm8507_vm0, %v12564_v10  ;;  %v12822_v38 = vld [vmem:[#allocation13_spill] sm:$0xff] }
 0x847   :  { %7916 = vmatprep.mubr.msk.f32.mxu1 %vm8507_vm0, %v12564_v10  ;;  %8078 = vmatprep.subr.bf16.mxu0 %v12558_v50 }
 0x848   :  { %8084 = vmatprep.subr.bf16.mxu1 %v12558_v50 }
 0x849   :  { %7856 = vmatmul.mubr.msk.f32.gmra.mrb[240].mxu0 %vm149_vm2, %v11674_v24  ;;  %v12823_v24 = vld [vmem:[#allocation44_spill] sm:$0xff] }
 0x84a   :  { %7917 = vmatmul.mubr.msk.f32.gmra.mrb[240].mxu1 %vm149_vm2, %v11681_v47  ;;  %7858 = vmatprep.mubr.msk.f32.mxu0 %vm8507_vm0, %v12564_v10  ;;  %v12824_v47 = vld [vmem:[#allocation50_spill] sm:$0xff] }
 0x84b   :  { %7919 = vmatprep.mubr.msk.f32.mxu1 %vm8507_vm0, %v12564_v10 }
 0x84d   :  { %7859 = vmatmul.mubr.msk.f32.gmra.mrb[242].mxu0 %vm149_vm2, %v11694_v35  ;;  %v12825_v35 = vld [vmem:[#allocation43_spill] sm:$0xff] }
 0x84e   :  { %7920 = vmatmul.mubr.msk.f32.gmra.mrb[242].mxu1 %vm149_vm2, %v11701_v0  ;;  %7861 = vmatprep.mubr.msk.f32.mxu0 %vm8507_vm0, %v12564_v10  ;;  %v12826_v0 = vld [vmem:[#allocation49_spill] sm:$0xff] }
 0x84f   :  { %7922 = vmatprep.mubr.msk.f32.mxu1 %vm8507_vm0, %v12564_v10 }
 0x851   :  { %7862 = vmatmul.mubr.msk.f32.gmra.mrb[244].mxu0 %vm149_vm2, %v11712_v40  ;;  %v12827_v40 = vld [vmem:[#allocation39_spill] sm:$0xff] }
 0x852   :  { %7923 = vmatmul.mubr.msk.f32.gmra.mrb[244].mxu1 %vm149_vm2, %v11719_v29  ;;  %7864 = vmatprep.mubr.msk.f32.mxu0 %vm8507_vm0, %v12564_v10  ;;  %v12828_v29 = vld [vmem:[#allocation41_spill] sm:$0xff] }
 0x853   :  { %7925 = vmatprep.mubr.msk.f32.mxu1 %vm8507_vm0, %v12564_v10 }
 0x855   :  { %7865 = vmatmul.mubr.msk.f32.gmra.mrb[246].mxu0 %vm149_vm2, %v11730_v33  ;;  %v12829_v33 = vld [vmem:[#allocation42_spill] sm:$0xff] }
 0x856   :  { %7926 = vmatmul.mubr.msk.f32.gmra.mrb[246].mxu1 %vm149_vm2, %v11737_v59  ;;  %7867 = vmatprep.mubr.msk.f32.mxu0 %vm8507_vm0, %v12564_v10  ;;  %v12830_v59 = vld [vmem:[#allocation48_spill] sm:$0xff] }
 0x857   :  { %7928 = vmatprep.mubr.msk.f32.mxu1 %vm8507_vm0, %v12564_v10 }
 0x859   :  { %7868 = vmatmul.mubr.msk.f32.gmra.mrb[248].mxu0 %vm149_vm2, %v11748_v22  ;;  %v12831_v22 = vld [vmem:[#allocation38_spill] sm:$0xff] }
 0x85a   :  { %7929 = vmatmul.mubr.msk.f32.gmra.mrb[248].mxu1 %vm149_vm2, %v11755_v25  ;;  %7870 = vmatprep.mubr.msk.f32.mxu0 %vm8507_vm0, %v12564_v10  ;;  %v12832_v25 = vld [vmem:[#allocation40_spill] sm:$0xff] }
 0x85b   :  { %7931 = vmatprep.mubr.msk.f32.mxu1 %vm8507_vm0, %v12564_v10 }
 0x85d   :  { %7871 = vmatmul.mubr.msk.f32.gmra.mrb[250].mxu0 %vm149_vm2, %v11766_v32  ;;  %v12833_v32 = vld [vmem:[#allocation53_spill] sm:$0xff] }
 0x85e   :  { %7932 = vmatmul.mubr.msk.f32.gmra.mrb[250].mxu1 %vm149_vm2, %v11773_v19  ;;  %7873 = vmatprep.mubr.msk.f32.mxu0 %vm8507_vm0, %v12564_v10  ;;  %v12834_v19 = vld [vmem:[#allocation55_spill] sm:$0xff] }
 0x85f   :  { %7934 = vmatprep.mubr.msk.f32.mxu1 %vm8507_vm0, %v12564_v10 }
 0x861   :  { %7874 = vmatmul.mubr.msk.f32.gmra.mrb[252].mxu0 %vm149_vm2, %v11784_v27  ;;  %v12835_v27 = vld [vmem:[#allocation52_spill] sm:$0xff] }
 0x862   :  { %7935 = vmatmul.mubr.msk.f32.gmra.mrb[252].mxu1 %vm149_vm2, %v11791_v62  ;;  %7876 = vmatprep.mubr.msk.f32.mxu0 %vm8507_vm0, %v12564_v10  ;;  %v12836_v62 = vld [vmem:[#allocation54_spill] sm:$0xff] }
 0x863   :  { %7937 = vmatprep.mubr.msk.f32.mxu1 %vm8507_vm0, %v12564_v10 }
 0x865   :  { %7877 = vmatmul.mubr.msk.f32.gmra.mrb[254].mxu0 %vm149_vm2, %v12821_v31  ;;  %v12843_v31 = vld [vmem:[#allocation24_spill] sm:$0xff] }
 0x866   :  { %7938 = vmatmul.mubr.msk.f32.gmra.mrb[254].mxu1 %vm149_vm2, %v12822_v38  ;;  %7879 = vmatprep.mubr.msk.f32.mxu0 %vm8507_vm0, %v12564_v10 }
 0x867   :  { %7940 = vmatprep.mubr.msk.f32.mxu1 %vm8507_vm0, %v12564_v10 }
 0x869   :  { %7880 = vmatmul.mubr.msk.f32.gmra.mrb[0].mxu0 %vm149_vm2, %v12823_v24 }
 0x86a   :  { %7941 = vmatmul.mubr.msk.f32.gmra.mrb[0].mxu1 %vm149_vm2, %v12824_v47  ;;  %7882 = vmatprep.mubr.msk.f32.mxu0 %vm8507_vm0, %v12564_v10 }
 0x86b   :  { %7943 = vmatprep.mubr.msk.f32.mxu1 %vm8507_vm0, %v12564_v10 }
 0x86d   :  { %7883 = vmatmul.mubr.msk.f32.gmra.mrb[2].mxu0 %vm149_vm2, %v12825_v35  ;;  %v12844_v35 = vld [vmem:[#allocation176_spill] sm:$0xff] }
 0x86e   :  { %7944 = vmatmul.mubr.msk.f32.gmra.mrb[2].mxu1 %vm149_vm2, %v12826_v0  ;;  %7885 = vmatprep.mubr.msk.f32.mxu0 %vm8507_vm0, %v12564_v10 }
 0x86f   :  { %7946 = vmatprep.mubr.msk.f32.mxu1 %vm8507_vm0, %v12564_v10 }
 0x871   :  { %7886 = vmatmul.mubr.msk.f32.gmra.mrb[4].mxu0 %vm149_vm2, %v12827_v40 }
 0x872   :  { %7947 = vmatmul.mubr.msk.f32.gmra.mrb[4].mxu1 %vm149_vm2, %v12828_v29  ;;  %7888 = vmatprep.mubr.msk.f32.mxu0 %vm8507_vm0, %v12564_v10 }
 0x873   :  { %7949 = vmatprep.mubr.msk.f32.mxu1 %vm8507_vm0, %v12564_v10 }
 0x875   :  { %7889 = vmatmul.mubr.msk.f32.gmra.mrb[6].mxu0 %vm149_vm2, %v12829_v33 }
 0x876   :  { %7950 = vmatmul.mubr.msk.f32.gmra.mrb[6].mxu1 %vm149_vm2, %v12830_v59  ;;  %7891 = vmatprep.mubr.msk.f32.mxu0 %vm8507_vm0, %v12564_v10 }
 0x877   :  { %7952 = vmatprep.mubr.msk.f32.mxu1 %vm8507_vm0, %v12564_v10 }
 0x879   :  { %7892 = vmatmul.mubr.msk.f32.gmra.mrb[8].mxu0 %vm149_vm2, %v12831_v22 }
 0x87a   :  { %7953 = vmatmul.mubr.msk.f32.gmra.mrb[8].mxu1 %vm149_vm2, %v12832_v25  ;;  %7894 = vmatprep.mubr.msk.f32.mxu0 %vm8507_vm0, %v12564_v10 }
 0x87b   :  { %7955 = vmatprep.mubr.msk.f32.mxu1 %vm8507_vm0, %v12564_v10 }
 0x87d   :  { %7895 = vmatmul.mubr.msk.f32.gmra.mrb[10].mxu0 %vm149_vm2, %v12833_v32 }
 0x87e   :  { %7956 = vmatmul.mubr.msk.f32.gmra.mrb[10].mxu1 %vm149_vm2, %v12834_v19  ;;  %7897 = vmatprep.mubr.msk.f32.mxu0 %vm8507_vm0, %v12564_v10 }
 0x87f   :  { %7958 = vmatprep.mubr.msk.f32.mxu1 %vm8507_vm0, %v12564_v10 }
 0x881   :  { %7898 = vmatmul.mubr.msk.f32.gmra.mrb[12].mxu0 %vm149_vm2, %v12835_v27 }
 0x882   :  { %7959 = vmatmul.mubr.msk.f32.gmra.mrb[12].mxu1 %vm149_vm2, %v12836_v62  ;;  %7900 = vmatprep.mubr.msk.f32.mxu0 %vm8507_vm0, %v12564_v10 }
 0x883   :  { %7961 = vmatprep.mubr.msk.f32.mxu1 %vm8507_vm0, %v12564_v10 }
 0x885   :  { %7901 = vmatmul.mubr.msk.f32.gmra.mrb[14].mxu0 %vm149_vm2, %v5395_v7 }
 0x886   :  { %7962 = vmatmul.mubr.msk.f32.gmra.mrb[14].mxu1 %vm149_vm2, %v5776_v49  ;;  %7972 = vmatprep.mubr.msk.f32.mxu0 %vm8507_vm0, %v12564_v10 }
 0x887   :  { %7983 = vmatprep.mubr.msk.f32.mxu1 %vm8507_vm0, %v12564_v10 }
 0x918   :  { %v5618_v1 = vpop.f32.mrb[238].mxu0 }
 0x919   :  { %v5999_v3 = vpop.f32.mrb[238].mxu1  ;;  %v7854_v60 = vpop.f32.mrb[239].mxu0  ;;  %v5619_v34 = vadd.f32 %v5618_v1, %v12837_v56 }
 0x91a   :  { %v7915_v42 = vpop.f32.mrb[239].mxu1  ;;  %v6000_v9 = vadd.f32 %v5999_v3, %v12838_v6 }
 0x91b   :  { %v5702_v16 = vmul.f32 0.5, %v5619_v34  ;;  %v12845_v34 = vld [vmem:[#allocation181_spill] sm:$0xff] }
 0x91c   :  { %v5623_v52 = vpop.f32.mrb[240].mxu0  ;;  %v6083_v4 = vmul.f32 0.5, %v6000_v9 }
 0x91d   :  { %v6004_v55 = vpop.f32.mrb[240].mxu1  ;;  %v7857_v23 = vpop.f32.mrb[241].mxu0  ;;  %v5624_v2 = vadd.f32 %v5623_v52, %v12839_v21  ;;  %8433 = vtanh.f32 %v5702_v16  ;;  %v12846_v16 = vld [vmem:[#allocation183_spill] sm:$0xff] }
 0x91e   :  { %v7918_v39 = vpop.f32.mrb[241].mxu1  ;;  %v6005_v11 = vadd.f32 %v6004_v55, %v12840_v28  ;;  %8435 = vtanh.f32 %v6083_v4 }
 0x91f   :  { %v5703_v13 = vmul.f32 0.5, %v5624_v2 }
 0x920   :  { %v5628_v14 = vpop.f32.mrb[242].mxu0  ;;  %v6084_v45 = vmul.f32 0.5, %v6005_v11 }
 0x921   :  { %v6009_v58 = vpop.f32.mrb[242].mxu1  ;;  %v7860_v12 = vpop.f32.mrb[243].mxu0  ;;  %v5629_v18 = vadd.f32 %v5628_v14, %v12841_v48  ;;  %8437 = vtanh.f32 %v5703_v13 }
 0x922   :  { %v7921_v46 = vpop.f32.mrb[243].mxu1  ;;  %v6010_v53 = vadd.f32 %v6009_v58, %v12842_v20  ;;  %8439 = vtanh.f32 %v6084_v45 }
 0x923   :  { %v5704_v5 = vmul.f32 0.5, %v5629_v18 }
 0x924   :  { %v5633_v10 = vpop.f32.mrb[244].mxu0  ;;  %v6085_v47 = vmul.f32 0.5, %v6010_v53 }
 0x925   :  { %v6014_v54 = vpop.f32.mrb[244].mxu1  ;;  %v7863_v8 = vpop.f32.mrb[245].mxu0  ;;  %v5634_v38 = vadd.f32 %v5633_v10, %v12843_v31  ;;  %8441 = vtanh.f32 %v5704_v5  ;;  %v12849_v5 = vld [vmem:[#allocation182_spill] sm:$0xff] }
 0x926   :  { %v7924_v26 = vpop.f32.mrb[245].mxu1  ;;  %v6015_v0 = vadd.f32 %v6014_v54, %v12844_v35  ;;  %8443 = vtanh.f32 %v6085_v47 }
 0x927   :  { %v5705_v59 = vmul.f32 0.5, %v5634_v38  ;;  %v8434_v27 = vpop.eup %8433  ;;  %v12847_v26 = vld [vmem:[#allocation180_spill] sm:$0xff] }
 0x928   :  { %v5638_v43 = vpop.f32.mrb[246].mxu0  ;;  %v6086_v25 = vmul.f32 0.5, %v6015_v0  ;;  %v8436_v7 = vpop.eup %8435  ;;  %v5710_v1 = vmul.f32 0.5, %v8434_v27  ;;  %v12850_v0 = vld [vmem:[#allocation46_spill] sm:$0xff]  ;;  %v12851_v27 = vld [vmem:[#allocation191_spill] sm:$0xff] }
 0x929   :  { %v6019_v41 = vpop.f32.mrb[246].mxu1  ;;  %v7866_v44 = vpop.f32.mrb[247].mxu0  ;;  %8445 = vtanh.f32 %v5705_v59  ;;  %v6091_v52 = vmul.f32 0.5, %v8436_v7 }
 0x92a   :  { %v7927_v51 = vpop.f32.mrb[247].mxu1  ;;  %8447 = vtanh.f32 %v6086_v25  ;;  %v5714_v6 = vadd.f32 0.5, %v5710_v1  ;;  %v12848_v44 = vld [vmem:[#allocation179_spill] sm:$0xff] }
 0x92b   :  { %v8438_v42 = vpop.eup %8437  ;;  %v6095_v2 = vadd.f32 0.5, %v6091_v52  ;;  %v5639_v51 = vadd.f32 %v5638_v43, %v12848_v44 }
 0x92c   :  { %v12203_v24 = vpop.f32.mrb[248].mxu0  ;;  %v8440_v23 = vpop.eup %8439  ;;  %v5711_v56 = vmul.f32 0.5, %v8438_v42 }
 0x92d   :  { %v12206_v40 = vpop.f32.mrb[248].mxu1  ;;  %v7869_v29 = vpop.f32.mrb[249].mxu0  ;;  %v6092_v46 = vmul.f32 0.5, %v8440_v23  ;;  %v5718_v52 = vmul.f32 0.5, %v5639_v51  ;;  %v12859_v51 = vld [vmem:[#allocation185_spill] sm:$0xff] }
 0x92e   :  { %v7930_v33 = vpop.f32.mrb[249].mxu1  ;;  %v5715_v48 = vadd.f32 0.5, %v5711_v56  ;;  %v6020_v29 = vadd.f32 %v6019_v41, %v12850_v0 }
 0x92f   :  { %v8442_v12 = vpop.eup %8441  ;;  %v6096_v38 = vadd.f32 0.5, %v6092_v46  ;;  %v12855_v46 = vld [vmem:[#allocation190_spill] sm:$0xff]  ;;  %8449 = vtanh.f32 %v5718_v52 }
 0x930   :  { %v12208_v22 = vpop.f32.mrb[250].mxu0  ;;  %v8444_v4 = vpop.eup %8443  ;;  %v5712_v8 = vmul.f32 0.5, %v8442_v12  ;;  %v6099_v56 = vmul.f32 0.5, %v6020_v29 }
 0x931   :  { %v12210_v32 = vpop.f32.mrb[250].mxu1  ;;  %v7872_v19 = vpop.f32.mrb[251].mxu0  ;;  %v6093_v53 = vmul.f32 0.5, %v8444_v4  ;;  %v12856_v4 = vld [vmem:[#allocation194_spill] sm:$0xff] }
 0x932   :  { %v7933_v62 = vpop.f32.mrb[251].mxu1  ;;  %v5716_v7 = vadd.f32 0.5, %v5712_v8  ;;  %8451 = vtanh.f32 %v6099_v56 }
 0x933   :  { %v8446_v20 = vpop.eup %8445  ;;  %v6097_v23 = vadd.f32 0.5, %v6093_v53 }
 0x934   :  { %v12212_v49 = vpop.f32.mrb[252].mxu0  ;;  %v8448_v35 = vpop.eup %8447  ;;  %v5713_v19 = vmul.f32 0.5, %v8446_v20 }
 0x935   :  { %v12214_v3 = vpop.f32.mrb[252].mxu1  ;;  %v7875_v60 = vpop.f32.mrb[253].mxu0  ;;  %v6094_v42 = vmul.f32 0.5, %v8448_v35 }
 0x936   :  { %v7936_v55 = vpop.f32.mrb[253].mxu1 }
 0x937   :  { %v12852_v55 = vld [vmem:[#allocation195_spill] sm:$0xff]  ;;  %v6098_v8 = vadd.f32 0.5, %v6094_v42 }
 0x938   :  { %v5658_v39 = vpop.f32.mrb[254].mxu0 }
 0x939   :  { %v5659_v14 = vadd.f32 %v5658_v39, %v12845_v34  ;;  %v6039_v9 = vpop.f32.mrb[254].mxu1  ;;  %v7878_v58 = vpop.f32.mrb[255].mxu0  ;;  %v12853_v34 = vld [vmem:[#allocation178_spill] sm:$0xff] }
 0x93a   :  { %v6040_v21 = vadd.f32 %v6039_v9, %v12846_v16  ;;  %v7939_v10 = vpop.f32.mrb[255].mxu1 }
 0x93b   :  { %v5734_v28 = vmul.f32 %v5714_v6, %v5659_v14  ;;  %v5644_v14 = vadd.f32 %v12203_v24, %v12853_v34  ;;  %v12854_v6 = vld [vmem:[#allocation47_spill] sm:$0xff] }
 0x93c   :  { %v6115_v11 = vmul.f32 %v6095_v2, %v6040_v21  ;;  %v5663_v54 = vpop.f32.mrb[0].mxu0  ;;  %v6025_v9 = vadd.f32 %v12206_v40, %v12854_v6  ;;  %v5717_v21 = vadd.f32 0.5, %v5713_v19  ;;  %v12858_v40 = vld [vmem:[#allocation193_spill] sm:$0xff] }
 0x93d   :  { %v5664_v13 = vadd.f32 %v5663_v54, %v12847_v26  ;;  %v6044_v18 = vpop.f32.mrb[0].mxu1  ;;  %v7881_v45 = vpop.f32.mrb[1].mxu0  ;;  %v6030_v20 = vadd.f32 %v12210_v32, %v12858_v40  ;;  %v12868_v40 = vld [vmem:[#allocation198_spill] sm:$0xff] }
 0x93e   :  { %v6045_v31 = vadd.f32 %v6044_v18, %v12849_v5  ;;  %v7942_v47 = vpop.f32.mrb[1].mxu1  ;;  %v6100_v45 = vmul.f32 0.5, %v6025_v9 }
 0x93f   :  { %v5735_v33 = vmul.f32 %v5715_v48, %v5664_v13  ;;  %v5719_v13 = vmul.f32 0.5, %v5644_v14  ;;  %v12857_v48 = vld [vmem:[#allocation189_spill] sm:$0xff]  ;;  %v12860_v47 = vld [vmem:[#allocation187_spill] sm:$0xff] }
 0x940   :  { %v6116_v59 = vmul.f32 %v6096_v38, %v6045_v31  ;;  %v5668_v25 = vpop.f32.mrb[2].mxu0  ;;  %v5649_v24 = vadd.f32 %v12208_v22, %v12857_v48 }
 0x941   :  { %v5669_v62 = vadd.f32 %v5668_v25, %v12851_v27  ;;  %v6049_v1 = vpop.f32.mrb[2].mxu1  ;;  %v7884_v60 = vpop.f32.mrb[3].mxu0  ;;  %8453 = vtanh.f32 %v5719_v13  ;;  %v12861_v25 = vld [vmem:[#allocation188_spill] sm:$0xff]  ;;  %v6101_v27 = vmul.f32 0.5, %v6030_v20 }
 0x942   :  { %v6050_v43 = vadd.f32 %v6049_v1, %v12852_v55  ;;  %v7945_v39 = vpop.f32.mrb[3].mxu1  ;;  %v5720_v29 = vmul.f32 0.5, %v5649_v24  ;;  %v5654_v22 = vadd.f32 %v12212_v49, %v12861_v25  ;;  %8455 = vtanh.f32 %v6100_v45  ;;  %v12863_v60 = vld [vmem:[#allocation184_spill] sm:$0xff] }
 0x943   :  { %v5736_v41 = vmul.f32 %v5716_v7, %v5669_v62  ;;  %v12862_v62 = vld [vmem:[#allocation192_spill] sm:$0xff] }
 0x944   :  { %v6117_v58 = vmul.f32 %v6097_v23, %v6050_v43  ;;  %v5673_v12 = vpop.f32.mrb[4].mxu0  ;;  %v6035_v32 = vadd.f32 %v12214_v3, %v12862_v62  ;;  %v12864_v43 = vld [vmem:[#allocation186_spill] sm:$0xff]  ;;  %v5721_v56 = vmul.f32 0.5, %v5654_v22 }
 0x945   :  { %v5674_v16 = vadd.f32 %v5673_v12, %v12855_v46  ;;  %v6054_v2 = vpop.f32.mrb[4].mxu1  ;;  %v7887_v10 = vpop.f32.mrb[5].mxu0 }
 0x946   :  { %v6055_v54 = vadd.f32 %v6054_v2, %v12856_v4  ;;  %v7948_v26 = vpop.f32.mrb[5].mxu1  ;;  %v6102_v34 = vmul.f32 0.5, %v6035_v32 }
 0x947   :  { %v5737_v18 = vmul.f32 %v5717_v21, %v5674_v16  ;;  %v12866_v16 = vld [vmem:[#allocation199_spill] sm:$0xff] }
 0x948   :  { %v12234_v53 = vmul.f32 %v6098_v8, %v6055_v54  ;;  %v5678_v44 = vpop.f32.mrb[6].mxu0 }
 0x949   :  { %v5679_v5 = vadd.f32 %v5678_v44, %v12859_v51  ;;  %v6059_v31 = vpop.f32.mrb[6].mxu1  ;;  %v7890_v38 = vpop.f32.mrb[7].mxu0 }
 0x94a   :  { %v6060_v35 = vadd.f32 %v6059_v31, %v12860_v47  ;;  %v7951_v0 = vpop.f32.mrb[7].mxu1  ;;  %v5496_v47 = vpop.permute.xlu0 %5495 }
 0x94b   :  { %v5738_v19 = vadd.f32 %v5734_v28, %v5679_v5  ;;  %v8450_v28 = vpop.eup %8449  ;;  %v5877_v5 = vpop.permute.xlu1 %5876 }
 0x94c   :  { %v6119_v7 = vadd.f32 %v6115_v11, %v6060_v35  ;;  %v5683_v1 = vpop.f32.mrb[8].mxu0  ;;  %v8452_v3 = vpop.eup %8451  ;;  %v12865_v11 = vld [vmem:[#allocation197_spill] sm:$0xff]  ;;  %v5726_v10 = vmul.f32 0.5, %v8450_v28 }
 0x94d   :  { %8457 = vtanh.f32 %v5738_v19  ;;  %v5684_v42 = vadd.f32 %v5683_v1, %v12863_v60  ;;  %v6064_v52 = vpop.f32.mrb[8].mxu1  ;;  %v7893_v55 = vpop.f32.mrb[9].mxu0  ;;  %v6107_v54 = vmul.f32 0.5, %v8452_v3 }
 0x94e   :  { %8459 = vtanh.f32 %v6119_v7  ;;  %v6065_v23 = vadd.f32 %v6064_v52, %v12864_v43  ;;  %v7954_v39 = vpop.f32.mrb[9].mxu1  ;;  %v8454_v26 = vpop.eup %8453  ;;  %v5730_v31 = vadd.f32 0.5, %v5726_v10 }
 0x94f   :  { %8461 = vtanh.f32 %v5720_v29  ;;  %v5739_v49 = vadd.f32 %v5735_v33, %v5684_v42  ;;  %v8456_v45 = vpop.eup %8455  ;;  %v6111_v35 = vadd.f32 0.5, %v6107_v54 }
 0x950   :  { %8463 = vtanh.f32 %v6101_v27  ;;  %v6120_v14 = vadd.f32 %v6116_v59, %v6065_v23  ;;  %v5688_v6 = vpop.f32.mrb[10].mxu0  ;;  %v12867_v59 = vld [vmem:[#allocation196_spill] sm:$0xff]  ;;  %v6108_v19 = vmul.f32 0.5, %v8456_v45 }
 0x951   :  { %8465 = vtanh.f32 %v5739_v49  ;;  %v5689_v9 = vadd.f32 %v5688_v6, %v12865_v11  ;;  %v6069_v12 = vpop.f32.mrb[10].mxu1  ;;  %v7896_v46 = vpop.f32.mrb[11].mxu0 }
 0x952   :  { %8467 = vtanh.f32 %v6120_v14  ;;  %v6070_v21 = vadd.f32 %v6069_v12, %v12866_v16  ;;  %v7957_v2 = vpop.f32.mrb[11].mxu1  ;;  %v6112_v49 = vadd.f32 0.5, %v6108_v19 }
 0x953   :  { %8469 = vtanh.f32 %v5721_v56  ;;  %v5740_v4 = vadd.f32 %v5736_v41, %v5689_v9 }
 0x954   :  { %8471 = vtanh.f32 %v6102_v34  ;;  %v6121_v33 = vadd.f32 %v6117_v58, %v6070_v21  ;;  %v5693_v8 = vpop.f32.mrb[12].mxu0  ;;  %v5727_v58 = vmul.f32 0.5, %v8454_v26 }
 0x955   :  { %8473 = vtanh.f32 %v5740_v4  ;;  %v5694_v13 = vadd.f32 %v5693_v8, %v12867_v59  ;;  %v6074_v48 = vpop.f32.mrb[12].mxu1  ;;  %v7899_v24 = vpop.f32.mrb[13].mxu0 }
 0x956   :  { %8475 = vtanh.f32 %v6121_v33  ;;  %v6075_v20 = vadd.f32 %v6074_v48, %v12868_v40  ;;  %v7960_v44 = vpop.f32.mrb[13].mxu1  ;;  %v5731_v43 = vadd.f32 0.5, %v5727_v58 }
 0x957   :  { %v8458_v51 = vpop.eup %8457  ;;  %v5741_v38 = vadd.f32 %v5737_v18, %v5694_v13 }
 0x958   :  { %v8460_v41 = vpop.eup %8459  ;;  %v6122_v0 = vadd.f32 %v12234_v53, %v6075_v20  ;;  %v5698_v29 = vpop.f32.mrb[14].mxu0  ;;  %v5746_v25 = vsub.f32 %v12013_v61, %v8458_v51 }
 0x959   :  { %v8462_v22 = vpop.eup %8461  ;;  %8477 = vtanh.f32 %v5741_v38  ;;  %v5699_v27 = vadd.f32 %v5698_v29, %v5496_v47  ;;  %v6079_v62 = vpop.f32.mrb[14].mxu1  ;;  %v6127_v32 = vsub.f32 %v12016_v36, %v8460_v41 }
 0x95a   :  { %v7902_v7 = vpop.f32.mrb[15].mxu0  ;;  %v8464_v1 = vpop.eup %8463  ;;  %8479 = vtanh.f32 %v6122_v0  ;;  %v6080_v18 = vadd.f32 %v6079_v62, %v5877_v5  ;;  %v5750_v60 = vmul.f32 %v5746_v25, %v5730_v31  ;;  %v5728_v23 = vmul.f32 0.5, %v8462_v22 }
 0x95b   :  { %v7963_v42 = vpop.f32.mrb[15].mxu1  ;;  %v8466_v52 = vpop.eup %8465  ;;  %6139 = vst [vmem:[#allocation2 + $0x6] sm:$0x1] %v5699_v27  ;;  %v6131_v55 = vmul.f32 %v6127_v32, %v6111_v35  ;;  %v6109_v28 = vmul.f32 0.5, %v8464_v1 }
 0x95c   :  { %v8468_v53 = vpop.eup %8467  ;;  %6140 = vst [vmem:[#allocation3 + $0x1] sm:$0x1] %v6080_v18  ;;  %v5747_v61 = vsub.f32 %v12018_v63, %v8466_v52  ;;  %v5754_v39 = vadd.f32 %v8458_v51, %v5750_v60  ;;  %v5732_v12 = vadd.f32 0.5, %v5728_v23  ;;  %v6303_v29 = vpop.permute.xlu0 %6302 }
 0x95d   :  { %v8470_v56 = vpop.eup %8469  ;;  %v6128_v36 = vsub.f32 %v12021_v57, %v8468_v53  ;;  %v6135_v34 = vadd.f32 %v8460_v41, %v6131_v55  ;;  %v6113_v2 = vadd.f32 0.5, %v6109_v28 }
 0x95e   :  { %v8472_v14 = vpop.eup %8471  ;;  %v5751_v6 = vmul.f32 %v5747_v61, %v5731_v43  ;;  %v5729_v46 = vmul.f32 0.5, %v8470_v56 }
 0x95f   :  { %v8474_v3 = vpop.eup %8473  ;;  %v6132_v11 = vmul.f32 %v6128_v36, %v6112_v49  ;;  %v6110_v10 = vmul.f32 0.5, %v8472_v14 }
 0x960   :  { %v8476_v9 = vpop.eup %8475  ;;  %v5755_v16 = vadd.f32 %v8466_v52, %v5751_v6  ;;  %v5748_v21 = vsub.f32 %v12029_v15, %v8474_v3  ;;  %v5733_v13 = vadd.f32 0.5, %v5729_v46 }
 0x961   :  { %v6136_v63 = vadd.f32 %v8468_v53, %v6132_v11  ;;  %v6129_v4 = vsub.f32 %v12033_v30, %v8476_v9  ;;  %v6114_v45 = vadd.f32 0.5, %v6110_v10 }
 0x962   :  { %v8079_v54 = vpack.c.bf16 %v5755_v16, %v5754_v39  ;;  %v5752_v33 = vmul.f32 %v5748_v21, %v5732_v12 }
 0x963   :  { %v8478_v8 = vpop.eup %8477  ;;  %v8085_v57 = vpack.c.bf16 %v6136_v63, %v6135_v34  ;;  %v6133_v26 = vmul.f32 %v6129_v4, %v6113_v2 }
 0x964   :  { %v8480_v59 = vpop.eup %8479  ;;  %8080 = vmatpush3.bf16.msra.mxu0 %v8079_v54  ;;  %v5749_v48 = vsub.f32 %v12036_v17, %v8478_v8  ;;  %v5756_v24 = vadd.f32 %v8474_v3, %v5752_v33  ;;  %v6141_v17 = vld [vmem:[%s12279_s2 + $0x80] sm:$0x1]  ;;  %s8481_s2 = scalar_lea.vmem %s6314_s29, 128 }
 0x965   :  { %8086 = vmatpush3.bf16.msra.mxu1 %v8085_v57  ;;  %8081 = vmatprep.subr.bf16.mxu0 %v12558_v50  ;;  %v6130_v15 = vsub.f32 %v12038_v37, %v8480_v59  ;;  %v6137_v40 = vadd.f32 %v8476_v9, %v6133_v26  ;;  %v6142_v37 = vld [vmem:[%s12280_s3 + $0x80] sm:$0x1]  ;;  %p8482_p0 = scmp.ne.s32.totalorder %s6314_s29, %s8481_s2  ;;  %p8487_p2 = scmp.lt.s32.totalorder %s8481_s2, %s8481_s2 }
 0x966   :  { %8087 = vmatprep.subr.bf16.mxu1 %v12558_v50  ;;  %v5753_v30 = vmul.f32 %v5749_v48, %v5733_v13 }
 0x967   :  { %v6134_v20 = vmul.f32 %v6130_v15, %v6114_v45  ;;  %p8488_p3 = por %p8487_p2, %p8486_p1 }
 0x968   :  { %v5757_v44 = vadd.f32 %v8478_v8, %v5753_v30 }
 0x969   :  { %v6138_v51 = vadd.f32 %v8480_v59, %v6134_v20  ;;  %p8489_p4 = pnand %p8488_p3, %p8482_p0 }
 0x96a   :  { %v8082_v5 = vpack.c.bf16 %v5757_v44, %v5756_v24 }
 0x96b   :  { %v8088_v31 = vpack.c.bf16 %v6138_v51, %v6137_v40 }
 0x96c   :  { %8083 = vmatpush3.bf16.msra.mxu0 %v8082_v5 }
 0x96d   :  { %8089 = vmatpush3.bf16.msra.mxu1 %v8088_v31 }
 0x96f   :  { %7973 = vmatmul.mubr.msk.f32.vlgmr.msra.gmra.mrb[16].mxu0 %vm6143_vm3, %v6141_v17 }
 0x970   :  { %7984 = vmatmul.mubr.msk.f32.vlgmr.msra.gmra.mrb[16].mxu1 %vm6143_vm3, %v6142_v37 }
 0xa42   :  { %v6213_v50 = vpop.f32.mrb[16].mxu0 }
 0xa43   :  { %6217 = vst [vmem:[#allocation2 + $0x7] sm:$0x1] %v6213_v50  ;;  %v6287_v38 = vpop.f32.mrb[16].mxu1  ;;  %v7974_v41 = vpop.f32.mrb[17].mxu0 }
 0xa44   :  { %6291 = vst [vmem:[#allocation3] sm:$0x1] %v6287_v38  ;;  %v7985_v47 = vpop.f32.mrb[17].mxu1 }
 0xa4a   :  { %v6292_v35 = vld [vmem:[#allocation2] sm:$0xff] }
 0xa4b   :  { %v6293_v58 = vld [vmem:[#allocation3] sm:$0xff] }
 0xa4c   :  { %v6294_v0 = vadd.f32 %v6293_v58, %v6292_v35 }
 0xa4e   :  { %v6305_v25 = vadd.f32 %v6303_v29, %v6294_v0 }
 0xa50   :  { %6306 = vst [vmem:[#allocation5] sm:$0xff] %v6305_v25 }
 0xa51   :  { %8492 = shalt.err (!%p8489_p4)
}
 0xa52   :  { %s8493_s30 = scalar_lea.hbm %s12284_s7, 128 }
 0xa53   :  { %p8494_p5 = scmp.ne.s32.totalorder %s12284_s7, %s8493_s30  ;;  %p8497_p6 = scmp.lt.u32.totalorder %s8493_s30, %s12284_s7 }
 0xa55   :  { %p8499_p7 = pnand %p8497_p6, %p8494_p5 }
 0xa57   :  { %8502 = shalt.err (!%p8499_p7)
}
 0xa58   :  { %6316 = dma.vmem_to_hbm [thread:$0]  %s6314_s29, 128, %s12284_s7, [#allocation6]  }
 0xa59   :  { %8503 = dma.done.wait [#allocation6], 128  }
 0xa5a   :  { %8504 = vsyncadd [#allocation6], 4294967168 }
 0xa5b   :  { %6320 = vsyncpa [#allocation6], 1 }

</bundles_post_ra>
